<compile_context>
chip_gen: v7x
topology: tpu7x:2x2x1
jax: 0.10.0
libtpu: 0.0.40
codegen_flags: <defaults>
</compile_context>

<pallas_src>
import numpy as np
import jax
import jax.numpy as jnp
from jax import lax
from jax.experimental import pallas as pl
from jax.experimental.pallas import tpu as pltpu

jax.config.update("jax_default_matmul_precision", "highest")

NUM_CLASSES = 2  # ['cat', 'dog']


def _ceil_div(a, b):
    return -(-a // b)


def _round_up(a, b):
    return _ceil_div(a, b) * b


# --------------------------------------------------------------------------------------
# Fused Conv2d(valid, stride 1) + bias + ReLU + MaxPool2d(2, 2) as an MXU matmul.
#
#   cols[p, k, m] = x[b, ci, 2i+a+kh, 2j+c+kw]   p = 2a+c,  k = ci*K*K + kh*K + kw,
#                                                m = b*Hp*Wp + i*Wp + j
#   y_p   = W2d @ cols[p]                (Cout, M)   one pooling parity of the conv output
#   out   = relu(max_p y_p + bias)                   fused 2x2 max-pool + bias + ReLU
#
# grid = (M tiles ["parallel"], 4 parities ["arbitrary"]).  The output block is resident
# across the parity axis and serves as the running-max accumulator.
# --------------------------------------------------------------------------------------
def conv_relu_pool_kernel(w_ref, x_ref, b_ref, o_ref):
    p = pl.program_id(1)
    y = jnp.dot(w_ref[...], x_ref[0], preferred_element_type=jnp.float32)

    @pl.when(p == 0)
    def _():
        o_ref[...] = y

    @pl.when(p > 0)
    def _():
        o_ref[...] = jnp.maximum(o_ref[...], y)

    @pl.when(p == pl.num_programs(1) - 1)
    def _():
        o_ref[...] = jnp.maximum(o_ref[...] + b_ref[...], 0.0)


def conv_relu_pool(x, w, b, *, m_tile_target=4096):
    B, Cin, Hin, Win = x.shape
    Cout, _, K, _ = w.shape
    Ho, Wo = Hin - K + 1, Win - K + 1
    Hp, Wp = Ho // 2, Wo // 2
    Kc = Cin * K * K
    M = B * Hp * Wp

    # ---- JAX glue: im2col with 2x2-pool parity split (shifted-slice stacking). ----
    taps = []
    for kh in range(K):
        for kw in range(K):
            s = x[:, :, kh:kh + 2 * Hp, kw:kw + 2 * Wp].astype(jnp.float32)
            taps.append(s.reshape(B, Cin, Hp, 2, Wp, 2))
    t = jnp.stack(taps, axis=0)                        # (K*K, B, Cin, Hp, a, Wp, c)
    # -> (a, c, Cin, tap, B, Hp, Wp) -> (4, Cin*K*K, B*Hp*Wp): lane dim = M (dense).
    cols = t.transpose(4, 6, 2, 0, 1, 3, 5).reshape(4, Kc, M)

    # M tiling: at least 2 lane-dense tiles (megacore), ~m_tile_target rows per tile.
    nm = max(2, _ceil_div(M, m_tile_target))
    tm = _round_up(_ceil_div(M, nm), 128)
    Mpad = nm * tm
    cols = jnp.pad(cols, ((0, 0), (0, 0), (0, Mpad - M)))

    w2d = w.reshape(Cout, Kc).astype(jnp.float32)
    b2d = b.reshape(Cout, 1).astype(jnp.float32)

    out = pl.pallas_call(
        conv_relu_pool_kernel,
        out_shape=jax.ShapeDtypeStruct((Cout, Mpad), jnp.float32),
        grid=(nm, 4),
        in_specs=[
            pl.BlockSpec((Cout, Kc), lambda m, p: (0, 0)),      # conv weights (resident)
            pl.BlockSpec((1, Kc, tm), lambda m, p: (p, 0, m)),  # im2col parity tile
            pl.BlockSpec((Cout, 1), lambda m, p: (0, 0)),       # bias (resident)
        ],
        out_specs=pl.BlockSpec((Cout, tm), lambda m, p: (0, m)),
        compiler_params=pltpu.CompilerParams(
            dimension_semantics=("parallel", "arbitrary")),
    )(w2d, cols, b2d)

    # (Cout, M) -> (B, Cout, Hp, Wp)  (NCHW, matching torch)
    return out[:, :M].reshape(Cout, B, Hp, Wp).transpose(1, 0, 2, 3)


# --------------------------------------------------------------------------------------
# MLP head: fc1 (bf16-streamed K-tiled matmul, f32 VMEM accumulator) -> relu
#           -> fc2 -> relu -> fc3 (applied in the last grid step via pl.when)
# --------------------------------------------------------------------------------------
def mlp_head_kernel(x_ref, w1_ref, b1_ref, w2_ref, b2_ref, w3_ref, b3_ref,
                    o_ref, acc_ref):
    k = pl.program_id(0)

    @pl.when(k == 0)
    def _():
        acc_ref[...] = jnp.zeros_like(acc_ref)

    acc_ref[...] += jnp.dot(x_ref[...], w1_ref[...],
                            preferred_element_type=jnp.float32)

    @pl.when(k == pl.num_programs(0) - 1)
    def _():
        h1 = jnp.maximum(acc_ref[...] + b1_ref[...], 0.0)
        h2 = jnp.maximum(
            jnp.dot(h1, w2_ref[...], preferred_element_type=jnp.float32)
            + b2_ref[...], 0.0)
        o_ref[...] = (jnp.dot(h2, w3_ref[...], preferred_element_type=jnp.float32)
                      + b3_ref[...])


def mlp_head(xf, w1, b1, w2, b2, w3, b3, *, tk):
    B, Kp = xf.shape
    H1 = w1.shape[1]
    nk = Kp // tk
    return pl.pallas_call(
        mlp_head_kernel,
        out_shape=jax.ShapeDtypeStruct((B, w3.shape[1]), jnp.float32),
        grid=(nk,),
        in_specs=[
            pl.BlockSpec((B, tk), lambda k: (0, k)),       # bf16 activations
            pl.BlockSpec((tk, H1), lambda k: (k, 0)),      # bf16 fc1 weight K-tile
            pl.BlockSpec((1, H1), lambda k: (0, 0)),
            pl.BlockSpec(w2.shape, lambda k: (0, 0)),
            pl.BlockSpec((1, w2.shape[1]), lambda k: (0, 0)),
            pl.BlockSpec(w3.shape, lambda k: (0, 0)),
            pl.BlockSpec((1, w3.shape[1]), lambda k: (0, 0)),
        ],
        out_specs=pl.BlockSpec((B, w3.shape[1]), lambda k: (0, 0)),
        scratch_shapes=[pltpu.VMEM((B, H1), jnp.float32)],
        compiler_params=pltpu.CompilerParams(dimension_semantics=("arbitrary",)),
    )(xf, w1, b1, w2, b2, w3, b3)


# --------------------------------------------------------------------------------------
# Full forward pass (Pallas) and pure-JAX reference
# --------------------------------------------------------------------------------------
def cnn_forward(x, params):
    (w1c, b1c, w2c, b2c, wf1, bf1, wf2, bf2, wf3, bf3) = params
    a = conv_relu_pool(x, w1c, b1c)          # (B, 6, 110, 110)
    a = conv_relu_pool(a, w2c, b2c)          # (B, 16, 53, 53)
    B = a.shape[0]
    xf = a.reshape(B, -1)                    # NCHW flatten == torch.flatten(x, 1)
    kflat = xf.shape[1]                      # 16*53*53 = 44944
    tk = 11264                               # 4 K tiles (was 16 tiles of 2816)
    kpad = _round_up(kflat, tk)              # 45056
    H1 = 128                                 # fc1 hidden padded 120 -> 128 (lane-dense)

    # bf16 stream for the HBM-bound fc1 weight read; zero-padded rows/cols contribute 0.
    xf = jnp.pad(xf, ((0, 0), (0, kpad - kflat))).astype(jnp.bfloat16)
    w1p = jnp.pad(wf1.T, ((0, kpad - kflat), (0, H1 - wf1.shape[0]))).astype(jnp.bfloat16)
    b1p = jnp.pad(bf1, (0, H1 - bf1.shape[0]))[None, :]
    w2p = jnp.pad(wf2.T, ((0, H1 - wf2.shape[1]), (0, 0)))
    return mlp_head(xf, w1p, b1p, w2p, bf2[None, :], wf3.T, bf3[None, :], tk=tk)


def cnn_reference(x, params):
    (w1c, b1c, w2c, b2c, wf1, bf1, wf2, bf2, wf3, bf3) = params

    def conv(a, w, b):
        y = lax.conv_general_dilated(a, w, (1, 1), "VALID",
                                     dimension_numbers=("NCHW", "OIHW", "NCHW"))
        return y + b.reshape(1, -1, 1, 1)

    def pool(a):
        return lax.reduce_window(a, -jnp.inf, lax.max,
                                 (1, 1, 2, 2), (1, 1, 2, 2), "VALID")

    a = pool(jnp.maximum(conv(x, w1c, b1c), 0.0))
    a = pool(jnp.maximum(conv(a, w2c, b2c), 0.0))
    a = a.reshape(a.shape[0], -1)
    a = jnp.maximum(a @ wf1.T + bf1, 0.0)
    a = jnp.maximum(a @ wf2.T + bf2, 0.0)
    return a @ wf3.T + bf3


if __name__ == "__main__":
    key = jax.random.PRNGKey(0)
    ks = jax.random.split(key, 11)

    def uinit(k, shape, fan_in):
        bound = 1.0 / np.sqrt(fan_in)
        return jax.random.uniform(k, shape, jnp.float32, -bound, bound)

    params = (
        uinit(ks[0], (6, 3, 5, 5), 3 * 25),   uinit(ks[1], (6,), 3 * 25),        # conv1
        uinit(ks[2], (16, 6, 5, 5), 6 * 25),  uinit(ks[3], (16,), 6 * 25),       # conv2
        uinit(ks[4], (120, 16 * 53 * 53), 16 * 53 * 53),                          # fc1
        uinit(ks[5], (120,), 16 * 53 * 53),
        uinit(ks[6], (84, 120), 120),         uinit(ks[7], (84,), 120),          # fc2
        uinit(ks[8], (NUM_CLASSES, 84), 84),  uinit(ks[9], (NUM_CLASSES,), 84),  # fc3
    )

    # fc1 expects 16*53*53 features, which forces 224x224 spatial input; batch kept small.
    x = jax.random.normal(ks[10], (2, 3, 224, 224), jnp.float32)

    out = cnn_forward(x, params)
    jax.block_until_ready(out)

    ref = cnn_reference(x, params)
    assert out.shape == (2, NUM_CLASSES)
    # Tolerance loosened vs the all-f32 version because the fc1 weight/activation stream is
    # bf16 (per perf review); the conv path remains f32.  Estimated quantization error is
    # ~2e-4 abs on O(0.1) outputs, so 1e-2 leaves a wide margin.
    np.testing.assert_allclose(np.asarray(out), np.asarray(ref), rtol=1e-2, atol=1e-2)
    print("KERNEL_OK")
</pallas_src>

<mosaic_0001>
module attributes {stable_mosaic.version = 11 : i64} {
  func.func @conv_relu_pool_kernel(%arg0: i32, %arg1: i32, %arg2: memref<6x75xf32, #tpu.memory_space<vmem>>, %arg3: memref<1x75x4096xf32, #tpu.memory_space<vmem>>, %arg4: memref<6x1xf32, #tpu.memory_space<vmem>>, %arg5: memref<6x4096xf32, #tpu.memory_space<vmem>>) attributes {dimension_semantics = [#tpu.dimension_semantics<parallel>, #tpu.dimension_semantics<arbitrary>], iteration_bounds = array<i64: 6, 4>, scalar_prefetch = 0 : i64, scratch_operands = 0 : i64, tpu.core_type = #tpu.core_type<tc>, window_params = [{pipeline_mode = #tpu.pipeline_mode<synchronous>, transform_indices = @transform_0, window_bounds = array<i64: 6, 75>}, {transform_indices = @transform_1, window_bounds = array<i64: 1, 75, 4096>}, {pipeline_mode = #tpu.pipeline_mode<synchronous>, transform_indices = @transform_2, window_bounds = array<i64: 6, 1>}, {transform_indices = @transform_3, window_bounds = array<i64: 6, 4096>}]} {
    %c0 = arith.constant 0 : index
    %c0_0 = arith.constant 0 : index
    %0 = vector.load %arg2[%c0, %c0_0] : memref<6x75xf32, #tpu.memory_space<vmem>>, vector<6x75xf32>
    %c0_1 = arith.constant 0 : index
    %c0_2 = arith.constant 0 : index
    %c0_3 = arith.constant 0 : index
    %1 = vector.load %arg3[%c0_1, %c0_2, %c0_3] : memref<1x75x4096xf32, #tpu.memory_space<vmem>>, vector<1x75x4096xf32>
    %2 = vector.shape_cast %1 : vector<1x75x4096xf32> to vector<75x4096xf32>
    %cst = arith.constant dense<0.000000e+00> : vector<6x4096xf32>
    %3 = tpu.matmul %0, %2, %cst {dimension_numbers = #tpu.dot_dimension_numbers<[1], [0], [0], [1], [0, 0, 1, 1], [], []>, precision = #tpu.contract_precision<fp32>} : vector<6x75xf32>, vector<75x4096xf32>, vector<6x4096xf32> -> vector<6x4096xf32>
    %c0_i32 = arith.constant 0 : i32
    %4 = arith.cmpi eq, %arg1, %c0_i32 : i32
    %5 = arith.extui %4 : i1 to i32
    %c0_i32_4 = arith.constant 0 : i32
    %6 = arith.cmpi ne, %5, %c0_i32_4 : i32
    scf.if %6 {
      %c0_8 = arith.constant 0 : index
      %c0_9 = arith.constant 0 : index
      %13 = vector.load %arg5[%c0_8, %c0_9] : memref<6x4096xf32, #tpu.memory_space<vmem>>, vector<6x4096xf32>
      tpu.vector_store %arg5[%c0_8, %c0_9], %3 {strides = array<i32>} : memref<6x4096xf32, #tpu.memory_space<vmem>>, vector<6x4096xf32>,
    } else {
    }
    %c0_i32_5 = arith.constant 0 : i32
    %7 = arith.cmpi sgt, %arg1, %c0_i32_5 : i32
    %8 = arith.extui %7 : i1 to i32
    %c0_i32_6 = arith.constant 0 : i32
    %9 = arith.cmpi ne, %8, %c0_i32_6 : i32
    scf.if %9 {
      %c0_8 = arith.constant 0 : index
      %c0_9 = arith.constant 0 : index
      %13 = vector.load %arg5[%c0_8, %c0_9] : memref<6x4096xf32, #tpu.memory_space<vmem>>, vector<6x4096xf32>
      %14 = arith.maximumf %13, %3 : vector<6x4096xf32>
      %c0_10 = arith.constant 0 : index
      %c0_11 = arith.constant 0 : index
      %15 = vector.load %arg5[%c0_10, %c0_11] : memref<6x4096xf32, #tpu.memory_space<vmem>>, vector<6x4096xf32>
      tpu.vector_store %arg5[%c0_10, %c0_11], %14 {strides = array<i32>} : memref<6x4096xf32, #tpu.memory_space<vmem>>, vector<6x4096xf32>,
    } else {
    }
    %c3_i32 = arith.constant 3 : i32
    %10 = arith.cmpi eq, %arg1, %c3_i32 : i32
    %11 = arith.extui %10 : i1 to i32
    %c0_i32_7 = arith.constant 0 : i32
    %12 = arith.cmpi ne, %11, %c0_i32_7 : i32
    scf.if %12 {
      %c0_8 = arith.constant 0 : index
      %c0_9 = arith.constant 0 : index
      %13 = vector.load %arg5[%c0_8, %c0_9] : memref<6x4096xf32, #tpu.memory_space<vmem>>, vector<6x4096xf32>
      %c0_10 = arith.constant 0 : index
      %c0_11 = arith.constant 0 : index
      %14 = vector.load %arg4[%c0_10, %c0_11] : memref<6x1xf32, #tpu.memory_space<vmem>>, vector<6x1xf32>
      %15 = vector.broadcast %14 : vector<6x1xf32> to vector<6x4096xf32>
      %16 = arith.addf %13, %15 : vector<6x4096xf32>
      %cst_12 = arith.constant 0.000000e+00 : f32
      %17 = vector.broadcast %cst_12 : f32 to vector<6x4096xf32>
      %18 = arith.maximumf %16, %17 : vector<6x4096xf32>
      %c0_13 = arith.constant 0 : index
      %c0_14 = arith.constant 0 : index
      %19 = vector.load %arg5[%c0_13, %c0_14] : memref<6x4096xf32, #tpu.memory_space<vmem>>, vector<6x4096xf32>
      tpu.vector_store %arg5[%c0_13, %c0_14], %18 {strides = array<i32>} : memref<6x4096xf32, #tpu.memory_space<vmem>>, vector<6x4096xf32>,
    } else {
    }
    return
  }
  func.func @transform_0(%arg0: i32, %arg1: i32) -> (i32, i32) {
    %c0_i32 = arith.constant 0 : i32
    %c0_i32_0 = arith.constant 0 : i32
    %c0_i32_1 = arith.constant 0 : i32
    return %c0_i32, %c0_i32_0 : i32, i32
  }
  func.func @transform_1(%arg0: i32, %arg1: i32) -> (i32, i32, i32) {
    %c0_i32 = arith.constant 0 : i32
    %c0_i32_0 = arith.constant 0 : i32
    return %arg1, %c0_i32, %arg0 : i32, i32, i32
  }
  func.func @transform_2(%arg0: i32, %arg1: i32) -> (i32, i32) {
    %c0_i32 = arith.constant 0 : i32
    %c0_i32_0 = arith.constant 0 : i32
    %c0_i32_1 = arith.constant 0 : i32
    return %c0_i32, %c0_i32_0 : i32, i32
  }
  func.func @transform_3(%arg0: i32, %arg1: i32) -> (i32, i32) {
    %c0_i32 = arith.constant 0 : i32
    %c0_i32_0 = arith.constant 0 : i32
    return %c0_i32, %arg0 : i32, i32
  }
}

</mosaic_0001>

<bundles_post_ra>
// kernel: tpu_custom_call.1
= control target key start
LH: loop header
LB: loop body
LE: loop exit
PB: predicated region body
PF: predicated region fallthrough
CT: control target
= control target key end

     0   :  { %8 = vsyncpa [#allocation4], 0  ;;  %s23231_s0 = inlined_call_operand.vmem [shape: f32[6,75], index: 0, kind: input, shape index: {}]   ;;  %s23232_s1 = inlined_call_operand.vmem [shape: f32[4,75,24576], index: 1, kind: input, shape index: {}]   ;;  %s23233_s2 = inlined_call_operand.vmem [shape: f32[6,1], index: 2, kind: input, shape index: {}]   ;;  %s23234_s3 = inlined_call_operand.hbm [shape: f32[6,24576], index: 3, kind: output, shape index: {}]  }
   0x1   :  { %10 = vsyncpa [#allocation4 + $0x1], 0  ;;  %s15144_s12 = smov 0   ;;  %s15146_s13 = smov 0  }
   0x2   :  { %s15148_s14 = smov 0   ;;  %s15150_s15 = smov 0  }
   0x3   :  { %s15152_s16 = smov 0   ;;  %s15154_s17 = smov 0  }
   0x4   :  { %s15156_s18 = smov 0   ;;  %s15158_s19 = smov 0  }
   0x5   :  { %s15160_s20 = smov 0   ;;  %s15162_s21 = smov 0  }
   0x6 LB: > { %s12819_s22 = sadd.s32 4294967295, %s15119_s21   ;;  %s12820_s23 = sadd.s32 4294967294, %s15119_s21   ;;  %s15119_s21 = sphi %s15162_s21, %s16_s21   ;;  %s15115_s20 = sphi %s15160_s20, %s26761_s20   ;;  %s15111_s19 = sphi %s15158_s19, %s26760_s19   ;;  %s15107_s18 = sphi %s15156_s18, %s26759_s18   ;;  %s15103_s17 = sphi %s15154_s17, %s26758_s17   ;;  %s15099_s16 = sphi %s15152_s16, %s26757_s16   ;;  %s15095_s15 = sphi %s15150_s15, %s26756_s15   ;;  %s15091_s14 = sphi %s15148_s14, %s26755_s14   ;;  %s15087_s13 = sphi %s15146_s13, %s26754_s13   ;;  %s15083_s12 = sphi %s15144_s12, %s26753_s12  }
   0x7   : > { %s25_s24 = sadd.s32 1, %s15111_s19  ;;  %s28_s25 = sadd.s32 1, %s15115_s20 }
   0x8   : > { %p26_p0 = scmp.ge.s32.totalorder %s25_s24, 4  ;;  %s58_s26 = sadd.s32 1, %s15099_s16 }
   0x9   : > { %p65_p1 = scmp.ne.s32.totalorder %s15099_s16, %s15095_s15  ;;  %p66_p2 = scmp.eq.s32.totalorder %s15119_s21, 0 }
   0xa   : > { %s26763_s24 = smov (%p26_p0, %s25_s24), 0  ;;  %s26765_s25 = smov (!%p26_p0, %s28_s25), %s15115_s20 }
   0xb   : > { %s53_s27 = ssub.s32 %s15111_s19, %s26763_s24  ;;  %p15207_p3 = por %p66_p2, %p65_p1 }
   0xc   : > { %p30_p4 = scmp.ge.s32.totalorder %s26765_s25, 6  ;;  %s105_s29 = sadd.s32 1, %s15091_s14 }
   0xd   : > { %p115_p5 = scmp.ne.s32.totalorder %s15091_s14, %s15087_s13  ;;  %p116_p6 = scmp.eq.s32.totalorder %s12819_s22, 23 }
   0xe   : > { %s26767_s25 = smov (%p30_p4, %s26765_s25), 0  ;;  %p121_p8 = scmp.ne.s32.totalorder %s15087_s13, %s15083_s12 }
   0xf   : > { %p15216_p7 = por %p116_p6, %p115_p5  ;;  %s54_s4 = ssub.s32 %s15115_s20, %s26767_s25 }
  0x10   : > { %p122_p9 = scmp.eq.s32.totalorder %s12820_s23, 23  ;;  %s55_s5 = sor.u32 %s54_s4, %s53_s27 }
  0x11   : > { %p103_p10 = scmp.eq.s32.totalorder %s54_s4, 0  ;;  %p56_p11 = scmp.eq.s32.totalorder %s55_s5, 0 }
  0x12   : > { %p15224_p12 = por %p122_p9, %p121_p8  ;;  %p12822_p13 = scmp.ge.s32.totalorder %s15119_s21, 24 }
  0x13   : > { %s15229_s7 = scalar_select %p103_p10, %s15091_s14, %s105_s29  }
  0x14   : > { %s15232_s8 = scalar_select %p56_p11, %s15099_s16, %s58_s26  }
  0x15   : > { %144 = sbr.rel (%p12822_p13) target bundleno = 196 (0xc4), region = 24 }
  0x1c   : > { %147 = sbr.rel (!%p15207_p3) target bundleno = 196 (0xc4), region = 28  ;;  %s149_s9 = sand.u32 (%p15207_p3), 1, %s15099_s16  }
  0x1d   : > { %s14916_s10 = smul.u32 (%p15207_p3), 2560, %s149_s9  ;;  %s12823_s11 = sshll.u32 (%p15207_p3), %s15115_s20, 5 }
  0x1e   : > { %s14917_s22 = smul.u32 (%p15207_p3), 1920, %s15111_s19 }
  0x1f   : > { %s15248_s28 = scalar_lea.vmem (%p15207_p3), [#allocation2], %s14916_s10 }
  0x20   : > { %s154_s23 = sadd.s32 (%p15207_p3), %s14917_s22, %s12823_s11 }
  0x21   : > { %s12824_s27 = sshll.u32 (%p15207_p3), %s154_s23, 3 }
  0x22   : > { %s15243_s26 = scalar_lea.vmem (%p15207_p3), %s23232_s1, %s12824_s27 }
  0x23   : > { %v169_v0 = vld [vmem:[%s15243_s26] sm:$0xff]  ;;  %v171_v1 = vld [vmem:[%s15243_s26 + $0x8] sm:$0xff]  ;;  %v173_v2 = vld [vmem:[%s15243_s26 + $0x10] sm:$0xff] }
  0x24   : > { %170 = vst [vmem:[%s15248_s28] sm:$0xff] %v169_v0  ;;  %172 = vst [vmem:[%s15248_s28 + $0x8] sm:$0xff] %v171_v1  ;;  %v175_v3 = vld [vmem:[%s15243_s26 + $0x18] sm:$0xff]  ;;  %v177_v4 = vld [vmem:[%s15243_s26 + $0x20] sm:$0xff] }
  0x25   : > { %174 = vst [vmem:[%s15248_s28 + $0x10] sm:$0xff] %v173_v2  ;;  %v179_v5 = vld [vmem:[%s15243_s26 + $0x28] sm:$0xff]  ;;  %176 = vst [vmem:[%s15248_s28 + $0x18] sm:$0xff] %v175_v3  ;;  %v181_v6 = vld [vmem:[%s15243_s26 + $0x30] sm:$0xff] }
  0x26   : > { %178 = vst [vmem:[%s15248_s28 + $0x20] sm:$0xff] %v177_v4  ;;  %180 = vst [vmem:[%s15248_s28 + $0x28] sm:$0xff] %v179_v5  ;;  %v183_v7 = vld [vmem:[%s15243_s26 + $0x38] sm:$0xff]  ;;  %v185_v8 = vld [vmem:[%s15243_s26 + $0x40] sm:$0xff] }
  0x27   : > { %182 = vst [vmem:[%s15248_s28 + $0x30] sm:$0xff] %v181_v6  ;;  %184 = vst [vmem:[%s15248_s28 + $0x38] sm:$0xff] %v183_v7  ;;  %v187_v9 = vld [vmem:[%s15243_s26 + $0x48] sm:$0xff]  ;;  %v189_v10 = vld [vmem:[%s15243_s26 + $0x50] sm:$0xff] }
  0x28   : > { %186 = vst [vmem:[%s15248_s28 + $0x40] sm:$0xff] %v185_v8  ;;  %v191_v11 = vld [vmem:[%s15243_s26 + $0x58] sm:$0xff]  ;;  %188 = vst [vmem:[%s15248_s28 + $0x48] sm:$0xff] %v187_v9  ;;  %v193_v12 = vld [vmem:[%s15243_s26 + $0x60] sm:$0xff] }
  0x29   : > { %190 = vst [vmem:[%s15248_s28 + $0x50] sm:$0xff] %v189_v10  ;;  %192 = vst [vmem:[%s15248_s28 + $0x58] sm:$0xff] %v191_v11  ;;  %v195_v13 = vld [vmem:[%s15243_s26 + $0x68] sm:$0xff]  ;;  %v197_v14 = vld [vmem:[%s15243_s26 + $0x70] sm:$0xff] }
  0x2a   : > { %194 = vst [vmem:[%s15248_s28 + $0x60] sm:$0xff] %v193_v12  ;;  %196 = vst [vmem:[%s15248_s28 + $0x68] sm:$0xff] %v195_v13  ;;  %v199_v15 = vld [vmem:[%s15243_s26 + $0x78] sm:$0xff]  ;;  %v201_v16 = vld [vmem:[%s15243_s26 + $0x80] sm:$0xff] }
  0x2b   : > { %198 = vst [vmem:[%s15248_s28 + $0x70] sm:$0xff] %v197_v14  ;;  %v203_v17 = vld [vmem:[%s15243_s26 + $0x88] sm:$0xff]  ;;  %200 = vst [vmem:[%s15248_s28 + $0x78] sm:$0xff] %v199_v15  ;;  %v205_v18 = vld [vmem:[%s15243_s26 + $0x90] sm:$0xff] }
  0x2c   : > { %202 = vst [vmem:[%s15248_s28 + $0x80] sm:$0xff] %v201_v16  ;;  %204 = vst [vmem:[%s15248_s28 + $0x88] sm:$0xff] %v203_v17  ;;  %v207_v19 = vld [vmem:[%s15243_s26 + $0x98] sm:$0xff]  ;;  %v209_v20 = vld [vmem:[%s15243_s26 + $0xa0] sm:$0xff] }
  0x2d   : > { %206 = vst [vmem:[%s15248_s28 + $0x90] sm:$0xff] %v205_v18  ;;  %208 = vst [vmem:[%s15248_s28 + $0x98] sm:$0xff] %v207_v19  ;;  %v211_v21 = vld [vmem:[%s15243_s26 + $0xa8] sm:$0xff]  ;;  %v213_v22 = vld [vmem:[%s15243_s26 + $0xb0] sm:$0xff] }
  0x2e   : > { %210 = vst [vmem:[%s15248_s28 + $0xa0] sm:$0xff] %v209_v20  ;;  %v215_v23 = vld [vmem:[%s15243_s26 + $0xb8] sm:$0xff]  ;;  %212 = vst [vmem:[%s15248_s28 + $0xa8] sm:$0xff] %v211_v21  ;;  %v217_v24 = vld [vmem:[%s15243_s26 + $0xc0] sm:$0xff] }
  0x2f   : > { %214 = vst [vmem:[%s15248_s28 + $0xb0] sm:$0xff] %v213_v22  ;;  %216 = vst [vmem:[%s15248_s28 + $0xb8] sm:$0xff] %v215_v23  ;;  %v219_v25 = vld [vmem:[%s15243_s26 + $0xc8] sm:$0xff]  ;;  %v221_v26 = vld [vmem:[%s15243_s26 + $0xd0] sm:$0xff] }
  0x30   : > { %218 = vst [vmem:[%s15248_s28 + $0xc0] sm:$0xff] %v217_v24  ;;  %220 = vst [vmem:[%s15248_s28 + $0xc8] sm:$0xff] %v219_v25  ;;  %v223_v27 = vld [vmem:[%s15243_s26 + $0xd8] sm:$0xff]  ;;  %v225_v28 = vld [vmem:[%s15243_s26 + $0xe0] sm:$0xff] }
  0x31   : > { %222 = vst [vmem:[%s15248_s28 + $0xd0] sm:$0xff] %v221_v26  ;;  %v227_v29 = vld [vmem:[%s15243_s26 + $0xe8] sm:$0xff]  ;;  %224 = vst [vmem:[%s15248_s28 + $0xd8] sm:$0xff] %v223_v27  ;;  %v229_v30 = vld [vmem:[%s15243_s26 + $0xf0] sm:$0xff] }
  0x32   : > { %226 = vst [vmem:[%s15248_s28 + $0xe0] sm:$0xff] %v225_v28  ;;  %228 = vst [vmem:[%s15248_s28 + $0xe8] sm:$0xff] %v227_v29  ;;  %v231_v31 = vld [vmem:[%s15243_s26 + $0xf8] sm:$0xff]  ;;  %v233_v32 = vld [vmem:[%s15243_s26 + $0x600] sm:$0xff] }
  0x33   : > { %230 = vst [vmem:[%s15248_s28 + $0xf0] sm:$0xff] %v229_v30  ;;  %232 = vst [vmem:[%s15248_s28 + $0xf8] sm:$0xff] %v231_v31  ;;  %v235_v33 = vld [vmem:[%s15243_s26 + $0x608] sm:$0xff]  ;;  %v237_v34 = vld [vmem:[%s15243_s26 + $0x610] sm:$0xff] }
  0x34   : > { %234 = vst [vmem:[%s15248_s28 + $0x100] sm:$0xff] %v233_v32  ;;  %v239_v35 = vld [vmem:[%s15243_s26 + $0x618] sm:$0xff]  ;;  %236 = vst [vmem:[%s15248_s28 + $0x108] sm:$0xff] %v235_v33  ;;  %v241_v36 = vld [vmem:[%s15243_s26 + $0x620] sm:$0xff] }
  0x35   : > { %238 = vst [vmem:[%s15248_s28 + $0x110] sm:$0xff] %v237_v34  ;;  %240 = vst [vmem:[%s15248_s28 + $0x118] sm:$0xff] %v239_v35  ;;  %v243_v37 = vld [vmem:[%s15243_s26 + $0x628] sm:$0xff]  ;;  %v245_v38 = vld [vmem:[%s15243_s26 + $0x630] sm:$0xff] }
  0x36   : > { %242 = vst [vmem:[%s15248_s28 + $0x120] sm:$0xff] %v241_v36  ;;  %244 = vst [vmem:[%s15248_s28 + $0x128] sm:$0xff] %v243_v37  ;;  %v247_v39 = vld [vmem:[%s15243_s26 + $0x638] sm:$0xff]  ;;  %v249_v40 = vld [vmem:[%s15243_s26 + $0x640] sm:$0xff] }
  0x37   : > { %246 = vst [vmem:[%s15248_s28 + $0x130] sm:$0xff] %v245_v38  ;;  %v251_v41 = vld [vmem:[%s15243_s26 + $0x648] sm:$0xff]  ;;  %248 = vst [vmem:[%s15248_s28 + $0x138] sm:$0xff] %v247_v39  ;;  %v253_v42 = vld [vmem:[%s15243_s26 + $0x650] sm:$0xff] }
  0x38   : > { %250 = vst [vmem:[%s15248_s28 + $0x140] sm:$0xff] %v249_v40  ;;  %252 = vst [vmem:[%s15248_s28 + $0x148] sm:$0xff] %v251_v41  ;;  %v255_v43 = vld [vmem:[%s15243_s26 + $0x658] sm:$0xff]  ;;  %v257_v44 = vld [vmem:[%s15243_s26 + $0x660] sm:$0xff] }
  0x39   : > { %254 = vst [vmem:[%s15248_s28 + $0x150] sm:$0xff] %v253_v42  ;;  %256 = vst [vmem:[%s15248_s28 + $0x158] sm:$0xff] %v255_v43  ;;  %v259_v45 = vld [vmem:[%s15243_s26 + $0x668] sm:$0xff]  ;;  %v261_v46 = vld [vmem:[%s15243_s26 + $0x670] sm:$0xff] }
  0x3a   : > { %258 = vst [vmem:[%s15248_s28 + $0x160] sm:$0xff] %v257_v44  ;;  %v263_v47 = vld [vmem:[%s15243_s26 + $0x678] sm:$0xff]  ;;  %260 = vst [vmem:[%s15248_s28 + $0x168] sm:$0xff] %v259_v45  ;;  %v265_v48 = vld [vmem:[%s15243_s26 + $0x680] sm:$0xff] }
  0x3b   : > { %262 = vst [vmem:[%s15248_s28 + $0x170] sm:$0xff] %v261_v46  ;;  %264 = vst [vmem:[%s15248_s28 + $0x178] sm:$0xff] %v263_v47  ;;  %v267_v49 = vld [vmem:[%s15243_s26 + $0x688] sm:$0xff]  ;;  %v269_v50 = vld [vmem:[%s15243_s26 + $0x690] sm:$0xff] }
  0x3c   : > { %266 = vst [vmem:[%s15248_s28 + $0x180] sm:$0xff] %v265_v48  ;;  %268 = vst [vmem:[%s15248_s28 + $0x188] sm:$0xff] %v267_v49  ;;  %v271_v51 = vld [vmem:[%s15243_s26 + $0x698] sm:$0xff]  ;;  %v273_v52 = vld [vmem:[%s15243_s26 + $0x6a0] sm:$0xff] }
  0x3d   : > { %270 = vst [vmem:[%s15248_s28 + $0x190] sm:$0xff] %v269_v50  ;;  %v275_v53 = vld [vmem:[%s15243_s26 + $0x6a8] sm:$0xff]  ;;  %272 = vst [vmem:[%s15248_s28 + $0x198] sm:$0xff] %v271_v51  ;;  %v277_v54 = vld [vmem:[%s15243_s26 + $0x6b0] sm:$0xff] }
  0x3e   : > { %274 = vst [vmem:[%s15248_s28 + $0x1a0] sm:$0xff] %v273_v52  ;;  %276 = vst [vmem:[%s15248_s28 + $0x1a8] sm:$0xff] %v275_v53  ;;  %v279_v55 = vld [vmem:[%s15243_s26 + $0x6b8] sm:$0xff]  ;;  %v281_v56 = vld [vmem:[%s15243_s26 + $0x6c0] sm:$0xff] }
  0x3f   : > { %278 = vst [vmem:[%s15248_s28 + $0x1b0] sm:$0xff] %v277_v54  ;;  %280 = vst [vmem:[%s15248_s28 + $0x1b8] sm:$0xff] %v279_v55  ;;  %v283_v57 = vld [vmem:[%s15243_s26 + $0x6c8] sm:$0xff]  ;;  %v285_v58 = vld [vmem:[%s15243_s26 + $0x6d0] sm:$0xff] }
  0x40   : > { %282 = vst [vmem:[%s15248_s28 + $0x1c0] sm:$0xff] %v281_v56  ;;  %v287_v59 = vld [vmem:[%s15243_s26 + $0x6d8] sm:$0xff]  ;;  %284 = vst [vmem:[%s15248_s28 + $0x1c8] sm:$0xff] %v283_v57  ;;  %v289_v60 = vld [vmem:[%s15243_s26 + $0x6e0] sm:$0xff] }
  0x41   : > { %286 = vst [vmem:[%s15248_s28 + $0x1d0] sm:$0xff] %v285_v58  ;;  %288 = vst [vmem:[%s15248_s28 + $0x1d8] sm:$0xff] %v287_v59  ;;  %v291_v61 = vld [vmem:[%s15243_s26 + $0x6e8] sm:$0xff]  ;;  %v293_v62 = vld [vmem:[%s15243_s26 + $0x6f0] sm:$0xff] }
  0x42   : > { %290 = vst [vmem:[%s15248_s28 + $0x1e0] sm:$0xff] %v289_v60  ;;  %292 = vst [vmem:[%s15248_s28 + $0x1e8] sm:$0xff] %v291_v61  ;;  %v295_v63 = vld [vmem:[%s15243_s26 + $0x6f8] sm:$0xff]  ;;  %v297_v0 = vld [vmem:[%s15243_s26 + $0xc00] sm:$0xff] }
  0x43   : > { %294 = vst [vmem:[%s15248_s28 + $0x1f0] sm:$0xff] %v293_v62  ;;  %v299_v1 = vld [vmem:[%s15243_s26 + $0xc08] sm:$0xff]  ;;  %296 = vst [vmem:[%s15248_s28 + $0x1f8] sm:$0xff] %v295_v63  ;;  %v301_v2 = vld [vmem:[%s15243_s26 + $0xc10] sm:$0xff] }
  0x44   : > { %298 = vst [vmem:[%s15248_s28 + $0x200] sm:$0xff] %v297_v0  ;;  %300 = vst [vmem:[%s15248_s28 + $0x208] sm:$0xff] %v299_v1  ;;  %v303_v3 = vld [vmem:[%s15243_s26 + $0xc18] sm:$0xff]  ;;  %v305_v4 = vld [vmem:[%s15243_s26 + $0xc20] sm:$0xff] }
  0x45   : > { %302 = vst [vmem:[%s15248_s28 + $0x210] sm:$0xff] %v301_v2  ;;  %304 = vst [vmem:[%s15248_s28 + $0x218] sm:$0xff] %v303_v3  ;;  %v307_v5 = vld [vmem:[%s15243_s26 + $0xc28] sm:$0xff]  ;;  %v309_v6 = vld [vmem:[%s15243_s26 + $0xc30] sm:$0xff] }
  0x46   : > { %306 = vst [vmem:[%s15248_s28 + $0x220] sm:$0xff] %v305_v4  ;;  %v311_v7 = vld [vmem:[%s15243_s26 + $0xc38] sm:$0xff]  ;;  %308 = vst [vmem:[%s15248_s28 + $0x228] sm:$0xff] %v307_v5  ;;  %v313_v8 = vld [vmem:[%s15243_s26 + $0xc40] sm:$0xff] }
  0x47   : > { %310 = vst [vmem:[%s15248_s28 + $0x230] sm:$0xff] %v309_v6  ;;  %312 = vst [vmem:[%s15248_s28 + $0x238] sm:$0xff] %v311_v7  ;;  %v315_v9 = vld [vmem:[%s15243_s26 + $0xc48] sm:$0xff]  ;;  %v317_v10 = vld [vmem:[%s15243_s26 + $0xc50] sm:$0xff] }
  0x48   : > { %314 = vst [vmem:[%s15248_s28 + $0x240] sm:$0xff] %v313_v8  ;;  %316 = vst [vmem:[%s15248_s28 + $0x248] sm:$0xff] %v315_v9  ;;  %v319_v11 = vld [vmem:[%s15243_s26 + $0xc58] sm:$0xff]  ;;  %v321_v12 = vld [vmem:[%s15243_s26 + $0xc60] sm:$0xff] }
  0x49   : > { %318 = vst [vmem:[%s15248_s28 + $0x250] sm:$0xff] %v317_v10  ;;  %v323_v13 = vld [vmem:[%s15243_s26 + $0xc68] sm:$0xff]  ;;  %320 = vst [vmem:[%s15248_s28 + $0x258] sm:$0xff] %v319_v11  ;;  %v325_v14 = vld [vmem:[%s15243_s26 + $0xc70] sm:$0xff] }
  0x4a   : > { %322 = vst [vmem:[%s15248_s28 + $0x260] sm:$0xff] %v321_v12  ;;  %324 = vst [vmem:[%s15248_s28 + $0x268] sm:$0xff] %v323_v13  ;;  %v327_v15 = vld [vmem:[%s15243_s26 + $0xc78] sm:$0xff]  ;;  %v329_v16 = vld [vmem:[%s15243_s26 + $0xc80] sm:$0xff] }
  0x4b   : > { %326 = vst [vmem:[%s15248_s28 + $0x270] sm:$0xff] %v325_v14  ;;  %328 = vst [vmem:[%s15248_s28 + $0x278] sm:$0xff] %v327_v15  ;;  %v331_v17 = vld [vmem:[%s15243_s26 + $0xc88] sm:$0xff]  ;;  %v333_v18 = vld [vmem:[%s15243_s26 + $0xc90] sm:$0xff] }
  0x4c   : > { %330 = vst [vmem:[%s15248_s28 + $0x280] sm:$0xff] %v329_v16  ;;  %v335_v19 = vld [vmem:[%s15243_s26 + $0xc98] sm:$0xff]  ;;  %332 = vst [vmem:[%s15248_s28 + $0x288] sm:$0xff] %v331_v17  ;;  %v337_v20 = vld [vmem:[%s15243_s26 + $0xca0] sm:$0xff] }
  0x4d   : > { %334 = vst [vmem:[%s15248_s28 + $0x290] sm:$0xff] %v333_v18  ;;  %336 = vst [vmem:[%s15248_s28 + $0x298] sm:$0xff] %v335_v19  ;;  %v339_v21 = vld [vmem:[%s15243_s26 + $0xca8] sm:$0xff]  ;;  %v341_v22 = vld [vmem:[%s15243_s26 + $0xcb0] sm:$0xff] }
  0x4e   : > { %338 = vst [vmem:[%s15248_s28 + $0x2a0] sm:$0xff] %v337_v20  ;;  %340 = vst [vmem:[%s15248_s28 + $0x2a8] sm:$0xff] %v339_v21  ;;  %v343_v23 = vld [vmem:[%s15243_s26 + $0xcb8] sm:$0xff]  ;;  %v345_v24 = vld [vmem:[%s15243_s26 + $0xcc0] sm:$0xff] }
  0x4f   : > { %342 = vst [vmem:[%s15248_s28 + $0x2b0] sm:$0xff] %v341_v22  ;;  %v347_v25 = vld [vmem:[%s15243_s26 + $0xcc8] sm:$0xff]  ;;  %344 = vst [vmem:[%s15248_s28 + $0x2b8] sm:$0xff] %v343_v23  ;;  %v349_v26 = vld [vmem:[%s15243_s26 + $0xcd0] sm:$0xff] }
  0x50   : > { %346 = vst [vmem:[%s15248_s28 + $0x2c0] sm:$0xff] %v345_v24  ;;  %348 = vst [vmem:[%s15248_s28 + $0x2c8] sm:$0xff] %v347_v25  ;;  %v351_v27 = vld [vmem:[%s15243_s26 + $0xcd8] sm:$0xff]  ;;  %v353_v28 = vld [vmem:[%s15243_s26 + $0xce0] sm:$0xff] }
  0x51   : > { %350 = vst [vmem:[%s15248_s28 + $0x2d0] sm:$0xff] %v349_v26  ;;  %352 = vst [vmem:[%s15248_s28 + $0x2d8] sm:$0xff] %v351_v27  ;;  %v355_v29 = vld [vmem:[%s15243_s26 + $0xce8] sm:$0xff]  ;;  %v357_v30 = vld [vmem:[%s15243_s26 + $0xcf0] sm:$0xff] }
  0x52   : > { %354 = vst [vmem:[%s15248_s28 + $0x2e0] sm:$0xff] %v353_v28  ;;  %v359_v31 = vld [vmem:[%s15243_s26 + $0xcf8] sm:$0xff]  ;;  %356 = vst [vmem:[%s15248_s28 + $0x2e8] sm:$0xff] %v355_v29  ;;  %v361_v32 = vld [vmem:[%s15243_s26 + $0x1200] sm:$0xff] }
  0x53   : > { %358 = vst [vmem:[%s15248_s28 + $0x2f0] sm:$0xff] %v357_v30  ;;  %360 = vst [vmem:[%s15248_s28 + $0x2f8] sm:$0xff] %v359_v31  ;;  %v363_v33 = vld [vmem:[%s15243_s26 + $0x1208] sm:$0xff]  ;;  %v365_v34 = vld [vmem:[%s15243_s26 + $0x1210] sm:$0xff] }
  0x54   : > { %362 = vst [vmem:[%s15248_s28 + $0x300] sm:$0xff] %v361_v32  ;;  %364 = vst [vmem:[%s15248_s28 + $0x308] sm:$0xff] %v363_v33  ;;  %v367_v35 = vld [vmem:[%s15243_s26 + $0x1218] sm:$0xff]  ;;  %v369_v36 = vld [vmem:[%s15243_s26 + $0x1220] sm:$0xff] }
  0x55   : > { %366 = vst [vmem:[%s15248_s28 + $0x310] sm:$0xff] %v365_v34  ;;  %v371_v37 = vld [vmem:[%s15243_s26 + $0x1228] sm:$0xff]  ;;  %368 = vst [vmem:[%s15248_s28 + $0x318] sm:$0xff] %v367_v35  ;;  %v373_v38 = vld [vmem:[%s15243_s26 + $0x1230] sm:$0xff] }
  0x56   : > { %370 = vst [vmem:[%s15248_s28 + $0x320] sm:$0xff] %v369_v36  ;;  %372 = vst [vmem:[%s15248_s28 + $0x328] sm:$0xff] %v371_v37  ;;  %v375_v39 = vld [vmem:[%s15243_s26 + $0x1238] sm:$0xff]  ;;  %v377_v40 = vld [vmem:[%s15243_s26 + $0x1240] sm:$0xff] }
  0x57   : > { %374 = vst [vmem:[%s15248_s28 + $0x330] sm:$0xff] %v373_v38  ;;  %376 = vst [vmem:[%s15248_s28 + $0x338] sm:$0xff] %v375_v39  ;;  %v379_v41 = vld [vmem:[%s15243_s26 + $0x1248] sm:$0xff]  ;;  %v381_v42 = vld [vmem:[%s15243_s26 + $0x1250] sm:$0xff] }
  0x58   : > { %378 = vst [vmem:[%s15248_s28 + $0x340] sm:$0xff] %v377_v40  ;;  %v383_v43 = vld [vmem:[%s15243_s26 + $0x1258] sm:$0xff]  ;;  %380 = vst [vmem:[%s15248_s28 + $0x348] sm:$0xff] %v379_v41  ;;  %v385_v44 = vld [vmem:[%s15243_s26 + $0x1260] sm:$0xff] }
  0x59   : > { %382 = vst [vmem:[%s15248_s28 + $0x350] sm:$0xff] %v381_v42  ;;  %384 = vst [vmem:[%s15248_s28 + $0x358] sm:$0xff] %v383_v43  ;;  %v387_v45 = vld [vmem:[%s15243_s26 + $0x1268] sm:$0xff]  ;;  %v389_v46 = vld [vmem:[%s15243_s26 + $0x1270] sm:$0xff] }
  0x5a   : > { %386 = vst [vmem:[%s15248_s28 + $0x360] sm:$0xff] %v385_v44  ;;  %388 = vst [vmem:[%s15248_s28 + $0x368] sm:$0xff] %v387_v45  ;;  %v391_v47 = vld [vmem:[%s15243_s26 + $0x1278] sm:$0xff]  ;;  %v393_v48 = vld [vmem:[%s15243_s26 + $0x1280] sm:$0xff] }
  0x5b   : > { %390 = vst [vmem:[%s15248_s28 + $0x370] sm:$0xff] %v389_v46  ;;  %v395_v49 = vld [vmem:[%s15243_s26 + $0x1288] sm:$0xff]  ;;  %392 = vst [vmem:[%s15248_s28 + $0x378] sm:$0xff] %v391_v47  ;;  %v397_v50 = vld [vmem:[%s15243_s26 + $0x1290] sm:$0xff] }
  0x5c   : > { %394 = vst [vmem:[%s15248_s28 + $0x380] sm:$0xff] %v393_v48  ;;  %396 = vst [vmem:[%s15248_s28 + $0x388] sm:$0xff] %v395_v49  ;;  %v399_v51 = vld [vmem:[%s15243_s26 + $0x1298] sm:$0xff]  ;;  %v401_v52 = vld [vmem:[%s15243_s26 + $0x12a0] sm:$0xff] }
  0x5d   : > { %398 = vst [vmem:[%s15248_s28 + $0x390] sm:$0xff] %v397_v50  ;;  %400 = vst [vmem:[%s15248_s28 + $0x398] sm:$0xff] %v399_v51  ;;  %v403_v53 = vld [vmem:[%s15243_s26 + $0x12a8] sm:$0xff]  ;;  %v405_v54 = vld [vmem:[%s15243_s26 + $0x12b0] sm:$0xff] }
  0x5e   : > { %402 = vst [vmem:[%s15248_s28 + $0x3a0] sm:$0xff] %v401_v52  ;;  %v407_v55 = vld [vmem:[%s15243_s26 + $0x12b8] sm:$0xff]  ;;  %404 = vst [vmem:[%s15248_s28 + $0x3a8] sm:$0xff] %v403_v53  ;;  %v409_v56 = vld [vmem:[%s15243_s26 + $0x12c0] sm:$0xff] }
  0x5f   : > { %406 = vst [vmem:[%s15248_s28 + $0x3b0] sm:$0xff] %v405_v54  ;;  %408 = vst [vmem:[%s15248_s28 + $0x3b8] sm:$0xff] %v407_v55  ;;  %v411_v57 = vld [vmem:[%s15243_s26 + $0x12c8] sm:$0xff]  ;;  %v413_v58 = vld [vmem:[%s15243_s26 + $0x12d0] sm:$0xff] }
  0x60   : > { %410 = vst [vmem:[%s15248_s28 + $0x3c0] sm:$0xff] %v409_v56  ;;  %412 = vst [vmem:[%s15248_s28 + $0x3c8] sm:$0xff] %v411_v57  ;;  %v415_v59 = vld [vmem:[%s15243_s26 + $0x12d8] sm:$0xff]  ;;  %v417_v60 = vld [vmem:[%s15243_s26 + $0x12e0] sm:$0xff] }
  0x61   : > { %414 = vst [vmem:[%s15248_s28 + $0x3d0] sm:$0xff] %v413_v58  ;;  %v419_v61 = vld [vmem:[%s15243_s26 + $0x12e8] sm:$0xff]  ;;  %416 = vst [vmem:[%s15248_s28 + $0x3d8] sm:$0xff] %v415_v59  ;;  %v421_v62 = vld [vmem:[%s15243_s26 + $0x12f0] sm:$0xff] }
  0x62   : > { %418 = vst [vmem:[%s15248_s28 + $0x3e0] sm:$0xff] %v417_v60  ;;  %420 = vst [vmem:[%s15248_s28 + $0x3e8] sm:$0xff] %v419_v61  ;;  %v423_v63 = vld [vmem:[%s15243_s26 + $0x12f8] sm:$0xff]  ;;  %v425_v0 = vld [vmem:[%s15243_s26 + $0x1800] sm:$0xff] }
  0x63   : > { %422 = vst [vmem:[%s15248_s28 + $0x3f0] sm:$0xff] %v421_v62  ;;  %424 = vst [vmem:[%s15248_s28 + $0x3f8] sm:$0xff] %v423_v63  ;;  %v427_v1 = vld [vmem:[%s15243_s26 + $0x1808] sm:$0xff]  ;;  %v429_v2 = vld [vmem:[%s15243_s26 + $0x1810] sm:$0xff] }
  0x64   : > { %426 = vst [vmem:[%s15248_s28 + $0x400] sm:$0xff] %v425_v0  ;;  %v431_v3 = vld [vmem:[%s15243_s26 + $0x1818] sm:$0xff]  ;;  %428 = vst [vmem:[%s15248_s28 + $0x408] sm:$0xff] %v427_v1  ;;  %v433_v4 = vld [vmem:[%s15243_s26 + $0x1820] sm:$0xff] }
  0x65   : > { %430 = vst [vmem:[%s15248_s28 + $0x410] sm:$0xff] %v429_v2  ;;  %432 = vst [vmem:[%s15248_s28 + $0x418] sm:$0xff] %v431_v3  ;;  %v435_v5 = vld [vmem:[%s15243_s26 + $0x1828] sm:$0xff]  ;;  %v437_v6 = vld [vmem:[%s15243_s26 + $0x1830] sm:$0xff] }
  0x66   : > { %434 = vst [vmem:[%s15248_s28 + $0x420] sm:$0xff] %v433_v4  ;;  %436 = vst [vmem:[%s15248_s28 + $0x428] sm:$0xff] %v435_v5  ;;  %v439_v7 = vld [vmem:[%s15243_s26 + $0x1838] sm:$0xff]  ;;  %v441_v8 = vld [vmem:[%s15243_s26 + $0x1840] sm:$0xff] }
  0x67   : > { %438 = vst [vmem:[%s15248_s28 + $0x430] sm:$0xff] %v437_v6  ;;  %v443_v9 = vld [vmem:[%s15243_s26 + $0x1848] sm:$0xff]  ;;  %440 = vst [vmem:[%s15248_s28 + $0x438] sm:$0xff] %v439_v7  ;;  %v445_v10 = vld [vmem:[%s15243_s26 + $0x1850] sm:$0xff] }
  0x68   : > { %442 = vst [vmem:[%s15248_s28 + $0x440] sm:$0xff] %v441_v8  ;;  %444 = vst [vmem:[%s15248_s28 + $0x448] sm:$0xff] %v443_v9  ;;  %v447_v11 = vld [vmem:[%s15243_s26 + $0x1858] sm:$0xff]  ;;  %v449_v12 = vld [vmem:[%s15243_s26 + $0x1860] sm:$0xff] }
  0x69   : > { %446 = vst [vmem:[%s15248_s28 + $0x450] sm:$0xff] %v445_v10  ;;  %448 = vst [vmem:[%s15248_s28 + $0x458] sm:$0xff] %v447_v11  ;;  %v451_v13 = vld [vmem:[%s15243_s26 + $0x1868] sm:$0xff]  ;;  %v453_v14 = vld [vmem:[%s15243_s26 + $0x1870] sm:$0xff] }
  0x6a   : > { %450 = vst [vmem:[%s15248_s28 + $0x460] sm:$0xff] %v449_v12  ;;  %v455_v15 = vld [vmem:[%s15243_s26 + $0x1878] sm:$0xff]  ;;  %452 = vst [vmem:[%s15248_s28 + $0x468] sm:$0xff] %v451_v13  ;;  %v457_v16 = vld [vmem:[%s15243_s26 + $0x1880] sm:$0xff] }
  0x6b   : > { %454 = vst [vmem:[%s15248_s28 + $0x470] sm:$0xff] %v453_v14  ;;  %456 = vst [vmem:[%s15248_s28 + $0x478] sm:$0xff] %v455_v15  ;;  %v459_v17 = vld [vmem:[%s15243_s26 + $0x1888] sm:$0xff]  ;;  %v461_v18 = vld [vmem:[%s15243_s26 + $0x1890] sm:$0xff] }
  0x6c   : > { %458 = vst [vmem:[%s15248_s28 + $0x480] sm:$0xff] %v457_v16  ;;  %460 = vst [vmem:[%s15248_s28 + $0x488] sm:$0xff] %v459_v17  ;;  %v463_v19 = vld [vmem:[%s15243_s26 + $0x1898] sm:$0xff]  ;;  %v465_v20 = vld [vmem:[%s15243_s26 + $0x18a0] sm:$0xff] }
  0x6d   : > { %462 = vst [vmem:[%s15248_s28 + $0x490] sm:$0xff] %v461_v18  ;;  %v467_v21 = vld [vmem:[%s15243_s26 + $0x18a8] sm:$0xff]  ;;  %464 = vst [vmem:[%s15248_s28 + $0x498] sm:$0xff] %v463_v19  ;;  %v469_v22 = vld [vmem:[%s15243_s26 + $0x18b0] sm:$0xff] }
  0x6e   : > { %466 = vst [vmem:[%s15248_s28 + $0x4a0] sm:$0xff] %v465_v20  ;;  %468 = vst [vmem:[%s15248_s28 + $0x4a8] sm:$0xff] %v467_v21  ;;  %v471_v23 = vld [vmem:[%s15243_s26 + $0x18b8] sm:$0xff]  ;;  %v473_v24 = vld [vmem:[%s15243_s26 + $0x18c0] sm:$0xff] }
  0x6f   : > { %470 = vst [vmem:[%s15248_s28 + $0x4b0] sm:$0xff] %v469_v22  ;;  %472 = vst [vmem:[%s15248_s28 + $0x4b8] sm:$0xff] %v471_v23  ;;  %v475_v25 = vld [vmem:[%s15243_s26 + $0x18c8] sm:$0xff]  ;;  %v477_v26 = vld [vmem:[%s15243_s26 + $0x18d0] sm:$0xff] }
  0x70   : > { %474 = vst [vmem:[%s15248_s28 + $0x4c0] sm:$0xff] %v473_v24  ;;  %v479_v27 = vld [vmem:[%s15243_s26 + $0x18d8] sm:$0xff]  ;;  %476 = vst [vmem:[%s15248_s28 + $0x4c8] sm:$0xff] %v475_v25  ;;  %v481_v28 = vld [vmem:[%s15243_s26 + $0x18e0] sm:$0xff] }
  0x71   : > { %478 = vst [vmem:[%s15248_s28 + $0x4d0] sm:$0xff] %v477_v26  ;;  %480 = vst [vmem:[%s15248_s28 + $0x4d8] sm:$0xff] %v479_v27  ;;  %v483_v29 = vld [vmem:[%s15243_s26 + $0x18e8] sm:$0xff]  ;;  %v485_v30 = vld [vmem:[%s15243_s26 + $0x18f0] sm:$0xff] }
  0x72   : > { %482 = vst [vmem:[%s15248_s28 + $0x4e0] sm:$0xff] %v481_v28  ;;  %484 = vst [vmem:[%s15248_s28 + $0x4e8] sm:$0xff] %v483_v29  ;;  %v487_v31 = vld [vmem:[%s15243_s26 + $0x18f8] sm:$0xff]  ;;  %v489_v32 = vld [vmem:[%s15243_s26 + $0x1e00] sm:$0xff] }
  0x73   : > { %486 = vst [vmem:[%s15248_s28 + $0x4f0] sm:$0xff] %v485_v30  ;;  %v491_v33 = vld [vmem:[%s15243_s26 + $0x1e08] sm:$0xff]  ;;  %488 = vst [vmem:[%s15248_s28 + $0x4f8] sm:$0xff] %v487_v31  ;;  %v493_v34 = vld [vmem:[%s15243_s26 + $0x1e10] sm:$0xff] }
  0x74   : > { %490 = vst [vmem:[%s15248_s28 + $0x500] sm:$0xff] %v489_v32  ;;  %492 = vst [vmem:[%s15248_s28 + $0x508] sm:$0xff] %v491_v33  ;;  %v495_v35 = vld [vmem:[%s15243_s26 + $0x1e18] sm:$0xff]  ;;  %v497_v36 = vld [vmem:[%s15243_s26 + $0x1e20] sm:$0xff] }
  0x75   : > { %494 = vst [vmem:[%s15248_s28 + $0x510] sm:$0xff] %v493_v34  ;;  %496 = vst [vmem:[%s15248_s28 + $0x518] sm:$0xff] %v495_v35  ;;  %v499_v37 = vld [vmem:[%s15243_s26 + $0x1e28] sm:$0xff]  ;;  %v501_v38 = vld [vmem:[%s15243_s26 + $0x1e30] sm:$0xff] }
  0x76   : > { %498 = vst [vmem:[%s15248_s28 + $0x520] sm:$0xff] %v497_v36  ;;  %v503_v39 = vld [vmem:[%s15243_s26 + $0x1e38] sm:$0xff]  ;;  %500 = vst [vmem:[%s15248_s28 + $0x528] sm:$0xff] %v499_v37  ;;  %v505_v40 = vld [vmem:[%s15243_s26 + $0x1e40] sm:$0xff] }
  0x77   : > { %502 = vst [vmem:[%s15248_s28 + $0x530] sm:$0xff] %v501_v38  ;;  %504 = vst [vmem:[%s15248_s28 + $0x538] sm:$0xff] %v503_v39  ;;  %v507_v41 = vld [vmem:[%s15243_s26 + $0x1e48] sm:$0xff]  ;;  %v509_v42 = vld [vmem:[%s15243_s26 + $0x1e50] sm:$0xff] }
  0x78   : > { %506 = vst [vmem:[%s15248_s28 + $0x540] sm:$0xff] %v505_v40  ;;  %508 = vst [vmem:[%s15248_s28 + $0x548] sm:$0xff] %v507_v41  ;;  %v511_v43 = vld [vmem:[%s15243_s26 + $0x1e58] sm:$0xff]  ;;  %v513_v44 = vld [vmem:[%s15243_s26 + $0x1e60] sm:$0xff] }
  0x79   : > { %510 = vst [vmem:[%s15248_s28 + $0x550] sm:$0xff] %v509_v42  ;;  %v515_v45 = vld [vmem:[%s15243_s26 + $0x1e68] sm:$0xff]  ;;  %512 = vst [vmem:[%s15248_s28 + $0x558] sm:$0xff] %v511_v43  ;;  %v517_v46 = vld [vmem:[%s15243_s26 + $0x1e70] sm:$0xff] }
  0x7a   : > { %514 = vst [vmem:[%s15248_s28 + $0x560] sm:$0xff] %v513_v44  ;;  %516 = vst [vmem:[%s15248_s28 + $0x568] sm:$0xff] %v515_v45  ;;  %v519_v47 = vld [vmem:[%s15243_s26 + $0x1e78] sm:$0xff]  ;;  %v521_v48 = vld [vmem:[%s15243_s26 + $0x1e80] sm:$0xff] }
  0x7b   : > { %518 = vst [vmem:[%s15248_s28 + $0x570] sm:$0xff] %v517_v46  ;;  %520 = vst [vmem:[%s15248_s28 + $0x578] sm:$0xff] %v519_v47  ;;  %v523_v49 = vld [vmem:[%s15243_s26 + $0x1e88] sm:$0xff]  ;;  %v525_v50 = vld [vmem:[%s15243_s26 + $0x1e90] sm:$0xff] }
  0x7c   : > { %522 = vst [vmem:[%s15248_s28 + $0x580] sm:$0xff] %v521_v48  ;;  %v527_v51 = vld [vmem:[%s15243_s26 + $0x1e98] sm:$0xff]  ;;  %524 = vst [vmem:[%s15248_s28 + $0x588] sm:$0xff] %v523_v49  ;;  %v529_v52 = vld [vmem:[%s15243_s26 + $0x1ea0] sm:$0xff] }
  0x7d   : > { %526 = vst [vmem:[%s15248_s28 + $0x590] sm:$0xff] %v525_v50  ;;  %528 = vst [vmem:[%s15248_s28 + $0x598] sm:$0xff] %v527_v51  ;;  %v531_v53 = vld [vmem:[%s15243_s26 + $0x1ea8] sm:$0xff]  ;;  %v533_v54 = vld [vmem:[%s15243_s26 + $0x1eb0] sm:$0xff] }
  0x7e   : > { %530 = vst [vmem:[%s15248_s28 + $0x5a0] sm:$0xff] %v529_v52  ;;  %532 = vst [vmem:[%s15248_s28 + $0x5a8] sm:$0xff] %v531_v53  ;;  %v535_v55 = vld [vmem:[%s15243_s26 + $0x1eb8] sm:$0xff]  ;;  %v537_v56 = vld [vmem:[%s15243_s26 + $0x1ec0] sm:$0xff] }
  0x7f   : > { %534 = vst [vmem:[%s15248_s28 + $0x5b0] sm:$0xff] %v533_v54  ;;  %v539_v57 = vld [vmem:[%s15243_s26 + $0x1ec8] sm:$0xff]  ;;  %536 = vst [vmem:[%s15248_s28 + $0x5b8] sm:$0xff] %v535_v55  ;;  %v541_v58 = vld [vmem:[%s15243_s26 + $0x1ed0] sm:$0xff] }
  0x80   : > { %538 = vst [vmem:[%s15248_s28 + $0x5c0] sm:$0xff] %v537_v56  ;;  %540 = vst [vmem:[%s15248_s28 + $0x5c8] sm:$0xff] %v539_v57  ;;  %v543_v59 = vld [vmem:[%s15243_s26 + $0x1ed8] sm:$0xff]  ;;  %v545_v60 = vld [vmem:[%s15243_s26 + $0x1ee0] sm:$0xff] }
  0x81   : > { %542 = vst [vmem:[%s15248_s28 + $0x5d0] sm:$0xff] %v541_v58  ;;  %544 = vst [vmem:[%s15248_s28 + $0x5d8] sm:$0xff] %v543_v59  ;;  %v547_v61 = vld [vmem:[%s15243_s26 + $0x1ee8] sm:$0xff]  ;;  %v549_v62 = vld [vmem:[%s15243_s26 + $0x1ef0] sm:$0xff] }
  0x82   : > { %546 = vst [vmem:[%s15248_s28 + $0x5e0] sm:$0xff] %v545_v60  ;;  %v551_v63 = vld [vmem:[%s15243_s26 + $0x1ef8] sm:$0xff]  ;;  %548 = vst [vmem:[%s15248_s28 + $0x5e8] sm:$0xff] %v547_v61  ;;  %v553_v0 = vld [vmem:[%s15243_s26 + $0x2400] sm:$0xff] }
  0x83   : > { %550 = vst [vmem:[%s15248_s28 + $0x5f0] sm:$0xff] %v549_v62  ;;  %552 = vst [vmem:[%s15248_s28 + $0x5f8] sm:$0xff] %v551_v63  ;;  %v555_v1 = vld [vmem:[%s15243_s26 + $0x2408] sm:$0xff]  ;;  %v557_v2 = vld [vmem:[%s15243_s26 + $0x2410] sm:$0xff] }
  0x84   : > { %554 = vst [vmem:[%s15248_s28 + $0x600] sm:$0xff] %v553_v0  ;;  %556 = vst [vmem:[%s15248_s28 + $0x608] sm:$0xff] %v555_v1  ;;  %v559_v3 = vld [vmem:[%s15243_s26 + $0x2418] sm:$0xff]  ;;  %v561_v4 = vld [vmem:[%s15243_s26 + $0x2420] sm:$0xff] }
  0x85   : > { %558 = vst [vmem:[%s15248_s28 + $0x610] sm:$0xff] %v557_v2  ;;  %v563_v5 = vld [vmem:[%s15243_s26 + $0x2428] sm:$0xff]  ;;  %560 = vst [vmem:[%s15248_s28 + $0x618] sm:$0xff] %v559_v3  ;;  %v565_v6 = vld [vmem:[%s15243_s26 + $0x2430] sm:$0xff] }
  0x86   : > { %562 = vst [vmem:[%s15248_s28 + $0x620] sm:$0xff] %v561_v4  ;;  %564 = vst [vmem:[%s15248_s28 + $0x628] sm:$0xff] %v563_v5  ;;  %v567_v7 = vld [vmem:[%s15243_s26 + $0x2438] sm:$0xff]  ;;  %v569_v8 = vld [vmem:[%s15243_s26 + $0x2440] sm:$0xff] }
  0x87   : > { %566 = vst [vmem:[%s15248_s28 + $0x630] sm:$0xff] %v565_v6  ;;  %568 = vst [vmem:[%s15248_s28 + $0x638] sm:$0xff] %v567_v7  ;;  %v571_v9 = vld [vmem:[%s15243_s26 + $0x2448] sm:$0xff]  ;;  %v573_v10 = vld [vmem:[%s15243_s26 + $0x2450] sm:$0xff] }
  0x88   : > { %570 = vst [vmem:[%s15248_s28 + $0x640] sm:$0xff] %v569_v8  ;;  %v575_v11 = vld [vmem:[%s15243_s26 + $0x2458] sm:$0xff]  ;;  %572 = vst [vmem:[%s15248_s28 + $0x648] sm:$0xff] %v571_v9  ;;  %v577_v12 = vld [vmem:[%s15243_s26 + $0x2460] sm:$0xff] }
  0x89   : > { %574 = vst [vmem:[%s15248_s28 + $0x650] sm:$0xff] %v573_v10  ;;  %576 = vst [vmem:[%s15248_s28 + $0x658] sm:$0xff] %v575_v11  ;;  %v579_v13 = vld [vmem:[%s15243_s26 + $0x2468] sm:$0xff]  ;;  %v581_v14 = vld [vmem:[%s15243_s26 + $0x2470] sm:$0xff] }
  0x8a   : > { %578 = vst [vmem:[%s15248_s28 + $0x660] sm:$0xff] %v577_v12  ;;  %580 = vst [vmem:[%s15248_s28 + $0x668] sm:$0xff] %v579_v13  ;;  %v583_v15 = vld [vmem:[%s15243_s26 + $0x2478] sm:$0xff]  ;;  %v585_v16 = vld [vmem:[%s15243_s26 + $0x2480] sm:$0xff] }
  0x8b   : > { %582 = vst [vmem:[%s15248_s28 + $0x670] sm:$0xff] %v581_v14  ;;  %v587_v17 = vld [vmem:[%s15243_s26 + $0x2488] sm:$0xff]  ;;  %584 = vst [vmem:[%s15248_s28 + $0x678] sm:$0xff] %v583_v15  ;;  %v589_v18 = vld [vmem:[%s15243_s26 + $0x2490] sm:$0xff] }
  0x8c   : > { %586 = vst [vmem:[%s15248_s28 + $0x680] sm:$0xff] %v585_v16  ;;  %588 = vst [vmem:[%s15248_s28 + $0x688] sm:$0xff] %v587_v17  ;;  %v591_v19 = vld [vmem:[%s15243_s26 + $0x2498] sm:$0xff]  ;;  %v593_v20 = vld [vmem:[%s15243_s26 + $0x24a0] sm:$0xff] }
  0x8d   : > { %590 = vst [vmem:[%s15248_s28 + $0x690] sm:$0xff] %v589_v18  ;;  %592 = vst [vmem:[%s15248_s28 + $0x698] sm:$0xff] %v591_v19  ;;  %v595_v21 = vld [vmem:[%s15243_s26 + $0x24a8] sm:$0xff]  ;;  %v597_v22 = vld [vmem:[%s15243_s26 + $0x24b0] sm:$0xff] }
  0x8e   : > { %594 = vst [vmem:[%s15248_s28 + $0x6a0] sm:$0xff] %v593_v20  ;;  %v599_v23 = vld [vmem:[%s15243_s26 + $0x24b8] sm:$0xff]  ;;  %596 = vst [vmem:[%s15248_s28 + $0x6a8] sm:$0xff] %v595_v21  ;;  %v601_v24 = vld [vmem:[%s15243_s26 + $0x24c0] sm:$0xff] }
  0x8f   : > { %598 = vst [vmem:[%s15248_s28 + $0x6b0] sm:$0xff] %v597_v22  ;;  %600 = vst [vmem:[%s15248_s28 + $0x6b8] sm:$0xff] %v599_v23  ;;  %v603_v25 = vld [vmem:[%s15243_s26 + $0x24c8] sm:$0xff]  ;;  %v605_v26 = vld [vmem:[%s15243_s26 + $0x24d0] sm:$0xff] }
  0x90   : > { %602 = vst [vmem:[%s15248_s28 + $0x6c0] sm:$0xff] %v601_v24  ;;  %604 = vst [vmem:[%s15248_s28 + $0x6c8] sm:$0xff] %v603_v25  ;;  %v607_v27 = vld [vmem:[%s15243_s26 + $0x24d8] sm:$0xff]  ;;  %v609_v28 = vld [vmem:[%s15243_s26 + $0x24e0] sm:$0xff] }
  0x91   : > { %606 = vst [vmem:[%s15248_s28 + $0x6d0] sm:$0xff] %v605_v26  ;;  %v611_v29 = vld [vmem:[%s15243_s26 + $0x24e8] sm:$0xff]  ;;  %608 = vst [vmem:[%s15248_s28 + $0x6d8] sm:$0xff] %v607_v27  ;;  %v613_v30 = vld [vmem:[%s15243_s26 + $0x24f0] sm:$0xff] }
  0x92   : > { %610 = vst [vmem:[%s15248_s28 + $0x6e0] sm:$0xff] %v609_v28  ;;  %612 = vst [vmem:[%s15248_s28 + $0x6e8] sm:$0xff] %v611_v29  ;;  %v615_v31 = vld [vmem:[%s15243_s26 + $0x24f8] sm:$0xff]  ;;  %v617_v32 = vld [vmem:[%s15243_s26 + $0x2a00] sm:$0xff] }
  0x93   : > { %614 = vst [vmem:[%s15248_s28 + $0x6f0] sm:$0xff] %v613_v30  ;;  %616 = vst [vmem:[%s15248_s28 + $0x6f8] sm:$0xff] %v615_v31  ;;  %v619_v33 = vld [vmem:[%s15243_s26 + $0x2a08] sm:$0xff]  ;;  %v621_v34 = vld [vmem:[%s15243_s26 + $0x2a10] sm:$0xff] }
  0x94   : > { %618 = vst [vmem:[%s15248_s28 + $0x700] sm:$0xff] %v617_v32  ;;  %v623_v35 = vld [vmem:[%s15243_s26 + $0x2a18] sm:$0xff]  ;;  %620 = vst [vmem:[%s15248_s28 + $0x708] sm:$0xff] %v619_v33  ;;  %v625_v36 = vld [vmem:[%s15243_s26 + $0x2a20] sm:$0xff] }
  0x95   : > { %622 = vst [vmem:[%s15248_s28 + $0x710] sm:$0xff] %v621_v34  ;;  %624 = vst [vmem:[%s15248_s28 + $0x718] sm:$0xff] %v623_v35  ;;  %v627_v37 = vld [vmem:[%s15243_s26 + $0x2a28] sm:$0xff]  ;;  %v629_v38 = vld [vmem:[%s15243_s26 + $0x2a30] sm:$0xff] }
  0x96   : > { %626 = vst [vmem:[%s15248_s28 + $0x720] sm:$0xff] %v625_v36  ;;  %628 = vst [vmem:[%s15248_s28 + $0x728] sm:$0xff] %v627_v37  ;;  %v631_v39 = vld [vmem:[%s15243_s26 + $0x2a38] sm:$0xff]  ;;  %v633_v40 = vld [vmem:[%s15243_s26 + $0x2a40] sm:$0xff] }
  0x97   : > { %630 = vst [vmem:[%s15248_s28 + $0x730] sm:$0xff] %v629_v38  ;;  %v635_v41 = vld [vmem:[%s15243_s26 + $0x2a48] sm:$0xff]  ;;  %632 = vst [vmem:[%s15248_s28 + $0x738] sm:$0xff] %v631_v39  ;;  %v637_v42 = vld [vmem:[%s15243_s26 + $0x2a50] sm:$0xff] }
  0x98   : > { %634 = vst [vmem:[%s15248_s28 + $0x740] sm:$0xff] %v633_v40  ;;  %636 = vst [vmem:[%s15248_s28 + $0x748] sm:$0xff] %v635_v41  ;;  %v639_v43 = vld [vmem:[%s15243_s26 + $0x2a58] sm:$0xff]  ;;  %v641_v44 = vld [vmem:[%s15243_s26 + $0x2a60] sm:$0xff] }
  0x99   : > { %638 = vst [vmem:[%s15248_s28 + $0x750] sm:$0xff] %v637_v42  ;;  %640 = vst [vmem:[%s15248_s28 + $0x758] sm:$0xff] %v639_v43  ;;  %v643_v45 = vld [vmem:[%s15243_s26 + $0x2a68] sm:$0xff]  ;;  %v645_v46 = vld [vmem:[%s15243_s26 + $0x2a70] sm:$0xff] }
  0x9a   : > { %642 = vst [vmem:[%s15248_s28 + $0x760] sm:$0xff] %v641_v44  ;;  %v647_v47 = vld [vmem:[%s15243_s26 + $0x2a78] sm:$0xff]  ;;  %644 = vst [vmem:[%s15248_s28 + $0x768] sm:$0xff] %v643_v45  ;;  %v649_v48 = vld [vmem:[%s15243_s26 + $0x2a80] sm:$0xff] }
  0x9b   : > { %646 = vst [vmem:[%s15248_s28 + $0x770] sm:$0xff] %v645_v46  ;;  %648 = vst [vmem:[%s15248_s28 + $0x778] sm:$0xff] %v647_v47  ;;  %v651_v49 = vld [vmem:[%s15243_s26 + $0x2a88] sm:$0xff]  ;;  %v653_v50 = vld [vmem:[%s15243_s26 + $0x2a90] sm:$0xff] }
  0x9c   : > { %650 = vst [vmem:[%s15248_s28 + $0x780] sm:$0xff] %v649_v48  ;;  %652 = vst [vmem:[%s15248_s28 + $0x788] sm:$0xff] %v651_v49  ;;  %v655_v51 = vld [vmem:[%s15243_s26 + $0x2a98] sm:$0xff]  ;;  %v657_v52 = vld [vmem:[%s15243_s26 + $0x2aa0] sm:$0xff] }
  0x9d   : > { %654 = vst [vmem:[%s15248_s28 + $0x790] sm:$0xff] %v653_v50  ;;  %v659_v53 = vld [vmem:[%s15243_s26 + $0x2aa8] sm:$0xff]  ;;  %656 = vst [vmem:[%s15248_s28 + $0x798] sm:$0xff] %v655_v51  ;;  %v661_v54 = vld [vmem:[%s15243_s26 + $0x2ab0] sm:$0xff] }
  0x9e   : > { %658 = vst [vmem:[%s15248_s28 + $0x7a0] sm:$0xff] %v657_v52  ;;  %660 = vst [vmem:[%s15248_s28 + $0x7a8] sm:$0xff] %v659_v53  ;;  %v663_v55 = vld [vmem:[%s15243_s26 + $0x2ab8] sm:$0xff]  ;;  %v665_v56 = vld [vmem:[%s15243_s26 + $0x2ac0] sm:$0xff] }
  0x9f   : > { %662 = vst [vmem:[%s15248_s28 + $0x7b0] sm:$0xff] %v661_v54  ;;  %664 = vst [vmem:[%s15248_s28 + $0x7b8] sm:$0xff] %v663_v55  ;;  %v667_v57 = vld [vmem:[%s15243_s26 + $0x2ac8] sm:$0xff]  ;;  %v669_v58 = vld [vmem:[%s15243_s26 + $0x2ad0] sm:$0xff] }
  0xa0   : > { %666 = vst [vmem:[%s15248_s28 + $0x7c0] sm:$0xff] %v665_v56  ;;  %v671_v59 = vld [vmem:[%s15243_s26 + $0x2ad8] sm:$0xff]  ;;  %668 = vst [vmem:[%s15248_s28 + $0x7c8] sm:$0xff] %v667_v57  ;;  %v673_v60 = vld [vmem:[%s15243_s26 + $0x2ae0] sm:$0xff] }
  0xa1   : > { %670 = vst [vmem:[%s15248_s28 + $0x7d0] sm:$0xff] %v669_v58  ;;  %672 = vst [vmem:[%s15248_s28 + $0x7d8] sm:$0xff] %v671_v59  ;;  %v675_v61 = vld [vmem:[%s15243_s26 + $0x2ae8] sm:$0xff]  ;;  %v677_v62 = vld [vmem:[%s15243_s26 + $0x2af0] sm:$0xff] }
  0xa2   : > { %674 = vst [vmem:[%s15248_s28 + $0x7e0] sm:$0xff] %v673_v60  ;;  %676 = vst [vmem:[%s15248_s28 + $0x7e8] sm:$0xff] %v675_v61  ;;  %v679_v63 = vld [vmem:[%s15243_s26 + $0x2af8] sm:$0xff]  ;;  %v681_v0 = vld [vmem:[%s15243_s26 + $0x3000] sm:$0xff] }
  0xa3   : > { %678 = vst [vmem:[%s15248_s28 + $0x7f0] sm:$0xff] %v677_v62  ;;  %v683_v1 = vld [vmem:[%s15243_s26 + $0x3008] sm:$0xff]  ;;  %680 = vst [vmem:[%s15248_s28 + $0x7f8] sm:$0xff] %v679_v63  ;;  %v685_v2 = vld [vmem:[%s15243_s26 + $0x3010] sm:$0xff] }
  0xa4   : > { %682 = vst [vmem:[%s15248_s28 + $0x800] sm:$0xff] %v681_v0  ;;  %684 = vst [vmem:[%s15248_s28 + $0x808] sm:$0xff] %v683_v1  ;;  %v687_v3 = vld [vmem:[%s15243_s26 + $0x3018] sm:$0xff]  ;;  %v689_v4 = vld [vmem:[%s15243_s26 + $0x3020] sm:$0xff] }
  0xa5   : > { %686 = vst [vmem:[%s15248_s28 + $0x810] sm:$0xff] %v685_v2  ;;  %688 = vst [vmem:[%s15248_s28 + $0x818] sm:$0xff] %v687_v3  ;;  %v691_v5 = vld [vmem:[%s15243_s26 + $0x3028] sm:$0xff]  ;;  %v693_v6 = vld [vmem:[%s15243_s26 + $0x3030] sm:$0xff] }
  0xa6   : > { %690 = vst [vmem:[%s15248_s28 + $0x820] sm:$0xff] %v689_v4  ;;  %v695_v7 = vld [vmem:[%s15243_s26 + $0x3038] sm:$0xff]  ;;  %692 = vst [vmem:[%s15248_s28 + $0x828] sm:$0xff] %v691_v5  ;;  %v697_v8 = vld [vmem:[%s15243_s26 + $0x3040] sm:$0xff] }
  0xa7   : > { %694 = vst [vmem:[%s15248_s28 + $0x830] sm:$0xff] %v693_v6  ;;  %696 = vst [vmem:[%s15248_s28 + $0x838] sm:$0xff] %v695_v7  ;;  %v699_v9 = vld [vmem:[%s15243_s26 + $0x3048] sm:$0xff]  ;;  %v701_v10 = vld [vmem:[%s15243_s26 + $0x3050] sm:$0xff] }
  0xa8   : > { %698 = vst [vmem:[%s15248_s28 + $0x840] sm:$0xff] %v697_v8  ;;  %700 = vst [vmem:[%s15248_s28 + $0x848] sm:$0xff] %v699_v9  ;;  %v703_v11 = vld [vmem:[%s15243_s26 + $0x3058] sm:$0xff]  ;;  %v705_v12 = vld [vmem:[%s15243_s26 + $0x3060] sm:$0xff] }
  0xa9   : > { %702 = vst [vmem:[%s15248_s28 + $0x850] sm:$0xff] %v701_v10  ;;  %v707_v13 = vld [vmem:[%s15243_s26 + $0x3068] sm:$0xff]  ;;  %704 = vst [vmem:[%s15248_s28 + $0x858] sm:$0xff] %v703_v11  ;;  %v709_v14 = vld [vmem:[%s15243_s26 + $0x3070] sm:$0xff] }
  0xaa   : > { %706 = vst [vmem:[%s15248_s28 + $0x860] sm:$0xff] %v705_v12  ;;  %708 = vst [vmem:[%s15248_s28 + $0x868] sm:$0xff] %v707_v13  ;;  %v711_v15 = vld [vmem:[%s15243_s26 + $0x3078] sm:$0xff]  ;;  %v713_v16 = vld [vmem:[%s15243_s26 + $0x3080] sm:$0xff] }
  0xab   : > { %710 = vst [vmem:[%s15248_s28 + $0x870] sm:$0xff] %v709_v14  ;;  %712 = vst [vmem:[%s15248_s28 + $0x878] sm:$0xff] %v711_v15  ;;  %v715_v17 = vld [vmem:[%s15243_s26 + $0x3088] sm:$0xff]  ;;  %v717_v18 = vld [vmem:[%s15243_s26 + $0x3090] sm:$0xff] }
  0xac   : > { %714 = vst [vmem:[%s15248_s28 + $0x880] sm:$0xff] %v713_v16  ;;  %v719_v19 = vld [vmem:[%s15243_s26 + $0x3098] sm:$0xff]  ;;  %716 = vst [vmem:[%s15248_s28 + $0x888] sm:$0xff] %v715_v17  ;;  %v721_v20 = vld [vmem:[%s15243_s26 + $0x30a0] sm:$0xff] }
  0xad   : > { %718 = vst [vmem:[%s15248_s28 + $0x890] sm:$0xff] %v717_v18  ;;  %720 = vst [vmem:[%s15248_s28 + $0x898] sm:$0xff] %v719_v19  ;;  %v723_v21 = vld [vmem:[%s15243_s26 + $0x30a8] sm:$0xff]  ;;  %v725_v22 = vld [vmem:[%s15243_s26 + $0x30b0] sm:$0xff] }
  0xae   : > { %722 = vst [vmem:[%s15248_s28 + $0x8a0] sm:$0xff] %v721_v20  ;;  %724 = vst [vmem:[%s15248_s28 + $0x8a8] sm:$0xff] %v723_v21  ;;  %v727_v23 = vld [vmem:[%s15243_s26 + $0x30b8] sm:$0xff]  ;;  %v729_v24 = vld [vmem:[%s15243_s26 + $0x30c0] sm:$0xff] }
  0xaf   : > { %726 = vst [vmem:[%s15248_s28 + $0x8b0] sm:$0xff] %v725_v22  ;;  %v731_v25 = vld [vmem:[%s15243_s26 + $0x30c8] sm:$0xff]  ;;  %728 = vst [vmem:[%s15248_s28 + $0x8b8] sm:$0xff] %v727_v23  ;;  %v733_v26 = vld [vmem:[%s15243_s26 + $0x30d0] sm:$0xff] }
  0xb0   : > { %730 = vst [vmem:[%s15248_s28 + $0x8c0] sm:$0xff] %v729_v24  ;;  %732 = vst [vmem:[%s15248_s28 + $0x8c8] sm:$0xff] %v731_v25  ;;  %v735_v27 = vld [vmem:[%s15243_s26 + $0x30d8] sm:$0xff]  ;;  %v737_v28 = vld [vmem:[%s15243_s26 + $0x30e0] sm:$0xff] }
  0xb1   : > { %734 = vst [vmem:[%s15248_s28 + $0x8d0] sm:$0xff] %v733_v26  ;;  %736 = vst [vmem:[%s15248_s28 + $0x8d8] sm:$0xff] %v735_v27  ;;  %v739_v29 = vld [vmem:[%s15243_s26 + $0x30e8] sm:$0xff]  ;;  %v741_v30 = vld [vmem:[%s15243_s26 + $0x30f0] sm:$0xff] }
  0xb2   : > { %738 = vst [vmem:[%s15248_s28 + $0x8e0] sm:$0xff] %v737_v28  ;;  %v743_v31 = vld [vmem:[%s15243_s26 + $0x30f8] sm:$0xff]  ;;  %740 = vst [vmem:[%s15248_s28 + $0x8e8] sm:$0xff] %v739_v29  ;;  %v745_v32 = vld [vmem:[%s15243_s26 + $0x3600] sm:$0xff] }
  0xb3   : > { %742 = vst [vmem:[%s15248_s28 + $0x8f0] sm:$0xff] %v741_v30  ;;  %744 = vst [vmem:[%s15248_s28 + $0x8f8] sm:$0xff] %v743_v31  ;;  %v747_v33 = vld [vmem:[%s15243_s26 + $0x3608] sm:$0xff]  ;;  %v749_v34 = vld [vmem:[%s15243_s26 + $0x3610] sm:$0xff] }
  0xb4   : > { %746 = vst [vmem:[%s15248_s28 + $0x900] sm:$0xff] %v745_v32  ;;  %748 = vst [vmem:[%s15248_s28 + $0x908] sm:$0xff] %v747_v33  ;;  %v751_v35 = vld [vmem:[%s15243_s26 + $0x3618] sm:$0xff]  ;;  %v753_v36 = vld [vmem:[%s15243_s26 + $0x3620] sm:$0xff] }
  0xb5   : > { %750 = vst [vmem:[%s15248_s28 + $0x910] sm:$0xff] %v749_v34  ;;  %v755_v37 = vld [vmem:[%s15243_s26 + $0x3628] sm:$0xff]  ;;  %752 = vst [vmem:[%s15248_s28 + $0x918] sm:$0xff] %v751_v35  ;;  %v757_v38 = vld [vmem:[%s15243_s26 + $0x3630] sm:$0xff] }
  0xb6   : > { %754 = vst [vmem:[%s15248_s28 + $0x920] sm:$0xff] %v753_v36  ;;  %756 = vst [vmem:[%s15248_s28 + $0x928] sm:$0xff] %v755_v37  ;;  %v759_v39 = vld [vmem:[%s15243_s26 + $0x3638] sm:$0xff]  ;;  %v761_v40 = vld [vmem:[%s15243_s26 + $0x3640] sm:$0xff] }
  0xb7   : > { %758 = vst [vmem:[%s15248_s28 + $0x930] sm:$0xff] %v757_v38  ;;  %760 = vst [vmem:[%s15248_s28 + $0x938] sm:$0xff] %v759_v39  ;;  %v763_v41 = vld [vmem:[%s15243_s26 + $0x3648] sm:$0xff]  ;;  %v765_v42 = vld [vmem:[%s15243_s26 + $0x3650] sm:$0xff] }
  0xb8   : > { %762 = vst [vmem:[%s15248_s28 + $0x940] sm:$0xff] %v761_v40  ;;  %v767_v43 = vld [vmem:[%s15243_s26 + $0x3658] sm:$0xff]  ;;  %764 = vst [vmem:[%s15248_s28 + $0x948] sm:$0xff] %v763_v41  ;;  %v769_v44 = vld [vmem:[%s15243_s26 + $0x3660] sm:$0xff] }
  0xb9   : > { %766 = vst [vmem:[%s15248_s28 + $0x950] sm:$0xff] %v765_v42  ;;  %768 = vst [vmem:[%s15248_s28 + $0x958] sm:$0xff] %v767_v43  ;;  %v771_v45 = vld [vmem:[%s15243_s26 + $0x3668] sm:$0xff]  ;;  %v773_v46 = vld [vmem:[%s15243_s26 + $0x3670] sm:$0xff] }
  0xba   : > { %770 = vst [vmem:[%s15248_s28 + $0x960] sm:$0xff] %v769_v44  ;;  %772 = vst [vmem:[%s15248_s28 + $0x968] sm:$0xff] %v771_v45  ;;  %v775_v47 = vld [vmem:[%s15243_s26 + $0x3678] sm:$0xff]  ;;  %v777_v48 = vld [vmem:[%s15243_s26 + $0x3680] sm:$0xff] }
  0xbb   : > { %774 = vst [vmem:[%s15248_s28 + $0x970] sm:$0xff] %v773_v46  ;;  %v779_v49 = vld [vmem:[%s15243_s26 + $0x3688] sm:$0xff]  ;;  %776 = vst [vmem:[%s15248_s28 + $0x978] sm:$0xff] %v775_v47  ;;  %v781_v50 = vld [vmem:[%s15243_s26 + $0x3690] sm:$0xff] }
  0xbc   : > { %778 = vst [vmem:[%s15248_s28 + $0x980] sm:$0xff] %v777_v48  ;;  %780 = vst [vmem:[%s15248_s28 + $0x988] sm:$0xff] %v779_v49  ;;  %v783_v51 = vld [vmem:[%s15243_s26 + $0x3698] sm:$0xff]  ;;  %v785_v52 = vld [vmem:[%s15243_s26 + $0x36a0] sm:$0xff] }
  0xbd   : > { %782 = vst [vmem:[%s15248_s28 + $0x990] sm:$0xff] %v781_v50  ;;  %784 = vst [vmem:[%s15248_s28 + $0x998] sm:$0xff] %v783_v51  ;;  %v787_v53 = vld [vmem:[%s15243_s26 + $0x36a8] sm:$0xff]  ;;  %v789_v54 = vld [vmem:[%s15243_s26 + $0x36b0] sm:$0xff] }
  0xbe   : > { %786 = vst [vmem:[%s15248_s28 + $0x9a0] sm:$0xff] %v785_v52  ;;  %v791_v55 = vld [vmem:[%s15243_s26 + $0x36b8] sm:$0xff]  ;;  %788 = vst [vmem:[%s15248_s28 + $0x9a8] sm:$0xff] %v787_v53  ;;  %v793_v56 = vld [vmem:[%s15243_s26 + $0x36c0] sm:$0xff] }
  0xbf   : > { %790 = vst [vmem:[%s15248_s28 + $0x9b0] sm:$0xff] %v789_v54  ;;  %792 = vst [vmem:[%s15248_s28 + $0x9b8] sm:$0xff] %v791_v55  ;;  %v795_v57 = vld [vmem:[%s15243_s26 + $0x36c8] sm:$0xff]  ;;  %v797_v58 = vld [vmem:[%s15243_s26 + $0x36d0] sm:$0xff] }
  0xc0   : > { %794 = vst [vmem:[%s15248_s28 + $0x9c0] sm:$0xff] %v793_v56  ;;  %796 = vst [vmem:[%s15248_s28 + $0x9c8] sm:$0xff] %v795_v57  ;;  %v799_v59 = vld [vmem:[%s15243_s26 + $0x36d8] sm:$0xff]  ;;  %v801_v60 = vld [vmem:[%s15243_s26 + $0x36e0] sm:$0xff] }
  0xc1   : > { %798 = vst [vmem:[%s15248_s28 + $0x9d0] sm:$0xff] %v797_v58  ;;  %v803_v61 = vld [vmem:[%s15243_s26 + $0x36e8] sm:$0xff]  ;;  %800 = vst [vmem:[%s15248_s28 + $0x9d8] sm:$0xff] %v799_v59  ;;  %v805_v62 = vld [vmem:[%s15243_s26 + $0x36f0] sm:$0xff] }
  0xc2   : > { %802 = vst [vmem:[%s15248_s28 + $0x9e0] sm:$0xff] %v801_v60  ;;  %804 = vst [vmem:[%s15248_s28 + $0x9e8] sm:$0xff] %v803_v61  ;;  %v807_v63 = vld [vmem:[%s15243_s26 + $0x36f8] sm:$0xff] }
  0xc3   : > { %806 = vst [vmem:[%s15248_s28 + $0x9f0] sm:$0xff] %v805_v62  ;;  %808 = vst [vmem:[%s15248_s28 + $0x9f8] sm:$0xff] %v807_v63 }
  0xc4 PF: > { %p12825_p0 = scmp.ge.s32.totalorder %s15119_s21, 1  ;;  %p813_p1 = scmp.lt.s32.totalorder %s15119_s21, 25 }
  0xc6   : > { %p814_p2 = pnand %p12825_p0, %p813_p1 }
  0xc8   : > { %817 = sbr.rel (%p814_p2) target bundleno = 1712 (0x6b0), region = 51 }
  0xcf   : > { %s820_s5 = sand.u32 1, %s15095_s15   ;;  %s840_s9 = sand.u32 1, %s15087_s13   ;;  %v845_v0 = vld [vmem:[%s23231_s0] sm:$0x3f]  ;;  %v23235_v1 = vmov 0.0   ;;  %vm1166_vm0 = vcmask 613376  }
  0xd0   : > { %s14918_s22 = smul.u32 2560, %s820_s5  ;;  %s15896_s23 = sshll.u32 %s840_s9, 8  ;;  %1351 = vmatprep.mubr.f32.mxu0 %v23235_v1  ;;  %2050 = vmatprep.mubr.f32.mxu1 %v23235_v1  ;;  %v1168_v2 = vsel %vm1166_vm0, %v845_v0, 0  ;;  %vm1170_vm1 = vcmask 1042432  }
  0xd1   : > { %v15900_v3 = vand.u32 4294901760, %v1168_v2  ;;  %s22903_s15 = scalar_lea.vmem [#allocation3], %s15896_s23  ;;  %p12827_p3 = scmp.ne.s32.totalorder %s15103_s17, 0 }
  0xd2   : > { %s15902_s27 = scalar_lea.vmem [#allocation2], %s14918_s22 }
  0xd3   : > { %24272 = vst [vmem:[#allocation6_spill] sm:$0xff] %v15900_v3  ;;  %v847_v4 = vld [vmem:[%s15902_s27 + $0x8] sm:$0xff]  ;;  %v849_v6 = vld [vmem:[%s15902_s27 + $0x18] sm:$0xff]  ;;  %v846_v11 = vld [vmem:[%s15902_s27] sm:$0xff]  ;;  %v15914_v19 = vsub.f32 %v1168_v2, %v15900_v3 }
  0xd4   : > { %v879_v5 = vld [vmem:[%s15902_s27 + $0x108] sm:$0xff]  ;;  %v1267_v7 = vand.u32 4294901760, %v847_v4  ;;  %v881_v9 = vld [vmem:[%s15902_s27 + $0x118] sm:$0xff]  ;;  %v1966_v10 = vand.u32 4294901760, %v849_v6  ;;  %v878_v12 = vld [vmem:[%s15902_s27 + $0x100] sm:$0xff]  ;;  %v1269_v14 = vand.u32 4294901760, %v846_v11 }
  0xd5   : > { %v1271_v8 = vand.u32 4294901760, %v879_v5  ;;  %v1970_v13 = vand.u32 4294901760, %v881_v9  ;;  %v1273_v15 = vand.u32 4294901760, %v878_v12  ;;  %v848_v16 = vld [vmem:[%s15902_s27 + $0x10] sm:$0xff]  ;;  %v911_v18 = vld [vmem:[%s15902_s27 + $0x208] sm:$0xff]  ;;  %24273 = vst [vmem:[#allocation7_spill] sm:$0xff] %v15914_v19 }
  0xd6   : > { %v880_v17 = vld [vmem:[%s15902_s27 + $0x110] sm:$0xff]  ;;  %v15918_v21 = vsub.f32 %v847_v4, %v1267_v7  ;;  %v15922_v23 = vsub.f32 %v849_v6, %v1966_v10  ;;  %v943_v24 = vld [vmem:[%s15902_s27 + $0x308] sm:$0xff]  ;;  %v913_v25 = vld [vmem:[%s15902_s27 + $0x218] sm:$0xff]  ;;  %v15933_v30 = vsub.f32 %v846_v11, %v1269_v14  ;;  %v1968_v33 = vand.u32 4294901760, %v848_v16 }
  0xd7   : > { %v15916_v20 = vpack.c.bf16 %v1271_v8, %v1267_v7  ;;  %v15920_v22 = vsub.f32 %v879_v5, %v1271_v8  ;;  %v945_v26 = vld [vmem:[%s15902_s27 + $0x318] sm:$0xff]  ;;  %v15927_v27 = vpack.c.bf16 %v1970_v13, %v1966_v10  ;;  %v15929_v28 = vsub.f32 %v881_v9, %v1970_v13  ;;  %v910_v31 = vld [vmem:[%s15902_s27 + $0x200] sm:$0xff]  ;;  %v912_v41 = vld [vmem:[%s15902_s27 + $0x210] sm:$0xff] }
  0xd8   : > { %v15931_v29 = vpack.c.bf16 %v1273_v15, %v1269_v14  ;;  %v15937_v32 = vsub.f32 %v878_v12, %v1273_v15  ;;  %v1972_v34 = vand.u32 4294901760, %v880_v17  ;;  %v1275_v35 = vand.u32 4294901760, %v911_v18  ;;  %v942_v36 = vld [vmem:[%s15902_s27 + $0x300] sm:$0xff]  ;;  %v944_v42 = vld [vmem:[%s15902_s27 + $0x310] sm:$0xff]  ;;  %v975_v47 = vld [vmem:[%s15902_s27 + $0x408] sm:$0xff] }
  0xd9   : > { %24274 = vst [vmem:[#allocation8_spill] sm:$0xff] %v15927_v27  ;;  %12837 = vmatprep.subr.bf16.mxu0 %v15916_v20  ;;  %12957 = vmatprep.subr.bf16.mxu1 %v15927_v27  ;;  %v1279_v37 = vand.u32 4294901760, %v943_v24  ;;  %v1974_v38 = vand.u32 4294901760, %v913_v25  ;;  %v1978_v39 = vand.u32 4294901760, %v945_v26  ;;  %v1277_v40 = vand.u32 4294901760, %v910_v31  ;;  %v1007_v48 = vld [vmem:[%s15902_s27 + $0x508] sm:$0xff] }
  0xda   : > { %24275 = vst [vmem:[#allocation9_spill] sm:$0xff] %v15931_v29  ;;  %12839 = vmatpush1.bf16.msra.mxu0 %v15931_v29  ;;  %v15944_v43 = vpack.c.bf16 %v1972_v34, %v1968_v33  ;;  %v15946_v44 = vsub.f32 %v848_v16, %v1968_v33  ;;  %v15948_v45 = vsub.f32 %v880_v17, %v1972_v34  ;;  %v977_v49 = vld [vmem:[%s15902_s27 + $0x418] sm:$0xff]  ;;  %v1281_v56 = vand.u32 4294901760, %v942_v36  ;;  %v974_v63 = vld [vmem:[%s15902_s27 + $0x400] sm:$0xff]  ;;  %v976_v7 = vld [vmem:[%s15902_s27 + $0x410] sm:$0xff] }
  0xdb   : > { %v15950_v46 = vsub.f32 %v911_v18, %v1275_v35  ;;  %v15955_v50 = vpack.c.bf16 %v1279_v37, %v1275_v35  ;;  %v15957_v51 = vsub.f32 %v943_v24, %v1279_v37  ;;  %v15959_v52 = vpack.c.bf16 %v1978_v39, %v1974_v38  ;;  %v1009_v54 = vld [vmem:[%s15902_s27 + $0x518] sm:$0xff]  ;;  %v1006_v0 = vld [vmem:[%s15902_s27 + $0x500] sm:$0xff]  ;;  %v1008_v8 = vld [vmem:[%s15902_s27 + $0x510] sm:$0xff] }
  0xdc   : > { %24276 = vst [vmem:[#allocation10_spill] sm:$0xff] %v15944_v43  ;;  %v15961_v53 = vsub.f32 %v913_v25, %v1974_v38  ;;  %12959 = vmatpush1.bf16.msra.mxu1 %v15944_v43  ;;  %v15965_v55 = vsub.f32 %v945_v26, %v1978_v39  ;;  %v15967_v57 = vsub.f32 %v910_v31, %v1277_v40  ;;  %v1976_v58 = vand.u32 4294901760, %v912_v41  ;;  %v1039_v9 = vld [vmem:[%s15902_s27 + $0x608] sm:$0xff]  ;;  %v1041_v15 = vld [vmem:[%s15902_s27 + $0x618] sm:$0xff]  ;;  %v1038_v39 = vld [vmem:[%s15902_s27 + $0x600] sm:$0xff] }
  0xdd   : > { %24277 = vst [vmem:[#allocation11_spill] sm:$0xff] %v15955_v50  ;;  %24278 = vst [vmem:[#allocation12_spill] sm:$0xff] %v15959_v52  ;;  %12841 = vmatprep.subr.bf16.mxu0 %v15955_v50  ;;  %12961 = vmatprep.subr.bf16.mxu1 %v15959_v52  ;;  %v1980_v59 = vand.u32 4294901760, %v944_v42  ;;  %v1283_v60 = vand.u32 4294901760, %v975_v47  ;;  %v1287_v61 = vand.u32 4294901760, %v1007_v48  ;;  %v1982_v62 = vand.u32 4294901760, %v977_v49 }
  0xde   : > { %v15973_v2 = vpack.c.bf16 %v1281_v56, %v1277_v40  ;;  %v15975_v4 = vsub.f32 %v942_v36, %v1281_v56  ;;  %v15977_v5 = vsub.f32 %v912_v41, %v1976_v58  ;;  %v1986_v6 = vand.u32 4294901760, %v1009_v54  ;;  %v1071_v14 = vld [vmem:[%s15902_s27 + $0x708] sm:$0xff]  ;;  %v1073_v16 = vld [vmem:[%s15902_s27 + $0x718] sm:$0xff] }
  0xdf   : > { %v15982_v10 = vpack.c.bf16 %v1980_v59, %v1976_v58  ;;  %v15984_v11 = vsub.f32 %v944_v42, %v1980_v59  ;;  %v15986_v12 = vpack.c.bf16 %v1287_v61, %v1283_v60  ;;  %v15988_v13 = vsub.f32 %v975_v47, %v1283_v60 }
  0xe0   : > { %24279 = vst [vmem:[#allocation13_spill] sm:$0xff] %v15973_v2  ;;  %12843 = vmatpush1.bf16.msra.mxu0 %v15973_v2  ;;  %v15994_v17 = vsub.f32 %v1007_v48, %v1287_v61  ;;  %v15996_v18 = vpack.c.bf16 %v1986_v6, %v1982_v62  ;;  %v15998_v24 = vsub.f32 %v977_v49, %v1982_v62  ;;  %v1285_v26 = vand.u32 4294901760, %v974_v63  ;;  %v1070_v48 = vld [vmem:[%s15902_s27 + $0x700] sm:$0xff]  ;;  %v1040_v49 = vld [vmem:[%s15902_s27 + $0x610] sm:$0xff]  ;;  %v1103_v61 = vld [vmem:[%s15902_s27 + $0x808] sm:$0xff] }
  0xe1   : > { %24280 = vst [vmem:[#allocation14_spill] sm:$0xff] %v15982_v10  ;;  %24281 = vst [vmem:[#allocation15_spill] sm:$0xff] %v15986_v12  ;;  %v16000_v25 = vsub.f32 %v1009_v54, %v1986_v6  ;;  %12963 = vmatpush1.bf16.msra.mxu1 %v15982_v10  ;;  %12845 = vmatprep.subr.bf16.mxu0 %v15986_v12  ;;  %v1289_v31 = vand.u32 4294901760, %v1006_v0  ;;  %v1984_v33 = vand.u32 4294901760, %v976_v7  ;;  %v1988_v34 = vand.u32 4294901760, %v1008_v8  ;;  %v1072_v54 = vld [vmem:[%s15902_s27 + $0x710] sm:$0xff] }
  0xe2   : > { %24282 = vst [vmem:[#allocation16_spill] sm:$0xff] %v15996_v18  ;;  %12965 = vmatprep.subr.bf16.mxu1 %v15996_v18  ;;  %v1291_v35 = vand.u32 4294901760, %v1039_v9  ;;  %v1295_v36 = vand.u32 4294901760, %v1071_v14  ;;  %v1990_v37 = vand.u32 4294901760, %v1041_v15  ;;  %v1994_v38 = vand.u32 4294901760, %v1073_v16 }
  0xe3   : > { %v16006_v40 = vpack.c.bf16 %v1289_v31, %v1285_v26  ;;  %v16008_v41 = vsub.f32 %v974_v63, %v1285_v26  ;;  %v16010_v42 = vsub.f32 %v1006_v0, %v1289_v31  ;;  %v16012_v47 = vpack.c.bf16 %v1988_v34, %v1984_v33  ;;  %v1135_v62 = vld [vmem:[%s15902_s27 + $0x908] sm:$0x7]  ;;  %v1137_v63 = vld [vmem:[%s15902_s27 + $0x918] sm:$0x7] }
  0xe4   : > { %v16017_v56 = vsub.f32 %v976_v7, %v1984_v33  ;;  %v16019_v58 = vsub.f32 %v1008_v8, %v1988_v34  ;;  %v16021_v59 = vpack.c.bf16 %v1295_v36, %v1291_v35  ;;  %v16023_v60 = vsub.f32 %v1039_v9, %v1291_v35  ;;  %v1105_v34 = vld [vmem:[%s15902_s27 + $0x818] sm:$0xff]  ;;  %v1134_v35 = vld [vmem:[%s15902_s27 + $0x900] sm:$0x7] }
  0xe5   : > { %24283 = vst [vmem:[#allocation17_spill] sm:$0xff] %v16006_v40  ;;  %24284 = vst [vmem:[#allocation18_spill] sm:$0xff] %v16012_v47  ;;  %12847 = vmatpush1.bf16.msra.mxu0 %v16006_v40  ;;  %12967 = vmatpush1.bf16.msra.mxu1 %v16012_v47  ;;  %v16030_v0 = vsub.f32 %v1071_v14, %v1295_v36  ;;  %v16032_v6 = vpack.c.bf16 %v1994_v38, %v1990_v37  ;;  %v1293_v8 = vand.u32 4294901760, %v1038_v39  ;;  %v1136_v47 = vld [vmem:[%s15902_s27 + $0x910] sm:$0x7] }
  0xe6   : > { %24285 = vst [vmem:[#allocation19_spill] sm:$0xff] %v16021_v59  ;;  %v16034_v7 = vsub.f32 %v1041_v15, %v1990_v37  ;;  %12849 = vmatprep.subr.bf16.mxu0 %v16021_v59  ;;  %v16037_v9 = vsub.f32 %v1073_v16, %v1994_v38  ;;  %v1297_v26 = vand.u32 4294901760, %v1070_v48  ;;  %v1992_v31 = vand.u32 4294901760, %v1040_v49  ;;  %v1102_v37 = vld [vmem:[%s15902_s27 + $0x800] sm:$0xff] }
  0xe7   : > { %24286 = vst [vmem:[#allocation20_spill] sm:$0xff] %v16032_v6  ;;  %v1996_v33 = vand.u32 4294901760, %v1072_v54  ;;  %12969 = vmatprep.subr.bf16.mxu1 %v16032_v6  ;;  %v16042_v14 = vsub.f32 %v1038_v39, %v1293_v8  ;;  %v1175_v36 = vsel %vm1170_vm1, %v1135_v62, 0  ;;  %v1299_v1 = vand.u32 4294901760, %v1103_v61  ;;  %v1104_v62 = vld [vmem:[%s15902_s27 + $0x810] sm:$0xff] }
  0xe8   : > { %v1181_v15 = vsel %vm1170_vm1, %v1137_v63, 0  ;;  %v16048_v59 = vpack.c.bf16 %v1297_v26, %v1293_v8  ;;  %v16050_v16 = vsub.f32 %v1070_v48, %v1297_v26  ;;  %v16054_v40 = vsub.f32 %v1040_v49, %v1992_v31 }
  0xe9   : > { %v16052_v38 = vpack.c.bf16 %v1996_v33, %v1992_v31  ;;  %v16056_v18 = vsub.f32 %v1072_v54, %v1996_v33  ;;  %v1303_v6 = vand.u32 4294901760, %v1175_v36  ;;  %v16058_v39 = vsub.f32 %v1103_v61, %v1299_v1 }
  0xea   : > { %24287 = vst [vmem:[#allocation21_spill] sm:$0xff] %v16048_v59  ;;  %v1998_v10 = vand.u32 4294901760, %v1105_v34  ;;  %12851 = vmatpush1.bf16.msra.mxu0 %v16048_v59  ;;  %v2002_v63 = vand.u32 4294901760, %v1181_v15  ;;  %v1172_v8 = vsel %vm1170_vm1, %v1134_v35, 0  ;;  %v1301_v48 = vand.u32 4294901760, %v1102_v37 }
  0xeb   : > { %24288 = vst [vmem:[#allocation22_spill] sm:$0xff] %v16052_v38  ;;  %12971 = vmatpush1.bf16.msra.mxu1 %v16052_v38  ;;  %v1178_v26 = vsel %vm1170_vm1, %v1136_v47, 0  ;;  %v16065_v12 = vpack.c.bf16 %v1303_v6, %v1299_v1  ;;  %v16067_v49 = vsub.f32 %v1175_v36, %v1303_v6  ;;  %v1305_v61 = vand.u32 4294901760, %v1172_v8 }
  0xec   : > { %v16069_v54 = vsub.f32 %v1105_v34, %v1998_v10  ;;  %v16071_v31 = vpack.c.bf16 %v2002_v63, %v1998_v10  ;;  %v16073_v33 = vsub.f32 %v1181_v15, %v2002_v63  ;;  %v16075_v59 = vsub.f32 %v1102_v37, %v1301_v48 }
  0xed   : > { %24289 = vst [vmem:[#allocation23_spill] sm:$0xff] %v16065_v12  ;;  %v2000_v38 = vand.u32 4294901760, %v1104_v62  ;;  %12853 = vmatprep.subr.bf16.mxu0 %v16065_v12  ;;  %v16078_v35 = vpack.c.bf16 %v1305_v61, %v1301_v48  ;;  %v16080_v2 = vsub.f32 %v1172_v8, %v1305_v61  ;;  %v2004_v1 = vand.u32 4294901760, %v1178_v26 }
  0xee   : > { %24290 = vst [vmem:[#allocation24_spill] sm:$0xff] %v16071_v31  ;;  %v23257_v47 = vand.u32 4294901760, %v15918_v21  ;;  %12973 = vmatprep.subr.bf16.mxu1 %v16071_v31  ;;  %v23258_v10 = vand.u32 4294901760, %v15920_v22  ;;  %v23265_v34 = vand.u32 4294901760, %v15922_v23  ;;  %v23266_v36 = vand.u32 4294901760, %v15929_v28 }
  0xef   : > { %24291 = vst [vmem:[#allocation25_spill] sm:$0xff] %v16078_v35  ;;  %v16084_v6 = vsub.f32 %v1104_v62, %v2000_v38  ;;  %12855 = vmatpush1.bf16.msra.mxu0 %v16078_v35  ;;  %v16090_v15 = vpack.c.bf16 %v2004_v1, %v2000_v38  ;;  %v16092_v37 = vsub.f32 %v1178_v26, %v2004_v1  ;;  %v16098_v8 = vand.u32 4294901760, %v15914_v19 }
  0xf0   : > { %v1366_v63 = vsub.f32 %v15918_v21, %v23257_v47  ;;  %v1378_v62 = vsub.f32 %v15920_v22, %v23258_v10  ;;  %v2065_v48 = vsub.f32 %v15922_v23, %v23265_v34  ;;  %v2077_v38 = vsub.f32 %v15929_v28, %v23266_v36 }
  0xf1   : > { %24292 = vst [vmem:[#allocation26_spill] sm:$0xff] %v16090_v15  ;;  %24293 = vst [vmem:[#allocation27_spill] sm:$0xff] %v16098_v8  ;;  %v23273_v26 = vand.u32 4294901760, %v15933_v30  ;;  %12975 = vmatpush1.bf16.msra.mxu1 %v16090_v15  ;;  %v1355_v1 = vsub.f32 %v15914_v19, %v16098_v8  ;;  %v23274_v47 = vand.u32 4294901760, %v15937_v32  ;;  %v23280_v10 = vand.u32 4294901760, %v15946_v44 }
  0xf2   : > { %v1367_v61 = vand.u32 4294901760, %v1366_v63  ;;  %v1379_v35 = vand.u32 4294901760, %v1378_v62  ;;  %v2066_v31 = vand.u32 4294901760, %v2065_v48  ;;  %v2078_v12 = vand.u32 4294901760, %v2077_v38 }
  0xf3   : > { %v1372_v34 = vsub.f32 %v15933_v30, %v23273_v26  ;;  %v16118_v36 = vand.u32 4294901760, %v1355_v1  ;;  %v1384_v63 = vsub.f32 %v15937_v32, %v23274_v47  ;;  %v2071_v8 = vsub.f32 %v15946_v44, %v23280_v10 }
  0xf4   : > { %v23277_v15 = vand.u32 4294901760, %v15948_v45  ;;  %v12856_v52 = vpack.c.bf16 %v1379_v35, %v1367_v61  ;;  %v12976_v62 = vpack.c.bf16 %v2078_v12, %v2066_v31  ;;  %v23278_v38 = vand.u32 4294901760, %v15950_v46 }
  0xf5   : > { %24294 = vst [vmem:[#allocation28_spill] sm:$0xff] %v16118_v36  ;;  %v1373_v48 = vand.u32 4294901760, %v1372_v34  ;;  %1357 = vmatmul.mubr.f32.vlgmr.msra.gmra.mrb[0].mxu0 %v16118_v36  ;;  %v1385_v26 = vand.u32 4294901760, %v1384_v63  ;;  %2056 = vmatmul.mubr.f32.vlgmr.msra.gmra.mrb[0].mxu1 %v16118_v36  ;;  %v2072_v1 = vand.u32 4294901760, %v2071_v8  ;;  %v23279_v43 = vand.u32 4294901760, %v15957_v51 }
  0xf6   : > { %v2083_v47 = vsub.f32 %v15948_v45, %v23277_v15  ;;  %12857 = vmatprep.subr.bf16.mxu0 %v12856_v52  ;;  %12977 = vmatprep.subr.bf16.mxu1 %v12976_v62  ;;  %v1390_v12 = vsub.f32 %v15950_v46, %v23278_v38  ;;  %v23285_v31 = vand.u32 4294901760, %v15961_v53  ;;  %v23288_v35 = vand.u32 4294901760, %v15965_v55 }
  0xf7   : > { %v23314_v34 = vand.u32 4294901760, %v15967_v57  ;;  %v12858_v61 = vpack.c.bf16 %v1385_v26, %v1373_v48  ;;  %v1402_v63 = vsub.f32 %v15957_v51, %v23279_v43  ;;  %v23304_v15 = vand.u32 4294901760, %v15975_v4 }
  0xf8   : > { %v2084_v8 = vand.u32 4294901760, %v2083_v47  ;;  %v24295_v52 = vmov 0.0   ;;  %v1391_v62 = vand.u32 4294901760, %v1390_v12  ;;  %v2089_v38 = vsub.f32 %v15961_v53, %v23285_v31 }
  0xf9   : > { %1527 = vmatprep.mubr.f32.mxu0 %v24295_v52  ;;  %2226 = vmatprep.mubr.f32.mxu1 %v24295_v52  ;;  %v2101_v26 = vsub.f32 %v15965_v55, %v23288_v35  ;;  %v1396_v47 = vsub.f32 %v15967_v57, %v23314_v34  ;;  %v1403_v43 = vand.u32 4294901760, %v1402_v63  ;;  %v1408_v10 = vsub.f32 %v15975_v4, %v23304_v15 }
  0xfa   : > { %12859 = vmatpush1.bf16.msra.mxu0 %v12858_v61  ;;  %v12978_v48 = vpack.c.bf16 %v2084_v8, %v2072_v1  ;;  %v23296_v12 = vand.u32 4294901760, %v15977_v5  ;;  %v2090_v36 = vand.u32 4294901760, %v2089_v38  ;;  %v23292_v29 = vand.u32 4294901760, %v15984_v11 }
  0xfb   : > { %v2102_v50 = vand.u32 4294901760, %v2101_v26  ;;  %v1397_v31 = vand.u32 4294901760, %v1396_v47  ;;  %v12860_v35 = vpack.c.bf16 %v1403_v43, %v1391_v62  ;;  %v1409_v19 = vand.u32 4294901760, %v1408_v10 }
  0xfc   : > { %12979 = vmatpush1.bf16.msra.mxu1 %v12978_v48  ;;  %v2095_v61 = vsub.f32 %v15977_v5, %v23296_v12  ;;  %v23291_v1 = vand.u32 4294901760, %v15988_v13  ;;  %v2107_v63 = vsub.f32 %v15984_v11, %v23292_v29  ;;  %v23293_v38 = vand.u32 4294901760, %v15994_v17 }
  0xfd   : > { %v12980_v8 = vpack.c.bf16 %v2102_v50, %v2090_v36  ;;  %v23294_v26 = vand.u32 4294901760, %v15998_v24  ;;  %12861 = vmatprep.subr.bf16.mxu0 %v12860_v35  ;;  %v12862_v47 = vpack.c.bf16 %v1409_v19, %v1397_v31  ;;  %v23295_v10 = vand.u32 4294901760, %v16000_v25 }
  0xfe   : > { %v2096_v48 = vand.u32 4294901760, %v2095_v61  ;;  %v1414_v43 = vsub.f32 %v15988_v13, %v23291_v1  ;;  %v2108_v62 = vand.u32 4294901760, %v2107_v63  ;;  %v1426_v50 = vsub.f32 %v15994_v17, %v23293_v38 }
  0xff   : > { %12981 = vmatprep.subr.bf16.mxu1 %v12980_v8  ;;  %v2113_v36 = vsub.f32 %v15998_v24, %v23294_v26  ;;  %v23297_v35 = vand.u32 4294901760, %v16008_v41  ;;  %12863 = vmatpush1.bf16.msra.mxu0 %v12862_v47  ;;  %v2125_v31 = vsub.f32 %v16000_v25, %v23295_v10  ;;  %v23298_v61 = vand.u32 4294901760, %v16010_v42 }
 0x100   : > { %v1415_v19 = vand.u32 4294901760, %v1414_v43  ;;  %v23299_v8 = vand.u32 4294901760, %v16017_v56  ;;  %v12982_v63 = vpack.c.bf16 %v2108_v62, %v2096_v48  ;;  %v1427_v1 = vand.u32 4294901760, %v1426_v50 }
 0x101   : > { %v2114_v29 = vand.u32 4294901760, %v2113_v36  ;;  %v1420_v38 = vsub.f32 %v16008_v41, %v23297_v35  ;;  %v2126_v26 = vand.u32 4294901760, %v2125_v31  ;;  %v1432_v47 = vsub.f32 %v16010_v42, %v23298_v61 }
 0x102   : > { %v2119_v43 = vsub.f32 %v16017_v56, %v23299_v8  ;;  %v23302_v10 = vand.u32 4294901760, %v16019_v58  ;;  %12983 = vmatpush1.bf16.msra.mxu1 %v12982_v63  ;;  %v12864_v12 = vpack.c.bf16 %v1427_v1, %v1415_v19  ;;  %v23300_v62 = vand.u32 4294901760, %v16023_v60 }
 0x103   : > { %v1421_v48 = vand.u32 4294901760, %v1420_v38  ;;  %v23301_v50 = vand.u32 4294901760, %v16030_v0  ;;  %v12984_v36 = vpack.c.bf16 %v2126_v26, %v2114_v29  ;;  %v1433_v35 = vand.u32 4294901760, %v1432_v47 }
 0x104   : > { %v2120_v31 = vand.u32 4294901760, %v2119_v43  ;;  %v2131_v61 = vsub.f32 %v16019_v58, %v23302_v10  ;;  %12865 = vmatprep.subr.bf16.mxu0 %v12864_v12  ;;  %v1438_v8 = vsub.f32 %v16023_v60, %v23300_v62  ;;  %v23303_v38 = vand.u32 4294901760, %v16034_v7 }
 0x105   : > { %v1450_v1 = vsub.f32 %v16030_v0, %v23301_v50  ;;  %v23305_v19 = vand.u32 4294901760, %v16037_v9  ;;  %12985 = vmatprep.subr.bf16.mxu1 %v12984_v36  ;;  %v12866_v29 = vpack.c.bf16 %v1433_v35, %v1421_v48  ;;  %v23313_v63 = vand.u32 4294901760, %v16042_v14 }
 0x106   : > { %v2132_v26 = vand.u32 4294901760, %v2131_v61  ;;  %v23306_v47 = vand.u32 4294901760, %v16050_v16  ;;  %v1439_v12 = vand.u32 4294901760, %v1438_v8  ;;  %v2137_v62 = vsub.f32 %v16034_v7, %v23303_v38 }
 0x107   : > { %v1451_v43 = vand.u32 4294901760, %v1450_v1  ;;  %v2149_v50 = vsub.f32 %v16037_v9, %v23305_v19  ;;  %12867 = vmatpush1.bf16.msra.mxu0 %v12866_v29  ;;  %v1444_v35 = vsub.f32 %v16042_v14, %v23313_v63  ;;  %v23311_v8 = vand.u32 4294901760, %v16054_v40 }
 0x108   : > { %v12986_v10 = vpack.c.bf16 %v2132_v26, %v2120_v31  ;;  %v1456_v61 = vsub.f32 %v16050_v16, %v23306_v47  ;;  %v2138_v36 = vand.u32 4294901760, %v2137_v62  ;;  %v23308_v38 = vand.u32 4294901760, %v16056_v18 }
 0x109   : > { %v12868_v48 = vpack.c.bf16 %v1451_v43, %v1439_v12  ;;  %v2150_v1 = vand.u32 4294901760, %v2149_v50  ;;  %v1445_v15 = vand.u32 4294901760, %v1444_v35  ;;  %v2143_v31 = vsub.f32 %v16054_v40, %v23311_v8 }
 0x10a   : > { %12987 = vmatpush1.bf16.msra.mxu1 %v12986_v10  ;;  %v1457_v19 = vand.u32 4294901760, %v1456_v61  ;;  %v23307_v29 = vand.u32 4294901760, %v16058_v39  ;;  %v2155_v47 = vsub.f32 %v16056_v18, %v23308_v38  ;;  %v23309_v62 = vand.u32 4294901760, %v16067_v49 }
 0x10b   : > { %12869 = vmatprep.subr.bf16.mxu0 %v12868_v48  ;;  %v12988_v26 = vpack.c.bf16 %v2150_v1, %v2138_v36  ;;  %v23310_v50 = vand.u32 4294901760, %v16069_v54  ;;  %v2144_v10 = vand.u32 4294901760, %v2143_v31  ;;  %v23312_v35 = vand.u32 4294901760, %v16073_v33 }
 0x10c   : > { %v12870_v12 = vpack.c.bf16 %v1457_v19, %v1445_v15  ;;  %v1462_v43 = vsub.f32 %v16058_v39, %v23307_v29  ;;  %v2156_v61 = vand.u32 4294901760, %v2155_v47  ;;  %v1474_v48 = vsub.f32 %v16067_v49, %v23309_v62 }
 0x10d   : > { %12989 = vmatprep.subr.bf16.mxu1 %v12988_v26  ;;  %v2161_v36 = vsub.f32 %v16069_v54, %v23310_v50  ;;  %v23315_v1 = vand.u32 4294901760, %v16075_v59  ;;  %v2173_v19 = vsub.f32 %v16073_v33, %v23312_v35  ;;  %v1479_v31 = vand.u32 4294901760, %v16080_v2 }
 0x10e   : > { %12871 = vmatpush1.bf16.msra.mxu0 %v12870_v12  ;;  %v1463_v15 = vand.u32 4294901760, %v1462_v43  ;;  %v23316_v47 = vand.u32 4294901760, %v16084_v6  ;;  %v12990_v26 = vpack.c.bf16 %v2156_v61, %v2144_v10  ;;  %v1475_v29 = vand.u32 4294901760, %v1474_v48 }
 0x10f   : > { %v2162_v38 = vand.u32 4294901760, %v2161_v36  ;;  %v1468_v62 = vsub.f32 %v16075_v59, %v23315_v1  ;;  %v2174_v50 = vand.u32 4294901760, %v2173_v19  ;;  %v1480_v8 = vsub.f32 %v16080_v2, %v1479_v31 }
 0x110   : > { %v2167_v12 = vsub.f32 %v16084_v6, %v23316_v47  ;;  %v2178_v43 = vand.u32 4294901760, %v16092_v37  ;;  %12991 = vmatpush1.bf16.msra.mxu1 %v12990_v26  ;;  %v12872_v35 = vpack.c.bf16 %v1475_v29, %v1463_v15  ;;  %v12876_v36 = vpack.c.bf16 %v15920_v22, %v15918_v21 }
 0x111   : > { %v1469_v63 = vand.u32 4294901760, %v1468_v62  ;;  %v12992_v34 = vpack.c.bf16 %v2174_v50, %v2162_v38  ;;  %v1481_v10 = vand.u32 4294901760, %v1480_v8  ;;  %v12996_v47 = vpack.c.bf16 %v15929_v28, %v15922_v23 }
 0x112   : > { %v2168_v61 = vand.u32 4294901760, %v2167_v12  ;;  %v2179_v48 = vsub.f32 %v16092_v37, %v2178_v43  ;;  %12873 = vmatprep.subr.bf16.mxu0 %v12872_v35  ;;  %v12878_v29 = vpack.c.bf16 %v15937_v32, %v15933_v30  ;;  %v12998_v38 = vpack.c.bf16 %v15948_v45, %v15946_v44 }
 0x113   : > { %12993 = vmatprep.subr.bf16.mxu1 %v12992_v34  ;;  %v12874_v19 = vpack.c.bf16 %v1481_v10, %v1469_v63  ;;  %v12880_v8 = vpack.c.bf16 %v15957_v51, %v15950_v46  ;;  %v13000_v34 = vpack.c.bf16 %v15965_v55, %v15961_v53  ;;  %v12882_v63 = vpack.c.bf16 %v15975_v4, %v15967_v57 }
 0x114   : > { %v2180_v1 = vand.u32 4294901760, %v2179_v48  ;;  %v13002_v62 = vpack.c.bf16 %v15984_v11, %v15977_v5  ;;  %v12884_v50 = vpack.c.bf16 %v15994_v17, %v15988_v13  ;;  %v13004_v35 = vpack.c.bf16 %v16000_v25, %v15998_v24 }
 0x115   : > { %12875 = vmatpush1.bf16.msra.mxu0 %v12874_v19  ;;  %v24297_v15 = vand.u32 4294901760, %v15920_v22  ;;  %v24298_v12 = vand.u32 4294901760, %v15922_v23  ;;  %v24299_v10 = vand.u32 4294901760, %v15929_v28  ;;  %v24300_v48 = vand.u32 4294901760, %v15933_v30 }
 0x116   : > { %v12994_v27 = vpack.c.bf16 %v2180_v1, %v2168_v61  ;;  %12877 = vmatprep.subr.bf16.mxu0 %v12876_v36  ;;  %v24296_v1 = vand.u32 4294901760, %v15918_v21  ;;  %v24301_v36 = vand.u32 4294901760, %v15937_v32  ;;  %v24302_v21 = vand.u32 4294901760, %v15946_v44 }
 0x117   : > { %v16288_v61 = vpack.c.bf16 %v24299_v10, %v24298_v12  ;;  %v24303_v22 = vand.u32 4294901760, %v15948_v45  ;;  %v24304_v23 = vand.u32 4294901760, %v15950_v46  ;;  %v24305_v28 = vand.u32 4294901760, %v15957_v51 }
 0x118   : > { %12995 = vmatpush1.bf16.msra.mxu1 %v12994_v27  ;;  %v16282_v26 = vpack.c.bf16 %v24297_v15, %v24296_v1  ;;  %v16294_v27 = vpack.c.bf16 %v24301_v36, %v24300_v48  ;;  %1529 = vmatmul.mubr.f32.vlgmr.msra.gmra.mrb[0].mxu0 %v15900_v3  ;;  %v24306_v30 = vand.u32 4294901760, %v15961_v53  ;;  %v24307_v32 = vand.u32 4294901760, %v15965_v55 }
 0x119   : > { %12997 = vmatprep.subr.bf16.mxu1 %v12996_v47  ;;  %v16301_v19 = vpack.c.bf16 %v24303_v22, %v24302_v21  ;;  %v16307_v1 = vpack.c.bf16 %v24305_v28, %v24304_v23  ;;  %12879 = vmatpush1.bf16.msra.mxu0 %v12878_v29  ;;  %v24308_v44 = vand.u32 4294901760, %v15967_v57  ;;  %v24309_v45 = vand.u32 4294901760, %v15975_v4 }
 0x11a   : > { %v16313_v15 = vpack.c.bf16 %v24307_v32, %v24306_v30  ;;  %1639 = vmatprep.mubr.f32.mxu0 %v24295_v52  ;;  %v24310_v46 = vand.u32 4294901760, %v15977_v5  ;;  %v24311_v51 = vand.u32 4294901760, %v15984_v11  ;;  %v24312_v53 = vand.u32 4294901760, %v15988_v13  ;;  %12881 = vmatprep.subr.bf16.mxu0 %v12880_v8 }
 0x11b   : > { %v16320_v47 = vpack.c.bf16 %v24309_v45, %v24308_v44  ;;  %v24313_v55 = vand.u32 4294901760, %v15994_v17  ;;  %2228 = vmatmul.mubr.f32.vlgmr.msra.gmra.mrb[0].mxu1 %v15900_v3  ;;  %v24314_v57 = vand.u32 4294901760, %v15998_v24  ;;  %v24315_v4 = vand.u32 4294901760, %v16000_v25 }
 0x11c   : > { %v16326_v12 = vpack.c.bf16 %v24311_v51, %v24310_v46  ;;  %v24316_v5 = vand.u32 4294901760, %v16008_v41  ;;  %v24317_v11 = vand.u32 4294901760, %v16010_v42  ;;  %v24318_v13 = vand.u32 4294901760, %v16017_v56  ;;  %12999 = vmatpush1.bf16.msra.mxu1 %v12998_v38  ;;  %2338 = vmatprep.mubr.f32.mxu1 %v24295_v52 }
 0x11d   : > { %v16332_v10 = vpack.c.bf16 %v24313_v55, %v24312_v53  ;;  %v16339_v29 = vpack.c.bf16 %v24315_v4, %v24314_v57  ;;  %v24319_v17 = vand.u32 4294901760, %v16019_v58  ;;  %v24320_v24 = vand.u32 4294901760, %v16023_v60  ;;  %13001 = vmatprep.subr.bf16.mxu1 %v13000_v34  ;;  %12883 = vmatpush1.bf16.msra.mxu0 %v12882_v63  ;;  %v851_v63 = vld [vmem:[%s15902_s27 + $0x28] sm:$0xff] }
 0x11e   : > { %v16345_v48 = vpack.c.bf16 %v24317_v11, %v24316_v5  ;;  %v24321_v25 = vand.u32 4294901760, %v16030_v0  ;;  %v24322_v21 = vand.u32 4294901760, %v16034_v7  ;;  %v24323_v22 = vand.u32 4294901760, %v16037_v9  ;;  %12885 = vmatprep.subr.bf16.mxu0 %v12884_v50  ;;  %v24349_v50 = vld [vmem:[#allocation23_spill] sm:$0xff] }
 0x11f   : > { %v16351_v36 = vpack.c.bf16 %v24319_v17, %v24318_v13  ;;  %v24324_v28 = vand.u32 4294901760, %v16042_v14  ;;  %v24325_v30 = vand.u32 4294901760, %v16050_v16  ;;  %v24326_v38 = vand.u32 4294901760, %v16054_v40 }
 0x120   : > { %v16358_v8 = vpack.c.bf16 %v24321_v25, %v24320_v24  ;;  %v16364_v23 = vpack.c.bf16 %v24323_v22, %v24322_v21  ;;  %v24327_v44 = vand.u32 4294901760, %v16056_v18  ;;  %v24328_v46 = vand.u32 4294901760, %v16058_v39  ;;  %13003 = vmatpush1.bf16.msra.mxu1 %v13002_v62  ;;  %v883_v62 = vld [vmem:[%s15902_s27 + $0x128] sm:$0xff]  ;;  %v24351_v21 = vld [vmem:[#allocation24_spill] sm:$0xff] }
 0x121   : > { %v16370_v32 = vpack.c.bf16 %v24325_v30, %v24324_v28  ;;  %v24329_v51 = vand.u32 4294901760, %v16067_v49  ;;  %v24330_v55 = vand.u32 4294901760, %v16069_v54  ;;  %v24331_v57 = vand.u32 4294901760, %v16073_v33  ;;  %13005 = vmatprep.subr.bf16.mxu1 %v13004_v35  ;;  %v24350_v35 = vld [vmem:[#allocation22_spill] sm:$0xff]  ;;  %v16443_v30 = vld [vmem:[%s15902_s27 + $0x38] sm:$0xff] }
 0x122   : > { %v16376_v45 = vpack.c.bf16 %v24327_v44, %v24326_v38  ;;  %v24332_v34 = vand.u32 4294901760, %v16075_v59  ;;  %v12886_v11 = vpack.c.bf16 %v16010_v42, %v16008_v41  ;;  %v24333_v13 = vand.u32 4294901760, %v16084_v6  ;;  %v16446_v38 = vld [vmem:[%s15902_s27 + $0x138] sm:$0xff] }
 0x123   : > { %v16382_v53 = vpack.c.bf16 %v24329_v51, %v24328_v46  ;;  %v16388_v4 = vpack.c.bf16 %v24331_v57, %v24330_v55  ;;  %v12888_v24 = vpack.c.bf16 %v16030_v0, %v16023_v60  ;;  %v13006_v25 = vpack.c.bf16 %v16019_v58, %v16017_v56  ;;  %v24354_v44 = vld [vmem:[#allocation25_spill] sm:$0xff]  ;;  %v16450_v46 = vld [vmem:[%s15902_s27 + $0x20] sm:$0xff]  ;;  %v16457_v55 = vld [vmem:[%s15902_s27 + $0x30] sm:$0xff] }
 0x124   : > { %v16392_v5 = vpack.c.bf16 %v1479_v31, %v24332_v34  ;;  %v16398_v17 = vpack.c.bf16 %v2178_v43, %v24333_v13  ;;  %v13008_v31 = vpack.c.bf16 %v16037_v9, %v16034_v7  ;;  %12887 = vmatpush1.bf16.msra.mxu0 %v12886_v11  ;;  %v12890_v41 = vpack.c.bf16 %v16050_v16, %v16042_v14  ;;  %v24334_v7 = vld [vmem:[#allocation8_spill] sm:$0xff]  ;;  %v24340_v14 = vld [vmem:[#allocation13_spill] sm:$0xff]  ;;  %v24341_v16 = vld [vmem:[#allocation15_spill] sm:$0xff] }
 0x125   : > { %12889 = vmatprep.subr.bf16.mxu0 %v12888_v24  ;;  %v12892_v42 = vpack.c.bf16 %v16067_v49, %v16058_v39  ;;  %13007 = vmatpush1.bf16.msra.mxu1 %v13006_v25  ;;  %v13010_v60 = vpack.c.bf16 %v16056_v18, %v16054_v40  ;;  %v13012_v56 = vpack.c.bf16 %v16073_v33, %v16069_v54  ;;  %v24335_v18 = vld [vmem:[#allocation7_spill] sm:$0xff]  ;;  %v24336_v40 = vld [vmem:[#allocation9_spill] sm:$0xff]  ;;  %v24339_v9 = vld [vmem:[#allocation12_spill] sm:$0xff]  ;;  %v2665_v22 = vand.u32 4294901760, %v851_v63 }
 0x126   : > { %13009 = vmatprep.subr.bf16.mxu1 %v13008_v31  ;;  %v12894_v58 = vpack.c.bf16 %v16080_v2, %v16075_v59  ;;  %v13014_v0 = vpack.c.bf16 %v16092_v37, %v16084_v6  ;;  %v24337_v2 = vld [vmem:[#allocation11_spill] sm:$0xff]  ;;  %v24338_v59 = vld [vmem:[#allocation10_spill] sm:$0xff]  ;;  %v24343_v49 = vld [vmem:[#allocation16_spill] sm:$0xff]  ;;  %v2669_v28 = vand.u32 4294901760, %v883_v62  ;;  %24352 = vst [vmem:[#allocation8_spill] sm:$0xff] %v16443_v30  ;;  %v23320_v34 = vand.u32 4294901760, %v16443_v30 }
 0x127   : > { %v24342_v39 = vld [vmem:[#allocation14_spill] sm:$0xff]  ;;  %v24344_v54 = vld [vmem:[#allocation17_spill] sm:$0xff]  ;;  %v24345_v33 = vld [vmem:[#allocation19_spill] sm:$0xff]  ;;  %24353 = vst [vmem:[#allocation9_spill] sm:$0xff] %v16446_v38  ;;  %v23319_v11 = vand.u32 4294901760, %v16446_v38 }
 0x128   : > { %12891 = vmatpush1.bf16.msra.mxu0 %v12890_v41  ;;  %v24346_v6 = vld [vmem:[#allocation18_spill] sm:$0xff]  ;;  %v24347_v37 = vld [vmem:[#allocation20_spill] sm:$0xff]  ;;  %v24348_v43 = vld [vmem:[#allocation21_spill] sm:$0xff]  ;;  %24355 = vst [vmem:[#allocation11_spill] sm:$0xff] %v16450_v46  ;;  %v16473_v31 = vpack.c.bf16 %v2669_v28, %v2665_v22  ;;  %v16475_v41 = vsub.f32 %v851_v63, %v2665_v22 }
 0x129   : > { %12893 = vmatprep.subr.bf16.mxu0 %v12892_v42  ;;  %13011 = vmatpush1.bf16.msra.mxu1 %v13010_v60  ;;  %v16454_v51 = vld [vmem:[%s15902_s27 + $0x120] sm:$0xff]  ;;  %24357 = vst [vmem:[#allocation12_spill] sm:$0xff] %v16457_v55  ;;  %v16463_v13 = vld [vmem:[%s15902_s27 + $0x130] sm:$0xff]  ;;  %v16466_v24 = vld [vmem:[%s15902_s27 + $0x228] sm:$0xff]  ;;  %v16477_v42 = vsub.f32 %v883_v62, %v2669_v28  ;;  %v23321_v60 = vand.u32 4294901760, %v16450_v46  ;;  %v24375_v28 = vand.u32 4294901760, %v16457_v55 }
 0x12a   : > { %13013 = vmatprep.subr.bf16.mxu1 %v13012_v56  ;;  %24356 = vst [vmem:[#allocation10_spill] sm:$0xff] %v16454_v51  ;;  %v24358_v57 = vld [vmem:[#allocation26_spill] sm:$0xff]  ;;  %24359 = vst [vmem:[#allocation13_spill] sm:$0xff] %v16463_v13  ;;  %v16469_v25 = vld [vmem:[%s15902_s27 + $0x328] sm:$0xff] }
 0x12b   : > { %24360 = vst [vmem:[#allocation15_spill] sm:$0xff] %v16466_v24  ;;  %24361 = vst [vmem:[#allocation14_spill] sm:$0xff] %v16469_v25  ;;  %v16481_v56 = vld [vmem:[%s15902_s27 + $0x238] sm:$0xff]  ;;  %v16501_v22 = vld [vmem:[%s15902_s27 + $0x220] sm:$0xff] }
 0x12c   : > { %12895 = vmatpush1.bf16.msra.mxu0 %v12894_v58  ;;  %24363 = vst [vmem:[#allocation16_spill] sm:$0xff] %v16473_v31  ;;  %24364 = vst [vmem:[#allocation17_spill] sm:$0xff] %v16475_v41  ;;  %v16484_v58 = vld [vmem:[%s15902_s27 + $0x338] sm:$0xff]  ;;  %v16514_v62 = vld [vmem:[%s15902_s27 + $0x320] sm:$0xff] }
 0x12d   : > { %12897 = vmatprep.subr.bf16.mxu0 %v15916_v20  ;;  %13015 = vmatpush1.bf16.msra.mxu1 %v13014_v0  ;;  %24365 = vst [vmem:[#allocation29_spill] sm:$0xff] %v16477_v42  ;;  %24366 = vst [vmem:[#allocation30_spill] sm:$0xff] %v16481_v56  ;;  %v16496_v0 = vsub.f32 %v16446_v38, %v23319_v11  ;;  %v16517_v63 = vld [vmem:[%s15902_s27 + $0x230] sm:$0xff]  ;;  %v16529_v11 = vsub.f32 %v16457_v55, %v24375_v28  ;;  %v24380_v28 = vand.u32 4294901760, %v16466_v24  ;;  %v16613_v38 = vld [vmem:[%s15902_s27 + $0x628] sm:$0xff] }
 0x12e   : > { %13017 = vmatprep.subr.bf16.mxu1 %v24334_v7  ;;  %24367 = vst [vmem:[#allocation31_spill] sm:$0xff] %v16484_v58  ;;  %24370 = vst [vmem:[#allocation34_spill] sm:$0xff] %v16501_v22 }
 0x12f   : > { %1642 = vmatmul.mubr.f32.vlgmr.msra.gmra.mrb[0].mxu0 %v24335_v18  ;;  %24369 = vst [vmem:[#allocation33_spill] sm:$0xff] %v16496_v0  ;;  %24372 = vst [vmem:[#allocation36_spill] sm:$0xff] %v16514_v62 }
 0x130   : > { %12899 = vmatpush1.bf16.msra.mxu0 %v24336_v40  ;;  %1732 = vmatprep.mubr.f32.mxu0 %v24295_v52  ;;  %24373 = vst [vmem:[#allocation37_spill] sm:$0xff] %v16517_v63  ;;  %24394 = vst [vmem:[#allocation48_spill] sm:$0xff] %v16613_v38 }
 0x131   : > { %2341 = vmatmul.mubr.f32.vlgmr.msra.gmra.mrb[0].mxu1 %v24335_v18  ;;  %12901 = vmatprep.subr.bf16.mxu0 %v24337_v2  ;;  %v16534_v18 = vld [vmem:[%s15902_s27 + $0x330] sm:$0xff] }
 0x132   : > { %13019 = vmatpush1.bf16.msra.mxu1 %v24338_v59  ;;  %2431 = vmatprep.mubr.f32.mxu1 %v24295_v52  ;;  %24376 = vst [vmem:[#allocation38_spill] sm:$0xff] %v16534_v18 }
 0x133   : > { %13021 = vmatprep.subr.bf16.mxu1 %v24339_v9 }
 0x134   : > { %12903 = vmatpush1.bf16.msra.mxu0 %v24340_v14 }
 0x135   : > { %12905 = vmatprep.subr.bf16.mxu0 %v24341_v16 }
 0x136   : > { %13023 = vmatpush1.bf16.msra.mxu1 %v24342_v39 }
 0x137   : > { %13025 = vmatprep.subr.bf16.mxu1 %v24343_v49 }
 0x138   : > { %12907 = vmatpush1.bf16.msra.mxu0 %v24344_v54 }
 0x139   : > { %12909 = vmatprep.subr.bf16.mxu0 %v24345_v33 }
 0x13a   : > { %13027 = vmatpush1.bf16.msra.mxu1 %v24346_v6 }
 0x13b   : > { %13029 = vmatprep.subr.bf16.mxu1 %v24347_v37  ;;  %v1138_v37 = vld [vmem:[%s15902_s27 + $0x920] sm:$0x7] }
 0x13c   : > { %12911 = vmatpush1.bf16.msra.mxu0 %v24348_v43 }
 0x13d   : > { %12913 = vmatprep.subr.bf16.mxu0 %v24349_v50  ;;  %v1139_v50 = vld [vmem:[%s15902_s27 + $0x928] sm:$0x7] }
 0x13e   : > { %13031 = vmatpush1.bf16.msra.mxu1 %v24350_v35  ;;  %v16658_v35 = vld [vmem:[%s15902_s27 + $0x720] sm:$0xff] }
 0x13f   : > { %13033 = vmatprep.subr.bf16.mxu1 %v24351_v21  ;;  %v16636_v21 = vld [vmem:[%s15902_s27 + $0x638] sm:$0xff]  ;;  %24407 = vst [vmem:[#allocation56_spill] sm:$0xff] %v16658_v35 }
 0x140   : > { %12915 = vmatpush1.bf16.msra.mxu0 %v24354_v44  ;;  %24401 = vst [vmem:[#allocation52_spill] sm:$0xff] %v16636_v21 }
 0x141   : > { %12917 = vmatprep.subr.bf16.mxu0 %v16282_v26  ;;  %v24362_v26 = vld [vmem:[#allocation27_spill] sm:$0xff] }
 0x142   : > { %13035 = vmatpush1.bf16.msra.mxu1 %v24358_v57  ;;  %v16540_v57 = vld [vmem:[%s15902_s27 + $0x528] sm:$0xff] }
 0x143   : > { %13037 = vmatprep.subr.bf16.mxu1 %v16288_v61  ;;  %1736 = vmatmul.mubr.f32.vlgmr.msra.gmra.mrb[0].mxu0 %v24362_v26  ;;  %v16491_v61 = vsub.f32 %v16443_v30, %v23320_v34  ;;  %24378 = vst [vmem:[#allocation40_spill] sm:$0xff] %v16540_v57  ;;  %v16551_v34 = vsub.f32 %v16466_v24, %v24380_v28 }
 0x144   : > { %12919 = vmatpush1.bf16.msra.mxu0 %v16294_v27  ;;  %1866 = vmatprep.mubr.f32.mxu0 %v24295_v52  ;;  %v16508_v27 = vsub.f32 %v16450_v46, %v23321_v60  ;;  %v16563_v46 = vld [vmem:[%s15902_s27 + $0x538] sm:$0xff] }
 0x145   : > { %24368 = vst [vmem:[#allocation32_spill] sm:$0xff] %v16491_v61  ;;  %2435 = vmatmul.mubr.f32.vlgmr.msra.gmra.mrb[0].mxu1 %v24362_v26  ;;  %12921 = vmatprep.subr.bf16.mxu0 %v16307_v1  ;;  %v24374_v1 = vand.u32 4294901760, %v16454_v51  ;;  %v24381_v26 = vand.u32 4294901760, %v16469_v25  ;;  %24383 = vst [vmem:[#allocation42_spill] sm:$0xff] %v16563_v46 }
 0x146   : > { %24371 = vst [vmem:[#allocation35_spill] sm:$0xff] %v16508_v27  ;;  %13039 = vmatpush1.bf16.msra.mxu1 %v16301_v19  ;;  %2565 = vmatprep.mubr.f32.mxu1 %v24295_v52  ;;  %v16537_v19 = vld [vmem:[%s15902_s27 + $0x428] sm:$0xff] }
 0x147   : > { %v16524_v60 = vsub.f32 %v16454_v51, %v24374_v1  ;;  %24377 = vst [vmem:[#allocation39_spill] sm:$0xff] %v16537_v19  ;;  %13041 = vmatprep.subr.bf16.mxu1 %v16313_v15  ;;  %v24379_v1 = vand.u32 4294901760, %v16463_v13  ;;  %v16556_v55 = vsub.f32 %v16469_v25, %v24381_v26  ;;  %v16560_v15 = vld [vmem:[%s15902_s27 + $0x438] sm:$0xff]  ;;  %v16579_v25 = vld [vmem:[%s15902_s27 + $0x420] sm:$0xff]  ;;  %v16594_v51 = vld [vmem:[%s15902_s27 + $0x430] sm:$0xff] }
 0x148   : > { %24382 = vst [vmem:[#allocation41_spill] sm:$0xff] %v16560_v15  ;;  %12923 = vmatpush1.bf16.msra.mxu0 %v16320_v47  ;;  %24386 = vst [vmem:[#allocation43_spill] sm:$0xff] %v16579_v25  ;;  %v24387_v47 = vand.u32 4294901760, %v16501_v22  ;;  %v16591_v26 = vld [vmem:[%s15902_s27 + $0x520] sm:$0xff] }
 0x149   : > { %v16546_v31 = vsub.f32 %v16463_v13, %v24379_v1  ;;  %v24384_v1 = vand.u32 4294901760, %v16481_v56  ;;  %v24385_v13 = vand.u32 4294901760, %v16484_v58  ;;  %12925 = vmatprep.subr.bf16.mxu0 %v16332_v10  ;;  %24388 = vst [vmem:[#allocation44_spill] sm:$0xff] %v16591_v26  ;;  %24389 = vst [vmem:[#allocation45_spill] sm:$0xff] %v16594_v51  ;;  %v24390_v10 = vand.u32 4294901760, %v16514_v62 }
 0x14a   : > { %13043 = vmatpush1.bf16.msra.mxu1 %v16326_v12  ;;  %v16616_v12 = vld [vmem:[%s15902_s27 + $0x728] sm:$0xff] }
 0x14b   : > { %v16569_v28 = vsub.f32 %v16481_v56, %v24384_v1  ;;  %v16574_v24 = vsub.f32 %v16484_v58, %v24385_v13  ;;  %v16585_v1 = vsub.f32 %v16501_v22, %v24387_v47  ;;  %v16600_v44 = vsub.f32 %v16514_v62, %v24390_v10  ;;  %v16610_v22 = vld [vmem:[%s15902_s27 + $0x530] sm:$0xff]  ;;  %24395 = vst [vmem:[#allocation49_spill] sm:$0xff] %v16616_v12 }
 0x14c   : > { %v24391_v47 = vand.u32 4294901760, %v16517_v63  ;;  %24393 = vst [vmem:[#allocation47_spill] sm:$0xff] %v16610_v22  ;;  %13045 = vmatprep.subr.bf16.mxu1 %v16339_v29  ;;  %v24396_v10 = vand.u32 4294901760, %v16534_v18  ;;  %v24398_v58 = vand.u32 4294901760, %v16537_v19  ;;  %v16639_v29 = vld [vmem:[%s15902_s27 + $0x738] sm:$0xff]  ;;  %12927 = vmatpush1.bf16.msra.mxu0 %v16345_v48  ;;  %v16661_v48 = vld [vmem:[%s15902_s27 + $0x630] sm:$0xff] }
 0x14d   : > { %24402 = vst [vmem:[#allocation53_spill] sm:$0xff] %v16639_v29  ;;  %24408 = vst [vmem:[#allocation57_spill] sm:$0xff] %v16661_v48  ;;  %12929 = vmatprep.subr.bf16.mxu0 %v16358_v8  ;;  %v24410_v8 = vand.u32 4294901760, %v16591_v26  ;;  %v24414_v30 = vand.u32 4294901760, %v16616_v12 }
 0x14e   : > { %v16605_v56 = vsub.f32 %v16517_v63, %v24391_v47  ;;  %v16622_v47 = vsub.f32 %v16534_v18, %v24396_v10  ;;  %v16627_v13 = vsub.f32 %v16537_v19, %v24398_v58  ;;  %v24399_v63 = vand.u32 4294901760, %v16540_v57  ;;  %v16655_v18 = vld [vmem:[%s15902_s27 + $0x620] sm:$0xff]  ;;  %13047 = vmatpush1.bf16.msra.mxu1 %v16351_v36 }
 0x14f   : > { %v24403_v10 = vand.u32 4294901760, %v16560_v15  ;;  %v24405_v19 = vand.u32 4294901760, %v16563_v46  ;;  %24406 = vst [vmem:[#allocation55_spill] sm:$0xff] %v16655_v18  ;;  %v16680_v43 = vsub.f32 %v16591_v26, %v24410_v8  ;;  %13049 = vmatprep.subr.bf16.mxu1 %v16364_v23  ;;  %v24412_v36 = vand.u32 4294901760, %v16610_v22  ;;  %v16709_v23 = vld [vmem:[%s15902_s27 + $0x828] sm:$0xff] }
 0x150   : > { %24392 = vst [vmem:[#allocation46_spill] sm:$0xff] %v16605_v56  ;;  %24397 = vst [vmem:[#allocation50_spill] sm:$0xff] %v16622_v47  ;;  %v16632_v62 = vsub.f32 %v16540_v57, %v24399_v63  ;;  %v24413_v8 = vand.u32 4294901760, %v16613_v38  ;;  %v1140_v26 = vld [vmem:[%s15902_s27 + $0x930] sm:$0x7]  ;;  %12931 = vmatpush1.bf16.msra.mxu0 %v16370_v32  ;;  %v16728_v57 = vld [vmem:[%s15902_s27 + $0x838] sm:$0xff] }
 0x151   : > { %v16645_v58 = vsub.f32 %v16560_v15, %v24403_v10  ;;  %v16650_v63 = vsub.f32 %v16563_v46, %v24405_v19  ;;  %v24409_v10 = vand.u32 4294901760, %v16579_v25  ;;  %v16673_v46 = vld [vmem:[%s15902_s27 + $0x730] sm:$0xff]  ;;  %v16695_v6 = vsub.f32 %v16610_v22, %v24412_v36  ;;  %12933 = vmatprep.subr.bf16.mxu0 %v16382_v53 }
 0x152   : > { %24400 = vst [vmem:[#allocation51_spill] sm:$0xff] %v16632_v62  ;;  %v24415_v36 = vand.u32 4294901760, %v16636_v21  ;;  %13051 = vmatpush1.bf16.msra.mxu1 %v16376_v45  ;;  %v24422_v32 = vand.u32 4294901760, %v16658_v35 }
 0x153   : > { %24404 = vst [vmem:[#allocation54_spill] sm:$0xff] %v16645_v58  ;;  %v16667_v15 = vsub.f32 %v16579_v25, %v24409_v10  ;;  %v24411_v10 = vand.u32 4294901760, %v16594_v51  ;;  %v1141_v25 = vld [vmem:[%s15902_s27 + $0x938] sm:$0x7]  ;;  %13053 = vmatprep.subr.bf16.mxu1 %v16388_v4 }
 0x154   : > { %v16716_v22 = vsub.f32 %v16636_v21, %v24415_v36  ;;  %v16734_v36 = vsel %vm1170_vm1, %v1141_v25, 0  ;;  %v16737_v21 = vld [vmem:[%s15902_s27 + $0x820] sm:$0xff]  ;;  %v16754_v33 = vsub.f32 %v16658_v35, %v24422_v32  ;;  %12935 = vmatpush1.bf16.msra.mxu0 %v16392_v5  ;;  %v24426_v5 = vand.u32 4294901760, %v16728_v57 }
 0x155   : > { %v16685_v19 = vsub.f32 %v16594_v51, %v24411_v10  ;;  %v16700_v10 = vsub.f32 %v16613_v38, %v24413_v8  ;;  %v16705_v51 = vsub.f32 %v16616_v12, %v24414_v30  ;;  %v24416_v8 = vand.u32 4294901760, %v16639_v29  ;;  %24418 = vst [vmem:[#allocation59_spill] sm:$0xff] %v16737_v21  ;;  %v16743_v30 = vld [vmem:[%s15902_s27 + $0x830] sm:$0xff]  ;;  %12937 = vmatprep.subr.bf16.mxu0 %v15916_v20 }
 0x156   : > { %v16725_v12 = vsel %vm1170_vm1, %v1139_v50, 0  ;;  %24420 = vst [vmem:[#allocation61_spill] sm:$0xff] %v16743_v30  ;;  %v24421_v50 = vand.u32 4294901760, %v16655_v18  ;;  %v16792_v4 = vsub.f32 %v16728_v57, %v24426_v5  ;;  %13055 = vmatpush1.bf16.msra.mxu1 %v16398_v17  ;;  %v24432_v5 = vand.u32 4294901760, %v16743_v30 }
 0x157   : > { %v16721_v38 = vsub.f32 %v16639_v29, %v24416_v8  ;;  %24417 = vst [vmem:[#allocation58_spill] sm:$0xff] %v16725_v12  ;;  %v16740_v8 = vsel %vm1170_vm1, %v1138_v37, 0  ;;  %v16758_v29 = vsel %vm1170_vm1, %v1140_v26, 0  ;;  %v24423_v37 = vand.u32 4294901760, %v16661_v48  ;;  %13057 = vmatprep.subr.bf16.mxu1 %v24334_v7  ;;  %1868 = vmatmul.mubr.f32.vlgmr.msra.gmra.mrb[0].mxu0 %v15900_v3 }
 0x158   : > { %24419 = vst [vmem:[#allocation60_spill] sm:$0xff] %v16740_v8  ;;  %v16749_v53 = vsub.f32 %v16655_v18, %v24421_v50  ;;  %v24424_v50 = vand.u32 4294901760, %v16673_v46  ;;  %v23354_v32 = vand.u32 4294901760, %v16725_v12  ;;  %v23356_v26 = vand.u32 4294901760, %v16734_v36  ;;  %12939 = vmatpush1.bf16.msra.mxu0 %v24336_v40  ;;  %1958 = vmatprep.mubr.f32.mxu0 %v24295_v52 }
 0x159   : > { %v16764_v45 = vsub.f32 %v16661_v48, %v24423_v37  ;;  %v24425_v48 = vand.u32 4294901760, %v16709_v23  ;;  %v16814_v25 = vsub.f32 %v16743_v30, %v24432_v5  ;;  %v24434_v17 = vand.u32 4294901760, %v16758_v29  ;;  %2567 = vmatmul.mubr.f32.vlgmr.msra.gmra.mrb[0].mxu1 %v15900_v3  ;;  %12941 = vmatprep.subr.bf16.mxu0 %v24337_v2 }
 0x15a   : > { %v16769_v18 = vsub.f32 %v16673_v46, %v24424_v50  ;;  %v16787_v35 = vsub.f32 %v16725_v12, %v23354_v32  ;;  %v16799_v20 = vsub.f32 %v16734_v36, %v23356_v26  ;;  %v24430_v32 = vand.u32 4294901760, %v16740_v8  ;;  %13059 = vmatpush1.bf16.msra.mxu1 %v24338_v59  ;;  %2657 = vmatprep.mubr.f32.mxu1 %v24295_v52 }
 0x15b   : > { %v16782_v50 = vsub.f32 %v16709_v23, %v24425_v48  ;;  %v24428_v48 = vand.u32 4294901760, %v16737_v21  ;;  %24433 = vst [vmem:[#allocation65_spill] sm:$0xff] %v16814_v25  ;;  %v16821_v26 = vsub.f32 %v16758_v29, %v24434_v17  ;;  %v23361_v5 = vand.u32 4294901760, %v16496_v0  ;;  %13061 = vmatprep.subr.bf16.mxu1 %v24339_v9 }
 0x15c   : > { %24427 = vst [vmem:[#allocation62_spill] sm:$0xff] %v16799_v20  ;;  %v16809_v12 = vsub.f32 %v16740_v8, %v24430_v32  ;;  %v23362_v17 = vand.u32 4294901760, %v16546_v31  ;;  %v23363_v32 = vand.u32 4294901760, %v16622_v47  ;;  %12943 = vmatpush1.bf16.msra.mxu0 %v24340_v14  ;;  %v24436_v14 = vld [vmem:[#allocation19_spill] sm:$0xff]  ;;  %v24441_v7 = vand.u32 4294901760, %v16508_v27 }
 0x15d   : > { %v16804_v37 = vsub.f32 %v16737_v21, %v24428_v48  ;;  %24435 = vst [vmem:[#allocation66_spill] sm:$0xff] %v16821_v26  ;;  %v23360_v48 = vand.u32 4294901760, %v16475_v41  ;;  %12945 = vmatprep.subr.bf16.mxu0 %v24341_v16  ;;  %v24437_v21 = vand.u32 4294901760, %v16477_v42  ;;  %v24442_v2 = vand.u32 4294901760, %v16524_v60 }
 0x15e   : > { %24431 = vst [vmem:[#allocation64_spill] sm:$0xff] %v16809_v12  ;;  %13063 = vmatpush1.bf16.msra.mxu1 %v24342_v39  ;;  %v24448_v59 = vand.u32 4294901760, %v16556_v55  ;;  %v24451_v16 = vand.u32 4294901760, %v16574_v24  ;;  %v24460_v30 = vand.u32 4294901760, %v16632_v62 }
 0x15f   : > { %24429 = vst [vmem:[#allocation63_spill] sm:$0xff] %v16804_v37  ;;  %13065 = vmatprep.subr.bf16.mxu1 %v24343_v49  ;;  %v16880_v40 = vpack.c.bf16 %v24437_v21, %v23360_v48  ;;  %v16892_v8 = vpack.c.bf16 %v24442_v2, %v24441_v7  ;;  %v24445_v49 = vand.u32 4294901760, %v16529_v11  ;;  %v24447_v48 = vand.u32 4294901760, %v16551_v34 }
 0x160   : > { %12947 = vmatpush1.bf16.msra.mxu0 %v24344_v54  ;;  %v24439_v54 = vand.u32 4294901760, %v16491_v61  ;;  %v24453_v2 = vand.u32 4294901760, %v16585_v1 }
 0x161   : > { %12949 = vmatprep.subr.bf16.mxu0 %v24436_v14  ;;  %24438 = vst [vmem:[#allocation19_spill] sm:$0xff] %v16880_v40  ;;  %24443 = vst [vmem:[#allocation68_spill] sm:$0xff] %v16892_v8  ;;  %v24444_v14 = vld [vmem:[#allocation18_spill] sm:$0xff]  ;;  %v16899_v21 = vpack.c.bf16 %v23362_v17, %v24445_v49  ;;  %v24456_v49 = vld [vmem:[#allocation20_spill] sm:$0xff]  ;;  %v24457_v17 = vand.u32 4294901760, %v16605_v56 }
 0x162   : > { %v16886_v39 = vpack.c.bf16 %v23361_v5, %v24439_v54  ;;  %13067 = vmatpush1.bf16.msra.mxu1 %v24444_v14  ;;  %v16905_v54 = vpack.c.bf16 %v24448_v59, %v24447_v48  ;;  %v24450_v5 = vand.u32 4294901760, %v16569_v28  ;;  %v24454_v14 = vand.u32 4294901760, %v16600_v44 }
 0x163   : > { %24446 = vst [vmem:[#allocation18_spill] sm:$0xff] %v16899_v21  ;;  %13069 = vmatprep.subr.bf16.mxu1 %v24456_v49  ;;  %v16924_v48 = vpack.c.bf16 %v23363_v32, %v24457_v17  ;;  %v24459_v59 = vand.u32 4294901760, %v16627_v13  ;;  %v24466_v49 = vand.u32 4294901760, %v16680_v43  ;;  %v24468_v17 = vld [vmem:[#allocation21_spill] sm:$0xff]  ;;  %v24469_v32 = vand.u32 4294901760, %v16685_v19 }
 0x164   : > { %24440 = vst [vmem:[#allocation67_spill] sm:$0xff] %v16886_v39  ;;  %24449 = vst [vmem:[#allocation69_spill] sm:$0xff] %v16905_v54  ;;  %v16911_v7 = vpack.c.bf16 %v24451_v16, %v24450_v5  ;;  %v16917_v9 = vpack.c.bf16 %v24454_v14, %v24453_v2  ;;  %v24462_v16 = vand.u32 4294901760, %v16645_v58  ;;  %v24465_v14 = vand.u32 4294901760, %v16667_v15  ;;  %12951 = vmatpush1.bf16.msra.mxu0 %v24468_v17  ;;  %v24504_v54 = vld [vmem:[#allocation25_spill] sm:$0xff]  ;;  %v24510_v39 = vld [vmem:[#allocation16_spill] sm:$0xff] }
 0x165   : > { %24458 = vst [vmem:[#allocation20_spill] sm:$0xff] %v16924_v48  ;;  %v16930_v5 = vpack.c.bf16 %v24460_v30, %v24459_v59  ;;  %v24470_v48 = vand.u32 4294901760, %v16695_v6  ;;  %v24472_v59 = vand.u32 4294901760, %v16700_v10  ;;  %v24479_v17 = vand.u32 4294901760, %v16754_v33 }
 0x166   : > { %24452 = vst [vmem:[#allocation70_spill] sm:$0xff] %v16911_v7  ;;  %24455 = vst [vmem:[#allocation71_spill] sm:$0xff] %v16917_v9  ;;  %v24463_v7 = vand.u32 4294901760, %v16650_v63  ;;  %v16942_v9 = vpack.c.bf16 %v24466_v49, %v24465_v14  ;;  %v24478_v49 = vand.u32 4294901760, %v16749_v53 }
 0x167   : > { %24461 = vst [vmem:[#allocation72_spill] sm:$0xff] %v16930_v5  ;;  %v16949_v30 = vpack.c.bf16 %v24470_v48, %v24469_v32  ;;  %v24473_v5 = vand.u32 4294901760, %v16705_v51  ;;  %v24481_v32 = vld [vmem:[#allocation23_spill] sm:$0xff]  ;;  %v24482_v48 = vand.u32 4294901760, %v16764_v45 }
 0x168   : > { %v16936_v2 = vpack.c.bf16 %v24463_v7, %v24462_v16  ;;  %24467 = vst [vmem:[#allocation74_spill] sm:$0xff] %v16942_v9  ;;  %v24475_v16 = vand.u32 4294901760, %v16716_v22  ;;  %v16967_v9 = vpack.c.bf16 %v24479_v17, %v24478_v49  ;;  %12953 = vmatprep.subr.bf16.mxu0 %v24481_v32  ;;  %v24491_v17 = vand.u32 4294901760, %v16804_v37 }
 0x169   : > { %24471 = vst [vmem:[#allocation21_spill] sm:$0xff] %v16949_v30  ;;  %v16955_v7 = vpack.c.bf16 %v24473_v5, %v24472_v59  ;;  %v24483_v30 = vand.u32 4294901760, %v16769_v18  ;;  %v24485_v59 = vand.u32 4294901760, %v16782_v50  ;;  %v24492_v32 = vand.u32 4294901760, %v16809_v12  ;;  %12955 = vmatpush1.bf16.msra.mxu0 %v24504_v54  ;;  %v24572_v12 = vld [vmem:[#allocation55_spill] sm:$0xff] }
 0x16a   : > { %24464 = vst [vmem:[#allocation73_spill] sm:$0xff] %v16936_v2  ;;  %v24476_v2 = vand.u32 4294901760, %v16721_v38  ;;  %24480 = vst [vmem:[#allocation77_spill] sm:$0xff] %v16967_v9  ;;  %13077 = vmatprep.subr.bf16.mxu0 %v24510_v39 }
 0x16b   : > { %24474 = vst [vmem:[#allocation75_spill] sm:$0xff] %v16955_v7  ;;  %v16974_v5 = vpack.c.bf16 %v24483_v30, %v24482_v48  ;;  %v24486_v7 = vand.u32 4294901760, %v16787_v35  ;;  %v16992_v9 = vpack.c.bf16 %v24492_v32, %v24491_v17  ;;  %v24494_v30 = vld [vmem:[#allocation22_spill] sm:$0xff]  ;;  %v24495_v48 = vand.u32 4294901760, %v16814_v25  ;;  %v24505_v17 = vld [vmem:[#allocation11_spill] sm:$0xff] }
 0x16c   : > { %v16961_v14 = vpack.c.bf16 %v24476_v2, %v24475_v16  ;;  %v24488_v16 = vand.u32 4294901760, %v16792_v4  ;;  %13071 = vmatpush1.bf16.msra.mxu1 %v24494_v30  ;;  %v24506_v32 = vand.u32 4294901760, %v24505_v17  ;;  %1960 = vmatmul.mubr.f32.vlgmr.msra.gmra.mrb[0].mxu0 %v15900_v3 }
 0x16d   : > { %24484 = vst [vmem:[#allocation23_spill] sm:$0xff] %v16974_v5  ;;  %v16980_v2 = vpack.c.bf16 %v24486_v7, %v24485_v59  ;;  %24493 = vst [vmem:[#allocation80_spill] sm:$0xff] %v16992_v9  ;;  %v24496_v5 = vand.u32 4294901760, %v16821_v26  ;;  %v24498_v59 = vld [vmem:[#allocation24_spill] sm:$0xff]  ;;  %v24507_v9 = vld [vmem:[#allocation10_spill] sm:$0xff]  ;;  %2749 = vmatprep.mubr.f32.mxu0 %v24295_v52 }
 0x16e   : > { %24477 = vst [vmem:[#allocation76_spill] sm:$0xff] %v16961_v14  ;;  %v24489_v14 = vand.u32 4294901760, %v16799_v20  ;;  %13073 = vmatprep.subr.bf16.mxu1 %v24498_v59  ;;  %v24508_v30 = vand.u32 4294901760, %v24507_v9  ;;  %v24522_v9 = vld [vmem:[#allocation30_spill] sm:$0xff] }
 0x16f   : > { %24487 = vst [vmem:[#allocation78_spill] sm:$0xff] %v16980_v2  ;;  %v16999_v7 = vpack.c.bf16 %v24496_v5, %v24495_v48  ;;  %v24499_v2 = vld [vmem:[#allocation8_spill] sm:$0xff]  ;;  %v24511_v5 = vld [vmem:[#allocation15_spill] sm:$0xff]  ;;  %v24523_v17 = vand.u32 4294901760, %v24522_v9 }
 0x170   : > { %v16986_v49 = vpack.c.bf16 %v24489_v14, %v24488_v16  ;;  %v24500_v21 = vand.u32 4294901760, %v24499_v2  ;;  %v24501_v14 = vld [vmem:[#allocation9_spill] sm:$0xff]  ;;  %v17013_v8 = vpack.c.bf16 %v24508_v30, %v24506_v32  ;;  %v24512_v48 = vand.u32 4294901760, %v24511_v5  ;;  %v24516_v2 = vld [vmem:[#allocation26_spill] sm:$0xff]  ;;  %v24524_v32 = vld [vmem:[#allocation31_spill] sm:$0xff] }
 0x171   : > { %24497 = vst [vmem:[#allocation22_spill] sm:$0xff] %v16999_v7  ;;  %v24502_v16 = vand.u32 4294901760, %v24501_v14  ;;  %v24513_v7 = vld [vmem:[#allocation14_spill] sm:$0xff]  ;;  %13075 = vmatpush1.bf16.msra.mxu1 %v24516_v2  ;;  %v24525_v30 = vand.u32 4294901760, %v24524_v32  ;;  %v24537_v32 = vld [vmem:[#allocation39_spill] sm:$0xff] }
 0x172   : > { %24490 = vst [vmem:[#allocation79_spill] sm:$0xff] %v16986_v49  ;;  %24509 = vst [vmem:[#allocation8_spill] sm:$0xff] %v17013_v8  ;;  %v24514_v59 = vand.u32 4294901760, %v24513_v7  ;;  %13079 = vmatpush1.bf16.msra.mxu0 %v17013_v8  ;;  %v24527_v7 = vld [vmem:[#allocation34_spill] sm:$0xff]  ;;  %v24539_v8 = vld [vmem:[#allocation40_spill] sm:$0xff] }
 0x173   : > { %v17006_v49 = vpack.c.bf16 %v24502_v16, %v24500_v21  ;;  %v24517_v21 = vld [vmem:[#allocation12_spill] sm:$0xff]  ;;  %v24519_v16 = vld [vmem:[#allocation13_spill] sm:$0xff]  ;;  %v17035_v5 = vpack.c.bf16 %v24525_v30, %v24523_v17  ;;  %v24538_v30 = vand.u32 4294901760, %v24537_v32 }
 0x174   : > { %v17020_v40 = vpack.c.bf16 %v24514_v59, %v24512_v48  ;;  %v24518_v14 = vand.u32 4294901760, %v24517_v21  ;;  %v24520_v54 = vand.u32 4294901760, %v24519_v16  ;;  %v24528_v48 = vand.u32 4294901760, %v24527_v7  ;;  %v24529_v59 = vld [vmem:[#allocation36_spill] sm:$0xff]  ;;  %2659 = vmatmul.mubr.f32.vlgmr.msra.gmra.mrb[0].mxu1 %v15900_v3 }
 0x175   : > { %24503 = vst [vmem:[#allocation24_spill] sm:$0xff] %v17006_v49  ;;  %13197 = vmatprep.subr.bf16.mxu1 %v17006_v49  ;;  %24526 = vst [vmem:[#allocation11_spill] sm:$0xff] %v17035_v5  ;;  %v24530_v2 = vand.u32 4294901760, %v24529_v59  ;;  %v24540_v7 = vand.u32 4294901760, %v24539_v8  ;;  %3448 = vmatprep.mubr.f32.mxu1 %v24295_v52  ;;  %v24549_v8 = vand.u32 4294901760, %v16491_v61  ;;  %v24560_v3 = vand.u32 4294901760, %v16496_v0 }
 0x176   : > { %24515 = vst [vmem:[#allocation9_spill] sm:$0xff] %v17020_v40  ;;  %v17027_v26 = vpack.c.bf16 %v24520_v54, %v24518_v14  ;;  %13081 = vmatprep.subr.bf16.mxu0 %v17020_v40  ;;  %v24532_v14 = vld [vmem:[#allocation37_spill] sm:$0xff]  ;;  %v24534_v54 = vld [vmem:[#allocation38_spill] sm:$0xff] }
 0x177   : > { %v17042_v21 = vpack.c.bf16 %v24530_v2, %v24528_v48  ;;  %v24533_v16 = vand.u32 4294901760, %v24532_v14  ;;  %v24535_v9 = vand.u32 4294901760, %v24534_v54  ;;  %v17057_v49 = vpack.c.bf16 %v24540_v7, %v24538_v30  ;;  %v24542_v48 = vld [vmem:[#allocation41_spill] sm:$0xff]  ;;  %v24544_v2 = vld [vmem:[#allocation42_spill] sm:$0xff]  ;;  %v24552_v7 = vld [vmem:[#allocation44_spill] sm:$0xff] }
 0x178   : > { %24521 = vst [vmem:[#allocation25_spill] sm:$0xff] %v17027_v26  ;;  %v24543_v59 = vand.u32 4294901760, %v24542_v48  ;;  %v24545_v39 = vand.u32 4294901760, %v24544_v2  ;;  %13199 = vmatpush1.bf16.msra.mxu1 %v17027_v26  ;;  %v24547_v14 = vand.u32 4294901760, %v16475_v41  ;;  %v17076_v32 = vsub.f32 %v16491_v61, %v24549_v8  ;;  %v24555_v2 = vld [vmem:[#allocation45_spill] sm:$0xff]  ;;  %v24557_v26 = vld [vmem:[#allocation47_spill] sm:$0xff] }
 0x179   : > { %24531 = vst [vmem:[#allocation10_spill] sm:$0xff] %v17042_v21  ;;  %v17051_v17 = vpack.c.bf16 %v24535_v9, %v24533_v16  ;;  %24541 = vst [vmem:[#allocation14_spill] sm:$0xff] %v17057_v49  ;;  %v24548_v16 = vand.u32 4294901760, %v16477_v42  ;;  %13201 = vmatprep.subr.bf16.mxu1 %v17035_v5  ;;  %v24553_v48 = vand.u32 4294901760, %v24552_v7  ;;  %v24558_v40 = vand.u32 4294901760, %v24557_v26  ;;  %13083 = vmatpush1.bf16.msra.mxu0 %v17042_v21 }
 0x17a   : > { %v17063_v25 = vpack.c.bf16 %v24545_v39, %v24543_v59  ;;  %v2764_v54 = vsub.f32 %v16475_v41, %v24547_v14  ;;  %v24550_v39 = vld [vmem:[#allocation43_spill] sm:$0xff]  ;;  %v24556_v14 = vand.u32 4294901760, %v24555_v2  ;;  %v24561_v8 = vand.u32 4294901760, %v16508_v27  ;;  %v24567_v2 = vld [vmem:[#allocation52_spill] sm:$0xff]  ;;  %13085 = vmatprep.subr.bf16.mxu0 %v17057_v49 }
 0x17b   : > { %24536 = vst [vmem:[#allocation15_spill] sm:$0xff] %v17051_v17  ;;  %v2776_v9 = vsub.f32 %v16477_v42, %v24548_v16  ;;  %v24551_v30 = vand.u32 4294901760, %v24550_v39  ;;  %v3475_v42 = vsub.f32 %v16496_v0, %v24560_v3  ;;  %v24562_v39 = vld [vmem:[#allocation48_spill] sm:$0xff]  ;;  %v24568_v26 = vand.u32 4294901760, %v24567_v2 }
 0x17c   : > { %24546 = vst [vmem:[#allocation26_spill] sm:$0xff] %v17063_v25  ;;  %v17089_v16 = vpack.c.bf16 %v24558_v40, %v24556_v14  ;;  %v2770_v5 = vsub.f32 %v16508_v27, %v24561_v8  ;;  %v24563_v7 = vand.u32 4294901760, %v24562_v39  ;;  %v24569_v40 = vld [vmem:[#allocation53_spill] sm:$0xff]  ;;  %v24573_v3 = vand.u32 4294901760, %v24572_v12  ;;  %v24574_v0 = vld [vmem:[#allocation56_spill] sm:$0xff]  ;;  %13203 = vmatpush1.bf16.msra.mxu1 %v17051_v17 }
 0x17d   : > { %v17083_v59 = vpack.c.bf16 %v24553_v48, %v24551_v30  ;;  %v24564_v30 = vld [vmem:[#allocation49_spill] sm:$0xff]  ;;  %v24570_v14 = vand.u32 4294901760, %v24569_v40  ;;  %v24575_v37 = vand.u32 4294901760, %v24574_v0  ;;  %v24579_v39 = vand.u32 4294901760, %v16673_v46  ;;  %13205 = vmatprep.subr.bf16.mxu1 %v17063_v25 }
 0x17e   : > { %24559 = vst [vmem:[#allocation13_spill] sm:$0xff] %v17089_v16  ;;  %v24565_v48 = vand.u32 4294901760, %v24564_v30  ;;  %v24577_v8 = vld [vmem:[#allocation57_spill] sm:$0xff]  ;;  %v24582_v30 = vld [vmem:[#allocation58_spill] sm:$0xff]  ;;  %v24585_v12 = vand.u32 4294901760, %v16728_v57  ;;  %v24586_v0 = vand.u32 4294901760, %v16734_v36 }
 0x17f   : > { %24554 = vst [vmem:[#allocation12_spill] sm:$0xff] %v17083_v59  ;;  %v17108_v41 = vpack.c.bf16 %v24570_v14, %v24568_v26  ;;  %v17114_v20 = vpack.c.bf16 %v24575_v37, %v24573_v3  ;;  %v24578_v21 = vand.u32 4294901760, %v24577_v8  ;;  %v24588_v26 = vld [vmem:[#allocation59_spill] sm:$0xff]  ;;  %v24590_v14 = vld [vmem:[#allocation60_spill] sm:$0xff]  ;;  %v24593_v3 = vld [vmem:[#allocation61_spill] sm:$0xff]  ;;  %v2777_v57 = vand.u32 4294901760, %v2776_v9  ;;  %13087 = vmatpush1.bf16.msra.mxu0 %v17083_v59 }
 0x180   : > { %v17102_v61 = vpack.c.bf16 %v24565_v48, %v24563_v7  ;;  %v24581_v7 = vand.u32 4294901760, %v16709_v23  ;;  %v24583_v48 = vand.u32 4294901760, %v24582_v30  ;;  %v17133_v37 = vpack.c.bf16 %v24586_v0, %v24585_v12  ;;  %13207 = vmatpush1.bf16.msra.mxu1 %v17089_v16 }
 0x181   : > { %24571 = vst [vmem:[#allocation31_spill] sm:$0xff] %v17108_v41  ;;  %24576 = vst [vmem:[#allocation34_spill] sm:$0xff] %v17114_v20  ;;  %v17120_v27 = vpack.c.bf16 %v24579_v39, %v24578_v21  ;;  %v24589_v40 = vand.u32 4294901760, %v24588_v26  ;;  %v24591_v46 = vand.u32 4294901760, %v24590_v14  ;;  %v24594_v8 = vand.u32 4294901760, %v24593_v3  ;;  %13209 = vmatprep.subr.bf16.mxu1 %v17108_v41 }
 0x182   : > { %24566 = vst [vmem:[#allocation30_spill] sm:$0xff] %v17102_v61  ;;  %v17127_v2 = vpack.c.bf16 %v24583_v48, %v24581_v7  ;;  %24587 = vst [vmem:[#allocation38_spill] sm:$0xff] %v17133_v37  ;;  %v24595_v23 = vand.u32 4294901760, %v16758_v29  ;;  %v2765_v7 = vand.u32 4294901760, %v2764_v54  ;;  %v3464_v36 = vand.u32 4294901760, %v17076_v32  ;;  %13089 = vmatprep.subr.bf16.mxu0 %v17102_v61 }
 0x183   : > { %24580 = vst [vmem:[#allocation36_spill] sm:$0xff] %v17120_v27  ;;  %v17139_v21 = vpack.c.bf16 %v24591_v46, %v24589_v40  ;;  %v24597_v30 = vand.u32 4294901760, %v16524_v60  ;;  %v3476_v12 = vand.u32 4294901760, %v3475_v42  ;;  %v2771_v0 = vand.u32 4294901760, %v2770_v5  ;;  %13091 = vmatpush1.bf16.msra.mxu0 %v17114_v20 }
 0x184   : > { %24584 = vst [vmem:[#allocation37_spill] sm:$0xff] %v17127_v2  ;;  %v17145_v39 = vpack.c.bf16 %v24595_v23, %v24594_v8  ;;  %v24598_v26 = vand.u32 4294901760, %v16529_v11  ;;  %v24599_v40 = vand.u32 4294901760, %v16546_v31  ;;  %v24600_v54 = vand.u32 4294901760, %v16551_v34  ;;  %13093 = vmatprep.subr.bf16.mxu0 %v17127_v2  ;;  %13211 = vmatpush1.bf16.msra.mxu1 %v17120_v27 }
 0x185   : > { %24592 = vst [vmem:[#allocation39_spill] sm:$0xff] %v17139_v21  ;;  %v2782_v48 = vsub.f32 %v16524_v60, %v24597_v30  ;;  %v24601_v32 = vand.u32 4294901760, %v16556_v55  ;;  %v24602_v42 = vand.u32 4294901760, %v16569_v28  ;;  %v24603_v3 = vand.u32 4294901760, %v16574_v24  ;;  %13213 = vmatprep.subr.bf16.mxu1 %v17133_v37 }
 0x186   : > { %24596 = vst [vmem:[#allocation40_spill] sm:$0xff] %v17145_v39  ;;  %v3469_v29 = vsub.f32 %v16529_v11, %v24598_v26  ;;  %v3481_v14 = vsub.f32 %v16546_v31, %v24599_v40  ;;  %v2788_v9 = vsub.f32 %v16551_v34, %v24600_v54  ;;  %v24604_v23 = vand.u32 4294901760, %v16585_v1 }
 0x187   : > { %v2800_v46 = vsub.f32 %v16556_v55, %v24601_v32  ;;  %v3487_v5 = vsub.f32 %v16569_v28, %v24602_v42  ;;  %v3499_v8 = vsub.f32 %v16574_v24, %v24603_v3  ;;  %v24605_v26 = vand.u32 4294901760, %v16600_v44  ;;  %13095 = vmatpush1.bf16.msra.mxu0 %v17139_v21 }
 0x188   : > { %v2794_v30 = vsub.f32 %v16585_v1, %v24604_v23  ;;  %v24606_v54 = vand.u32 4294901760, %v16605_v56  ;;  %v24607_v42 = vand.u32 4294901760, %v16622_v47  ;;  %v13096_v3 = vpack.c.bf16 %v2777_v57, %v2765_v7  ;;  %13215 = vmatpush1.bf16.msra.mxu1 %v17145_v39 }
 0x189   : > { %v2806_v40 = vsub.f32 %v16600_v44, %v24605_v26  ;;  %v2783_v61 = vand.u32 4294901760, %v2782_v48  ;;  %v24608_v25 = vand.u32 4294901760, %v16627_v13  ;;  %v24609_v17 = vand.u32 4294901760, %v16632_v62 }
 0x18a   : > { %v3493_v32 = vsub.f32 %v16605_v56, %v24606_v54  ;;  %v3505_v59 = vsub.f32 %v16622_v47, %v24607_v42  ;;  %v3470_v49 = vand.u32 4294901760, %v3469_v29  ;;  %v3482_v54 = vand.u32 4294901760, %v3481_v14  ;;  %13097 = vmatprep.subr.bf16.mxu0 %v13096_v3 }
 0x18b   : > { %v2812_v23 = vsub.f32 %v16627_v13, %v24608_v25  ;;  %v2824_v26 = vsub.f32 %v16632_v62, %v24609_v17  ;;  %v24610_v56 = vand.u32 4294901760, %v16645_v58  ;;  %v24611_v16 = vand.u32 4294901760, %v16650_v63 }
 0x18c   : > { %v2789_v57 = vand.u32 4294901760, %v2788_v9  ;;  %v2801_v25 = vand.u32 4294901760, %v2800_v46  ;;  %v3488_v48 = vand.u32 4294901760, %v3487_v5  ;;  %v3500_v47 = vand.u32 4294901760, %v3499_v8 }
 0x18d   : > { %v3511_v42 = vsub.f32 %v16645_v58, %v24610_v56  ;;  %v3523_v7 = vsub.f32 %v16650_v63, %v24611_v16  ;;  %v2795_v17 = vand.u32 4294901760, %v2794_v30  ;;  %v2807_v41 = vand.u32 4294901760, %v2806_v40 }
 0x18e   : > { %v3494_v29 = vand.u32 4294901760, %v3493_v32  ;;  %v3506_v14 = vand.u32 4294901760, %v3505_v59  ;;  %v2813_v62 = vand.u32 4294901760, %v2812_v23  ;;  %v2825_v56 = vand.u32 4294901760, %v2824_v26 }
 0x18f   : > { %v24612_v58 = vand.u32 4294901760, %v16667_v15  ;;  %v24613_v20 = vand.u32 4294901760, %v16680_v43  ;;  %v13216_v46 = vpack.c.bf16 %v3476_v12, %v3464_v36  ;;  %v13098_v5 = vpack.c.bf16 %v2783_v61, %v2771_v0 }
 0x190   : > { %v3512_v8 = vand.u32 4294901760, %v3511_v42  ;;  %v3524_v30 = vand.u32 4294901760, %v3523_v7  ;;  %v13218_v59 = vpack.c.bf16 %v3482_v54, %v3470_v49  ;;  %v13100_v40 = vpack.c.bf16 %v2801_v25, %v2789_v57  ;;  %v24618_v57 = vld [vmem:[#allocation28_spill] sm:$0xff] }
 0x191   : > { %v2818_v16 = vsub.f32 %v16667_v15, %v24612_v58  ;;  %v2830_v9 = vsub.f32 %v16680_v43, %v24613_v20  ;;  %v24614_v32 = vand.u32 4294901760, %v16685_v19  ;;  %v24615_v58 = vand.u32 4294901760, %v16695_v6  ;;  %13217 = vmatprep.subr.bf16.mxu1 %v13216_v46  ;;  %2755 = vmatmul.mubr.f32.vlgmr.msra.gmra.mrb[2].mxu0 %v24618_v57 }
 0x192   : > { %v13220_v20 = vpack.c.bf16 %v3500_v47, %v3488_v48  ;;  %v13102_v27 = vpack.c.bf16 %v2807_v41, %v2795_v17  ;;  %v24616_v36 = vand.u32 4294901760, %v16700_v10  ;;  %v24617_v12 = vand.u32 4294901760, %v16705_v51  ;;  %13099 = vmatpush1.bf16.msra.mxu0 %v13098_v5  ;;  %2925 = vmatprep.mubr.f32.mxu0 %v24295_v52 }
 0x193   : > { %v3517_v23 = vsub.f32 %v16685_v19, %v24614_v32  ;;  %v3529_v26 = vsub.f32 %v16695_v6, %v24615_v58  ;;  %v13222_v0 = vpack.c.bf16 %v3506_v14, %v3494_v29  ;;  %v13104_v54 = vpack.c.bf16 %v2825_v56, %v2813_v62  ;;  %3454 = vmatmul.mubr.f32.vlgmr.msra.gmra.mrb[2].mxu1 %v24618_v57 }
 0x194   : > { %v2836_v61 = vsub.f32 %v16700_v10, %v24616_v36  ;;  %v2848_v49 = vsub.f32 %v16705_v51, %v24617_v12  ;;  %v2819_v42 = vand.u32 4294901760, %v2818_v16  ;;  %v2831_v7 = vand.u32 4294901760, %v2830_v9  ;;  %13101 = vmatprep.subr.bf16.mxu0 %v13100_v40  ;;  %13219 = vmatpush1.bf16.msra.mxu1 %v13218_v59 }
 0x195   : > { %v13224_v3 = vpack.c.bf16 %v3524_v30, %v3512_v8  ;;  %v24619_v41 = vand.u32 4294901760, %v16716_v22  ;;  %v24620_v25 = vand.u32 4294901760, %v16721_v38  ;;  %v3518_v17 = vand.u32 4294901760, %v3517_v23  ;;  %3624 = vmatprep.mubr.f32.mxu1 %v24295_v52  ;;  %13221 = vmatprep.subr.bf16.mxu1 %v13220_v20 }
 0x196   : > { %v3530_v32 = vand.u32 4294901760, %v3529_v26  ;;  %v24621_v29 = vand.u32 4294901760, %v16749_v53  ;;  %v24622_v14 = vand.u32 4294901760, %v16754_v33  ;;  %v2837_v16 = vand.u32 4294901760, %v2836_v61  ;;  %13103 = vmatpush1.bf16.msra.mxu0 %v13102_v27 }
 0x197   : > { %v3535_v47 = vsub.f32 %v16716_v22, %v24619_v41  ;;  %v3547_v48 = vsub.f32 %v16721_v38, %v24620_v25  ;;  %v2849_v9 = vand.u32 4294901760, %v2848_v49  ;;  %v24623_v46 = vand.u32 4294901760, %v16782_v50  ;;  %v24628_v25 = vld [vmem:[#allocation62_spill] sm:$0xff]  ;;  %13105 = vmatprep.subr.bf16.mxu0 %v13104_v54 }
 0x198   : > { %v2842_v62 = vsub.f32 %v16749_v53, %v24621_v29  ;;  %v2854_v56 = vsub.f32 %v16754_v33, %v24622_v14  ;;  %v24624_v8 = vand.u32 4294901760, %v16787_v35  ;;  %v13106_v23 = vpack.c.bf16 %v2831_v7, %v2819_v42  ;;  %v24630_v14 = vld [vmem:[#allocation63_spill] sm:$0xff]  ;;  %13223 = vmatpush1.bf16.msra.mxu1 %v13222_v0 }
 0x199   : > { %v2860_v5 = vsub.f32 %v16782_v50, %v24623_v46  ;;  %v24625_v58 = vand.u32 4294901760, %v16764_v45  ;;  %v24626_v36 = vand.u32 4294901760, %v16769_v18  ;;  %v3536_v61 = vand.u32 4294901760, %v3535_v47  ;;  %13225 = vmatprep.subr.bf16.mxu1 %v13224_v3  ;;  %v24639_v3 = vld [vmem:[#allocation29_spill] sm:$0xff] }
 0x19a   : > { %v2872_v30 = vsub.f32 %v16787_v35, %v24624_v8  ;;  %v3548_v12 = vand.u32 4294901760, %v3547_v48  ;;  %v24627_v49 = vand.u32 4294901760, %v16792_v4  ;;  %v24629_v59 = vand.u32 4294901760, %v24628_v25  ;;  %13107 = vmatpush1.bf16.msra.mxu0 %v13106_v23  ;;  %v24640_v23 = vld [vmem:[#allocation32_spill] sm:$0xff] }
 0x19b   : > { %v3541_v26 = vsub.f32 %v16764_v45, %v24625_v58  ;;  %v3553_v40 = vsub.f32 %v16769_v18, %v24626_v36  ;;  %v2843_v7 = vand.u32 4294901760, %v2842_v62  ;;  %v2855_v29 = vand.u32 4294901760, %v2854_v56  ;;  %v24632_v58 = vld [vmem:[#allocation64_spill] sm:$0xff]  ;;  %v24636_v56 = vld [vmem:[#allocation66_spill] sm:$0xff] }
 0x19c   : > { %v3559_v41 = vsub.f32 %v16792_v4, %v24627_v49  ;;  %v3571_v42 = vsub.f32 %v24628_v25, %v24629_v59  ;;  %v24631_v46 = vand.u32 4294901760, %v24630_v14  ;;  %v24633_v36 = vand.u32 4294901760, %v24632_v58  ;;  %v24634_v59 = vld [vmem:[#allocation65_spill] sm:$0xff] }
 0x19d   : > { %v13226_v47 = vpack.c.bf16 %v3530_v32, %v3518_v17  ;;  %v13108_v48 = vpack.c.bf16 %v2849_v9, %v2837_v16  ;;  %v2861_v57 = vand.u32 4294901760, %v2860_v5  ;;  %v2873_v49 = vand.u32 4294901760, %v2872_v30 }
 0x19e   : > { %v2866_v8 = vsub.f32 %v24630_v14, %v24631_v46  ;;  %v2878_v20 = vsub.f32 %v24632_v58, %v24633_v36  ;;  %v3542_v39 = vand.u32 4294901760, %v3541_v26  ;;  %v3554_v21 = vand.u32 4294901760, %v3553_v40 }
 0x19f   : > { %v24635_v27 = vand.u32 4294901760, %v24634_v59  ;;  %v24637_v37 = vand.u32 4294901760, %v24636_v56  ;;  %v13228_v2 = vpack.c.bf16 %v3548_v12, %v3536_v61  ;;  %v3560_v14 = vand.u32 4294901760, %v3559_v41  ;;  %13109 = vmatprep.subr.bf16.mxu0 %v13108_v48  ;;  %13227 = vmatpush1.bf16.msra.mxu1 %v13226_v47  ;;  %v24641_v12 = vld [vmem:[#allocation33_spill] sm:$0xff] }
 0x1a0   : > { %v3572_v36 = vand.u32 4294901760, %v3571_v42  ;;  %v13110_v54 = vpack.c.bf16 %v2855_v29, %v2843_v7  ;;  %v2867_v17 = vand.u32 4294901760, %v2866_v8  ;;  %v2879_v32 = vand.u32 4294901760, %v2878_v20  ;;  %v24643_v42 = vld [vmem:[#allocation6_spill] sm:$0xff]  ;;  %v17302_v8 = vld [vmem:[%s15902_s27 + $0x48] sm:$0xff]  ;;  %v17308_v20 = vld [vmem:[%s15902_s27 + $0x58] sm:$0xff] }
 0x1a1   : > { %v3565_v62 = vsub.f32 %v24634_v59, %v24635_v27  ;;  %v3577_v46 = vsub.f32 %v24636_v56, %v24637_v37  ;;  %v13112_v0 = vpack.c.bf16 %v2873_v49, %v2861_v57  ;;  %v13230_v16 = vpack.c.bf16 %v3554_v21, %v3542_v39  ;;  %13229 = vmatprep.subr.bf16.mxu1 %v13228_v2  ;;  %v24638_v37 = vld [vmem:[#allocation17_spill] sm:$0xff]  ;;  %v24642_v57 = vld [vmem:[#allocation35_spill] sm:$0xff] }
 0x1a2   : > { %v13232_v30 = vpack.c.bf16 %v3572_v36, %v3560_v14  ;;  %13111 = vmatpush1.bf16.msra.mxu0 %v13110_v54  ;;  %v13114_v26 = vpack.c.bf16 %v2879_v32, %v2867_v17  ;;  %v13116_v40 = vpack.c.bf16 %v24639_v3, %v24638_v37  ;;  %v13236_v41 = vpack.c.bf16 %v24641_v12, %v24640_v23  ;;  %v17347_v49 = vld [vmem:[%s15902_s27 + $0x348] sm:$0xff]  ;;  %v17350_v27 = vld [vmem:[%s15902_s27 + $0x258] sm:$0xff]  ;;  %v17372_v54 = vld [vmem:[%s15902_s27 + $0x240] sm:$0xff] }
 0x1a3   : > { %v3566_v9 = vand.u32 4294901760, %v3565_v62  ;;  %v3578_v5 = vand.u32 4294901760, %v3577_v46  ;;  %13113 = vmatprep.subr.bf16.mxu0 %v13112_v0  ;;  %13231 = vmatpush1.bf16.msra.mxu1 %v13230_v16  ;;  %v13118_v21 = vpack.c.bf16 %v16524_v60, %v24642_v57  ;;  %v13120_v2 = vpack.c.bf16 %v16556_v55, %v16551_v34  ;;  %v24644_v55 = vld [vmem:[#allocation51_spill] sm:$0xff]  ;;  %24648 = vst [vmem:[#allocation41_spill] sm:$0xff] %v17302_v8  ;;  %v17369_v36 = vld [vmem:[%s15902_s27 + $0x358] sm:$0xff]  ;;  %v17375_v17 = vld [vmem:[%s15902_s27 + $0x340] sm:$0xff] }
 0x1a4   : > { %13233 = vmatprep.subr.bf16.mxu1 %v13232_v30  ;;  %v13238_v39 = vpack.c.bf16 %v16546_v31, %v16529_v11  ;;  %v13240_v7 = vpack.c.bf16 %v16574_v24, %v16569_v28  ;;  %v13122_v29 = vpack.c.bf16 %v16600_v44, %v16585_v1  ;;  %v13124_v34 = vpack.c.bf16 %v24644_v55, %v16627_v13  ;;  %v24645_v11 = vld [vmem:[#allocation46_spill] sm:$0xff]  ;;  %v17416_v57 = vld [vmem:[%s15902_s27 + $0x448] sm:$0xff] }
 0x1a5   : > { %v13234_v61 = vpack.c.bf16 %v3578_v5, %v3566_v9  ;;  %v24646_v31 = vld [vmem:[#allocation50_spill] sm:$0xff]  ;;  %v13126_v28 = vpack.c.bf16 %v16680_v43, %v16667_v15  ;;  %v13128_v1 = vpack.c.bf16 %v16705_v51, %v16700_v10  ;;  %v13246_v13 = vpack.c.bf16 %v16695_v6, %v16685_v19  ;;  %24650 = vst [vmem:[#allocation43_spill] sm:$0xff] %v17308_v20  ;;  %v17313_v51 = vld [vmem:[%s15902_s27 + $0x158] sm:$0xff]  ;;  %v24655_v10 = vld [vmem:[#allocation63_spill] sm:$0xff] }
 0x1a6   : > { %13115 = vmatpush1.bf16.msra.mxu0 %v13114_v26  ;;  %v13242_v60 = vpack.c.bf16 %v24646_v31, %v24645_v11  ;;  %v24647_v44 = vld [vmem:[#allocation54_spill] sm:$0xff]  ;;  %v13248_v14 = vpack.c.bf16 %v16721_v38, %v16716_v22  ;;  %v13130_v43 = vpack.c.bf16 %v16754_v33, %v16749_v53  ;;  %24651 = vst [vmem:[#allocation44_spill] sm:$0xff] %v17313_v51  ;;  %v17328_v33 = vld [vmem:[%s15902_s27 + $0x50] sm:$0xff]  ;;  %v23443_v47 = vand.u32 4294901760, %v17302_v8 }
 0x1a7   : > { %13117 = vmatprep.subr.bf16.mxu0 %v13116_v40  ;;  %13235 = vmatpush1.bf16.msra.mxu1 %v13234_v61  ;;  %v13244_v24 = vpack.c.bf16 %v16650_v63, %v24647_v44  ;;  %v17305_v63 = vld [vmem:[%s15902_s27 + $0x148] sm:$0xff]  ;;  %v17316_v15 = vld [vmem:[%s15902_s27 + $0x40] sm:$0xff]  ;;  %v13250_v38 = vpack.c.bf16 %v16769_v18, %v16764_v45  ;;  %v13132_v22 = vpack.c.bf16 %v16787_v35, %v16782_v50  ;;  %v23439_v18 = vand.u32 4294901760, %v17308_v20  ;;  %v17336_v45 = vld [vmem:[%s15902_s27 + $0x150] sm:$0xff] }
 0x1a8   : > { %13237 = vmatprep.subr.bf16.mxu1 %v13236_v41  ;;  %24649 = vst [vmem:[#allocation42_spill] sm:$0xff] %v17305_v63  ;;  %24652 = vst [vmem:[#allocation45_spill] sm:$0xff] %v17316_v15  ;;  %v17319_v6 = vld [vmem:[%s15902_s27 + $0x140] sm:$0xff]  ;;  %v13252_v19 = vpack.c.bf16 %v24628_v25, %v16792_v4  ;;  %v13134_v53 = vpack.c.bf16 %v24632_v58, %v24655_v10  ;;  %v23442_v48 = vand.u32 4294901760, %v17305_v63  ;;  %v23437_v4 = vand.u32 4294901760, %v17313_v51  ;;  %v17344_v58 = vld [vmem:[%s15902_s27 + $0x248] sm:$0xff] }
 0x1a9   : > { %2927 = vmatmul.mubr.f32.vlgmr.msra.gmra.mrb[2].mxu0 %v24643_v42  ;;  %24653 = vst [vmem:[#allocation47_spill] sm:$0xff] %v17319_v6  ;;  %24654 = vst [vmem:[#allocation48_spill] sm:$0xff] %v17328_v33  ;;  %v13254_v35 = vpack.c.bf16 %v24636_v56, %v24634_v59  ;;  %v23436_v50 = vand.u32 4294901760, %v17316_v15  ;;  %v23435_v25 = vand.u32 4294901760, %v17319_v6  ;;  %v17355_v62 = vsub.f32 %v17302_v8, %v23443_v47  ;;  %v17394_v5 = vld [vmem:[%s15902_s27 + $0x250] sm:$0xff]  ;;  %v17444_v11 = vld [vmem:[%s15902_s27 + $0x440] sm:$0xff] }
 0x1aa   : > { %13119 = vmatpush1.bf16.msra.mxu0 %v13118_v21  ;;  %3037 = vmatprep.mubr.f32.mxu0 %v24295_v52  ;;  %24656 = vst [vmem:[#allocation49_spill] sm:$0xff] %v17336_v45  ;;  %24657 = vst [vmem:[#allocation52_spill] sm:$0xff] %v17344_v58  ;;  %v17360_v59 = vsub.f32 %v17305_v63, %v23442_v48  ;;  %v17365_v56 = vsub.f32 %v17308_v20, %v23439_v18  ;;  %v23431_v46 = vand.u32 4294901760, %v17328_v33  ;;  %v17405_v40 = vld [vmem:[%s15902_s27 + $0x350] sm:$0xff]  ;;  %v17419_v21 = vld [vmem:[%s15902_s27 + $0x548] sm:$0xff] }
 0x1ab   : > { %3626 = vmatmul.mubr.f32.vlgmr.msra.gmra.mrb[2].mxu1 %v24643_v42  ;;  %13121 = vmatprep.subr.bf16.mxu0 %v13120_v2  ;;  %24658 = vst [vmem:[#allocation53_spill] sm:$0xff] %v17347_v49  ;;  %24659 = vst [vmem:[#allocation55_spill] sm:$0xff] %v17350_v27  ;;  %v17380_v32 = vsub.f32 %v17313_v51, %v23437_v4  ;;  %v17385_v0 = vsub.f32 %v17316_v15, %v23436_v50  ;;  %v23430_v9 = vand.u32 4294901760, %v17336_v45  ;;  %v17422_v2 = vld [vmem:[%s15902_s27 + $0x458] sm:$0xff]  ;;  %v17447_v31 = vld [vmem:[%s15902_s27 + $0x540] sm:$0xff] }
 0x1ac   : > { %13239 = vmatpush1.bf16.msra.mxu1 %v13238_v39  ;;  %3736 = vmatprep.mubr.f32.mxu1 %v24295_v52  ;;  %24660 = vst [vmem:[#allocation56_spill] sm:$0xff] %v17355_v62  ;;  %24661 = vst [vmem:[#allocation57_spill] sm:$0xff] %v17369_v36  ;;  %v17390_v16 = vsub.f32 %v17319_v6, %v23435_v25  ;;  %v17399_v30 = vsub.f32 %v17328_v33, %v23431_v46  ;;  %v23434_v26 = vand.u32 4294901760, %v17344_v58  ;;  %v24686_v10 = vld [vmem:[#allocation24_spill] sm:$0xff]  ;;  %v17518_v50 = vld [vmem:[%s15902_s27 + $0x758] sm:$0xff] }
 0x1ad   : > { %13241 = vmatprep.subr.bf16.mxu1 %v13240_v7  ;;  %24662 = vst [vmem:[#allocation58_spill] sm:$0xff] %v17372_v54  ;;  %24663 = vst [vmem:[#allocation59_spill] sm:$0xff] %v17375_v17  ;;  %v23433_v37 = vand.u32 4294901760, %v17347_v49  ;;  %v23429_v3 = vand.u32 4294901760, %v17350_v27  ;;  %v17410_v61 = vsub.f32 %v17336_v45, %v23430_v9  ;;  %v23428_v23 = vand.u32 4294901760, %v17369_v36  ;;  %v17497_v9 = vld [vmem:[%s15902_s27 + $0x658] sm:$0xff] }
 0x1ae   : > { %13123 = vmatpush1.bf16.msra.mxu0 %v13122_v29  ;;  %24664 = vst [vmem:[#allocation60_spill] sm:$0xff] %v17380_v32  ;;  %24665 = vst [vmem:[#allocation61_spill] sm:$0xff] %v17385_v0  ;;  %v23427_v12 = vand.u32 4294901760, %v17372_v54  ;;  %v23426_v41 = vand.u32 4294901760, %v17375_v17  ;;  %v17427_v39 = vsub.f32 %v17344_v58, %v23434_v26  ;;  %v23425_v55 = vand.u32 4294901760, %v17394_v5  ;;  %v24692_v46 = vld [vmem:[#allocation8_spill] sm:$0xff] }
 0x1af   : > { %13125 = vmatprep.subr.bf16.mxu0 %v13124_v34  ;;  %24666 = vst [vmem:[#allocation62_spill] sm:$0xff] %v17394_v5  ;;  %24667 = vst [vmem:[#allocation64_spill] sm:$0xff] %v17399_v30  ;;  %v17432_v7 = vsub.f32 %v17347_v49, %v23433_v37  ;;  %v17437_v29 = vsub.f32 %v17350_v27, %v23429_v3  ;;  %v17441_v34 = vld [vmem:[%s15902_s27 + $0x558] sm:$0xff]  ;;  %v17453_v44 = vsub.f32 %v17369_v36, %v23428_v23  ;;  %v17491_v23 = vld [vmem:[%s15902_s27 + $0x648] sm:$0xff] }
 0x1b0   : > { %13243 = vmatpush1.bf16.msra.mxu1 %v13242_v60  ;;  %24668 = vst [vmem:[#allocation65_spill] sm:$0xff] %v17405_v40  ;;  %24669 = vst [vmem:[#allocation66_spill] sm:$0xff] %v17410_v61  ;;  %v24679_v60 = vld [vmem:[#allocation16_spill] sm:$0xff]  ;;  %v17494_v3 = vld [vmem:[%s15902_s27 + $0x748] sm:$0xff]  ;;  %v24731_v20 = vand.u32 4294901760, %v17360_v59 }
 0x1b1   : > { %13245 = vmatprep.subr.bf16.mxu1 %v13244_v24  ;;  %24670 = vst [vmem:[#allocation17_spill] sm:$0xff] %v17416_v57  ;;  %24671 = vst [vmem:[#allocation29_spill] sm:$0xff] %v17419_v21  ;;  %v17458_v24 = vsub.f32 %v17372_v54, %v23427_v12  ;;  %v23449_v12 = vand.u32 4294901760, %v17447_v31  ;;  %v17521_v4 = vld [vmem:[%s15902_s27 + $0x640] sm:$0xff]  ;;  %v24698_v18 = vld [vmem:[#allocation9_spill] sm:$0xff] }
 0x1b2   : > { %13127 = vmatpush1.bf16.msra.mxu0 %v13126_v28  ;;  %24672 = vst [vmem:[#allocation32_spill] sm:$0xff] %v17422_v2  ;;  %24673 = vst [vmem:[#allocation33_spill] sm:$0xff] %v17427_v39  ;;  %v17463_v28 = vsub.f32 %v17375_v17, %v23426_v41  ;;  %v23446_v41 = vand.u32 4294901760, %v17444_v11  ;;  %v17543_v25 = vld [vmem:[%s15902_s27 + $0x740] sm:$0xff]  ;;  %v17556_v47 = vld [vmem:[%s15902_s27 + $0x650] sm:$0xff] }
 0x1b3   : > { %13129 = vmatprep.subr.bf16.mxu0 %v13128_v1  ;;  %24674 = vst [vmem:[#allocation35_spill] sm:$0xff] %v17432_v7  ;;  %24675 = vst [vmem:[#allocation51_spill] sm:$0xff] %v17437_v29  ;;  %v23432_v1 = vand.u32 4294901760, %v17405_v40  ;;  %v17539_v48 = vsub.f32 %v17447_v31, %v23449_v12  ;;  %v17594_v54 = vld [vmem:[%s15902_s27 + $0x858] sm:$0xff]  ;;  %v1142_v36 = vld [vmem:[%s15902_s27 + $0x940] sm:$0x7] }
 0x1b4   : > { %13247 = vmatpush1.bf16.msra.mxu1 %v13246_v13  ;;  %24676 = vst [vmem:[#allocation46_spill] sm:$0xff] %v17441_v34  ;;  %24677 = vst [vmem:[#allocation50_spill] sm:$0xff] %v17444_v11  ;;  %v17467_v13 = vld [vmem:[%s15902_s27 + $0x450] sm:$0xff]  ;;  %v24718_v27 = vld [vmem:[#allocation14_spill] sm:$0xff]  ;;  %v24722_v45 = vand.u32 4294901760, %v17543_v25  ;;  %v24737_v51 = vand.u32 4294901760, %v17594_v54 }
 0x1b5   : > { %13249 = vmatprep.subr.bf16.mxu1 %v13248_v14  ;;  %24678 = vst [vmem:[#allocation54_spill] sm:$0xff] %v17447_v31  ;;  %24680 = vst [vmem:[#allocation63_spill] sm:$0xff] %v17453_v44  ;;  %v17472_v14 = vsub.f32 %v17394_v5, %v23425_v55  ;;  %v23445_v55 = vand.u32 4294901760, %v17441_v34  ;;  %v17559_v31 = vld [vmem:[%s15902_s27 + $0x750] sm:$0xff]  ;;  %v24726_v6 = vld [vmem:[#allocation30_spill] sm:$0xff] }
 0x1b6   : > { %13131 = vmatpush1.bf16.msra.mxu0 %v13130_v43  ;;  %24681 = vst [vmem:[#allocation16_spill] sm:$0xff] %v17458_v24  ;;  %24682 = vst [vmem:[#allocation81_spill] sm:$0xff] %v17463_v28  ;;  %v23438_v43 = vand.u32 4294901760, %v17416_v57  ;;  %v17614_v33 = vsub.f32 %v17543_v25, %v24722_v45  ;;  %v1144_v15 = vld [vmem:[%s15902_s27 + $0x950] sm:$0x7]  ;;  %v24736_v63 = vld [vmem:[#allocation31_spill] sm:$0xff] }
 0x1b7   : > { %13133 = vmatprep.subr.bf16.mxu0 %v13132_v22  ;;  %24683 = vst [vmem:[#allocation82_spill] sm:$0xff] %v17467_v13  ;;  %24684 = vst [vmem:[#allocation83_spill] sm:$0xff] %v17472_v14  ;;  %v23441_v22 = vand.u32 4294901760, %v17422_v2  ;;  %v24746_v8 = vld [vmem:[#allocation36_spill] sm:$0xff] }
 0x1b8   : > { %13251 = vmatpush1.bf16.msra.mxu1 %v13250_v38  ;;  %v23440_v38 = vand.u32 4294901760, %v17419_v21  ;;  %24689 = vst [vmem:[#allocation85_spill] sm:$0xff] %v17491_v23  ;;  %24690 = vst [vmem:[#allocation86_spill] sm:$0xff] %v17494_v3 }
 0x1b9   : > { %13253 = vmatprep.subr.bf16.mxu1 %v13252_v19  ;;  %v17478_v19 = vld [vmem:[%s15902_s27 + $0x550] sm:$0xff]  ;;  %24691 = vst [vmem:[#allocation87_spill] sm:$0xff] %v17497_v9  ;;  %v17514_v26 = vsub.f32 %v17422_v2, %v23441_v22  ;;  %24696 = vst [vmem:[#allocation90_spill] sm:$0xff] %v17518_v50  ;;  %v17534_v22 = vsub.f32 %v17444_v11, %v23446_v41  ;;  %v24707_v2 = vld [vmem:[#allocation11_spill] sm:$0xff]  ;;  %v24716_v11 = vand.u32 4294901760, %v17497_v9 }
 0x1ba   : > { %13135 = vmatpush1.bf16.msra.mxu0 %v13134_v53  ;;  %24685 = vst [vmem:[#allocation84_spill] sm:$0xff] %v17478_v19  ;;  %v24687_v53 = vld [vmem:[#allocation7_spill] sm:$0xff]  ;;  %v17509_v37 = vsub.f32 %v17419_v21, %v23440_v38  ;;  %24697 = vst [vmem:[#allocation91_spill] sm:$0xff] %v17521_v4  ;;  %v17529_v38 = vsub.f32 %v17441_v34, %v23445_v55  ;;  %v24704_v55 = vand.u32 4294901760, %v17467_v13  ;;  %v24712_v21 = vld [vmem:[#allocation10_spill] sm:$0xff] }
 0x1bb   : > { %13137 = vmatprep.subr.bf16.mxu0 %v24679_v60  ;;  %24695 = vst [vmem:[#allocation89_spill] sm:$0xff] %v17514_v26  ;;  %24700 = vst [vmem:[#allocation92_spill] sm:$0xff] %v17534_v22  ;;  %v17570_v34 = vld [vmem:[%s15902_s27 + $0x848] sm:$0xff] }
 0x1bc   : > { %13255 = vmatpush1.bf16.msra.mxu1 %v13254_v35  ;;  %v17485_v35 = vsub.f32 %v17405_v40, %v23432_v1  ;;  %v17504_v1 = vsub.f32 %v17416_v57, %v23438_v43  ;;  %24694 = vst [vmem:[#allocation88_spill] sm:$0xff] %v17509_v37  ;;  %v1143_v43 = vld [vmem:[%s15902_s27 + $0x948] sm:$0x7]  ;;  %24699 = vst [vmem:[#allocation9_spill] sm:$0xff] %v17529_v38  ;;  %v17550_v41 = vsub.f32 %v17467_v13, %v24704_v55  ;;  %v1145_v13 = vld [vmem:[%s15902_s27 + $0x958] sm:$0x7] }
 0x1bd   : > { %13257 = vmatprep.subr.bf16.mxu1 %v24686_v10  ;;  %3040 = vmatmul.mubr.f32.vlgmr.msra.gmra.mrb[2].mxu0 %v24687_v53  ;;  %24701 = vst [vmem:[#allocation93_spill] sm:$0xff] %v17539_v48  ;;  %24702 = vst [vmem:[#allocation94_spill] sm:$0xff] %v17543_v25  ;;  %v24708_v40 = vand.u32 4294901760, %v17478_v19  ;;  %v17573_v12 = vsel %vm1170_vm1, %v1143_v43, 0  ;;  %v24713_v57 = vand.u32 4294901760, %v17491_v23  ;;  %v17590_v55 = vsub.f32 %v17497_v9, %v24716_v11  ;;  %v24721_v43 = vld [vmem:[#allocation15_spill] sm:$0xff] }
 0x1be   : > { %24688 = vst [vmem:[#allocation24_spill] sm:$0xff] %v17485_v35  ;;  %13139 = vmatpush1.bf16.msra.mxu0 %v24692_v46  ;;  %3130 = vmatprep.mubr.f32.mxu0 %v24295_v52  ;;  %24693 = vst [vmem:[#allocation8_spill] sm:$0xff] %v17504_v1  ;;  %v23472_v11 = vand.u32 4294901760, %v17556_v47  ;;  %v24734_v25 = vand.u32 4294901760, %v17380_v32  ;;  %v24741_v32 = vld [vmem:[#allocation34_spill] sm:$0xff] }
 0x1bf   : > { %3739 = vmatmul.mubr.f32.vlgmr.msra.gmra.mrb[2].mxu1 %v24687_v53  ;;  %13141 = vmatprep.subr.bf16.mxu0 %v24698_v18  ;;  %v24703_v53 = vld [vmem:[#allocation25_spill] sm:$0xff]  ;;  %24706 = vst [vmem:[#allocation95_spill] sm:$0xff] %v17559_v31  ;;  %v17565_v5 = vsub.f32 %v17478_v19, %v24708_v40  ;;  %24710 = vst [vmem:[#allocation96_spill] sm:$0xff] %v17570_v34  ;;  %v17580_v17 = vsub.f32 %v17491_v23, %v24713_v57  ;;  %v24715_v40 = vand.u32 4294901760, %v17494_v3 }
 0x1c0   : > { %13259 = vmatpush1.bf16.msra.mxu1 %v24703_v53  ;;  %3829 = vmatprep.mubr.f32.mxu1 %v24295_v52  ;;  %24705 = vst [vmem:[#allocation25_spill] sm:$0xff] %v17556_v47  ;;  %24711 = vst [vmem:[#allocation97_spill] sm:$0xff] %v17573_v12  ;;  %v24719_v57 = vand.u32 4294901760, %v17518_v50  ;;  %v17625_v9 = vsub.f32 %v17556_v47, %v23472_v11  ;;  %v24729_v11 = vld [vmem:[#allocation13_spill] sm:$0xff]  ;;  %v17656_v47 = vld [vmem:[%s15902_s27 + $0x840] sm:$0xff] }
 0x1c1   : > { %13261 = vmatprep.subr.bf16.mxu1 %v24707_v2  ;;  %24709 = vst [vmem:[#allocation11_spill] sm:$0xff] %v17565_v5  ;;  %24714 = vst [vmem:[#allocation10_spill] sm:$0xff] %v17580_v17  ;;  %v17585_v19 = vsub.f32 %v17494_v3, %v24715_v40  ;;  %v24720_v40 = vand.u32 4294901760, %v17521_v4 }
 0x1c2   : > { %13143 = vmatpush1.bf16.msra.mxu0 %v24712_v21  ;;  %24717 = vst [vmem:[#allocation98_spill] sm:$0xff] %v17594_v54  ;;  %v17601_v23 = vsub.f32 %v17518_v50, %v24719_v57  ;;  %v17619_v50 = vsel %vm1170_vm1, %v1145_v13, 0  ;;  %v17634_v57 = vsel %vm1170_vm1, %v1142_v36, 0  ;;  %v24725_v13 = vld [vmem:[#allocation12_spill] sm:$0xff]  ;;  %v24728_v36 = vand.u32 4294901760, %v17573_v12 }
 0x1c3   : > { %13145 = vmatprep.subr.bf16.mxu0 %v24718_v27  ;;  %v17606_v3 = vsub.f32 %v17521_v4, %v24720_v40  ;;  %v24723_v40 = vld [vmem:[#allocation26_spill] sm:$0xff]  ;;  %v24724_v4 = vand.u32 4294901760, %v17559_v31 }
 0x1c4   : > { %13263 = vmatpush1.bf16.msra.mxu1 %v24721_v43  ;;  %v17650_v49 = vsub.f32 %v17573_v12, %v24728_v36  ;;  %v24733_v12 = vand.u32 4294901760, %v17365_v56 }
 0x1c5   : > { %13265 = vmatprep.subr.bf16.mxu1 %v24723_v40  ;;  %v17630_v45 = vsub.f32 %v17559_v31, %v24724_v4  ;;  %v24727_v4 = vand.u32 4294901760, %v17570_v34 }
 0x1c6   : > { %13147 = vmatpush1.bf16.msra.mxu0 %v24725_v13  ;;  %v17671_v58 = vpack.c.bf16 %v24734_v25, %v24733_v12  ;;  %v17689_v25 = vld [vmem:[%s15902_s27 + $0x850] sm:$0xff]  ;;  %v24758_v12 = vand.u32 4294901760, %v17472_v14 }
 0x1c7   : > { %13149 = vmatprep.subr.bf16.mxu0 %v24726_v6  ;;  %v17645_v31 = vsub.f32 %v17570_v34, %v24727_v4  ;;  %v24730_v34 = vand.u32 4294901760, %v17355_v62  ;;  %v17678_v4 = vsub.f32 %v17594_v54, %v24737_v51  ;;  %v24742_v51 = vand.u32 4294901760, %v17399_v30  ;;  %v24761_v30 = vld [vmem:[#allocation19_spill] sm:$0xff] }
 0x1c8   : > { %13267 = vmatpush1.bf16.msra.mxu1 %v24729_v11  ;;  %24735 = vst [vmem:[#allocation15_spill] sm:$0xff] %v17671_v58  ;;  %v24743_v62 = vand.u32 4294901760, %v17410_v61  ;;  %v24759_v58 = vand.u32 4294901760, %v17485_v35 }
 0x1c9   : > { %v17665_v36 = vpack.c.bf16 %v24731_v20, %v24730_v34  ;;  %13269 = vmatprep.subr.bf16.mxu1 %v24736_v63  ;;  %v24738_v20 = vand.u32 4294901760, %v17385_v0  ;;  %v24739_v34 = vand.u32 4294901760, %v17390_v16  ;;  %v24745_v0 = vld [vmem:[#allocation37_spill] sm:$0xff] }
 0x1ca   : > { %13151 = vmatpush1.bf16.msra.mxu0 %v24741_v32  ;;  %v17698_v54 = vpack.c.bf16 %v24743_v62, %v24742_v51  ;;  %v24747_v62 = vand.u32 4294901760, %v17427_v39  ;;  %v24748_v51 = vand.u32 4294901760, %v17432_v7  ;;  %v24754_v39 = vand.u32 4294901760, %v17458_v24 }
 0x1cb   : > { %24732 = vst [vmem:[#allocation14_spill] sm:$0xff] %v17665_v36  ;;  %v17685_v36 = vpack.c.bf16 %v24739_v34, %v24738_v20  ;;  %13153 = vmatprep.subr.bf16.mxu0 %v24745_v0  ;;  %v17703_v34 = vsel %vm1170_vm1, %v1144_v15, 0  ;;  %v24750_v20 = vand.u32 4294901760, %v17437_v29  ;;  %v24751_v15 = vand.u32 4294901760, %v17453_v44 }
 0x1cc   : > { %24744 = vst [vmem:[#allocation12_spill] sm:$0xff] %v17698_v54  ;;  %13271 = vmatpush1.bf16.msra.mxu1 %v24746_v8  ;;  %v17714_v54 = vpack.c.bf16 %v24748_v51, %v24747_v62  ;;  %v24755_v7 = vand.u32 4294901760, %v17463_v28  ;;  %v24757_v51 = vld [vmem:[#allocation39_spill] sm:$0xff]  ;;  %v24762_v28 = vand.u32 4294901760, %v17619_v50 }
 0x1cd   : > { %24740 = vst [vmem:[#allocation26_spill] sm:$0xff] %v17685_v36  ;;  %v17720_v61 = vpack.c.bf16 %v24751_v15, %v24750_v20  ;;  %v24753_v36 = vld [vmem:[#allocation38_spill] sm:$0xff]  ;;  %v24763_v15 = vld [vmem:[#allocation40_spill] sm:$0xff]  ;;  %v24771_v20 = vld [vmem:[#allocation27_spill] sm:$0xff] }
 0x1ce   : > { %24749 = vst [vmem:[#allocation30_spill] sm:$0xff] %v17714_v54  ;;  %13273 = vmatprep.subr.bf16.mxu1 %v24753_v36  ;;  %v17730_v62 = vpack.c.bf16 %v24755_v7, %v24754_v39  ;;  %13155 = vmatpush1.bf16.msra.mxu0 %v24757_v51  ;;  %v17746_v39 = vsub.f32 %v17619_v50, %v24762_v28  ;;  %v24767_v28 = vand.u32 4294901760, %v17514_v26  ;;  %v24768_v7 = vand.u32 4294901760, %v17529_v38  ;;  %v24770_v54 = vld [vmem:[#allocation67_spill] sm:$0xff] }
 0x1cf   : > { %24752 = vst [vmem:[#allocation13_spill] sm:$0xff] %v17720_v61  ;;  %v17740_v61 = vpack.c.bf16 %v24759_v58, %v24758_v12  ;;  %13157 = vmatprep.subr.bf16.mxu0 %v24761_v30  ;;  %v24764_v12 = vand.u32 4294901760, %v17504_v1  ;;  %v24765_v30 = vand.u32 4294901760, %v17509_v37  ;;  %v24773_v1 = vand.u32 4294901760, %v17634_v57 }
 0x1d0   : > { %24756 = vst [vmem:[#allocation31_spill] sm:$0xff] %v17730_v62  ;;  %13275 = vmatpush1.bf16.msra.mxu1 %v24763_v15  ;;  %v17764_v35 = vpack.c.bf16 %v24768_v7, %v24767_v28  ;;  %v24772_v62 = vand.u32 4294901760, %v17656_v47  ;;  %v24777_v28 = vld [vmem:[#allocation68_spill] sm:$0xff] }
 0x1d1   : > { %24760 = vst [vmem:[#allocation34_spill] sm:$0xff] %v17740_v61  ;;  %v17758_v61 = vpack.c.bf16 %v24765_v30, %v24764_v12  ;;  %13277 = vmatprep.subr.bf16.mxu1 %v24770_v54  ;;  %3134 = vmatmul.mubr.f32.vlgmr.msra.gmra.mrb[2].mxu0 %v24771_v20  ;;  %v17776_v12 = vsub.f32 %v17634_v57, %v24773_v1  ;;  %v24774_v30 = vand.u32 4294901760, %v17534_v22  ;;  %v24778_v54 = vand.u32 4294901760, %v17689_v25 }
 0x1d2   : > { %24769 = vst [vmem:[#allocation36_spill] sm:$0xff] %v17764_v35  ;;  %v17771_v58 = vsub.f32 %v17656_v47, %v24772_v62  ;;  %13159 = vmatpush1.bf16.msra.mxu0 %v24777_v28  ;;  %3264 = vmatprep.mubr.f32.mxu0 %v24295_v52  ;;  %v24779_v35 = vand.u32 4294901760, %v17703_v34  ;;  %v24780_v22 = vand.u32 4294901760, %v17550_v41  ;;  %v23515_v28 = vand.u32 4294901760, %v17580_v17 }
 0x1d3   : > { %24766 = vst [vmem:[#allocation37_spill] sm:$0xff] %v17758_v61  ;;  %v24775_v61 = vand.u32 4294901760, %v17539_v48  ;;  %v17789_v62 = vsub.f32 %v17689_v25, %v24778_v54  ;;  %v24781_v48 = vand.u32 4294901760, %v17565_v5  ;;  %3833 = vmatmul.mubr.f32.vlgmr.msra.gmra.mrb[2].mxu1 %v24771_v20  ;;  %v24788_v5 = vand.u32 4294901760, %v17590_v55 }
 0x1d4   : > { %v17794_v1 = vsub.f32 %v17703_v34, %v24779_v35  ;;  %v24784_v35 = vld [vmem:[#allocation18_spill] sm:$0xff]  ;;  %3963 = vmatprep.mubr.f32.mxu1 %v24295_v52 }
 0x1d5   : > { %v17782_v7 = vpack.c.bf16 %v24775_v61, %v24774_v30  ;;  %v17800_v61 = vpack.c.bf16 %v24781_v48, %v24780_v22  ;;  %v24783_v30 = vld [vmem:[#allocation69_spill] sm:$0xff]  ;;  %13279 = vmatpush1.bf16.msra.mxu1 %v24784_v35  ;;  %v24786_v35 = vand.u32 4294901760, %v17585_v19  ;;  %v24789_v48 = vand.u32 4294901760, %v17601_v23  ;;  %v24791_v22 = vld [vmem:[#allocation71_spill] sm:$0xff] }
 0x1d6   : > { %13161 = vmatprep.subr.bf16.mxu0 %v24783_v30  ;;  %v24793_v30 = vand.u32 4294901760, %v17614_v33 }
 0x1d7   : > { %24776 = vst [vmem:[#allocation38_spill] sm:$0xff] %v17782_v7  ;;  %24782 = vst [vmem:[#allocation39_spill] sm:$0xff] %v17800_v61  ;;  %v24785_v61 = vld [vmem:[#allocation70_spill] sm:$0xff]  ;;  %v17821_v38 = vpack.c.bf16 %v24786_v35, %v23515_v28  ;;  %v17827_v20 = vpack.c.bf16 %v24789_v48, %v24788_v5  ;;  %13163 = vmatpush1.bf16.msra.mxu0 %v24791_v22  ;;  %v24792_v7 = vand.u32 4294901760, %v17606_v3  ;;  %v24795_v35 = vand.u32 4294901760, %v17625_v9  ;;  %v24798_v5 = vld [vmem:[#allocation72_spill] sm:$0xff] }
 0x1d8   : > { %13281 = vmatprep.subr.bf16.mxu1 %v24785_v61  ;;  %v24796_v28 = vand.u32 4294901760, %v17630_v45  ;;  %13165 = vmatprep.subr.bf16.mxu0 %v24798_v5  ;;  %v23516_v22 = vand.u32 4294901760, %v17776_v12  ;;  %v24799_v61 = vld [vmem:[#allocation20_spill] sm:$0xff]  ;;  %v24806_v48 = vld [vmem:[#allocation73_spill] sm:$0xff] }
 0x1d9   : > { %24787 = vst [vmem:[#allocation19_spill] sm:$0xff] %v17821_v38  ;;  %24790 = vst [vmem:[#allocation40_spill] sm:$0xff] %v17827_v20  ;;  %v17836_v17 = vpack.c.bf16 %v24793_v30, %v24792_v7  ;;  %13283 = vmatpush1.bf16.msra.mxu1 %v24799_v61  ;;  %v24800_v7 = vand.u32 4294901760, %v17645_v31  ;;  %v24801_v30 = vand.u32 4294901760, %v17650_v49  ;;  %v24807_v61 = vand.u32 4294901760, %v17771_v58  ;;  %v24809_v20 = vld [vmem:[#allocation74_spill] sm:$0xff] }
 0x1da   : > { %v17842_v38 = vpack.c.bf16 %v24796_v28, %v24795_v35  ;;  %v24803_v28 = vand.u32 4294901760, %v17678_v4  ;;  %v24804_v35 = vand.u32 4294901760, %v17746_v39  ;;  %13285 = vmatprep.subr.bf16.mxu1 %v24806_v48  ;;  %v24816_v48 = vld [vmem:[#allocation77_spill] sm:$0xff] }
 0x1db   : > { %24794 = vst [vmem:[#allocation67_spill] sm:$0xff] %v17836_v17  ;;  %v17854_v17 = vpack.c.bf16 %v24801_v30, %v24800_v7  ;;  %v17867_v54 = vpack.c.bf16 %v23516_v22, %v24807_v61  ;;  %13167 = vmatpush1.bf16.msra.mxu0 %v24809_v20  ;;  %v24811_v7 = vand.u32 4294901760, %v17794_v1  ;;  %v24818_v61 = vld [vmem:[#allocation23_spill] sm:$0xff]  ;;  %v24820_v20 = vld [vmem:[#allocation80_spill] sm:$0xff] }
 0x1dc   : > { %24797 = vst [vmem:[#allocation68_spill] sm:$0xff] %v17842_v38  ;;  %v17860_v5 = vpack.c.bf16 %v24804_v35, %v24803_v28  ;;  %v24810_v38 = vand.u32 4294901760, %v17789_v62  ;;  %v24814_v28 = vld [vmem:[#allocation21_spill] sm:$0xff]  ;;  %v24815_v35 = vld [vmem:[#allocation76_spill] sm:$0xff]  ;;  %v24819_v22 = vld [vmem:[#allocation79_spill] sm:$0xff] }
 0x1dd   : > { %24802 = vst [vmem:[#allocation69_spill] sm:$0xff] %v17854_v17  ;;  %24808 = vst [vmem:[#allocation70_spill] sm:$0xff] %v17867_v54  ;;  %v24813_v17 = vld [vmem:[#allocation75_spill] sm:$0xff]  ;;  %13287 = vmatpush1.bf16.msra.mxu1 %v24814_v28  ;;  %v24844_v28 = vld [vmem:[#allocation49_spill] sm:$0xff] }
 0x1de   : > { %24805 = vst [vmem:[#allocation18_spill] sm:$0xff] %v17860_v5  ;;  %v17874_v30 = vpack.c.bf16 %v24811_v7, %v24810_v38  ;;  %13169 = vmatprep.subr.bf16.mxu0 %v24813_v17  ;;  %13289 = vmatprep.subr.bf16.mxu1 %v24815_v35  ;;  %v24817_v5 = vld [vmem:[#allocation78_spill] sm:$0xff] }
 0x1df   : > { %13171 = vmatpush1.bf16.msra.mxu0 %v24816_v48  ;;  %v24821_v38 = vld [vmem:[#allocation22_spill] sm:$0xff]  ;;  %v24847_v48 = vld [vmem:[#allocation55_spill] sm:$0xff] }
 0x1e0   : > { %24812 = vst [vmem:[#allocation71_spill] sm:$0xff] %v17874_v30  ;;  %13173 = vmatprep.subr.bf16.mxu0 %v24817_v5  ;;  %v24824_v17 = vld [vmem:[#allocation42_spill] sm:$0xff]  ;;  %v24842_v5 = vld [vmem:[#allocation48_spill] sm:$0xff] }
 0x1e1   : > { %13291 = vmatpush1.bf16.msra.mxu1 %v24818_v61  ;;  %v24843_v7 = vand.u32 4294901760, %v24842_v5  ;;  %v24848_v61 = vand.u32 4294901760, %v24847_v48  ;;  %v24870_v48 = vld [vmem:[#allocation32_spill] sm:$0xff]  ;;  %v24890_v30 = vld [vmem:[#allocation86_spill] sm:$0xff] }
 0x1e2   : > { %13293 = vmatprep.subr.bf16.mxu1 %v24819_v22 }
 0x1e3   : > { %13175 = vmatpush1.bf16.msra.mxu0 %v24820_v20  ;;  %v24849_v20 = vld [vmem:[#allocation57_spill] sm:$0xff] }
 0x1e4   : > { %13177 = vmatprep.subr.bf16.mxu0 %v24679_v60  ;;  %v24829_v60 = vld [vmem:[#allocation44_spill] sm:$0xff] }
 0x1e5   : > { %13295 = vmatpush1.bf16.msra.mxu1 %v24821_v38  ;;  %v24850_v38 = vand.u32 4294901760, %v24849_v20  ;;  %v24872_v20 = vld [vmem:[#allocation46_spill] sm:$0xff] }
 0x1e6   : > { %13297 = vmatprep.subr.bf16.mxu1 %v24686_v10  ;;  %3266 = vmatmul.mubr.f32.vlgmr.msra.gmra.mrb[2].mxu0 %v24643_v42  ;;  %v24830_v10 = vand.u32 4294901760, %v24829_v60 }
 0x1e7   : > { %13179 = vmatpush1.bf16.msra.mxu0 %v24692_v46  ;;  %3356 = vmatprep.mubr.f32.mxu0 %v24295_v52 }
 0x1e8   : > { %3965 = vmatmul.mubr.f32.vlgmr.msra.gmra.mrb[2].mxu1 %v24643_v42  ;;  %13181 = vmatprep.subr.bf16.mxu0 %v24698_v18  ;;  %v24822_v18 = vld [vmem:[#allocation41_spill] sm:$0xff] }
 0x1e9   : > { %13299 = vmatpush1.bf16.msra.mxu1 %v24703_v53  ;;  %4055 = vmatprep.mubr.f32.mxu1 %v24295_v52  ;;  %v24823_v46 = vand.u32 4294901760, %v24822_v18  ;;  %v17946_v18 = vpack.c.bf16 %v24850_v38, %v24848_v61  ;;  %v24871_v61 = vand.u32 4294901760, %v24870_v48  ;;  %v24873_v38 = vand.u32 4294901760, %v24872_v20 }
 0x1ea   : > { %13301 = vmatprep.subr.bf16.mxu1 %v24707_v2  ;;  %v24827_v2 = vld [vmem:[#allocation43_spill] sm:$0xff] }
 0x1eb   : > { %13183 = vmatpush1.bf16.msra.mxu0 %v24712_v21  ;;  %24851 = vst [vmem:[#allocation21_spill] sm:$0xff] %v17946_v18 }
 0x1ec   : > { %13185 = vmatprep.subr.bf16.mxu0 %v24718_v27  ;;  %v24825_v27 = vand.u32 4294901760, %v24824_v17 }
 0x1ed   : > { %13303 = vmatpush1.bf16.msra.mxu1 %v24721_v43 }
 0x1ee   : > { %13305 = vmatprep.subr.bf16.mxu1 %v24723_v40  ;;  %v17909_v21 = vpack.c.bf16 %v24825_v27, %v24823_v46  ;;  %v24837_v40 = vld [vmem:[#allocation52_spill] sm:$0xff]  ;;  %v24854_v27 = vand.u32 4294901760, %v17360_v59 }
 0x1ef   : > { %13187 = vmatpush1.bf16.msra.mxu0 %v24725_v13  ;;  %v24839_v13 = vld [vmem:[#allocation53_spill] sm:$0xff]  ;;  %v24852_v46 = vld [vmem:[#allocation56_spill] sm:$0xff] }
 0x1f0   : > { %13189 = vmatprep.subr.bf16.mxu0 %v24726_v6  ;;  %24826 = vst [vmem:[#allocation72_spill] sm:$0xff] %v17909_v21  ;;  %v24828_v6 = vand.u32 4294901760, %v24827_v2  ;;  %v24853_v17 = vand.u32 4294901760, %v24852_v46  ;;  %v4174_v2 = vsub.f32 %v17360_v59, %v24854_v27  ;;  %v24875_v27 = vand.u32 4294901760, %v17365_v56 }
 0x1f1   : > { %13307 = vmatpush1.bf16.msra.mxu1 %v24729_v11 }
 0x1f2   : > { %13309 = vmatprep.subr.bf16.mxu1 %v24736_v63  ;;  %v17917_v53 = vpack.c.bf16 %v24830_v10, %v24828_v6  ;;  %v24832_v63 = vld [vmem:[#allocation45_spill] sm:$0xff]  ;;  %v24855_v6 = vld [vmem:[#allocation58_spill] sm:$0xff]  ;;  %v24857_v10 = vld [vmem:[#allocation59_spill] sm:$0xff] }
 0x1f3   : > { %13191 = vmatpush1.bf16.msra.mxu0 %v24741_v32  ;;  %v24833_v32 = vand.u32 4294901760, %v24832_v63  ;;  %v24856_v60 = vand.u32 4294901760, %v24855_v6  ;;  %v24858_v63 = vand.u32 4294901760, %v24857_v10  ;;  %v17987_v6 = vsub.f32 %v17365_v56, %v24875_v27  ;;  %v24888_v27 = vld [vmem:[#allocation85_spill] sm:$0xff] }
 0x1f4   : > { %13193 = vmatprep.subr.bf16.mxu0 %v24745_v0  ;;  %24831 = vst [vmem:[#allocation20_spill] sm:$0xff] %v17917_v53  ;;  %v24834_v0 = vld [vmem:[#allocation47_spill] sm:$0xff] }
 0x1f5   : > { %13311 = vmatpush1.bf16.msra.mxu1 %v24746_v8  ;;  %v24835_v43 = vand.u32 4294901760, %v24834_v0  ;;  %v24838_v8 = vand.u32 4294901760, %v24837_v40  ;;  %v24860_v0 = vld [vmem:[#allocation17_spill] sm:$0xff] }
 0x1f6   : > { %13313 = vmatprep.subr.bf16.mxu1 %v24753_v36  ;;  %v24840_v36 = vand.u32 4294901760, %v24839_v13  ;;  %v24862_v40 = vld [vmem:[#allocation29_spill] sm:$0xff] }
 0x1f7   : > { %13195 = vmatpush1.bf16.msra.mxu0 %v24757_v51  ;;  %v17924_v11 = vpack.c.bf16 %v24835_v43, %v24833_v32  ;;  %v24845_v51 = vand.u32 4294901760, %v24844_v28  ;;  %v17959_v32 = vpack.c.bf16 %v24858_v63, %v24856_v60  ;;  %v24861_v43 = vand.u32 4294901760, %v24860_v0  ;;  %v24876_v60 = vld [vmem:[#allocation50_spill] sm:$0xff] }
 0x1f8   : > { %13317 = vmatprep.subr.bf16.mxu0 %v17909_v21  ;;  %v17931_v22 = vpack.c.bf16 %v24840_v36, %v24838_v8  ;;  %v24863_v8 = vand.u32 4294901760, %v24862_v40  ;;  %v24865_v36 = vld [vmem:[#allocation62_spill] sm:$0xff]  ;;  %v24877_v10 = vand.u32 4294901760, %v24876_v60  ;;  %v24889_v60 = vand.u32 4294901760, %v24888_v27  ;;  %v24938_v21 = vld [vmem:[#allocation24_spill] sm:$0xff] }
 0x1f9   : > { %24836 = vst [vmem:[#allocation73_spill] sm:$0xff] %v17924_v11  ;;  %13315 = vmatpush1.bf16.msra.mxu1 %v24763_v15  ;;  %v17938_v35 = vpack.c.bf16 %v24845_v51, %v24843_v7  ;;  %v4162_v15 = vsub.f32 %v24852_v46, %v24853_v17  ;;  %24859 = vst [vmem:[#allocation76_spill] sm:$0xff] %v17959_v32  ;;  %v24866_v5 = vand.u32 4294901760, %v24865_v36  ;;  %v24867_v7 = vld [vmem:[#allocation65_spill] sm:$0xff]  ;;  %v24878_v63 = vld [vmem:[#allocation54_spill] sm:$0xff] }
 0x1fa   : > { %24841 = vst [vmem:[#allocation74_spill] sm:$0xff] %v17931_v22  ;;  %3358 = vmatmul.mubr.f32.vlgmr.msra.gmra.mrb[2].mxu0 %v24643_v42  ;;  %13437 = vmatprep.subr.bf16.mxu1 %v17917_v53  ;;  %v17968_v13 = vpack.c.bf16 %v24863_v8, %v24861_v43  ;;  %v24868_v28 = vand.u32 4294901760, %v24867_v7  ;;  %v17981_v17 = vpack.c.bf16 %v24873_v38, %v24871_v61  ;;  %v24879_v0 = vand.u32 4294901760, %v24878_v63  ;;  %v24881_v36 = vld [vmem:[#allocation60_spill] sm:$0xff] }
 0x1fb   : > { %24846 = vst [vmem:[#allocation75_spill] sm:$0xff] %v17938_v35  ;;  %13319 = vmatpush1.bf16.msra.mxu0 %v17924_v11  ;;  %4147 = vmatprep.mubr.f32.mxu0 %v24295_v52  ;;  %v4163_v40 = vand.u32 4294901760, %v4162_v15  ;;  %v4175_v8 = vand.u32 4294901760, %v4174_v2  ;;  %v24885_v61 = vld [vmem:[#allocation84_spill] sm:$0xff]  ;;  %v24891_v63 = vand.u32 4294901760, %v24890_v30  ;;  %v24893_v15 = vld [vmem:[#allocation87_spill] sm:$0xff] }
 0x1fc   : > { %4057 = vmatmul.mubr.f32.vlgmr.msra.gmra.mrb[2].mxu1 %v24643_v42  ;;  %13321 = vmatprep.subr.bf16.mxu0 %v17931_v22  ;;  %24864 = vst [vmem:[#allocation77_spill] sm:$0xff] %v17968_v13  ;;  %v17975_v51 = vpack.c.bf16 %v24868_v28, %v24866_v5  ;;  %24874 = vst [vmem:[#allocation23_spill] sm:$0xff] %v17981_v17  ;;  %v17994_v43 = vpack.c.bf16 %v24879_v0, %v24877_v10  ;;  %v24882_v5 = vand.u32 4294901760, %v24881_v36  ;;  %v24883_v28 = vld [vmem:[#allocation82_spill] sm:$0xff] }
 0x1fd   : > { %13439 = vmatpush1.bf16.msra.mxu1 %v17938_v35  ;;  %4846 = vmatprep.mubr.f32.mxu1 %v24295_v52  ;;  %v24884_v48 = vand.u32 4294901760, %v24883_v28  ;;  %v24886_v20 = vand.u32 4294901760, %v24885_v61  ;;  %v18010_v10 = vpack.c.bf16 %v24891_v63, %v24889_v60  ;;  %v24894_v2 = vand.u32 4294901760, %v24893_v15  ;;  %v24895_v0 = vld [vmem:[#allocation90_spill] sm:$0xff]  ;;  %v24908_v60 = vld [vmem:[#allocation96_spill] sm:$0xff]  ;;  %v24910_v15 = vld [vmem:[#allocation97_spill] sm:$0xff] }
 0x1fe   : > { %24869 = vst [vmem:[#allocation78_spill] sm:$0xff] %v17975_v51  ;;  %13441 = vmatprep.subr.bf16.mxu1 %v17946_v18  ;;  %24880 = vst [vmem:[#allocation79_spill] sm:$0xff] %v17994_v43  ;;  %v4873_v7 = vsub.f32 %v24881_v36, %v24882_v5  ;;  %v24896_v54 = vand.u32 4294901760, %v24895_v0  ;;  %v24898_v5 = vld [vmem:[#allocation91_spill] sm:$0xff]  ;;  %v24900_v35 = vld [vmem:[#allocation94_spill] sm:$0xff]  ;;  %v24909_v63 = vand.u32 4294901760, %v24908_v60 }
 0x1ff   : > { %13323 = vmatpush1.bf16.msra.mxu0 %v17959_v32  ;;  %v18004_v38 = vpack.c.bf16 %v24886_v20, %v24884_v48  ;;  %24892 = vst [vmem:[#allocation22_spill] sm:$0xff] %v18010_v10  ;;  %v24899_v32 = vand.u32 4294901760, %v24898_v5  ;;  %v24901_v28 = vand.u32 4294901760, %v24900_v35  ;;  %v24903_v48 = vld [vmem:[#allocation25_spill] sm:$0xff]  ;;  %v24905_v20 = vld [vmem:[#allocation95_spill] sm:$0xff]  ;;  %v24911_v0 = vand.u32 4294901760, %v24910_v15 }
 0x200   : > { %v18016_v18 = vpack.c.bf16 %v24896_v54, %v24894_v2  ;;  %13325 = vmatprep.subr.bf16.mxu0 %v17968_v13  ;;  %v24904_v61 = vand.u32 4294901760, %v24903_v48  ;;  %v24906_v30 = vand.u32 4294901760, %v24905_v20  ;;  %v24913_v2 = vld [vmem:[#allocation98_spill] sm:$0xff]  ;;  %v24915_v35 = vand.u32 4294901760, %v17619_v50 }
 0x201   : > { %24887 = vst [vmem:[#allocation80_spill] sm:$0xff] %v18004_v38  ;;  %v18022_v22 = vpack.c.bf16 %v24901_v28, %v24899_v32  ;;  %v18035_v54 = vpack.c.bf16 %v24911_v0, %v24909_v63  ;;  %v24914_v5 = vand.u32 4294901760, %v24913_v2  ;;  %v24917_v28 = vand.u32 4294901760, %v17656_v47  ;;  %13443 = vmatpush1.bf16.msra.mxu1 %v17975_v51  ;;  %v24921_v63 = vld [vmem:[#allocation61_spill] sm:$0xff] }
 0x202   : > { %24897 = vst [vmem:[#allocation41_spill] sm:$0xff] %v18016_v18  ;;  %v18029_v27 = vpack.c.bf16 %v24906_v30, %v24904_v61  ;;  %v24918_v48 = vand.u32 4294901760, %v17634_v57  ;;  %v24919_v61 = vand.u32 4294901760, %v17689_v25  ;;  %v24920_v20 = vand.u32 4294901760, %v17703_v34  ;;  %13445 = vmatprep.subr.bf16.mxu1 %v17981_v17  ;;  %v24935_v51 = vld [vmem:[#allocation81_spill] sm:$0xff] }
 0x203   : > { %24902 = vst [vmem:[#allocation42_spill] sm:$0xff] %v18022_v22  ;;  %24912 = vst [vmem:[#allocation44_spill] sm:$0xff] %v18035_v54  ;;  %v18041_v32 = vpack.c.bf16 %v24915_v35, %v24914_v5  ;;  %v4862_v60 = vand.u32 4294901760, %v17987_v6  ;;  %v24922_v50 = vand.u32 4294901760, %v24921_v63  ;;  %v24923_v47 = vand.u32 4294901760, %v17390_v16  ;;  %v24924_v5 = vld [vmem:[#allocation64_spill] sm:$0xff]  ;;  %13327 = vmatpush1.bf16.msra.mxu0 %v17994_v43 }
 0x204   : > { %24907 = vst [vmem:[#allocation43_spill] sm:$0xff] %v18029_v27  ;;  %v18047_v13 = vpack.c.bf16 %v24918_v48, %v24917_v28  ;;  %v18054_v30 = vpack.c.bf16 %v24920_v20, %v24919_v61  ;;  %v13336_v0 = vpack.c.bf16 %v4175_v8, %v4163_v40  ;;  %v4874_v2 = vand.u32 4294901760, %v4873_v7  ;;  %v24926_v35 = vld [vmem:[#allocation66_spill] sm:$0xff]  ;;  %v24928_v48 = vld [vmem:[#allocation33_spill] sm:$0xff]  ;;  %13329 = vmatprep.subr.bf16.mxu0 %v18010_v10 }
 0x205   : > { %24916 = vst [vmem:[#allocation45_spill] sm:$0xff] %v18041_v32  ;;  %v4168_v15 = vsub.f32 %v24921_v63, %v24922_v50  ;;  %v4180_v57 = vsub.f32 %v17390_v16, %v24923_v47  ;;  %v24925_v25 = vand.u32 4294901760, %v24924_v5  ;;  %v24927_v28 = vand.u32 4294901760, %v24926_v35  ;;  %v24930_v50 = vld [vmem:[#allocation35_spill] sm:$0xff]  ;;  %13447 = vmatpush1.bf16.msra.mxu1 %v18004_v38 }
 0x206   : > { %v24929_v61 = vand.u32 4294901760, %v24928_v48  ;;  %v24931_v47 = vand.u32 4294901760, %v24930_v50  ;;  %v24932_v40 = vand.u32 4294901760, %v17437_v29  ;;  %v24933_v7 = vand.u32 4294901760, %v17453_v44  ;;  %13449 = vmatprep.subr.bf16.mxu1 %v18016_v18 }
 0x207   : > { %v4867_v34 = vsub.f32 %v24924_v5, %v24925_v25  ;;  %v4879_v6 = vsub.f32 %v24926_v35, %v24927_v28  ;;  %v24934_v28 = vand.u32 4294901760, %v17458_v24  ;;  %v4181_v10 = vand.u32 4294901760, %v4180_v57  ;;  %13331 = vmatpush1.bf16.msra.mxu0 %v18022_v22 }
 0x208   : > { %v4186_v20 = vsub.f32 %v24928_v48, %v24929_v61  ;;  %v4198_v17 = vsub.f32 %v24930_v50, %v24931_v47  ;;  %v4885_v8 = vsub.f32 %v17437_v29, %v24932_v40  ;;  %v4897_v25 = vsub.f32 %v17453_v44, %v24933_v7  ;;  %v24940_v44 = vld [vmem:[#allocation8_spill] sm:$0xff]  ;;  %13333 = vmatprep.subr.bf16.mxu0 %v18035_v54 }
 0x209   : > { %v4192_v43 = vsub.f32 %v17458_v24, %v24934_v28  ;;  %v24936_v61 = vand.u32 4294901760, %v24935_v51  ;;  %v24937_v47 = vand.u32 4294901760, %v17472_v14  ;;  %v24939_v40 = vand.u32 4294901760, %v24938_v21  ;;  %13451 = vmatpush1.bf16.msra.mxu1 %v18029_v27 }
 0x20a   : > { %v4169_v7 = vand.u32 4294901760, %v4168_v15  ;;  %v24941_v42 = vand.u32 4294901760, %v24940_v44  ;;  %v24942_v24 = vand.u32 4294901760, %v17509_v37  ;;  %v4187_v57 = vand.u32 4294901760, %v4186_v20  ;;  %13453 = vmatprep.subr.bf16.mxu1 %v18041_v32  ;;  %v24953_v32 = vld [vmem:[#allocation10_spill] sm:$0xff] }
 0x20b   : > { %v4204_v11 = vsub.f32 %v24935_v51, %v24936_v61  ;;  %v4891_v53 = vsub.f32 %v17472_v14, %v24937_v47  ;;  %v4903_v29 = vsub.f32 %v24938_v21, %v24939_v40  ;;  %v4868_v51 = vand.u32 4294901760, %v4867_v34  ;;  %v24944_v21 = vld [vmem:[#allocation9_spill] sm:$0xff]  ;;  %13335 = vmatpush1.bf16.msra.mxu0 %v18047_v13 }
 0x20c   : > { %v4210_v28 = vsub.f32 %v24940_v44, %v24941_v42  ;;  %v4222_v61 = vsub.f32 %v17509_v37, %v24942_v24  ;;  %v4880_v47 = vand.u32 4294901760, %v4879_v6  ;;  %v24943_v14 = vand.u32 4294901760, %v17514_v26  ;;  %13337 = vmatprep.subr.bf16.mxu0 %v13336_v0 }
 0x20d   : > { %v24945_v38 = vand.u32 4294901760, %v24944_v21  ;;  %v4199_v42 = vand.u32 4294901760, %v4198_v17  ;;  %v4886_v44 = vand.u32 4294901760, %v4885_v8  ;;  %v4898_v35 = vand.u32 4294901760, %v4897_v25  ;;  %13455 = vmatpush1.bf16.msra.mxu1 %v18054_v30 }
 0x20e   : > { %v4909_v40 = vsub.f32 %v17514_v26, %v24943_v14  ;;  %v4193_v24 = vand.u32 4294901760, %v4192_v43  ;;  %v4205_v18 = vand.u32 4294901760, %v4204_v11  ;;  %v4892_v34 = vand.u32 4294901760, %v4891_v53  ;;  %v24946_v26 = vld [vmem:[#allocation92_spill] sm:$0xff] }
 0x20f   : > { %v4921_v15 = vsub.f32 %v24944_v21, %v24945_v38  ;;  %v4904_v6 = vand.u32 4294901760, %v4903_v29  ;;  %v4211_v37 = vand.u32 4294901760, %v4210_v28  ;;  %v4223_v14 = vand.u32 4294901760, %v4222_v61  ;;  %v24948_v21 = vld [vmem:[#allocation93_spill] sm:$0xff]  ;;  %v24951_v61 = vld [vmem:[#allocation11_spill] sm:$0xff] }
 0x210   : > { %v24947_v5 = vand.u32 4294901760, %v24946_v26  ;;  %v24949_v22 = vand.u32 4294901760, %v24948_v21  ;;  %v13456_v20 = vpack.c.bf16 %v4874_v2, %v4862_v60  ;;  %v13338_v8 = vpack.c.bf16 %v4181_v10, %v4169_v7 }
 0x211   : > { %v4910_v43 = vand.u32 4294901760, %v4909_v40  ;;  %v4922_v11 = vand.u32 4294901760, %v4921_v15  ;;  %v13458_v29 = vpack.c.bf16 %v4880_v47, %v4868_v51  ;;  %v13340_v53 = vpack.c.bf16 %v4199_v42, %v4187_v57  ;;  %v24956_v57 = vld [vmem:[#allocation28_spill] sm:$0xff] }
 0x212   : > { %v4216_v38 = vsub.f32 %v24946_v26, %v24947_v5  ;;  %v4228_v17 = vsub.f32 %v24948_v21, %v24949_v22  ;;  %v24950_v25 = vand.u32 4294901760, %v17550_v41  ;;  %v24952_v5 = vand.u32 4294901760, %v24951_v61  ;;  %13457 = vmatprep.subr.bf16.mxu1 %v13456_v20  ;;  %4153 = vmatmul.mubr.f32.vlgmr.msra.gmra.mrb[4].mxu0 %v24956_v57 }
 0x213   : > { %v13460_v22 = vpack.c.bf16 %v4898_v35, %v4886_v44  ;;  %v13342_v54 = vpack.c.bf16 %v4205_v18, %v4193_v24  ;;  %v24954_v60 = vand.u32 4294901760, %v24953_v32  ;;  %v24955_v2 = vand.u32 4294901760, %v17585_v19  ;;  %13339 = vmatpush1.bf16.msra.mxu0 %v13338_v8  ;;  %4323 = vmatprep.mubr.f32.mxu0 %v24295_v52 }
 0x214   : > { %v4915_v28 = vsub.f32 %v17550_v41, %v24950_v25  ;;  %v4927_v27 = vsub.f32 %v24951_v61, %v24952_v5  ;;  %v13462_v7 = vpack.c.bf16 %v4904_v6, %v4892_v34  ;;  %v13344_v47 = vpack.c.bf16 %v4223_v14, %v4211_v37  ;;  %4852 = vmatmul.mubr.f32.vlgmr.msra.gmra.mrb[4].mxu1 %v24956_v57 }
 0x215   : > { %v4234_v10 = vsub.f32 %v24953_v32, %v24954_v60  ;;  %v4246_v51 = vsub.f32 %v17585_v19, %v24955_v2  ;;  %v4217_v40 = vand.u32 4294901760, %v4216_v38  ;;  %v4229_v15 = vand.u32 4294901760, %v4228_v17  ;;  %13341 = vmatprep.subr.bf16.mxu0 %v13340_v53  ;;  %13459 = vmatpush1.bf16.msra.mxu1 %v13458_v29 }
 0x216   : > { %v13464_v0 = vpack.c.bf16 %v4922_v11, %v4910_v43  ;;  %v24957_v44 = vand.u32 4294901760, %v17590_v55  ;;  %v24958_v35 = vand.u32 4294901760, %v17601_v23  ;;  %v4916_v24 = vand.u32 4294901760, %v4915_v28  ;;  %5022 = vmatprep.mubr.f32.mxu1 %v24295_v52  ;;  %13461 = vmatprep.subr.bf16.mxu1 %v13460_v22 }
 0x217   : > { %v4928_v25 = vand.u32 4294901760, %v4927_v27  ;;  %v24959_v34 = vand.u32 4294901760, %v17606_v3  ;;  %v24960_v6 = vand.u32 4294901760, %v17614_v33  ;;  %v4235_v38 = vand.u32 4294901760, %v4234_v10  ;;  %13343 = vmatpush1.bf16.msra.mxu0 %v13342_v54 }
 0x218   : > { %v4933_v18 = vsub.f32 %v17590_v55, %v24957_v44  ;;  %v4945_v42 = vsub.f32 %v17601_v23, %v24958_v35  ;;  %v4247_v17 = vand.u32 4294901760, %v4246_v51  ;;  %v24961_v20 = vand.u32 4294901760, %v17645_v31  ;;  %13345 = vmatprep.subr.bf16.mxu0 %v13344_v47 }
 0x219   : > { %v4240_v37 = vsub.f32 %v17606_v3, %v24959_v34  ;;  %v4252_v14 = vsub.f32 %v17614_v33, %v24960_v6  ;;  %v24962_v27 = vand.u32 4294901760, %v17650_v49  ;;  %v13346_v11 = vpack.c.bf16 %v4229_v15, %v4217_v40  ;;  %13463 = vmatpush1.bf16.msra.mxu1 %v13462_v7 }
 0x21a   : > { %v4258_v8 = vsub.f32 %v17645_v31, %v24961_v20  ;;  %v24963_v28 = vand.u32 4294901760, %v17625_v9  ;;  %v24964_v60 = vand.u32 4294901760, %v17630_v45  ;;  %v4934_v10 = vand.u32 4294901760, %v4933_v18  ;;  %13465 = vmatprep.subr.bf16.mxu1 %v13464_v0 }
 0x21b   : > { %v4270_v43 = vsub.f32 %v17650_v49, %v24962_v27  ;;  %v4946_v2 = vand.u32 4294901760, %v4945_v42  ;;  %v24965_v51 = vand.u32 4294901760, %v17678_v4  ;;  %v24966_v29 = vand.u32 4294901760, %v17746_v39  ;;  %13347 = vmatpush1.bf16.msra.mxu0 %v13346_v11 }
 0x21c   : > { %v4939_v5 = vsub.f32 %v17625_v9, %v24963_v28  ;;  %v4951_v53 = vsub.f32 %v17630_v45, %v24964_v60  ;;  %v4241_v15 = vand.u32 4294901760, %v4240_v37  ;;  %v4253_v35 = vand.u32 4294901760, %v4252_v14 }
 0x21d   : > { %v4957_v44 = vsub.f32 %v17678_v4, %v24965_v51  ;;  %v4969_v40 = vsub.f32 %v17746_v39, %v24966_v29  ;;  %v24967_v34 = vand.u32 4294901760, %v17771_v58  ;;  %v24968_v20 = vand.u32 4294901760, %v17776_v12 }
 0x21e   : > { %v13466_v18 = vpack.c.bf16 %v4928_v25, %v4916_v24  ;;  %v13348_v42 = vpack.c.bf16 %v4247_v17, %v4235_v38  ;;  %v4259_v27 = vand.u32 4294901760, %v4258_v8  ;;  %v4271_v28 = vand.u32 4294901760, %v4270_v43 }
 0x21f   : > { %v4264_v6 = vsub.f32 %v17771_v58, %v24967_v34  ;;  %v4276_v22 = vsub.f32 %v17776_v12, %v24968_v20  ;;  %v4940_v60 = vand.u32 4294901760, %v4939_v5  ;;  %v4952_v51 = vand.u32 4294901760, %v4951_v53 }
 0x220   : > { %v24969_v54 = vand.u32 4294901760, %v17789_v62  ;;  %v24970_v14 = vand.u32 4294901760, %v17794_v1  ;;  %v13468_v34 = vpack.c.bf16 %v4946_v2, %v4934_v10  ;;  %v4958_v57 = vand.u32 4294901760, %v4957_v44  ;;  %13349 = vmatprep.subr.bf16.mxu0 %v13348_v42  ;;  %13467 = vmatpush1.bf16.msra.mxu1 %v13466_v18  ;;  %v24971_v2 = vld [vmem:[#allocation64_spill] sm:$0xff]  ;;  %v24972_v44 = vld [vmem:[#allocation66_spill] sm:$0xff]  ;;  %v24982_v42 = vld [vmem:[#allocation89_spill] sm:$0xff] }
 0x221   : > { %v4970_v20 = vand.u32 4294901760, %v4969_v40  ;;  %v13350_v47 = vpack.c.bf16 %v4253_v35, %v4241_v15  ;;  %v4265_v24 = vand.u32 4294901760, %v4264_v6  ;;  %v4277_v25 = vand.u32 4294901760, %v4276_v22  ;;  %v24975_v15 = vld [vmem:[#allocation63_spill] sm:$0xff]  ;;  %v24981_v22 = vld [vmem:[#allocation24_spill] sm:$0xff] }
 0x222   : > { %v4963_v37 = vsub.f32 %v17789_v62, %v24969_v54  ;;  %v4975_v29 = vsub.f32 %v17794_v1, %v24970_v14  ;;  %v13352_v7 = vpack.c.bf16 %v4271_v28, %v4259_v27  ;;  %v13470_v38 = vpack.c.bf16 %v4952_v51, %v4940_v60  ;;  %13469 = vmatprep.subr.bf16.mxu1 %v13468_v34  ;;  %v24983_v27 = vld [vmem:[#allocation9_spill] sm:$0xff]  ;;  %v18213_v14 = vld [vmem:[%s15902_s27 + $0x68] sm:$0xff] }
 0x223   : > { %v13472_v43 = vpack.c.bf16 %v4970_v20, %v4958_v57  ;;  %13351 = vmatpush1.bf16.msra.mxu0 %v13350_v47  ;;  %v13354_v5 = vpack.c.bf16 %v4277_v25, %v4265_v24  ;;  %v13356_v0 = vpack.c.bf16 %v17360_v59, %v24852_v46  ;;  %v13476_v11 = vpack.c.bf16 %v24881_v36, %v17365_v56  ;;  %v24973_v59 = vld [vmem:[#allocation6_spill] sm:$0xff]  ;;  %v24974_v46 = vld [vmem:[#allocation51_spill] sm:$0xff]  ;;  %v24976_v56 = vld [vmem:[#allocation16_spill] sm:$0xff] }
 0x224   : > { %v4964_v17 = vand.u32 4294901760, %v4963_v37  ;;  %v4976_v8 = vand.u32 4294901760, %v4975_v29  ;;  %13353 = vmatprep.subr.bf16.mxu0 %v13352_v7  ;;  %13471 = vmatpush1.bf16.msra.mxu1 %v13470_v38  ;;  %v13358_v10 = vpack.c.bf16 %v17390_v16, %v24921_v63  ;;  %v13360_v57 = vpack.c.bf16 %v24930_v50, %v24928_v48  ;;  %v24977_v36 = vld [vmem:[#allocation81_spill] sm:$0xff]  ;;  %v24978_v16 = vld [vmem:[#allocation8_spill] sm:$0xff]  ;;  %v24980_v50 = vld [vmem:[#allocation83_spill] sm:$0xff]  ;;  %24984 = vst [vmem:[#allocation47_spill] sm:$0xff] %v18213_v14 }
 0x225   : > { %13473 = vmatprep.subr.bf16.mxu1 %v13472_v43  ;;  %v13478_v40 = vpack.c.bf16 %v24972_v44, %v24971_v2  ;;  %v13480_v35 = vpack.c.bf16 %v24975_v15, %v24974_v46  ;;  %v13362_v6 = vpack.c.bf16 %v24977_v36, %v24976_v56  ;;  %v24979_v63 = vld [vmem:[#allocation88_spill] sm:$0xff]  ;;  %v13482_v18 = vpack.c.bf16 %v24981_v22, %v24980_v50  ;;  %v18216_v29 = vld [vmem:[%s15902_s27 + $0x168] sm:$0xff]  ;;  %v18219_v34 = vld [vmem:[%s15902_s27 + $0x78] sm:$0xff] }
 0x226   : > { %v13474_v53 = vpack.c.bf16 %v4976_v8, %v4964_v17  ;;  %v13364_v48 = vpack.c.bf16 %v24979_v63, %v24978_v16  ;;  %v13484_v28 = vpack.c.bf16 %v24983_v27, %v24982_v42  ;;  %v13366_v60 = vpack.c.bf16 %v24948_v21, %v24946_v26  ;;  %24985 = vst [vmem:[#allocation52_spill] sm:$0xff] %v18216_v29  ;;  %v18227_v21 = vld [vmem:[%s15902_s27 + $0x60] sm:$0xff]  ;;  %v18261_v47 = vld [vmem:[%s15902_s27 + $0x278] sm:$0xff]  ;;  %v18316_v44 = vld [vmem:[%s15902_s27 + $0x370] sm:$0xff] }
 0x227   : > { %13355 = vmatpush1.bf16.msra.mxu0 %v13354_v5  ;;  %v13368_v51 = vpack.c.bf16 %v17585_v19, %v24953_v32  ;;  %v13486_v54 = vpack.c.bf16 %v24951_v61, %v17550_v41  ;;  %v13488_v37 = vpack.c.bf16 %v17601_v23, %v17590_v55  ;;  %24986 = vst [vmem:[#allocation53_spill] sm:$0xff] %v18219_v34  ;;  %v18224_v19 = vld [vmem:[%s15902_s27 + $0x178] sm:$0xff]  ;;  %24988 = vst [vmem:[#allocation49_spill] sm:$0xff] %v18227_v21  ;;  %v18230_v41 = vld [vmem:[%s15902_s27 + $0x160] sm:$0xff] }
 0x228   : > { %13357 = vmatprep.subr.bf16.mxu0 %v13356_v0  ;;  %13475 = vmatpush1.bf16.msra.mxu1 %v13474_v53  ;;  %v13370_v26 = vpack.c.bf16 %v17614_v33, %v17606_v3  ;;  %24987 = vst [vmem:[#allocation48_spill] sm:$0xff] %v18224_v19  ;;  %24989 = vst [vmem:[#allocation55_spill] sm:$0xff] %v18230_v41  ;;  %v13490_v23 = vpack.c.bf16 %v17630_v45, %v17625_v9  ;;  %v18239_v33 = vld [vmem:[%s15902_s27 + $0x70] sm:$0xff]  ;;  %v23583_v20 = vand.u32 4294901760, %v18213_v14  ;;  %v18276_v7 = vld [vmem:[%s15902_s27 + $0x378] sm:$0xff] }
 0x229   : > { %13477 = vmatprep.subr.bf16.mxu1 %v13476_v11  ;;  %v13372_v55 = vpack.c.bf16 %v17650_v49, %v17645_v31  ;;  %v13492_v32 = vpack.c.bf16 %v17746_v39, %v17678_v4  ;;  %24990 = vst [vmem:[#allocation57_spill] sm:$0xff] %v18239_v33  ;;  %v18242_v3 = vld [vmem:[%s15902_s27 + $0x170] sm:$0xff]  ;;  %v13374_v61 = vpack.c.bf16 %v17776_v12, %v17771_v58  ;;  %v23581_v9 = vand.u32 4294901760, %v18216_v29  ;;  %v18255_v58 = vld [vmem:[%s15902_s27 + $0x268] sm:$0xff]  ;;  %v18279_v38 = vld [vmem:[%s15902_s27 + $0x260] sm:$0xff] }
 0x22a   : > { %4325 = vmatmul.mubr.f32.vlgmr.msra.gmra.mrb[4].mxu0 %v24973_v59  ;;  %24991 = vst [vmem:[#allocation56_spill] sm:$0xff] %v18242_v3  ;;  %v23580_v49 = vand.u32 4294901760, %v18219_v34  ;;  %v13494_v31 = vpack.c.bf16 %v17794_v1, %v17789_v62  ;;  %v23579_v45 = vand.u32 4294901760, %v18224_v19  ;;  %v23578_v4 = vand.u32 4294901760, %v18227_v21  ;;  %24992 = vst [vmem:[#allocation58_spill] sm:$0xff] %v18255_v58  ;;  %v18258_v12 = vld [vmem:[%s15902_s27 + $0x368] sm:$0xff] }
 0x22b   : > { %13359 = vmatpush1.bf16.msra.mxu0 %v13358_v10  ;;  %4435 = vmatprep.mubr.f32.mxu0 %v24295_v52  ;;  %v23577_v39 = vand.u32 4294901760, %v18230_v41  ;;  %24993 = vst [vmem:[#allocation59_spill] sm:$0xff] %v18258_v12  ;;  %24994 = vst [vmem:[#allocation17_spill] sm:$0xff] %v18261_v47  ;;  %v18266_v24 = vsub.f32 %v18213_v14, %v23583_v20  ;;  %v18271_v62 = vsub.f32 %v18216_v29, %v23581_v9  ;;  %v18282_v17 = vld [vmem:[%s15902_s27 + $0x360] sm:$0xff]  ;;  %v18305_v53 = vld [vmem:[%s15902_s27 + $0x270] sm:$0xff] }
 0x22c   : > { %5024 = vmatmul.mubr.f32.vlgmr.msra.gmra.mrb[4].mxu1 %v24973_v59  ;;  %13361 = vmatprep.subr.bf16.mxu0 %v13360_v57  ;;  %v23573_v1 = vand.u32 4294901760, %v18239_v33  ;;  %v23572_v25 = vand.u32 4294901760, %v18242_v3  ;;  %24996 = vst [vmem:[#allocation62_spill] sm:$0xff] %v18276_v7  ;;  %24997 = vst [vmem:[#allocation65_spill] sm:$0xff] %v18279_v38  ;;  %v18287_v8 = vsub.f32 %v18219_v34, %v23580_v49  ;;  %v23575_v10 = vand.u32 4294901760, %v18255_v58  ;;  %v18327_v56 = vld [vmem:[%s15902_s27 + $0x468] sm:$0xff] }
 0x22d   : > { %13479 = vmatpush1.bf16.msra.mxu1 %v13478_v40  ;;  %5134 = vmatprep.mubr.f32.mxu1 %v24295_v52  ;;  %24995 = vst [vmem:[#allocation29_spill] sm:$0xff] %v18266_v24  ;;  %24998 = vst [vmem:[#allocation32_spill] sm:$0xff] %v18282_v17  ;;  %v18292_v43 = vsub.f32 %v18224_v19, %v23579_v45  ;;  %v18297_v5 = vsub.f32 %v18227_v21, %v23578_v4  ;;  %v23574_v57 = vand.u32 4294901760, %v18258_v12  ;;  %v18330_v36 = vld [vmem:[%s15902_s27 + $0x568] sm:$0xff]  ;;  %v18352_v22 = vld [vmem:[%s15902_s27 + $0x578] sm:$0xff] }
 0x22e   : > { %13481 = vmatprep.subr.bf16.mxu1 %v13480_v35  ;;  %v18302_v0 = vsub.f32 %v18230_v41, %v23577_v39  ;;  %25001 = vst [vmem:[#allocation54_spill] sm:$0xff] %v18305_v53  ;;  %v18310_v11 = vsub.f32 %v18239_v33, %v23573_v1  ;;  %v23571_v2 = vand.u32 4294901760, %v18261_v47  ;;  %25003 = vst [vmem:[#allocation82_spill] sm:$0xff] %v18316_v44  ;;  %v23570_v46 = vand.u32 4294901760, %v18276_v7  ;;  %v18358_v42 = vld [vmem:[%s15902_s27 + $0x560] sm:$0xff]  ;;  %v25013_v27 = vld [vmem:[#allocation72_spill] sm:$0xff] }
 0x22f   : > { %13363 = vmatpush1.bf16.msra.mxu0 %v13362_v6  ;;  %24999 = vst [vmem:[#allocation46_spill] sm:$0xff] %v18292_v43  ;;  %25000 = vst [vmem:[#allocation50_spill] sm:$0xff] %v18297_v5  ;;  %v18321_v40 = vsub.f32 %v18242_v3, %v23572_v25  ;;  %v23568_v15 = vand.u32 4294901760, %v18279_v38  ;;  %v23567_v35 = vand.u32 4294901760, %v18282_v17  ;;  %v18333_v6 = vld [vmem:[%s15902_s27 + $0x478] sm:$0xff]  ;;  %v18338_v16 = vsub.f32 %v18255_v58, %v23575_v10  ;;  %v18402_v25 = vld [vmem:[%s15902_s27 + $0x668] sm:$0xff] }
 0x230   : > { %13365 = vmatprep.subr.bf16.mxu0 %v13364_v48  ;;  %25002 = vst [vmem:[#allocation60_spill] sm:$0xff] %v18310_v11  ;;  %25005 = vst [vmem:[#allocation85_spill] sm:$0xff] %v18327_v56  ;;  %v18343_v63 = vsub.f32 %v18258_v12, %v23574_v57  ;;  %v18348_v48 = vsub.f32 %v18261_v47, %v23571_v2  ;;  %v23569_v50 = vand.u32 4294901760, %v18305_v53  ;;  %v23593_v2 = vand.u32 4294901760, %v18358_v42  ;;  %v18405_v1 = vld [vmem:[%s15902_s27 + $0x768] sm:$0xff]  ;;  %v18408_v57 = vld [vmem:[%s15902_s27 + $0x678] sm:$0xff] }
 0x231   : > { %13483 = vmatpush1.bf16.msra.mxu1 %v13482_v18  ;;  %25004 = vst [vmem:[#allocation84_spill] sm:$0xff] %v18321_v40  ;;  %25006 = vst [vmem:[#allocation86_spill] sm:$0xff] %v18330_v36  ;;  %v18355_v18 = vld [vmem:[%s15902_s27 + $0x460] sm:$0xff]  ;;  %v25026_v10 = vld [vmem:[#allocation73_spill] sm:$0xff]  ;;  %v25065_v14 = vand.u32 4294901760, %v18271_v62 }
 0x232   : > { %13485 = vmatprep.subr.bf16.mxu1 %v13484_v28  ;;  %25007 = vst [vmem:[#allocation87_spill] sm:$0xff] %v18333_v6  ;;  %25008 = vst [vmem:[#allocation90_spill] sm:$0xff] %v18338_v16  ;;  %v18364_v28 = vsub.f32 %v18276_v7, %v23570_v46  ;;  %v23590_v46 = vand.u32 4294901760, %v18355_v18  ;;  %v18429_v49 = vld [vmem:[%s15902_s27 + $0x778] sm:$0xff]  ;;  %v18432_v9 = vld [vmem:[%s15902_s27 + $0x660] sm:$0xff]  ;;  %v18450_v45 = vsub.f32 %v18358_v42, %v23593_v2 }
 0x233   : > { %13367 = vmatpush1.bf16.msra.mxu0 %v13366_v60  ;;  %25009 = vst [vmem:[#allocation91_spill] sm:$0xff] %v18343_v63  ;;  %25010 = vst [vmem:[#allocation94_spill] sm:$0xff] %v18352_v22  ;;  %v18369_v60 = vsub.f32 %v18279_v38, %v23568_v15  ;;  %v25021_v15 = vld [vmem:[#allocation7_spill] sm:$0xff]  ;;  %v25032_v20 = vld [vmem:[#allocation74_spill] sm:$0xff]  ;;  %v25047_v38 = vand.u32 4294901760, %v18402_v25 }
 0x234   : > { %13369 = vmatprep.subr.bf16.mxu0 %v13368_v51  ;;  %25011 = vst [vmem:[#allocation25_spill] sm:$0xff] %v18355_v18  ;;  %25012 = vst [vmem:[#allocation95_spill] sm:$0xff] %v18358_v42  ;;  %v18374_v51 = vsub.f32 %v18282_v17, %v23567_v35  ;;  %v25020_v35 = vld [vmem:[#allocation20_spill] sm:$0xff]  ;;  %v18505_v47 = vld [vmem:[%s15902_s27 + $0x878] sm:$0xff] }
 0x235   : > { %13487 = vmatpush1.bf16.msra.mxu1 %v13486_v54  ;;  %25014 = vst [vmem:[#allocation96_spill] sm:$0xff] %v18364_v28  ;;  %25015 = vst [vmem:[#allocation97_spill] sm:$0xff] %v18369_v60  ;;  %v23576_v54 = vand.u32 4294901760, %v18316_v44  ;;  %v18470_v42 = vld [vmem:[%s15902_s27 + $0x770] sm:$0xff]  ;;  %v18491_v7 = vsub.f32 %v18402_v25, %v25047_v38  ;;  %v1146_v3 = vld [vmem:[%s15902_s27 + $0x960] sm:$0x7] }
 0x236   : > { %13489 = vmatprep.subr.bf16.mxu1 %v13488_v37  ;;  %25016 = vst [vmem:[#allocation98_spill] sm:$0xff] %v18374_v51  ;;  %v18378_v37 = vld [vmem:[%s15902_s27 + $0x470] sm:$0xff]  ;;  %25023 = vst [vmem:[#allocation93_spill] sm:$0xff] %v18402_v25  ;;  %v25052_v33 = vld [vmem:[#allocation77_spill] sm:$0xff]  ;;  %v25053_v38 = vand.u32 4294901760, %v18429_v49  ;;  %v25071_v29 = vand.u32 4294901760, %v18505_v47 }
 0x237   : > { %13371 = vmatpush1.bf16.msra.mxu0 %v13370_v26  ;;  %25017 = vst [vmem:[#allocation61_spill] sm:$0xff] %v18378_v37  ;;  %v18383_v26 = vsub.f32 %v18305_v53, %v23569_v50  ;;  %v23589_v50 = vand.u32 4294901760, %v18352_v22  ;;  %25024 = vst [vmem:[#allocation11_spill] sm:$0xff] %v18405_v1  ;;  %v25041_v53 = vld [vmem:[#allocation21_spill] sm:$0xff]  ;;  %v25046_v17 = vld [vmem:[#allocation76_spill] sm:$0xff] }
 0x238   : > { %13373 = vmatprep.subr.bf16.mxu0 %v13372_v55  ;;  %v23584_v55 = vand.u32 4294901760, %v18330_v36  ;;  %25025 = vst [vmem:[#allocation10_spill] sm:$0xff] %v18408_v57  ;;  %25030 = vst [vmem:[#allocation63_spill] sm:$0xff] %v18429_v49  ;;  %v18512_v25 = vsub.f32 %v18429_v49, %v25053_v38  ;;  %v18545_v38 = vsel %vm1170_vm1, %v1146_v3, 0  ;;  %v25060_v19 = vld [vmem:[#allocation22_spill] sm:$0xff] }
 0x239   : > { %13491 = vmatpush1.bf16.msra.mxu1 %v13490_v23  ;;  %25018 = vst [vmem:[#allocation33_spill] sm:$0xff] %v18383_v26  ;;  %v23582_v23 = vand.u32 4294901760, %v18327_v56  ;;  %25031 = vst [vmem:[#allocation16_spill] sm:$0xff] %v18432_v9  ;;  %v1148_v34 = vld [vmem:[%s15902_s27 + $0x970] sm:$0x7] }
 0x23a   : > { %13493 = vmatprep.subr.bf16.mxu1 %v13492_v32  ;;  %v23585_v32 = vand.u32 4294901760, %v18333_v6  ;;  %v18420_v39 = vsub.f32 %v18330_v36, %v23584_v55  ;;  %v18440_v55 = vsub.f32 %v18352_v22, %v23589_v50  ;;  %25035 = vst [vmem:[#allocation88_spill] sm:$0xff] %v18450_v45  ;;  %v25038_v50 = vand.u32 4294901760, %v18378_v37  ;;  %25040 = vst [vmem:[#allocation89_spill] sm:$0xff] %v18470_v42  ;;  %v18481_v22 = vld [vmem:[%s15902_s27 + $0x868] sm:$0xff] }
 0x23b   : > { %13375 = vmatpush1.bf16.msra.mxu0 %v13374_v61  ;;  %v18389_v61 = vld [vmem:[%s15902_s27 + $0x570] sm:$0xff]  ;;  %25044 = vst [vmem:[#allocation72_spill] sm:$0xff] %v18481_v22  ;;  %25048 = vst [vmem:[#allocation73_spill] sm:$0xff] %v18491_v7 }
 0x23c   : > { %13377 = vmatprep.subr.bf16.mxu0 %v25013_v27  ;;  %25019 = vst [vmem:[#allocation35_spill] sm:$0xff] %v18389_v61  ;;  %25028 = vst [vmem:[#allocation66_spill] sm:$0xff] %v18420_v39  ;;  %v18425_v4 = vsub.f32 %v18333_v6, %v23585_v32  ;;  %v18445_v32 = vsub.f32 %v18355_v18, %v23590_v46  ;;  %v18454_v6 = vld [vmem:[%s15902_s27 + $0x760] sm:$0xff]  ;;  %v18461_v46 = vsub.f32 %v18378_v37, %v25038_v50  ;;  %v1149_v37 = vld [vmem:[%s15902_s27 + $0x978] sm:$0x7] }
 0x23d   : > { %13495 = vmatpush1.bf16.msra.mxu1 %v13494_v31  ;;  %v18396_v31 = vsub.f32 %v18316_v44, %v23576_v54  ;;  %v18415_v54 = vsub.f32 %v18327_v56, %v23582_v23  ;;  %v1147_v23 = vld [vmem:[%s15902_s27 + $0x968] sm:$0x7]  ;;  %25033 = vst [vmem:[#allocation81_spill] sm:$0xff] %v18440_v55  ;;  %25036 = vst [vmem:[#allocation83_spill] sm:$0xff] %v18454_v6  ;;  %v25042_v36 = vand.u32 4294901760, %v18389_v61  ;;  %v25050_v18 = vand.u32 4294901760, %v18408_v57 }
 0x23e   : > { %13497 = vmatprep.subr.bf16.mxu1 %v25020_v35  ;;  %4438 = vmatmul.mubr.f32.vlgmr.msra.gmra.mrb[4].mxu0 %v25021_v15  ;;  %25029 = vst [vmem:[#allocation51_spill] sm:$0xff] %v18425_v4  ;;  %25034 = vst [vmem:[#allocation8_spill] sm:$0xff] %v18445_v32  ;;  %v25037_v44 = vld [vmem:[#allocation75_spill] sm:$0xff]  ;;  %v18484_v2 = vsel %vm1170_vm1, %v1147_v23, 0  ;;  %v25055_v23 = vld [vmem:[#allocation78_spill] sm:$0xff]  ;;  %v25056_v12 = vand.u32 4294901760, %v18454_v6 }
 0x23f   : > { %25022 = vst [vmem:[#allocation92_spill] sm:$0xff] %v18396_v31  ;;  %13379 = vmatpush1.bf16.msra.mxu0 %v25026_v10  ;;  %4528 = vmatprep.mubr.f32.mxu0 %v24295_v52  ;;  %25027 = vst [vmem:[#allocation64_spill] sm:$0xff] %v18415_v54  ;;  %v18476_v56 = vsub.f32 %v18389_v61, %v25042_v36  ;;  %v25049_v36 = vand.u32 4294901760, %v18405_v1  ;;  %v18501_v50 = vsub.f32 %v18408_v57, %v25050_v18 }
 0x240   : > { %5137 = vmatmul.mubr.f32.vlgmr.msra.gmra.mrb[4].mxu1 %v25021_v15  ;;  %13381 = vmatprep.subr.bf16.mxu0 %v25032_v20  ;;  %v18467_v15 = vld [vmem:[%s15902_s27 + $0x670] sm:$0xff]  ;;  %25045 = vst [vmem:[#allocation20_spill] sm:$0xff] %v18484_v2  ;;  %25051 = vst [vmem:[#allocation74_spill] sm:$0xff] %v18505_v47  ;;  %v18525_v58 = vsub.f32 %v18454_v6, %v25056_v12  ;;  %v18530_v49 = vsel %vm1170_vm1, %v1149_v37, 0  ;;  %v25059_v37 = vld [vmem:[#allocation79_spill] sm:$0xff]  ;;  %v25062_v3 = vand.u32 4294901760, %v18484_v2 }
 0x241   : > { %13499 = vmatpush1.bf16.msra.mxu1 %v25037_v44  ;;  %5227 = vmatprep.mubr.f32.mxu1 %v24295_v52  ;;  %25039 = vst [vmem:[#allocation24_spill] sm:$0xff] %v18467_v15  ;;  %25043 = vst [vmem:[#allocation9_spill] sm:$0xff] %v18476_v56  ;;  %v18496_v61 = vsub.f32 %v18405_v1, %v25049_v36  ;;  %v25054_v36 = vand.u32 4294901760, %v18432_v9  ;;  %v23616_v18 = vand.u32 4294901760, %v18467_v15  ;;  %v25068_v6 = vand.u32 4294901760, %v18292_v43  ;;  %v25075_v43 = vld [vmem:[#allocation42_spill] sm:$0xff] }
 0x242   : > { %13501 = vmatprep.subr.bf16.mxu1 %v25041_v53  ;;  %v18561_v41 = vsub.f32 %v18484_v2, %v25062_v3  ;;  %v25067_v2 = vand.u32 4294901760, %v18287_v8 }
 0x243   : > { %13383 = vmatpush1.bf16.msra.mxu0 %v25046_v17  ;;  %v18517_v1 = vsub.f32 %v18432_v9, %v25054_v36  ;;  %v25057_v36 = vld [vmem:[#allocation23_spill] sm:$0xff]  ;;  %v18536_v57 = vsub.f32 %v18467_v15, %v23616_v18  ;;  %v25058_v9 = vand.u32 4294901760, %v18470_v42  ;;  %v25063_v18 = vld [vmem:[#allocation80_spill] sm:$0xff]  ;;  %v18567_v15 = vld [vmem:[%s15902_s27 + $0x860] sm:$0xff] }
 0x244   : > { %13385 = vmatprep.subr.bf16.mxu0 %v25052_v33  ;;  %v18582_v21 = vpack.c.bf16 %v25068_v6, %v25067_v2  ;;  %v18600_v2 = vld [vmem:[%s15902_s27 + $0x870] sm:$0xff]  ;;  %v25091_v6 = vand.u32 4294901760, %v18383_v26 }
 0x245   : > { %13503 = vmatpush1.bf16.msra.mxu1 %v25055_v23  ;;  %v18541_v12 = vsub.f32 %v18470_v42, %v25058_v9  ;;  %v25061_v9 = vand.u32 4294901760, %v18481_v22 }
 0x246   : > { %13505 = vmatprep.subr.bf16.mxu1 %v25057_v36  ;;  %25069 = vst [vmem:[#allocation21_spill] sm:$0xff] %v18582_v21  ;;  %v25092_v21 = vand.u32 4294901760, %v18396_v31 }
 0x247   : > { %13387 = vmatpush1.bf16.msra.mxu0 %v25059_v37  ;;  %v18556_v42 = vsub.f32 %v18481_v22, %v25061_v9  ;;  %v25064_v22 = vand.u32 4294901760, %v18266_v24  ;;  %v18589_v9 = vsub.f32 %v18505_v47, %v25071_v29  ;;  %v25076_v29 = vand.u32 4294901760, %v18310_v11  ;;  %v25094_v11 = vld [vmem:[#allocation14_spill] sm:$0xff] }
 0x248   : > { %13389 = vmatprep.subr.bf16.mxu0 %v25060_v19  ;;  %v25077_v24 = vand.u32 4294901760, %v18321_v40  ;;  %v25080_v19 = vld [vmem:[#allocation43_spill] sm:$0xff] }
 0x249   : > { %13507 = vmatpush1.bf16.msra.mxu1 %v25063_v18  ;;  %v18576_v3 = vpack.c.bf16 %v25065_v14, %v25064_v22  ;;  %v25070_v18 = vld [vmem:[#allocation41_spill] sm:$0xff]  ;;  %v25072_v14 = vand.u32 4294901760, %v18297_v5  ;;  %v25073_v22 = vand.u32 4294901760, %v18302_v0  ;;  %v25079_v5 = vld [vmem:[#allocation44_spill] sm:$0xff] }
 0x24a   : > { %13509 = vmatprep.subr.bf16.mxu1 %v25070_v18  ;;  %v18609_v47 = vpack.c.bf16 %v25077_v24, %v25076_v29  ;;  %v25081_v24 = vand.u32 4294901760, %v18338_v16  ;;  %v25082_v29 = vand.u32 4294901760, %v18343_v63  ;;  %v25088_v16 = vand.u32 4294901760, %v18369_v60 }
 0x24b   : > { %25066 = vst [vmem:[#allocation75_spill] sm:$0xff] %v18576_v3  ;;  %v18596_v3 = vpack.c.bf16 %v25073_v22, %v25072_v14  ;;  %13391 = vmatpush1.bf16.msra.mxu0 %v25075_v43  ;;  %v18614_v22 = vsel %vm1170_vm1, %v1148_v34, 0  ;;  %v25084_v14 = vand.u32 4294901760, %v18348_v48  ;;  %v25085_v34 = vand.u32 4294901760, %v18364_v28 }
 0x24c   : > { %25078 = vst [vmem:[#allocation77_spill] sm:$0xff] %v18609_v47  ;;  %13393 = vmatprep.subr.bf16.mxu0 %v25079_v5  ;;  %v18625_v47 = vpack.c.bf16 %v25082_v29, %v25081_v24  ;;  %v25089_v63 = vand.u32 4294901760, %v18374_v51  ;;  %v25102_v29 = vld [vmem:[#allocation15_spill] sm:$0xff] }
 0x24d   : > { %25074 = vst [vmem:[#allocation76_spill] sm:$0xff] %v18596_v3  ;;  %13511 = vmatpush1.bf16.msra.mxu1 %v25080_v19  ;;  %v18631_v40 = vpack.c.bf16 %v25085_v34, %v25084_v14  ;;  %v25087_v3 = vld [vmem:[#allocation45_spill] sm:$0xff]  ;;  %v25103_v14 = vld [vmem:[#allocation27_spill] sm:$0xff]  ;;  %v25104_v34 = vand.u32 4294901760, %v18567_v15 }
 0x24e   : > { %25083 = vst [vmem:[#allocation78_spill] sm:$0xff] %v18625_v47  ;;  %13513 = vmatprep.subr.bf16.mxu1 %v25087_v3  ;;  %v18641_v24 = vpack.c.bf16 %v25089_v63, %v25088_v16  ;;  %v25095_v47 = vand.u32 4294901760, %v18530_v49  ;;  %v25100_v63 = vand.u32 4294901760, %v18440_v55 }
 0x24f   : > { %25086 = vst [vmem:[#allocation23_spill] sm:$0xff] %v18631_v40  ;;  %13395 = vmatpush1.bf16.msra.mxu0 %v18047_v13  ;;  %v18651_v40 = vpack.c.bf16 %v25092_v21, %v25091_v6  ;;  %v25096_v6 = vand.u32 4294901760, %v18415_v54  ;;  %v18682_v21 = vsub.f32 %v18567_v15, %v25104_v34  ;;  %v25105_v54 = vand.u32 4294901760, %v18545_v38 }
 0x250   : > { %25090 = vst [vmem:[#allocation79_spill] sm:$0xff] %v18641_v24  ;;  %13397 = vmatprep.subr.bf16.mxu0 %v25094_v11  ;;  %v18657_v16 = vsub.f32 %v18530_v49, %v25095_v47  ;;  %v25097_v11 = vand.u32 4294901760, %v18420_v39  ;;  %v25099_v47 = vand.u32 4294901760, %v18425_v4 }
 0x251   : > { %25093 = vst [vmem:[#allocation41_spill] sm:$0xff] %v18651_v40  ;;  %13515 = vmatpush1.bf16.msra.mxu1 %v18054_v30 }
 0x252   : > { %v18669_v40 = vpack.c.bf16 %v25097_v11, %v25096_v6  ;;  %v18675_v24 = vpack.c.bf16 %v25100_v63, %v25099_v47  ;;  %13517 = vmatprep.subr.bf16.mxu1 %v25102_v29  ;;  %4532 = vmatmul.mubr.f32.vlgmr.msra.gmra.mrb[4].mxu0 %v25103_v14  ;;  %v18687_v6 = vsub.f32 %v18545_v38, %v25105_v54  ;;  %v25106_v11 = vand.u32 4294901760, %v18445_v32  ;;  %v25109_v47 = vld [vmem:[#allocation26_spill] sm:$0xff] }
 0x253   : > { %13399 = vmatpush1.bf16.msra.mxu0 %v25109_v47  ;;  %4662 = vmatprep.mubr.f32.mxu0 %v24295_v52  ;;  %v25110_v29 = vand.u32 4294901760, %v18600_v2  ;;  %v25112_v32 = vand.u32 4294901760, %v18461_v46  ;;  %v23653_v47 = vand.u32 4294901760, %v18491_v7 }
 0x254   : > { %25098 = vst [vmem:[#allocation42_spill] sm:$0xff] %v18669_v40  ;;  %25101 = vst [vmem:[#allocation44_spill] sm:$0xff] %v18675_v24  ;;  %v25107_v40 = vand.u32 4294901760, %v18450_v45  ;;  %v25111_v24 = vand.u32 4294901760, %v18614_v22  ;;  %v25113_v45 = vand.u32 4294901760, %v18476_v56  ;;  %5231 = vmatmul.mubr.f32.vlgmr.msra.gmra.mrb[4].mxu1 %v25103_v14  ;;  %v25120_v56 = vand.u32 4294901760, %v18501_v50 }
 0x255   : > { %v18700_v34 = vsub.f32 %v18600_v2, %v25110_v29  ;;  %5361 = vmatprep.mubr.f32.mxu1 %v24295_v52 }
 0x256   : > { %v18693_v63 = vpack.c.bf16 %v25107_v40, %v25106_v11  ;;  %v18705_v54 = vsub.f32 %v18614_v22, %v25111_v24  ;;  %v18711_v40 = vpack.c.bf16 %v25113_v45, %v25112_v32  ;;  %v25115_v11 = vld [vmem:[#allocation30_spill] sm:$0xff]  ;;  %v25116_v24 = vld [vmem:[#allocation12_spill] sm:$0xff]  ;;  %v25121_v45 = vand.u32 4294901760, %v18512_v25  ;;  %v25123_v32 = vld [vmem:[#allocation31_spill] sm:$0xff] }
 0x257   : > { %13401 = vmatprep.subr.bf16.mxu0 %v25115_v11  ;;  %13519 = vmatpush1.bf16.msra.mxu1 %v25116_v24  ;;  %v25118_v24 = vand.u32 4294901760, %v18496_v61  ;;  %v25125_v11 = vand.u32 4294901760, %v18525_v58 }
 0x258   : > { %25108 = vst [vmem:[#allocation43_spill] sm:$0xff] %v18693_v63  ;;  %25114 = vst [vmem:[#allocation45_spill] sm:$0xff] %v18711_v40  ;;  %v25117_v40 = vld [vmem:[#allocation13_spill] sm:$0xff]  ;;  %v18738_v14 = vpack.c.bf16 %v25121_v45, %v25120_v56  ;;  %13403 = vmatpush1.bf16.msra.mxu0 %v25123_v32  ;;  %v25124_v63 = vand.u32 4294901760, %v18517_v1  ;;  %v23654_v32 = vand.u32 4294901760, %v18687_v6  ;;  %v25138_v45 = vld [vmem:[#allocation36_spill] sm:$0xff] }
 0x259   : > { %13521 = vmatprep.subr.bf16.mxu1 %v25117_v40  ;;  %v18732_v55 = vpack.c.bf16 %v25118_v24, %v23653_v47  ;;  %v25127_v24 = vand.u32 4294901760, %v18536_v57  ;;  %v25128_v47 = vand.u32 4294901760, %v18541_v12  ;;  %v25130_v56 = vld [vmem:[#allocation37_spill] sm:$0xff]  ;;  %v25131_v40 = vld [vmem:[#allocation34_spill] sm:$0xff] }
 0x25a   : > { %25122 = vst [vmem:[#allocation15_spill] sm:$0xff] %v18738_v14  ;;  %v18747_v7 = vpack.c.bf16 %v25125_v11, %v25124_v63  ;;  %13405 = vmatprep.subr.bf16.mxu0 %v25130_v56  ;;  %v25132_v63 = vand.u32 4294901760, %v18556_v42  ;;  %v25133_v11 = vand.u32 4294901760, %v18561_v41  ;;  %v25141_v14 = vld [vmem:[#allocation38_spill] sm:$0xff] }
 0x25b   : > { %25119 = vst [vmem:[#allocation14_spill] sm:$0xff] %v18732_v55  ;;  %v18753_v55 = vpack.c.bf16 %v25128_v47, %v25127_v24  ;;  %13523 = vmatpush1.bf16.msra.mxu1 %v25131_v40  ;;  %v25135_v47 = vand.u32 4294901760, %v18589_v9  ;;  %v25136_v24 = vand.u32 4294901760, %v18657_v16  ;;  %v25139_v40 = vand.u32 4294901760, %v18682_v21 }
 0x25c   : > { %25126 = vst [vmem:[#allocation26_spill] sm:$0xff] %v18747_v7  ;;  %v18765_v7 = vpack.c.bf16 %v25133_v11, %v25132_v63  ;;  %13525 = vmatprep.subr.bf16.mxu1 %v25138_v45  ;;  %13407 = vmatpush1.bf16.msra.mxu0 %v25141_v14  ;;  %v25143_v63 = vand.u32 4294901760, %v18705_v54 }
 0x25d   : > { %25129 = vst [vmem:[#allocation30_spill] sm:$0xff] %v18753_v55  ;;  %v18771_v56 = vpack.c.bf16 %v25136_v24, %v25135_v47  ;;  %v18778_v29 = vpack.c.bf16 %v23654_v32, %v25139_v40  ;;  %v25142_v55 = vand.u32 4294901760, %v18700_v34  ;;  %v25146_v47 = vld [vmem:[#allocation39_spill] sm:$0xff]  ;;  %v18789_v24 = vpop.f32.mrb[0].mxu0  ;;  %v18794_v40 = vpop.f32.mrb[0].mxu1 }
 0x25e   : > { %25134 = vst [vmem:[#allocation12_spill] sm:$0xff] %v18765_v7  ;;  %v25145_v7 = vld [vmem:[#allocation19_spill] sm:$0xff]  ;;  %25147 = vst [vmem:[#allocation34_spill] sm:$0xff] %v18789_v24  ;;  %v18791_v45 = vpop.f32.mrb[1].mxu0  ;;  %v18797_v14 = vpop.f32.mrb[1].mxu1 }
 0x25f   : > { %25137 = vst [vmem:[#allocation13_spill] sm:$0xff] %v18771_v56  ;;  %25140 = vst [vmem:[#allocation31_spill] sm:$0xff] %v18778_v29  ;;  %v18785_v11 = vpack.c.bf16 %v25143_v63, %v25142_v55  ;;  %13409 = vmatprep.subr.bf16.mxu0 %v25145_v7  ;;  %13527 = vmatpush1.bf16.msra.mxu1 %v25146_v47  ;;  %v25149_v56 = vld [vmem:[#allocation40_spill] sm:$0xff]  ;;  %v25151_v32 = vld [vmem:[#allocation67_spill] sm:$0xff] }
 0x260   : > { %25148 = vst [vmem:[#allocation36_spill] sm:$0xff] %v18791_v45  ;;  %13529 = vmatprep.subr.bf16.mxu1 %v25149_v56  ;;  %25150 = vst [vmem:[#allocation38_spill] sm:$0xff] %v18794_v40  ;;  %13411 = vmatpush1.bf16.msra.mxu0 %v25151_v32  ;;  %v25153_v29 = vld [vmem:[#allocation69_spill] sm:$0xff]  ;;  %v25154_v55 = vld [vmem:[#allocation68_spill] sm:$0xff] }
 0x261   : > { %25144 = vst [vmem:[#allocation37_spill] sm:$0xff] %v18785_v11  ;;  %25152 = vst [vmem:[#allocation19_spill] sm:$0xff] %v18797_v14  ;;  %13413 = vmatprep.subr.bf16.mxu0 %v25153_v29  ;;  %v25155_v63 = vld [vmem:[#allocation18_spill] sm:$0xff]  ;;  %v25157_v47 = vld [vmem:[#allocation71_spill] sm:$0xff] }
 0x262   : > { %v25156_v7 = vld [vmem:[#allocation70_spill] sm:$0xff] }
 0x263   : > { %13531 = vmatpush1.bf16.msra.mxu1 %v25154_v55  ;;  %v25175_v55 = vld [vmem:[#allocation58_spill] sm:$0xff] }
 0x264   : > { %13533 = vmatprep.subr.bf16.mxu1 %v25155_v63  ;;  %13415 = vmatpush1.bf16.msra.mxu0 %v25156_v7  ;;  %v25177_v63 = vld [vmem:[#allocation59_spill] sm:$0xff] }
 0x265   : > { %13417 = vmatprep.subr.bf16.mxu0 %v25013_v27  ;;  %v25165_v27 = vld [vmem:[#allocation53_spill] sm:$0xff] }
 0x267   : > { %13535 = vmatpush1.bf16.msra.mxu1 %v25157_v47  ;;  %4664 = vmatmul.mubr.f32.vlgmr.msra.gmra.mrb[4].mxu0 %v24973_v59  ;;  %v25180_v47 = vld [vmem:[#allocation57_spill] sm:$0xff] }
 0x268   : > { %13537 = vmatprep.subr.bf16.mxu1 %v25020_v35  ;;  %13419 = vmatpush1.bf16.msra.mxu0 %v25026_v10  ;;  %v25158_v10 = vld [vmem:[#allocation22_spill] sm:$0xff]  ;;  %v25159_v35 = vld [vmem:[#allocation80_spill] sm:$0xff] }
 0x269   : > { %4754 = vmatprep.mubr.f32.mxu0 %v24295_v52  ;;  %13421 = vmatprep.subr.bf16.mxu0 %v25032_v20  ;;  %v25160_v20 = vld [vmem:[#allocation47_spill] sm:$0xff] }
 0x26a   : > { %5363 = vmatmul.mubr.f32.vlgmr.msra.gmra.mrb[4].mxu1 %v24973_v59 }
 0x26b   : > { %13539 = vmatpush1.bf16.msra.mxu1 %v25037_v44  ;;  %5453 = vmatprep.mubr.f32.mxu1 %v24295_v52 }
 0x26c   : > { %13541 = vmatprep.subr.bf16.mxu1 %v25041_v53  ;;  %13423 = vmatpush1.bf16.msra.mxu0 %v25046_v17  ;;  %v25161_v17 = vand.u32 4294901760, %v25160_v20  ;;  %v25162_v53 = vld [vmem:[#allocation52_spill] sm:$0xff] }
 0x26d   : > { %13425 = vmatprep.subr.bf16.mxu0 %v25052_v33  ;;  %v25163_v33 = vand.u32 4294901760, %v25162_v53 }
 0x26f   : > { %13543 = vmatpush1.bf16.msra.mxu1 %v25055_v23  ;;  %v18828_v44 = vpack.c.bf16 %v25163_v33, %v25161_v17  ;;  %v25166_v23 = vand.u32 4294901760, %v25165_v27  ;;  %v25185_v17 = vld [vmem:[#allocation17_spill] sm:$0xff]  ;;  %v25187_v33 = vld [vmem:[#allocation62_spill] sm:$0xff] }
 0x270   : > { %13545 = vmatprep.subr.bf16.mxu1 %v25057_v36  ;;  %13427 = vmatpush1.bf16.msra.mxu0 %v25059_v37  ;;  %v25167_v36 = vld [vmem:[#allocation48_spill] sm:$0xff]  ;;  %v25186_v53 = vand.u32 4294901760, %v25185_v17  ;;  %v25188_v27 = vand.u32 4294901760, %v25187_v33  ;;  %v25203_v17 = vld [vmem:[#allocation54_spill] sm:$0xff] }
 0x271   : > { %13429 = vmatprep.subr.bf16.mxu0 %v25158_v10  ;;  %25164 = vst [vmem:[#allocation39_spill] sm:$0xff] %v18828_v44  ;;  %v25168_v37 = vand.u32 4294901760, %v25167_v36  ;;  %v25181_v10 = vand.u32 4294901760, %v25180_v47  ;;  %v25190_v36 = vld [vmem:[#allocation65_spill] sm:$0xff]  ;;  %v25205_v33 = vld [vmem:[#allocation82_spill] sm:$0xff] }
 0x273   : > { %13547 = vmatpush1.bf16.msra.mxu1 %v25159_v35  ;;  %v18836_v29 = vpack.c.bf16 %v25168_v37, %v25166_v23  ;;  %v25182_v35 = vld [vmem:[#allocation56_spill] sm:$0xff]  ;;  %v18865_v23 = vpack.c.bf16 %v25188_v27, %v25186_v53  ;;  %v25204_v53 = vand.u32 4294901760, %v25203_v17  ;;  %v25206_v27 = vand.u32 4294901760, %v25205_v33  ;;  %v25218_v17 = vld [vmem:[#allocation61_spill] sm:$0xff] }
 0x274   : > { %13549 = vmatprep.subr.bf16.mxu1 %v25070_v18  ;;  %13431 = vmatpush1.bf16.msra.mxu0 %v25075_v43  ;;  %v25170_v43 = vld [vmem:[#allocation49_spill] sm:$0xff]  ;;  %v25172_v18 = vld [vmem:[#allocation55_spill] sm:$0xff]  ;;  %v25192_v37 = vld [vmem:[#allocation32_spill] sm:$0xff]  ;;  %v25219_v33 = vand.u32 4294901760, %v25218_v17 }
 0x275   : > { %13433 = vmatprep.subr.bf16.mxu0 %v25079_v5  ;;  %25169 = vst [vmem:[#allocation40_spill] sm:$0xff] %v18836_v29  ;;  %v25171_v5 = vand.u32 4294901760, %v25170_v43  ;;  %v25173_v32 = vand.u32 4294901760, %v25172_v18  ;;  %25189 = vst [vmem:[#allocation18_spill] sm:$0xff] %v18865_v23  ;;  %v25193_v43 = vand.u32 4294901760, %v25192_v37  ;;  %v25195_v18 = vld [vmem:[#allocation29_spill] sm:$0xff] }
 0x277   : > { %13551 = vmatpush1.bf16.msra.mxu1 %v25080_v19  ;;  %v18843_v56 = vpack.c.bf16 %v25173_v32, %v25171_v5  ;;  %v25176_v19 = vand.u32 4294901760, %v25175_v55  ;;  %v25196_v32 = vand.u32 4294901760, %v25195_v18 }
 0x278   : > { %13553 = vmatprep.subr.bf16.mxu1 %v25087_v3  ;;  %13435 = vmatpush1.bf16.msra.mxu0 %v18047_v13  ;;  %v25178_v3 = vand.u32 4294901760, %v25177_v63  ;;  %v25183_v13 = vand.u32 4294901760, %v25182_v35 }
 0x279   : > { %25174 = vst [vmem:[#allocation67_spill] sm:$0xff] %v18843_v56  ;;  %13557 = vmatprep.subr.bf16.mxu0 %v18828_v44  ;;  %v5560_v55 = vsub.f32 %v25195_v18, %v25196_v32 }
 0x27a   : > { %v18850_v7 = vpack.c.bf16 %v25178_v3, %v25176_v19  ;;  %v18857_v20 = vpack.c.bf16 %v25183_v13, %v25181_v10  ;;  %v25197_v19 = vand.u32 4294901760, %v18271_v62  ;;  %v25198_v3 = vld [vmem:[#allocation85_spill] sm:$0xff]  ;;  %v25200_v10 = vld [vmem:[#allocation86_spill] sm:$0xff] }
 0x27b   : > { %13555 = vmatpush1.bf16.msra.mxu1 %v18054_v30  ;;  %4756 = vmatmul.mubr.f32.vlgmr.msra.gmra.mrb[4].mxu0 %v24973_v59  ;;  %v25191_v30 = vand.u32 4294901760, %v25190_v36  ;;  %v25199_v47 = vand.u32 4294901760, %v25198_v3  ;;  %v25201_v35 = vand.u32 4294901760, %v25200_v10  ;;  %v18894_v36 = vpack.c.bf16 %v25206_v27, %v25204_v53  ;;  %v25213_v3 = vld [vmem:[#allocation25_spill] sm:$0xff]  ;;  %v25215_v10 = vld [vmem:[#allocation95_spill] sm:$0xff] }
 0x27c   : > { %25179 = vst [vmem:[#allocation69_spill] sm:$0xff] %v18850_v7  ;;  %25184 = vst [vmem:[#allocation68_spill] sm:$0xff] %v18857_v20  ;;  %13677 = vmatprep.subr.bf16.mxu1 %v18836_v29  ;;  %13559 = vmatpush1.bf16.msra.mxu0 %v18843_v56  ;;  %v5572_v63 = vsub.f32 %v18271_v62, %v25197_v19  ;;  %v25220_v53 = vld [vmem:[#allocation35_spill] sm:$0xff]  ;;  %v5561_v17 = vand.u32 4294901760, %v5560_v55  ;;  %v25243_v55 = vld [vmem:[#allocation24_spill] sm:$0xff] }
 0x27d   : > { %v18872_v5 = vpack.c.bf16 %v25193_v43, %v25191_v30  ;;  %5545 = vmatprep.mubr.f32.mxu0 %v24295_v52  ;;  %13561 = vmatprep.subr.bf16.mxu0 %v18850_v7  ;;  %v18887_v13 = vpack.c.bf16 %v25201_v35, %v25199_v47  ;;  %25207 = vst [vmem:[#allocation22_spill] sm:$0xff] %v18894_v36  ;;  %v25208_v30 = vld [vmem:[#allocation87_spill] sm:$0xff]  ;;  %v25210_v43 = vld [vmem:[#allocation94_spill] sm:$0xff]  ;;  %v25214_v47 = vand.u32 4294901760, %v25213_v3  ;;  %v25216_v35 = vand.u32 4294901760, %v25215_v10  ;;  %v25226_v3 = vld [vmem:[#allocation93_spill] sm:$0xff] }
 0x27e   : > { %5455 = vmatmul.mubr.f32.vlgmr.msra.gmra.mrb[4].mxu1 %v24973_v59  ;;  %v25209_v37 = vand.u32 4294901760, %v25208_v30  ;;  %v25211_v32 = vand.u32 4294901760, %v25210_v43  ;;  %v25221_v27 = vand.u32 4294901760, %v25220_v53  ;;  %v25223_v30 = vand.u32 4294901760, %v18287_v8  ;;  %v25224_v43 = vld [vmem:[#allocation46_spill] sm:$0xff]  ;;  %v25240_v56 = vld [vmem:[#allocation83_spill] sm:$0xff] }
 0x27f   : > { %25194 = vst [vmem:[#allocation70_spill] sm:$0xff] %v18872_v5  ;;  %25202 = vst [vmem:[#allocation71_spill] sm:$0xff] %v18887_v13  ;;  %13679 = vmatpush1.bf16.msra.mxu1 %v18857_v20  ;;  %6244 = vmatprep.mubr.f32.mxu1 %v24295_v52  ;;  %v18908_v14 = vpack.c.bf16 %v25216_v35, %v25214_v47  ;;  %v25227_v10 = vand.u32 4294901760, %v25226_v3  ;;  %v25228_v47 = vld [vmem:[#allocation11_spill] sm:$0xff]  ;;  %v5573_v53 = vand.u32 4294901760, %v5572_v63  ;;  %v25244_v63 = vand.u32 4294901760, %v25243_v55 }
 0x280   : > { %v18900_v19 = vpack.c.bf16 %v25211_v32, %v25209_v37  ;;  %13681 = vmatprep.subr.bf16.mxu1 %v18865_v23  ;;  %v18914_v40 = vpack.c.bf16 %v25221_v27, %v25219_v33  ;;  %v6259_v37 = vsub.f32 %v18287_v8, %v25223_v30  ;;  %v25225_v32 = vand.u32 4294901760, %v25224_v43  ;;  %13563 = vmatpush1.bf16.msra.mxu0 %v18872_v5  ;;  %v25231_v33 = vld [vmem:[#allocation50_spill] sm:$0xff]  ;;  %v25235_v20 = vld [vmem:[#allocation63_spill] sm:$0xff]  ;;  %v25238_v5 = vld [vmem:[#allocation16_spill] sm:$0xff] }
 0x281   : > { %25217 = vst [vmem:[#allocation47_spill] sm:$0xff] %v18908_v14  ;;  %v25229_v35 = vand.u32 4294901760, %v25228_v47  ;;  %v25232_v27 = vand.u32 4294901760, %v25231_v33  ;;  %13565 = vmatprep.subr.bf16.mxu0 %v18887_v13  ;;  %v25233_v30 = vld [vmem:[#allocation10_spill] sm:$0xff]  ;;  %v25239_v3 = vand.u32 4294901760, %v25238_v5  ;;  %v25241_v47 = vand.u32 4294901760, %v25240_v56 }
 0x282   : > { %25212 = vst [vmem:[#allocation80_spill] sm:$0xff] %v18900_v19  ;;  %25222 = vst [vmem:[#allocation52_spill] sm:$0xff] %v18914_v40  ;;  %v6271_v45 = vsub.f32 %v25224_v43, %v25225_v32  ;;  %v25234_v23 = vand.u32 4294901760, %v25233_v30  ;;  %v25236_v32 = vand.u32 4294901760, %v25235_v20  ;;  %v25250_v59 = vld [vmem:[#allocation20_spill] sm:$0xff]  ;;  %v25253_v20 = vld [vmem:[#allocation74_spill] sm:$0xff] }
 0x283   : > { %v18927_v24 = vpack.c.bf16 %v25229_v35, %v25227_v10  ;;  %v5566_v11 = vsub.f32 %v25231_v33, %v25232_v27  ;;  %v18943_v10 = vpack.c.bf16 %v25241_v47, %v25239_v3  ;;  %v25245_v35 = vld [vmem:[#allocation89_spill] sm:$0xff]  ;;  %v25248_v27 = vld [vmem:[#allocation72_spill] sm:$0xff]  ;;  %v25251_v30 = vand.u32 4294901760, %v25250_v59  ;;  %13683 = vmatpush1.bf16.msra.mxu1 %v18894_v36 }
 0x284   : > { %v18937_v7 = vpack.c.bf16 %v25236_v32, %v25234_v23  ;;  %v25246_v29 = vand.u32 4294901760, %v25245_v35  ;;  %v25249_v13 = vand.u32 4294901760, %v25248_v27  ;;  %v25254_v23 = vand.u32 4294901760, %v25253_v20  ;;  %13685 = vmatprep.subr.bf16.mxu1 %v18900_v19  ;;  %13567 = vmatpush1.bf16.msra.mxu0 %v18908_v14  ;;  %v25269_v19 = vld [vmem:[#allocation91_spill] sm:$0xff] }
 0x285   : > { %25230 = vst [vmem:[#allocation53_spill] sm:$0xff] %v18927_v24  ;;  %25242 = vst [vmem:[#allocation49_spill] sm:$0xff] %v18943_v10  ;;  %v25255_v56 = vand.u32 4294901760, %v18530_v49  ;;  %v25257_v32 = vand.u32 4294901760, %v18567_v15  ;;  %v25258_v3 = vand.u32 4294901760, %v18545_v38  ;;  %v25259_v47 = vand.u32 4294901760, %v18302_v0  ;;  %13569 = vmatprep.subr.bf16.mxu0 %v18927_v24 }
 0x286   : > { %25237 = vst [vmem:[#allocation48_spill] sm:$0xff] %v18937_v7  ;;  %v18949_v44 = vpack.c.bf16 %v25246_v29, %v25244_v63  ;;  %v18955_v33 = vpack.c.bf16 %v25251_v30, %v25249_v13  ;;  %v25260_v13 = vld [vmem:[#allocation60_spill] sm:$0xff]  ;;  %v25262_v49 = vand.u32 4294901760, %v18600_v2  ;;  %v25263_v35 = vand.u32 4294901760, %v18614_v22 }
 0x287   : > { %v18962_v5 = vpack.c.bf16 %v25255_v56, %v25254_v23  ;;  %v18968_v29 = vpack.c.bf16 %v25258_v3, %v25257_v32  ;;  %v5578_v59 = vsub.f32 %v18302_v0, %v25259_v47  ;;  %v25261_v55 = vand.u32 4294901760, %v25260_v13  ;;  %v25265_v30 = vld [vmem:[#allocation84_spill] sm:$0xff]  ;;  %v25267_v3 = vld [vmem:[#allocation90_spill] sm:$0xff]  ;;  %13687 = vmatpush1.bf16.msra.mxu1 %v18914_v40 }
 0x288   : > { %25247 = vst [vmem:[#allocation55_spill] sm:$0xff] %v18949_v44  ;;  %25252 = vst [vmem:[#allocation58_spill] sm:$0xff] %v18955_v33  ;;  %v18981_v27 = vpack.c.bf16 %v25263_v35, %v25262_v49  ;;  %v6260_v15 = vand.u32 4294901760, %v6259_v37  ;;  %v6272_v38 = vand.u32 4294901760, %v6271_v45  ;;  %v25266_v20 = vand.u32 4294901760, %v25265_v30  ;;  %13689 = vmatprep.subr.bf16.mxu1 %v18937_v7  ;;  %13571 = vmatpush1.bf16.msra.mxu0 %v18943_v10 }
 0x289   : > { %25256 = vst [vmem:[#allocation59_spill] sm:$0xff] %v18962_v5  ;;  %v6265_v63 = vsub.f32 %v25260_v13, %v25261_v55  ;;  %v13576_v56 = vpack.c.bf16 %v5573_v53, %v5561_v17  ;;  %v5567_v32 = vand.u32 4294901760, %v5566_v11  ;;  %v25268_v47 = vand.u32 4294901760, %v25267_v3  ;;  %13573 = vmatprep.subr.bf16.mxu0 %v18955_v33 }
 0x28a   : > { %25264 = vst [vmem:[#allocation57_spill] sm:$0xff] %v18981_v27  ;;  %v6277_v23 = vsub.f32 %v25265_v30, %v25266_v20  ;;  %v25270_v2 = vand.u32 4294901760, %v25269_v19  ;;  %v25271_v45 = vand.u32 4294901760, %v18348_v48  ;;  %v25272_v49 = vand.u32 4294901760, %v18364_v28 }
 0x28b   : > { %v5584_v55 = vsub.f32 %v25267_v3, %v25268_v47  ;;  %v25273_v11 = vand.u32 4294901760, %v18369_v60  ;;  %v25274_v53 = vand.u32 4294901760, %v18374_v51  ;;  %v5579_v47 = vand.u32 4294901760, %v5578_v59  ;;  %13691 = vmatpush1.bf16.msra.mxu1 %v18949_v44  ;;  %v25288_v44 = vld [vmem:[#allocation9_spill] sm:$0xff] }
 0x28c   : > { %v5596_v22 = vsub.f32 %v25269_v19, %v25270_v2  ;;  %v6283_v37 = vsub.f32 %v18348_v48, %v25271_v45  ;;  %v6295_v35 = vsub.f32 %v18364_v28, %v25272_v49  ;;  %v6266_v2 = vand.u32 4294901760, %v6265_v63  ;;  %13693 = vmatprep.subr.bf16.mxu1 %v18962_v5  ;;  %13575 = vmatpush1.bf16.msra.mxu0 %v18968_v29  ;;  %v25290_v5 = vld [vmem:[#allocation73_spill] sm:$0xff] }
 0x28d   : > { %v5590_v17 = vsub.f32 %v18369_v60, %v25273_v11  ;;  %v5602_v20 = vsub.f32 %v18374_v51, %v25274_v53  ;;  %v25275_v24 = vand.u32 4294901760, %v18383_v26  ;;  %v25276_v14 = vand.u32 4294901760, %v18396_v31  ;;  %v25277_v60 = vld [vmem:[#allocation64_spill] sm:$0xff]  ;;  %13577 = vmatprep.subr.bf16.mxu0 %v13576_v56 }
 0x28e   : > { %v13696_v36 = vpack.c.bf16 %v6272_v38, %v6260_v15  ;;  %v6278_v11 = vand.u32 4294901760, %v6277_v23  ;;  %v25278_v28 = vand.u32 4294901760, %v25277_v60  ;;  %v25279_v40 = vand.u32 4294901760, %v18420_v39  ;;  %v25285_v51 = vld [vmem:[#allocation88_spill] sm:$0xff] }
 0x28f   : > { %v6289_v45 = vsub.f32 %v18383_v26, %v25275_v24  ;;  %v6301_v49 = vsub.f32 %v18396_v31, %v25276_v14  ;;  %v5585_v63 = vand.u32 4294901760, %v5584_v55  ;;  %v5597_v24 = vand.u32 4294901760, %v5596_v22  ;;  %v25281_v31 = vld [vmem:[#allocation81_spill] sm:$0xff]  ;;  %v25283_v55 = vld [vmem:[#allocation8_spill] sm:$0xff]  ;;  %13695 = vmatpush1.bf16.msra.mxu1 %v18981_v27 }
 0x290   : > { %v5608_v53 = vsub.f32 %v25277_v60, %v25278_v28  ;;  %v5620_v59 = vsub.f32 %v18420_v39, %v25279_v40  ;;  %v25280_v26 = vand.u32 4294901760, %v18425_v4  ;;  %v25282_v7 = vand.u32 4294901760, %v25281_v31  ;;  %13697 = vmatprep.subr.bf16.mxu1 %v13696_v36 }
 0x291   : > { %v6284_v38 = vand.u32 4294901760, %v6283_v37  ;;  %v6296_v28 = vand.u32 4294901760, %v6295_v35  ;;  %v5591_v23 = vand.u32 4294901760, %v5590_v17  ;;  %v5603_v60 = vand.u32 4294901760, %v5602_v20 }
 0x292   : > { %v6307_v14 = vsub.f32 %v18425_v4, %v25280_v26  ;;  %v6319_v15 = vsub.f32 %v25281_v31, %v25282_v7  ;;  %v6290_v40 = vand.u32 4294901760, %v6289_v45  ;;  %v6302_v10 = vand.u32 4294901760, %v6301_v49 }
 0x293   : > { %v25284_v22 = vand.u32 4294901760, %v25283_v55  ;;  %v25286_v26 = vand.u32 4294901760, %v25285_v51  ;;  %v13578_v7 = vpack.c.bf16 %v5579_v47, %v5567_v32  ;;  %v5609_v33 = vand.u32 4294901760, %v5608_v53 }
 0x294   : > { %v5621_v37 = vand.u32 4294901760, %v5620_v59  ;;  %v25287_v35 = vand.u32 4294901760, %v18461_v46  ;;  %v13698_v20 = vpack.c.bf16 %v6278_v11, %v6266_v2  ;;  %v6308_v45 = vand.u32 4294901760, %v6307_v14 }
 0x295   : > { %v5614_v39 = vsub.f32 %v25283_v55, %v25284_v22  ;;  %v5626_v4 = vsub.f32 %v25285_v51, %v25286_v26  ;;  %v6320_v49 = vand.u32 4294901760, %v6319_v15  ;;  %v25289_v22 = vand.u32 4294901760, %v25288_v44 }
 0x296   : > { %v6313_v17 = vsub.f32 %v18461_v46, %v25287_v35  ;;  %v13580_v26 = vpack.c.bf16 %v5597_v24, %v5585_v63  ;;  %v13700_v51 = vpack.c.bf16 %v6296_v28, %v6284_v38  ;;  %v25291_v32 = vand.u32 4294901760, %v25290_v5  ;;  %v25293_v35 = vld [vmem:[#allocation28_spill] sm:$0xff] }
 0x297   : > { %v6325_v55 = vsub.f32 %v25288_v44, %v25289_v22  ;;  %v25292_v53 = vand.u32 4294901760, %v18496_v61  ;;  %v13582_v2 = vpack.c.bf16 %v5603_v60, %v5591_v23  ;;  %v13702_v11 = vpack.c.bf16 %v6302_v10, %v6290_v40  ;;  %5551 = vmatmul.mubr.f32.vlgmr.msra.gmra.mrb[6].mxu0 %v25293_v35  ;;  %6250 = vmatmul.mubr.f32.vlgmr.msra.gmra.mrb[6].mxu1 %v25293_v35 }
 0x298   : > { %v5632_v47 = vsub.f32 %v25290_v5, %v25291_v32  ;;  %v5615_v14 = vand.u32 4294901760, %v5614_v39  ;;  %v5627_v15 = vand.u32 4294901760, %v5626_v4  ;;  %v13584_v56 = vpack.c.bf16 %v5621_v37, %v5609_v33  ;;  %13579 = vmatpush1.bf16.msra.mxu0 %v13578_v7  ;;  %5721 = vmatprep.mubr.f32.mxu0 %v24295_v52 }
 0x299   : > { %v5644_v59 = vsub.f32 %v18496_v61, %v25292_v53  ;;  %v6314_v63 = vand.u32 4294901760, %v6313_v17  ;;  %v25294_v24 = vand.u32 4294901760, %v18501_v50  ;;  %v25295_v28 = vand.u32 4294901760, %v18512_v25  ;;  %13581 = vmatprep.subr.bf16.mxu0 %v13580_v26  ;;  %13699 = vmatpush1.bf16.msra.mxu1 %v13698_v20 }
 0x29a   : > { %v13704_v32 = vpack.c.bf16 %v6320_v49, %v6308_v45  ;;  %v6326_v53 = vand.u32 4294901760, %v6325_v55  ;;  %v25296_v60 = vand.u32 4294901760, %v18517_v1  ;;  %v25297_v39 = vand.u32 4294901760, %v18525_v58  ;;  %6420 = vmatprep.mubr.f32.mxu1 %v24295_v52  ;;  %13701 = vmatprep.subr.bf16.mxu1 %v13700_v51 }
 0x29b   : > { %v6331_v38 = vsub.f32 %v18501_v50, %v25294_v24  ;;  %v6343_v22 = vsub.f32 %v18512_v25, %v25295_v28  ;;  %v5633_v33 = vand.u32 4294901760, %v5632_v47  ;;  %v5645_v10 = vand.u32 4294901760, %v5644_v59 }
 0x29c   : > { %v5638_v4 = vsub.f32 %v18517_v1, %v25296_v60  ;;  %v5650_v36 = vsub.f32 %v18525_v58, %v25297_v39  ;;  %v25298_v23 = vand.u32 4294901760, %v18556_v42  ;;  %v25299_v55 = vand.u32 4294901760, %v18561_v41  ;;  %13583 = vmatpush1.bf16.msra.mxu0 %v13582_v2 }
 0x29d   : > { %v13586_v37 = vpack.c.bf16 %v5627_v15, %v5615_v14  ;;  %v25300_v17 = vand.u32 4294901760, %v18536_v57  ;;  %v25301_v49 = vand.u32 4294901760, %v18541_v12  ;;  %v6332_v47 = vand.u32 4294901760, %v6331_v38  ;;  %13585 = vmatprep.subr.bf16.mxu0 %v13584_v56  ;;  %13703 = vmatpush1.bf16.msra.mxu1 %v13702_v11 }
 0x29e   : > { %v5656_v40 = vsub.f32 %v18556_v42, %v25298_v23  ;;  %v5668_v7 = vsub.f32 %v18561_v41, %v25299_v55  ;;  %v6344_v59 = vand.u32 4294901760, %v6343_v22  ;;  %v25302_v24 = vand.u32 4294901760, %v18589_v9  ;;  %13705 = vmatprep.subr.bf16.mxu1 %v13704_v32 }
 0x29f   : > { %v6337_v45 = vsub.f32 %v18536_v57, %v25300_v17  ;;  %v6349_v26 = vsub.f32 %v18541_v12, %v25301_v49  ;;  %v25303_v20 = vand.u32 4294901760, %v18657_v16  ;;  %v5639_v15 = vand.u32 4294901760, %v5638_v4 }
 0x2a0   : > { %v6355_v28 = vsub.f32 %v18589_v9, %v25302_v24  ;;  %v5651_v60 = vand.u32 4294901760, %v5650_v36  ;;  %v25304_v39 = vand.u32 4294901760, %v18682_v21  ;;  %v25305_v55 = vand.u32 4294901760, %v18687_v6  ;;  %13587 = vmatpush1.bf16.msra.mxu0 %v13586_v37 }
 0x2a1   : > { %v6367_v14 = vsub.f32 %v18657_v16, %v25303_v20  ;;  %v13706_v38 = vpack.c.bf16 %v6326_v53, %v6314_v63  ;;  %v13588_v22 = vpack.c.bf16 %v5645_v10, %v5633_v33  ;;  %v5657_v17 = vand.u32 4294901760, %v5656_v40 }
 0x2a2   : > { %v5662_v23 = vsub.f32 %v18682_v21, %v25304_v39  ;;  %v5674_v51 = vsub.f32 %v18687_v6, %v25305_v55  ;;  %v5669_v49 = vand.u32 4294901760, %v5668_v7  ;;  %v6338_v24 = vand.u32 4294901760, %v6337_v45 }
 0x2a3   : > { %v6350_v35 = vand.u32 4294901760, %v6349_v26  ;;  %v25306_v2 = vand.u32 4294901760, %v18700_v34  ;;  %v25307_v36 = vand.u32 4294901760, %v18705_v54  ;;  %v13708_v39 = vpack.c.bf16 %v6344_v59, %v6332_v47  ;;  %13589 = vmatprep.subr.bf16.mxu0 %v13588_v22  ;;  %13707 = vmatpush1.bf16.msra.mxu1 %v13706_v38  ;;  %v25308_v47 = vld [vmem:[#allocation50_spill] sm:$0xff] }
 0x2a4   : > { %v6356_v27 = vand.u32 4294901760, %v6355_v28  ;;  %v6368_v55 = vand.u32 4294901760, %v6367_v14  ;;  %v13590_v56 = vpack.c.bf16 %v5651_v60, %v5639_v15  ;;  %v5663_v63 = vand.u32 4294901760, %v5662_v23  ;;  %v25318_v23 = vld [vmem:[#allocation8_spill] sm:$0xff] }
 0x2a5   : > { %v6361_v4 = vsub.f32 %v18700_v34, %v25306_v2  ;;  %v6373_v20 = vsub.f32 %v18705_v54, %v25307_v36  ;;  %v5675_v53 = vand.u32 4294901760, %v5674_v51  ;;  %v13592_v11 = vpack.c.bf16 %v5669_v49, %v5657_v17  ;;  %13709 = vmatprep.subr.bf16.mxu1 %v13708_v39  ;;  %v25319_v51 = vld [vmem:[#allocation88_spill] sm:$0xff]  ;;  %v19135_v2 = vld [vmem:[%s15902_s27 + $0x98] sm:$0xff] }
 0x2a6   : > { %v13710_v33 = vpack.c.bf16 %v6350_v35, %v6338_v24  ;;  %v13712_v7 = vpack.c.bf16 %v6368_v55, %v6356_v27  ;;  %13591 = vmatpush1.bf16.msra.mxu0 %v13590_v56  ;;  %v13596_v32 = vpack.c.bf16 %v18271_v62, %v25195_v18  ;;  %v13716_v37 = vpack.c.bf16 %v25224_v43, %v18287_v8  ;;  %v25309_v62 = vld [vmem:[#allocation6_spill] sm:$0xff]  ;;  %v25310_v18 = vld [vmem:[#allocation96_spill] sm:$0xff]  ;;  %v25311_v8 = vld [vmem:[#allocation97_spill] sm:$0xff] }
 0x2a7   : > { %v6362_v10 = vand.u32 4294901760, %v6361_v4  ;;  %v6374_v40 = vand.u32 4294901760, %v6373_v20  ;;  %v13594_v45 = vpack.c.bf16 %v5675_v53, %v5663_v63  ;;  %13593 = vmatprep.subr.bf16.mxu0 %v13592_v11  ;;  %v13598_v35 = vpack.c.bf16 %v18302_v0, %v25308_v47  ;;  %v25312_v43 = vld [vmem:[#allocation98_spill] sm:$0xff]  ;;  %v25313_v0 = vld [vmem:[#allocation64_spill] sm:$0xff]  ;;  %v19132_v24 = vld [vmem:[%s15902_s27 + $0x188] sm:$0xff]  ;;  %25322 = vst [vmem:[#allocation62_spill] sm:$0xff] %v19135_v2 }
 0x2a8   : > { %13711 = vmatpush1.bf16.msra.mxu1 %v13710_v33  ;;  %v13600_v27 = vpack.c.bf16 %v25269_v19, %v25267_v3  ;;  %v13718_v59 = vpack.c.bf16 %v25265_v30, %v25260_v13  ;;  %v13720_v28 = vpack.c.bf16 %v25310_v18, %v18348_v48  ;;  %v13602_v14 = vpack.c.bf16 %v25312_v43, %v25311_v8  ;;  %v25314_v19 = vld [vmem:[#allocation66_spill] sm:$0xff]  ;;  %v25315_v30 = vld [vmem:[#allocation33_spill] sm:$0xff]  ;;  %v25316_v3 = vld [vmem:[#allocation92_spill] sm:$0xff] }
 0x2a9   : > { %v13714_v26 = vpack.c.bf16 %v6374_v40, %v6362_v10  ;;  %13713 = vmatprep.subr.bf16.mxu1 %v13712_v7  ;;  %v13604_v13 = vpack.c.bf16 %v25314_v19, %v25313_v0  ;;  %v13722_v15 = vpack.c.bf16 %v25316_v3, %v25315_v30  ;;  %v25317_v48 = vld [vmem:[#allocation51_spill] sm:$0xff]  ;;  %v13606_v38 = vpack.c.bf16 %v25319_v51, %v25318_v23  ;;  %v19143_v4 = vld [vmem:[%s15902_s27 + $0x80] sm:$0xff]  ;;  %v19177_v39 = vld [vmem:[%s15902_s27 + $0x298] sm:$0xff] }
 0x2aa   : > { %13595 = vmatpush1.bf16.msra.mxu0 %v13594_v45  ;;  %v13724_v60 = vpack.c.bf16 %v25281_v31, %v25317_v48  ;;  %v13608_v22 = vpack.c.bf16 %v18496_v61, %v25290_v5  ;;  %v13726_v17 = vpack.c.bf16 %v25288_v44, %v18461_v46  ;;  %v13728_v49 = vpack.c.bf16 %v18512_v25, %v18501_v50  ;;  %v19129_v31 = vld [vmem:[%s15902_s27 + $0x88] sm:$0xff]  ;;  %v19140_v5 = vld [vmem:[%s15902_s27 + $0x198] sm:$0xff]  ;;  %v19146_v46 = vld [vmem:[%s15902_s27 + $0x180] sm:$0xff] }
 0x2ab   : > { %13597 = vmatprep.subr.bf16.mxu0 %v13596_v32  ;;  %25320 = vst [vmem:[#allocation56_spill] sm:$0xff] %v19129_v31  ;;  %25321 = vst [vmem:[#allocation17_spill] sm:$0xff] %v19132_v24  ;;  %v13610_v61 = vpack.c.bf16 %v18525_v58, %v18517_v1  ;;  %v13730_v25 = vpack.c.bf16 %v18541_v12, %v18536_v57  ;;  %v13612_v50 = vpack.c.bf16 %v18561_v41, %v18556_v42  ;;  %v19155_v58 = vld [vmem:[%s15902_s27 + $0x90] sm:$0xff]  ;;  %v19192_v63 = vld [vmem:[%s15902_s27 + $0x398] sm:$0xff] }
 0x2ac   : > { %13715 = vmatpush1.bf16.msra.mxu1 %v13714_v26  ;;  %25323 = vst [vmem:[#allocation65_spill] sm:$0xff] %v19140_v5  ;;  %25324 = vst [vmem:[#allocation32_spill] sm:$0xff] %v19143_v4  ;;  %v13732_v44 = vpack.c.bf16 %v18657_v16, %v18589_v9  ;;  %v19158_v1 = vld [vmem:[%s15902_s27 + $0x190] sm:$0xff]  ;;  %v13614_v36 = vpack.c.bf16 %v18687_v6, %v18682_v21  ;;  %v23724_v20 = vand.u32 4294901760, %v19129_v31  ;;  %v23721_v57 = vand.u32 4294901760, %v19132_v24  ;;  %v19171_v21 = vld [vmem:[%s15902_s27 + $0x288] sm:$0xff] }
 0x2ad   : > { %13717 = vmatprep.subr.bf16.mxu1 %v13716_v37  ;;  %5723 = vmatmul.mubr.f32.vlgmr.msra.gmra.mrb[6].mxu0 %v25309_v62  ;;  %25325 = vst [vmem:[#allocation29_spill] sm:$0xff] %v19146_v46  ;;  %25326 = vst [vmem:[#allocation85_spill] sm:$0xff] %v19155_v58  ;;  %v23719_v41 = vand.u32 4294901760, %v19135_v2  ;;  %v13734_v42 = vpack.c.bf16 %v18705_v54, %v18700_v34  ;;  %v23718_v12 = vand.u32 4294901760, %v19140_v5  ;;  %v23717_v9 = vand.u32 4294901760, %v19143_v4  ;;  %v19174_v6 = vld [vmem:[%s15902_s27 + $0x388] sm:$0xff] }
 0x2ae   : > { %13599 = vmatpush1.bf16.msra.mxu0 %v13598_v35  ;;  %5833 = vmatprep.mubr.f32.mxu0 %v24295_v52  ;;  %25327 = vst [vmem:[#allocation86_spill] sm:$0xff] %v19158_v1  ;;  %v23716_v16 = vand.u32 4294901760, %v19146_v46  ;;  %25328 = vst [vmem:[#allocation54_spill] sm:$0xff] %v19171_v21  ;;  %v19182_v55 = vsub.f32 %v19129_v31, %v23724_v20  ;;  %v19187_v34 = vsub.f32 %v19132_v24, %v23721_v57  ;;  %v19195_v53 = vld [vmem:[%s15902_s27 + $0x280] sm:$0xff]  ;;  %v19221_v45 = vld [vmem:[%s15902_s27 + $0x290] sm:$0xff] }
 0x2af   : > { %6422 = vmatmul.mubr.f32.vlgmr.msra.gmra.mrb[6].mxu1 %v25309_v62  ;;  %13601 = vmatprep.subr.bf16.mxu0 %v13600_v27  ;;  %25329 = vst [vmem:[#allocation82_spill] sm:$0xff] %v19174_v6  ;;  %25330 = vst [vmem:[#allocation87_spill] sm:$0xff] %v19177_v39  ;;  %v23712_v54 = vand.u32 4294901760, %v19155_v58  ;;  %v23711_v56 = vand.u32 4294901760, %v19158_v1  ;;  %v19198_v11 = vld [vmem:[%s15902_s27 + $0x380] sm:$0xff]  ;;  %v19203_v33 = vsub.f32 %v19135_v2, %v23719_v41  ;;  %v23715_v26 = vand.u32 4294901760, %v19171_v21 }
 0x2b0   : > { %13719 = vmatpush1.bf16.msra.mxu1 %v13718_v59  ;;  %6532 = vmatprep.mubr.f32.mxu1 %v24295_v52  ;;  %25331 = vst [vmem:[#allocation94_spill] sm:$0xff] %v19182_v55  ;;  %25332 = vst [vmem:[#allocation25_spill] sm:$0xff] %v19192_v63  ;;  %v19208_v10 = vsub.f32 %v19140_v5, %v23718_v12  ;;  %v19213_v40 = vsub.f32 %v19143_v4, %v23717_v9  ;;  %v23713_v37 = vand.u32 4294901760, %v19174_v6  ;;  %v19232_v35 = vld [vmem:[%s15902_s27 + $0x390] sm:$0xff]  ;;  %v19243_v8 = vld [vmem:[%s15902_s27 + $0x488] sm:$0xff] }
 0x2b1   : > { %13721 = vmatprep.subr.bf16.mxu1 %v13720_v28  ;;  %25333 = vst [vmem:[#allocation95_spill] sm:$0xff] %v19195_v53  ;;  %25334 = vst [vmem:[#allocation61_spill] sm:$0xff] %v19198_v11  ;;  %v19218_v7 = vsub.f32 %v19146_v46, %v23716_v16  ;;  %v19226_v32 = vsub.f32 %v19155_v58, %v23712_v54  ;;  %v23710_v47 = vand.u32 4294901760, %v19177_v39  ;;  %v23709_v59 = vand.u32 4294901760, %v19192_v63  ;;  %v19246_v43 = vld [vmem:[%s15902_s27 + $0x588] sm:$0xff]  ;;  %v19268_v3 = vld [vmem:[%s15902_s27 + $0x598] sm:$0xff] }
 0x2b2   : > { %13603 = vmatpush1.bf16.msra.mxu0 %v13602_v14  ;;  %25335 = vst [vmem:[#allocation35_spill] sm:$0xff] %v19208_v10  ;;  %25336 = vst [vmem:[#allocation46_spill] sm:$0xff] %v19213_v40  ;;  %v19237_v27 = vsub.f32 %v19158_v1, %v23711_v56  ;;  %v23708_v18 = vand.u32 4294901760, %v19195_v53  ;;  %v23706_v28 = vand.u32 4294901760, %v19198_v11  ;;  %v19249_v14 = vld [vmem:[%s15902_s27 + $0x498] sm:$0xff]  ;;  %v19254_v0 = vsub.f32 %v19171_v21, %v23715_v26  ;;  %v19274_v48 = vld [vmem:[%s15902_s27 + $0x580] sm:$0xff] }
 0x2b3   : > { %13605 = vmatprep.subr.bf16.mxu0 %v13604_v13  ;;  %25337 = vst [vmem:[#allocation93_spill] sm:$0xff] %v19221_v45  ;;  %25338 = vst [vmem:[#allocation11_spill] sm:$0xff] %v19226_v32  ;;  %v19259_v19 = vsub.f32 %v19174_v6, %v23713_v37  ;;  %v19264_v13 = vsub.f32 %v19177_v39, %v23710_v47  ;;  %v23707_v30 = vand.u32 4294901760, %v19221_v45  ;;  %v19318_v47 = vld [vmem:[%s15902_s27 + $0x688] sm:$0xff]  ;;  %v19324_v54 = vld [vmem:[%s15902_s27 + $0x698] sm:$0xff]  ;;  %v25402_v24 = vand.u32 4294901760, %v19187_v34 }
 0x2b4   : > { %13723 = vmatpush1.bf16.msra.mxu1 %v13722_v15  ;;  %25339 = vst [vmem:[#allocation10_spill] sm:$0xff] %v19232_v35  ;;  %25340 = vst [vmem:[#allocation63_spill] sm:$0xff] %v19237_v27  ;;  %v19271_v15 = vld [vmem:[%s15902_s27 + $0x480] sm:$0xff]  ;;  %v19280_v23 = vsub.f32 %v19192_v63, %v23709_v59  ;;  %v19285_v51 = vsub.f32 %v19195_v53, %v23708_v18  ;;  %v23731_v59 = vand.u32 4294901760, %v19274_v48  ;;  %v19321_v56 = vld [vmem:[%s15902_s27 + $0x788] sm:$0xff] }
 0x2b5   : > { %13725 = vmatprep.subr.bf16.mxu1 %v13724_v60  ;;  %25341 = vst [vmem:[#allocation16_spill] sm:$0xff] %v19243_v8  ;;  %25342 = vst [vmem:[#allocation83_spill] sm:$0xff] %v19246_v43  ;;  %v25350_v60 = vld [vmem:[#allocation39_spill] sm:$0xff]  ;;  %v23728_v18 = vand.u32 4294901760, %v19271_v15  ;;  %v19345_v12 = vld [vmem:[%s15902_s27 + $0x798] sm:$0xff] }
 0x2b6   : > { %13607 = vmatpush1.bf16.msra.mxu0 %v13606_v38  ;;  %25343 = vst [vmem:[#allocation24_spill] sm:$0xff] %v19249_v14  ;;  %25344 = vst [vmem:[#allocation89_spill] sm:$0xff] %v19254_v0  ;;  %v19290_v38 = vsub.f32 %v19198_v11, %v23706_v28  ;;  %v25358_v28 = vld [vmem:[#allocation7_spill] sm:$0xff]  ;;  %v19348_v41 = vld [vmem:[%s15902_s27 + $0x680] sm:$0xff]  ;;  %v19366_v20 = vsub.f32 %v19274_v48, %v23731_v59  ;;  %v25384_v11 = vand.u32 4294901760, %v19318_v47 }
 0x2b7   : > { %13609 = vmatprep.subr.bf16.mxu0 %v13608_v22  ;;  %25345 = vst [vmem:[#allocation72_spill] sm:$0xff] %v19259_v19  ;;  %25346 = vst [vmem:[#allocation20_spill] sm:$0xff] %v19264_v13  ;;  %v23714_v22 = vand.u32 4294901760, %v19232_v35  ;;  %v25363_v37 = vld [vmem:[#allocation67_spill] sm:$0xff]  ;;  %v25369_v57 = vld [vmem:[#allocation69_spill] sm:$0xff] }
 0x2b8   : > { %13727 = vmatpush1.bf16.msra.mxu1 %v13726_v17  ;;  %25347 = vst [vmem:[#allocation74_spill] sm:$0xff] %v19268_v3  ;;  %25348 = vst [vmem:[#allocation60_spill] sm:$0xff] %v19271_v15  ;;  %v19294_v17 = vld [vmem:[%s15902_s27 + $0x490] sm:$0xff]  ;;  %v19407_v53 = vsub.f32 %v19318_v47, %v25384_v11  ;;  %v19421_v63 = vld [vmem:[%s15902_s27 + $0x898] sm:$0xff]  ;;  %v25390_v11 = vand.u32 4294901760, %v19345_v12 }
 0x2b9   : > { %13729 = vmatprep.subr.bf16.mxu1 %v13728_v49  ;;  %25349 = vst [vmem:[#allocation84_spill] sm:$0xff] %v19274_v48  ;;  %25351 = vst [vmem:[#allocation90_spill] sm:$0xff] %v19280_v23  ;;  %v19299_v49 = vsub.f32 %v19221_v45, %v23707_v30  ;;  %v23727_v30 = vand.u32 4294901760, %v19268_v3  ;;  %v19383_v9 = vld [vmem:[%s15902_s27 + $0x690] sm:$0xff]  ;;  %v1150_v39 = vld [vmem:[%s15902_s27 + $0x980] sm:$0x7] }
 0x2ba   : > { %13611 = vmatpush1.bf16.msra.mxu0 %v13610_v61  ;;  %25352 = vst [vmem:[#allocation91_spill] sm:$0xff] %v19285_v51  ;;  %25353 = vst [vmem:[#allocation81_spill] sm:$0xff] %v19290_v38  ;;  %v23720_v61 = vand.u32 4294901760, %v19243_v8  ;;  %v19386_v48 = vld [vmem:[%s15902_s27 + $0x790] sm:$0xff]  ;;  %v25389_v1 = vld [vmem:[#allocation71_spill] sm:$0xff]  ;;  %v25408_v2 = vand.u32 4294901760, %v19421_v63 }
 0x2bb   : > { %13613 = vmatprep.subr.bf16.mxu0 %v13612_v50  ;;  %25354 = vst [vmem:[#allocation9_spill] sm:$0xff] %v19294_v17  ;;  %25355 = vst [vmem:[#allocation73_spill] sm:$0xff] %v19299_v49  ;;  %v23723_v50 = vand.u32 4294901760, %v19249_v14  ;;  %v25397_v4 = vld [vmem:[#allocation53_spill] sm:$0xff]  ;;  %v1152_v5 = vld [vmem:[%s15902_s27 + $0x990] sm:$0x7] }
 0x2bc   : > { %13731 = vmatpush1.bf16.msra.mxu1 %v13730_v25  ;;  %v23722_v25 = vand.u32 4294901760, %v19246_v43  ;;  %25360 = vst [vmem:[#allocation97_spill] sm:$0xff] %v19318_v47  ;;  %25361 = vst [vmem:[#allocation98_spill] sm:$0xff] %v19321_v56  ;;  %v19428_v47 = vsub.f32 %v19345_v12, %v25390_v11  ;;  %v19461_v11 = vsel %vm1170_vm1, %v1150_v39, 0  ;;  %v25407_v31 = vld [vmem:[#allocation48_spill] sm:$0xff] }
 0x2bd   : > { %13733 = vmatprep.subr.bf16.mxu1 %v13732_v44  ;;  %v19305_v44 = vld [vmem:[%s15902_s27 + $0x590] sm:$0xff]  ;;  %25362 = vst [vmem:[#allocation64_spill] sm:$0xff] %v19324_v54  ;;  %v19341_v16 = vsub.f32 %v19249_v14, %v23723_v50  ;;  %25367 = vst [vmem:[#allocation51_spill] sm:$0xff] %v19345_v12  ;;  %v19361_v50 = vsub.f32 %v19271_v15, %v23728_v18  ;;  %v25387_v15 = vand.u32 4294901760, %v19324_v54 }
 0x2be   : > { %13615 = vmatpush1.bf16.msra.mxu0 %v13614_v36  ;;  %25356 = vst [vmem:[#allocation50_spill] sm:$0xff] %v19305_v44  ;;  %v25357_v36 = vld [vmem:[#allocation40_spill] sm:$0xff]  ;;  %v19336_v26 = vsub.f32 %v19246_v43, %v23722_v25  ;;  %25368 = vst [vmem:[#allocation8_spill] sm:$0xff] %v19348_v41  ;;  %v19356_v25 = vsub.f32 %v19268_v3, %v23727_v30  ;;  %v25375_v30 = vand.u32 4294901760, %v19294_v17  ;;  %v25379_v45 = vand.u32 4294901760, %v19305_v44  ;;  %v19397_v3 = vld [vmem:[%s15902_s27 + $0x888] sm:$0xff] }
 0x2bf   : > { %13617 = vmatprep.subr.bf16.mxu0 %v25350_v60  ;;  %25366 = vst [vmem:[#allocation92_spill] sm:$0xff] %v19341_v16  ;;  %25371 = vst [vmem:[#allocation39_spill] sm:$0xff] %v19361_v50  ;;  %v25374_v14 = vld [vmem:[#allocation68_spill] sm:$0xff] }
 0x2c0   : > { %13735 = vmatpush1.bf16.msra.mxu1 %v13734_v42  ;;  %v19312_v42 = vsub.f32 %v19232_v35, %v23714_v22  ;;  %v19331_v22 = vsub.f32 %v19243_v8, %v23720_v61  ;;  %25365 = vst [vmem:[#allocation33_spill] sm:$0xff] %v19336_v26  ;;  %v1151_v61 = vld [vmem:[%s15902_s27 + $0x988] sm:$0x7]  ;;  %25370 = vst [vmem:[#allocation88_spill] sm:$0xff] %v19356_v25  ;;  %v19377_v18 = vsub.f32 %v19294_v17, %v25375_v30  ;;  %v25378_v35 = vld [vmem:[#allocation18_spill] sm:$0xff] }
 0x2c1   : > { %13737 = vmatprep.subr.bf16.mxu1 %v25357_v36  ;;  %5836 = vmatmul.mubr.f32.vlgmr.msra.gmra.mrb[6].mxu0 %v25358_v28  ;;  %25372 = vst [vmem:[#allocation40_spill] sm:$0xff] %v19366_v20  ;;  %25376 = vst [vmem:[#allocation69_spill] sm:$0xff] %v19383_v9  ;;  %v19392_v43 = vsub.f32 %v19305_v44, %v25379_v45  ;;  %v19400_v59 = vsel %vm1170_vm1, %v1151_v61, 0  ;;  %v1153_v17 = vld [vmem:[%s15902_s27 + $0x998] sm:$0x7]  ;;  %v25383_v8 = vld [vmem:[#allocation70_spill] sm:$0xff]  ;;  %v19417_v30 = vsub.f32 %v19324_v54, %v25387_v15 }
 0x2c2   : > { %25359 = vst [vmem:[#allocation96_spill] sm:$0xff] %v19312_v42  ;;  %13619 = vmatpush1.bf16.msra.mxu0 %v25363_v37  ;;  %5926 = vmatprep.mubr.f32.mxu0 %v24295_v52  ;;  %25364 = vst [vmem:[#allocation66_spill] sm:$0xff] %v19331_v22  ;;  %v25386_v45 = vand.u32 4294901760, %v19321_v56  ;;  %v23754_v15 = vand.u32 4294901760, %v19383_v9  ;;  %v25392_v61 = vld [vmem:[#allocation22_spill] sm:$0xff]  ;;  %v19446_v12 = vsel %vm1170_vm1, %v1153_v17, 0 }
 0x2c3   : > { %6535 = vmatmul.mubr.f32.vlgmr.msra.gmra.mrb[6].mxu1 %v25358_v28  ;;  %13621 = vmatprep.subr.bf16.mxu0 %v25369_v57  ;;  %v19370_v28 = vld [vmem:[%s15902_s27 + $0x780] sm:$0xff]  ;;  %25377 = vst [vmem:[#allocation68_spill] sm:$0xff] %v19386_v48  ;;  %25380 = vst [vmem:[#allocation18_spill] sm:$0xff] %v19392_v43  ;;  %v25396_v17 = vld [vmem:[#allocation47_spill] sm:$0xff]  ;;  %v25399_v39 = vand.u32 4294901760, %v19400_v59 }
 0x2c4   : > { %25373 = vst [vmem:[#allocation67_spill] sm:$0xff] %v19370_v28  ;;  %13739 = vmatpush1.bf16.msra.mxu1 %v25374_v14  ;;  %6625 = vmatprep.mubr.f32.mxu1 %v24295_v52  ;;  %25381 = vst [vmem:[#allocation99_spill] sm:$0xff] %v19397_v3  ;;  %v19412_v44 = vsub.f32 %v19321_v56, %v25386_v45  ;;  %v25391_v45 = vand.u32 4294901760, %v19348_v41  ;;  %v25393_v58 = vand.u32 4294901760, %v19370_v28 }
 0x2c5   : > { %13741 = vmatprep.subr.bf16.mxu1 %v25378_v35  ;;  %25382 = vst [vmem:[#allocation100_spill] sm:$0xff] %v19400_v59  ;;  %25385 = vst [vmem:[#allocation70_spill] sm:$0xff] %v19407_v53  ;;  %v19452_v54 = vsub.f32 %v19383_v9, %v23754_v15  ;;  %v19477_v21 = vsub.f32 %v19400_v59, %v25399_v39  ;;  %v25400_v15 = vld [vmem:[#allocation52_spill] sm:$0xff]  ;;  %v19483_v9 = vld [vmem:[%s15902_s27 + $0x880] sm:$0xff]  ;;  %v25404_v59 = vand.u32 4294901760, %v19203_v33 }
 0x2c6   : > { %13623 = vmatpush1.bf16.msra.mxu0 %v25383_v8  ;;  %25388 = vst [vmem:[#allocation101_spill] sm:$0xff] %v19421_v63  ;;  %v19433_v56 = vsub.f32 %v19348_v41, %v25391_v45  ;;  %v19441_v6 = vsub.f32 %v19370_v28, %v25393_v58  ;;  %v25394_v45 = vld [vmem:[#allocation80_spill] sm:$0xff]  ;;  %v25395_v41 = vand.u32 4294901760, %v19386_v48  ;;  %v25405_v28 = vand.u32 4294901760, %v19208_v10  ;;  %v25412_v10 = vld [vmem:[#allocation49_spill] sm:$0xff] }
 0x2c7   : > { %13625 = vmatprep.subr.bf16.mxu0 %v25389_v1 }
 0x2c8   : > { %13743 = vmatpush1.bf16.msra.mxu1 %v25392_v61  ;;  %v19457_v58 = vsub.f32 %v19386_v48, %v25395_v41  ;;  %v25398_v41 = vand.u32 4294901760, %v19397_v3  ;;  %v19498_v46 = vpack.c.bf16 %v25405_v28, %v25404_v59  ;;  %v19516_v59 = vld [vmem:[%s15902_s27 + $0x890] sm:$0xff]  ;;  %v25428_v28 = vand.u32 4294901760, %v19299_v49 }
 0x2c9   : > { %13745 = vmatprep.subr.bf16.mxu1 %v25394_v45 }
 0x2ca   : > { %13627 = vmatpush1.bf16.msra.mxu0 %v25396_v17  ;;  %v19472_v48 = vsub.f32 %v19397_v3, %v25398_v41  ;;  %v25401_v3 = vand.u32 4294901760, %v19182_v55  ;;  %25406 = vst [vmem:[#allocation22_spill] sm:$0xff] %v19498_v46  ;;  %v19505_v41 = vsub.f32 %v19421_v63, %v25408_v2  ;;  %v25413_v2 = vand.u32 4294901760, %v19226_v32  ;;  %v25431_v32 = vld [vmem:[#allocation75_spill] sm:$0xff] }
 0x2cb   : > { %13629 = vmatprep.subr.bf16.mxu0 %v25397_v4  ;;  %v25414_v55 = vand.u32 4294901760, %v19237_v27  ;;  %v25429_v46 = vand.u32 4294901760, %v19312_v42 }
 0x2cc   : > { %13747 = vmatpush1.bf16.msra.mxu1 %v25400_v15  ;;  %v19492_v39 = vpack.c.bf16 %v25402_v24, %v25401_v3  ;;  %v25409_v24 = vand.u32 4294901760, %v19213_v40  ;;  %v25410_v3 = vand.u32 4294901760, %v19218_v7  ;;  %v25416_v40 = vld [vmem:[#allocation58_spill] sm:$0xff]  ;;  %v25417_v15 = vld [vmem:[#allocation55_spill] sm:$0xff] }
 0x2cd   : > { %13749 = vmatprep.subr.bf16.mxu1 %v25407_v31  ;;  %v19525_v63 = vpack.c.bf16 %v25414_v55, %v25413_v2  ;;  %v25418_v55 = vand.u32 4294901760, %v19254_v0  ;;  %v25419_v2 = vand.u32 4294901760, %v19259_v19  ;;  %v25425_v0 = vand.u32 4294901760, %v19285_v51 }
 0x2ce   : > { %25403 = vst [vmem:[#allocation71_spill] sm:$0xff] %v19492_v39  ;;  %v19512_v39 = vpack.c.bf16 %v25410_v3, %v25409_v24  ;;  %13631 = vmatpush1.bf16.msra.mxu0 %v25412_v10  ;;  %v19530_v3 = vsel %vm1170_vm1, %v1152_v5, 0  ;;  %v25421_v24 = vand.u32 4294901760, %v19264_v13  ;;  %v25422_v5 = vand.u32 4294901760, %v19280_v23 }
 0x2cf   : > { %25415 = vst [vmem:[#allocation47_spill] sm:$0xff] %v19525_v63  ;;  %13633 = vmatprep.subr.bf16.mxu0 %v25416_v40  ;;  %v19541_v63 = vpack.c.bf16 %v25419_v2, %v25418_v55  ;;  %v25426_v19 = vand.u32 4294901760, %v19290_v38  ;;  %v25440_v2 = vld [vmem:[#allocation21_spill] sm:$0xff] }
 0x2d0   : > { %25411 = vst [vmem:[#allocation80_spill] sm:$0xff] %v19512_v39  ;;  %13751 = vmatpush1.bf16.msra.mxu1 %v25417_v15  ;;  %v19547_v27 = vpack.c.bf16 %v25422_v5, %v25421_v24  ;;  %v25424_v39 = vld [vmem:[#allocation59_spill] sm:$0xff]  ;;  %v25433_v5 = vld [vmem:[#allocation57_spill] sm:$0xff] }
 0x2d1   : > { %25420 = vst [vmem:[#allocation53_spill] sm:$0xff] %v19541_v63  ;;  %13753 = vmatprep.subr.bf16.mxu1 %v25424_v39  ;;  %v19557_v55 = vpack.c.bf16 %v25426_v19, %v25425_v0  ;;  %v25432_v63 = vand.u32 4294901760, %v19446_v12  ;;  %v25438_v19 = vand.u32 4294901760, %v19356_v25  ;;  %v25441_v24 = vld [vmem:[#allocation27_spill] sm:$0xff] }
 0x2d2   : > { %25423 = vst [vmem:[#allocation48_spill] sm:$0xff] %v19547_v27  ;;  %13635 = vmatpush1.bf16.msra.mxu0 %v18968_v29  ;;  %v19567_v27 = vpack.c.bf16 %v25429_v46, %v25428_v28  ;;  %v25434_v28 = vand.u32 4294901760, %v19331_v22  ;;  %v25443_v22 = vand.u32 4294901760, %v19461_v11 }
 0x2d3   : > { %25427 = vst [vmem:[#allocation49_spill] sm:$0xff] %v19557_v55  ;;  %13637 = vmatprep.subr.bf16.mxu0 %v25431_v32  ;;  %v19573_v0 = vsub.f32 %v19446_v12, %v25432_v63  ;;  %v25435_v32 = vand.u32 4294901760, %v19336_v26  ;;  %v25437_v63 = vand.u32 4294901760, %v19341_v16  ;;  %v25442_v55 = vand.u32 4294901760, %v19483_v9 }
 0x2d4   : > { %25430 = vst [vmem:[#allocation58_spill] sm:$0xff] %v19567_v27  ;;  %13755 = vmatpush1.bf16.msra.mxu1 %v25433_v5 }
 0x2d5   : > { %v19585_v27 = vpack.c.bf16 %v25435_v32, %v25434_v28  ;;  %v19591_v42 = vpack.c.bf16 %v25438_v19, %v25437_v63  ;;  %13757 = vmatprep.subr.bf16.mxu1 %v25440_v2  ;;  %5930 = vmatmul.mubr.f32.vlgmr.msra.gmra.mrb[6].mxu0 %v25441_v24  ;;  %v19598_v46 = vsub.f32 %v19483_v9, %v25442_v55  ;;  %v25444_v32 = vand.u32 4294901760, %v19361_v50  ;;  %v25447_v63 = vld [vmem:[#allocation76_spill] sm:$0xff] }
 0x2d6   : > { %v19603_v28 = vsub.f32 %v19461_v11, %v25443_v22  ;;  %13639 = vmatpush1.bf16.msra.mxu0 %v25447_v63  ;;  %6060 = vmatprep.mubr.f32.mxu0 %v24295_v52  ;;  %v25448_v2 = vand.u32 4294901760, %v19516_v59  ;;  %v25450_v50 = vand.u32 4294901760, %v19377_v18  ;;  %v23794_v63 = vand.u32 4294901760, %v19407_v53 }
 0x2d7   : > { %25436 = vst [vmem:[#allocation55_spill] sm:$0xff] %v19585_v27  ;;  %25439 = vst [vmem:[#allocation59_spill] sm:$0xff] %v19591_v42  ;;  %v25445_v27 = vand.u32 4294901760, %v19366_v20  ;;  %v25449_v42 = vand.u32 4294901760, %v19530_v3  ;;  %v25451_v20 = vand.u32 4294901760, %v19392_v43  ;;  %6629 = vmatmul.mubr.f32.vlgmr.msra.gmra.mrb[6].mxu1 %v25441_v24  ;;  %v25458_v43 = vand.u32 4294901760, %v19417_v30 }
 0x2d8   : > { %v19616_v55 = vsub.f32 %v19516_v59, %v25448_v2  ;;  %6759 = vmatprep.mubr.f32.mxu1 %v24295_v52 }
 0x2d9   : > { %v19609_v19 = vpack.c.bf16 %v25445_v27, %v25444_v32  ;;  %v19621_v22 = vsub.f32 %v19530_v3, %v25449_v42  ;;  %v19627_v27 = vpack.c.bf16 %v25451_v20, %v25450_v50  ;;  %v25453_v32 = vld [vmem:[#allocation78_spill] sm:$0xff]  ;;  %v25454_v42 = vld [vmem:[#allocation77_spill] sm:$0xff]  ;;  %v25459_v20 = vand.u32 4294901760, %v19428_v47  ;;  %v25461_v50 = vld [vmem:[#allocation79_spill] sm:$0xff] }
 0x2da   : > { %13641 = vmatprep.subr.bf16.mxu0 %v25453_v32  ;;  %13759 = vmatpush1.bf16.msra.mxu1 %v25454_v42  ;;  %v25456_v42 = vand.u32 4294901760, %v19412_v44  ;;  %v25463_v32 = vand.u32 4294901760, %v19441_v6 }
 0x2db   : > { %25446 = vst [vmem:[#allocation75_spill] sm:$0xff] %v19609_v19  ;;  %25452 = vst [vmem:[#allocation57_spill] sm:$0xff] %v19627_v27  ;;  %v25455_v27 = vld [vmem:[#allocation23_spill] sm:$0xff]  ;;  %v19654_v24 = vpack.c.bf16 %v25459_v20, %v25458_v43  ;;  %13643 = vmatpush1.bf16.msra.mxu0 %v25461_v50  ;;  %v25462_v19 = vand.u32 4294901760, %v19433_v56  ;;  %v25468_v43 = vld [vmem:[#allocation42_spill] sm:$0xff]  ;;  %v23795_v50 = vand.u32 4294901760, %v19603_v28 }
 0x2dc   : > { %13761 = vmatprep.subr.bf16.mxu1 %v25455_v27  ;;  %v19648_v25 = vpack.c.bf16 %v25456_v42, %v23794_v63  ;;  %v25465_v42 = vand.u32 4294901760, %v19452_v54  ;;  %v25466_v63 = vand.u32 4294901760, %v19457_v58  ;;  %13645 = vmatprep.subr.bf16.mxu0 %v25468_v43  ;;  %v25469_v27 = vld [vmem:[#allocation41_spill] sm:$0xff]  ;;  %v25476_v20 = vld [vmem:[#allocation44_spill] sm:$0xff] }
 0x2dd   : > { %25460 = vst [vmem:[#allocation76_spill] sm:$0xff] %v19654_v24  ;;  %v19663_v53 = vpack.c.bf16 %v25463_v32, %v25462_v19  ;;  %v25470_v19 = vand.u32 4294901760, %v19472_v48  ;;  %v25471_v32 = vand.u32 4294901760, %v19477_v21  ;;  %v25479_v24 = vld [vmem:[#allocation43_spill] sm:$0xff] }
 0x2de   : > { %25457 = vst [vmem:[#allocation21_spill] sm:$0xff] %v19648_v25  ;;  %v19669_v25 = vpack.c.bf16 %v25466_v63, %v25465_v42  ;;  %13763 = vmatpush1.bf16.msra.mxu1 %v25469_v27  ;;  %v25473_v63 = vand.u32 4294901760, %v19505_v41  ;;  %v25474_v42 = vand.u32 4294901760, %v19573_v0  ;;  %v25477_v27 = vand.u32 4294901760, %v19598_v46 }
 0x2df   : > { %25464 = vst [vmem:[#allocation78_spill] sm:$0xff] %v19663_v53  ;;  %v19681_v53 = vpack.c.bf16 %v25471_v32, %v25470_v19  ;;  %13765 = vmatprep.subr.bf16.mxu1 %v25476_v20  ;;  %13647 = vmatpush1.bf16.msra.mxu0 %v25479_v24  ;;  %v25481_v19 = vand.u32 4294901760, %v19621_v22 }
 0x2e0   : > { %25467 = vst [vmem:[#allocation77_spill] sm:$0xff] %v19669_v25  ;;  %v19687_v43 = vpack.c.bf16 %v25474_v42, %v25473_v63  ;;  %v19694_v2 = vpack.c.bf16 %v23795_v50, %v25477_v27  ;;  %v25480_v25 = vand.u32 4294901760, %v19616_v55  ;;  %v25484_v63 = vld [vmem:[#allocation45_spill] sm:$0xff]  ;;  %v19705_v42 = vpop.f32.mrb[2].mxu0  ;;  %v19710_v27 = vpop.f32.mrb[2].mxu1  ;;  %v25489_v50 = vld [vmem:[#allocation26_spill] sm:$0xff] }
 0x2e1   : > { %25472 = vst [vmem:[#allocation23_spill] sm:$0xff] %v19681_v53  ;;  %v25483_v53 = vld [vmem:[#allocation14_spill] sm:$0xff]  ;;  %25485 = vst [vmem:[#allocation44_spill] sm:$0xff] %v19705_v42  ;;  %v19707_v20 = vpop.f32.mrb[3].mxu0  ;;  %v19713_v24 = vpop.f32.mrb[3].mxu1 }
 0x2e2   : > { %25475 = vst [vmem:[#allocation79_spill] sm:$0xff] %v19687_v43  ;;  %25478 = vst [vmem:[#allocation42_spill] sm:$0xff] %v19694_v2  ;;  %v19701_v32 = vpack.c.bf16 %v25481_v19, %v25480_v25  ;;  %13649 = vmatprep.subr.bf16.mxu0 %v25483_v53  ;;  %13767 = vmatpush1.bf16.msra.mxu1 %v25484_v63  ;;  %v25487_v43 = vld [vmem:[#allocation15_spill] sm:$0xff]  ;;  %v25491_v2 = vld [vmem:[#allocation12_spill] sm:$0xff] }
 0x2e3   : > { %25486 = vst [vmem:[#allocation43_spill] sm:$0xff] %v19707_v20  ;;  %13769 = vmatprep.subr.bf16.mxu1 %v25487_v43  ;;  %25488 = vst [vmem:[#allocation14_spill] sm:$0xff] %v19710_v27  ;;  %13651 = vmatpush1.bf16.msra.mxu0 %v25489_v50  ;;  %v25492_v25 = vld [vmem:[#allocation30_spill] sm:$0xff]  ;;  %v25493_v19 = vld [vmem:[#allocation13_spill] sm:$0xff] }
 0x2e4   : > { %25482 = vst [vmem:[#allocation41_spill] sm:$0xff] %v19701_v32  ;;  %25490 = vst [vmem:[#allocation45_spill] sm:$0xff] %v19713_v24  ;;  %13653 = vmatprep.subr.bf16.mxu0 %v25491_v2  ;;  %v25494_v53 = vld [vmem:[#allocation31_spill] sm:$0xff]  ;;  %v25495_v63 = vld [vmem:[#allocation37_spill] sm:$0xff] }
 0x2e5   : > { %v25512_v50 = vld [vmem:[#allocation54_spill] sm:$0xff] }
 0x2e6   : > { %13771 = vmatpush1.bf16.msra.mxu1 %v25492_v25  ;;  %v25514_v43 = vld [vmem:[#allocation82_spill] sm:$0xff] }
 0x2e7   : > { %13773 = vmatprep.subr.bf16.mxu1 %v25493_v19  ;;  %13655 = vmatpush1.bf16.msra.mxu0 %v25494_v53  ;;  %v25517_v19 = vld [vmem:[#allocation85_spill] sm:$0xff] }
 0x2e8   : > { %13657 = vmatprep.subr.bf16.mxu0 %v25350_v60  ;;  %v25502_v60 = vld [vmem:[#allocation62_spill] sm:$0xff]  ;;  %v25518_v53 = vand.u32 4294901760, %v25517_v19  ;;  %v25537_v19 = vld [vmem:[#allocation83_spill] sm:$0xff] }
 0x2ea   : > { %13775 = vmatpush1.bf16.msra.mxu1 %v25495_v63  ;;  %6062 = vmatmul.mubr.f32.vlgmr.msra.gmra.mrb[6].mxu0 %v25309_v62  ;;  %v25519_v63 = vld [vmem:[#allocation86_spill] sm:$0xff] }
 0x2eb   : > { %13777 = vmatprep.subr.bf16.mxu1 %v25357_v36  ;;  %13659 = vmatpush1.bf16.msra.mxu0 %v25363_v37  ;;  %v25496_v37 = vld [vmem:[#allocation52_spill] sm:$0xff]  ;;  %v25504_v36 = vld [vmem:[#allocation65_spill] sm:$0xff] }
 0x2ec   : > { %6152 = vmatprep.mubr.f32.mxu0 %v24295_v52  ;;  %13661 = vmatprep.subr.bf16.mxu0 %v25369_v57  ;;  %v25497_v57 = vld [vmem:[#allocation56_spill] sm:$0xff] }
 0x2ed   : > { %6761 = vmatmul.mubr.f32.vlgmr.msra.gmra.mrb[6].mxu1 %v25309_v62 }
 0x2ee   : > { %13779 = vmatpush1.bf16.msra.mxu1 %v25374_v14  ;;  %6851 = vmatprep.mubr.f32.mxu1 %v24295_v52 }
 0x2ef   : > { %13781 = vmatprep.subr.bf16.mxu1 %v25378_v35  ;;  %13663 = vmatpush1.bf16.msra.mxu0 %v25383_v8  ;;  %v25498_v35 = vand.u32 4294901760, %v25497_v57  ;;  %v25499_v8 = vld [vmem:[#allocation17_spill] sm:$0xff]  ;;  %v25522_v57 = vld [vmem:[#allocation87_spill] sm:$0xff] }
 0x2f0   : > { %13665 = vmatprep.subr.bf16.mxu0 %v25389_v1  ;;  %v25500_v1 = vand.u32 4294901760, %v25499_v8  ;;  %v25524_v8 = vld [vmem:[#allocation25_spill] sm:$0xff] }
 0x2f2   : > { %13783 = vmatpush1.bf16.msra.mxu1 %v25392_v61  ;;  %v19744_v14 = vpack.c.bf16 %v25500_v1, %v25498_v35  ;;  %v25505_v61 = vand.u32 4294901760, %v25504_v36  ;;  %v25523_v35 = vand.u32 4294901760, %v25522_v57  ;;  %v25525_v1 = vand.u32 4294901760, %v25524_v8  ;;  %v25529_v36 = vld [vmem:[#allocation61_spill] sm:$0xff] }
 0x2f3   : > { %13785 = vmatprep.subr.bf16.mxu1 %v25394_v45  ;;  %13667 = vmatpush1.bf16.msra.mxu0 %v25396_v17 }
 0x2f4   : > { %13669 = vmatprep.subr.bf16.mxu0 %v25397_v4  ;;  %25501 = vst [vmem:[#allocation15_spill] sm:$0xff] %v19744_v14  ;;  %v25503_v4 = vand.u32 4294901760, %v25502_v60  ;;  %v19781_v60 = vpack.c.bf16 %v25525_v1, %v25523_v35  ;;  %v25542_v35 = vld [vmem:[#allocation10_spill] sm:$0xff] }
 0x2f5   : > { %v25543_v8 = vand.u32 4294901760, %v25542_v35 }
 0x2f6   : > { %13787 = vmatpush1.bf16.msra.mxu1 %v25496_v37  ;;  %v19752_v45 = vpack.c.bf16 %v25505_v61, %v25503_v4  ;;  %25526 = vst [vmem:[#allocation31_spill] sm:$0xff] %v19781_v60  ;;  %v25527_v4 = vld [vmem:[#allocation95_spill] sm:$0xff]  ;;  %v25530_v61 = vand.u32 4294901760, %v25529_v36  ;;  %v25547_v36 = vld [vmem:[#allocation74_spill] sm:$0xff] }
 0x2f7   : > { %13789 = vmatprep.subr.bf16.mxu1 %v25407_v31  ;;  %13671 = vmatpush1.bf16.msra.mxu0 %v25412_v10  ;;  %v25507_v31 = vld [vmem:[#allocation32_spill] sm:$0xff] }
 0x2f8   : > { %13673 = vmatprep.subr.bf16.mxu0 %v25416_v40  ;;  %25506 = vst [vmem:[#allocation26_spill] sm:$0xff] %v19752_v45  ;;  %v25508_v10 = vand.u32 4294901760, %v25507_v31  ;;  %v25509_v40 = vld [vmem:[#allocation29_spill] sm:$0xff] }
 0x2f9   : > { %v25510_v17 = vand.u32 4294901760, %v25509_v40 }
 0x2fa   : > { %13791 = vmatpush1.bf16.msra.mxu1 %v25417_v15  ;;  %v25513_v15 = vand.u32 4294901760, %v25512_v50  ;;  %v25534_v50 = vand.u32 4294901760, %v19187_v34 }
 0x2fb   : > { %13793 = vmatprep.subr.bf16.mxu1 %v25424_v39  ;;  %13675 = vmatpush1.bf16.msra.mxu0 %v18968_v29  ;;  %v19759_v2 = vpack.c.bf16 %v25510_v17, %v25508_v10  ;;  %v25515_v39 = vand.u32 4294901760, %v25514_v43  ;;  %v25520_v29 = vand.u32 4294901760, %v25519_v63  ;;  %v25532_v10 = vld [vmem:[#allocation94_spill] sm:$0xff]  ;;  %v25535_v43 = vld [vmem:[#allocation16_spill] sm:$0xff] }
 0x2fc   : > { %13797 = vmatprep.subr.bf16.mxu0 %v19744_v14  ;;  %v25533_v40 = vand.u32 4294901760, %v25532_v10  ;;  %v25587_v14 = vld [vmem:[#allocation100_spill] sm:$0xff] }
 0x2fd   : > { %25511 = vst [vmem:[#allocation12_spill] sm:$0xff] %v19759_v2  ;;  %v19766_v25 = vpack.c.bf16 %v25515_v39, %v25513_v15  ;;  %v19773_v37 = vpack.c.bf16 %v25520_v29, %v25518_v53  ;;  %v6970_v15 = vsub.f32 %v19187_v34, %v25534_v50  ;;  %v25536_v39 = vand.u32 4294901760, %v25535_v43  ;;  %v25540_v29 = vld [vmem:[#allocation93_spill] sm:$0xff]  ;;  %v25550_v50 = vld [vmem:[#allocation60_spill] sm:$0xff] }
 0x2fe   : > { %13795 = vmatpush1.bf16.msra.mxu1 %v25433_v5  ;;  %6154 = vmatmul.mubr.f32.vlgmr.msra.gmra.mrb[6].mxu0 %v25309_v62  ;;  %v25528_v5 = vand.u32 4294901760, %v25527_v4  ;;  %v6958_v17 = vsub.f32 %v25532_v10, %v25533_v40  ;;  %v25538_v53 = vand.u32 4294901760, %v25537_v19  ;;  %v25541_v57 = vand.u32 4294901760, %v25540_v29  ;;  %v25545_v4 = vld [vmem:[#allocation24_spill] sm:$0xff]  ;;  %v25555_v29 = vld [vmem:[#allocation9_spill] sm:$0xff] }
 0x2ff   : > { %25516 = vst [vmem:[#allocation30_spill] sm:$0xff] %v19766_v25  ;;  %25521 = vst [vmem:[#allocation13_spill] sm:$0xff] %v19773_v37  ;;  %13917 = vmatprep.subr.bf16.mxu1 %v19752_v45  ;;  %13799 = vmatpush1.bf16.msra.mxu0 %v19759_v2  ;;  %v25551_v43 = vand.u32 4294901760, %v25550_v50  ;;  %v25556_v35 = vand.u32 4294901760, %v25555_v29  ;;  %v25563_v50 = vld [vmem:[#allocation97_spill] sm:$0xff] }
 0x300   : > { %v19788_v31 = vpack.c.bf16 %v25530_v61, %v25528_v5  ;;  %6943 = vmatprep.mubr.f32.mxu0 %v24295_v52  ;;  %13801 = vmatprep.subr.bf16.mxu0 %v19766_v25  ;;  %v19803_v63 = vpack.c.bf16 %v25538_v53, %v25536_v39  ;;  %v19810_v1 = vpack.c.bf16 %v25543_v8, %v25541_v57  ;;  %v25546_v5 = vand.u32 4294901760, %v25545_v4  ;;  %v25552_v39 = vld [vmem:[#allocation84_spill] sm:$0xff]  ;;  %v25557_v57 = vld [vmem:[#allocation50_spill] sm:$0xff]  ;;  %v25577_v25 = vld [vmem:[#allocation67_spill] sm:$0xff] }
 0x301   : > { %6853 = vmatmul.mubr.f32.vlgmr.msra.gmra.mrb[6].mxu1 %v25309_v62  ;;  %v25548_v61 = vand.u32 4294901760, %v25547_v36  ;;  %v25553_v19 = vand.u32 4294901760, %v25552_v39  ;;  %v25558_v8 = vand.u32 4294901760, %v25557_v57  ;;  %v25560_v4 = vand.u32 4294901760, %v19203_v33  ;;  %v25561_v36 = vld [vmem:[#allocation35_spill] sm:$0xff] }
 0x302   : > { %25531 = vst [vmem:[#allocation37_spill] sm:$0xff] %v19788_v31  ;;  %25539 = vst [vmem:[#allocation52_spill] sm:$0xff] %v19803_v63  ;;  %13919 = vmatpush1.bf16.msra.mxu1 %v19773_v37  ;;  %7642 = vmatprep.mubr.f32.mxu1 %v24295_v52  ;;  %v25564_v39 = vand.u32 4294901760, %v25563_v50  ;;  %v6959_v29 = vand.u32 4294901760, %v6958_v17  ;;  %v6971_v57 = vand.u32 4294901760, %v6970_v15  ;;  %v25580_v17 = vld [vmem:[#allocation69_spill] sm:$0xff] }
 0x303   : > { %25544 = vst [vmem:[#allocation56_spill] sm:$0xff] %v19810_v1  ;;  %v19816_v40 = vpack.c.bf16 %v25548_v61, %v25546_v5  ;;  %13921 = vmatprep.subr.bf16.mxu1 %v19781_v60  ;;  %v19824_v53 = vpack.c.bf16 %v25553_v19, %v25551_v43  ;;  %v19830_v24 = vpack.c.bf16 %v25558_v8, %v25556_v35  ;;  %v25562_v61 = vand.u32 4294901760, %v25561_v36  ;;  %v25565_v43 = vld [vmem:[#allocation98_spill] sm:$0xff]  ;;  %v25572_v60 = vld [vmem:[#allocation51_spill] sm:$0xff] }
 0x304   : > { %v7657_v5 = vsub.f32 %v19203_v33, %v25560_v4  ;;  %13803 = vmatpush1.bf16.msra.mxu0 %v19788_v31  ;;  %v25566_v19 = vand.u32 4294901760, %v25565_v43  ;;  %v25568_v35 = vld [vmem:[#allocation46_spill] sm:$0xff]  ;;  %v25570_v4 = vld [vmem:[#allocation64_spill] sm:$0xff]  ;;  %v25578_v43 = vand.u32 4294901760, %v25577_v25  ;;  %v25581_v15 = vand.u32 4294901760, %v25580_v17 }
 0x305   : > { %25549 = vst [vmem:[#allocation17_spill] sm:$0xff] %v19816_v40  ;;  %25554 = vst [vmem:[#allocation62_spill] sm:$0xff] %v19824_v53  ;;  %v7669_v27 = vsub.f32 %v25561_v36, %v25562_v61  ;;  %v25569_v8 = vand.u32 4294901760, %v25568_v35  ;;  %13805 = vmatprep.subr.bf16.mxu0 %v19803_v63  ;;  %v25571_v32 = vand.u32 4294901760, %v25570_v4  ;;  %v25573_v61 = vand.u32 4294901760, %v25572_v60  ;;  %v25575_v31 = vld [vmem:[#allocation8_spill] sm:$0xff] }
 0x306   : > { %25559 = vst [vmem:[#allocation65_spill] sm:$0xff] %v19830_v24  ;;  %v19843_v20 = vpack.c.bf16 %v25566_v19, %v25564_v39  ;;  %v25576_v50 = vand.u32 4294901760, %v25575_v31  ;;  %v25582_v19 = vld [vmem:[#allocation68_spill] sm:$0xff]  ;;  %v25588_v4 = vand.u32 4294901760, %v25587_v14  ;;  %13923 = vmatpush1.bf16.msra.mxu1 %v19810_v1  ;;  %v25592_v25 = vand.u32 4294901760, %v19446_v12 }
 0x307   : > { %v6964_v42 = vsub.f32 %v25568_v35, %v25569_v8  ;;  %v19853_v37 = vpack.c.bf16 %v25573_v61, %v25571_v32  ;;  %v25583_v2 = vand.u32 4294901760, %v25582_v19  ;;  %v25585_v8 = vld [vmem:[#allocation99_spill] sm:$0xff]  ;;  %v25590_v32 = vld [vmem:[#allocation101_spill] sm:$0xff]  ;;  %v25594_v61 = vand.u32 4294901760, %v19483_v9  ;;  %13925 = vmatprep.subr.bf16.mxu1 %v19816_v40  ;;  %v25606_v40 = vld [vmem:[#allocation72_spill] sm:$0xff] }
 0x308   : > { %25567 = vst [vmem:[#allocation32_spill] sm:$0xff] %v19843_v20  ;;  %v19859_v39 = vpack.c.bf16 %v25578_v43, %v25576_v50  ;;  %v25586_v63 = vand.u32 4294901760, %v25585_v8  ;;  %v25591_v60 = vand.u32 4294901760, %v25590_v32  ;;  %v25595_v50 = vand.u32 4294901760, %v19461_v11  ;;  %13807 = vmatpush1.bf16.msra.mxu0 %v19824_v53  ;;  %v25613_v53 = vld [vmem:[#allocation96_spill] sm:$0xff] }
 0x309   : > { %25574 = vst [vmem:[#allocation29_spill] sm:$0xff] %v19853_v37  ;;  %v19865_v45 = vpack.c.bf16 %v25583_v2, %v25581_v15  ;;  %v25596_v43 = vand.u32 4294901760, %v19218_v7  ;;  %v25599_v12 = vand.u32 4294901760, %v19516_v59  ;;  %v25600_v19 = vand.u32 4294901760, %v19530_v3  ;;  %13809 = vmatprep.subr.bf16.mxu0 %v19843_v20 }
 0x30a   : > { %25579 = vst [vmem:[#allocation54_spill] sm:$0xff] %v19859_v39  ;;  %v19871_v62 = vpack.c.bf16 %v25588_v4, %v25586_v63  ;;  %v19878_v31 = vpack.c.bf16 %v25592_v25, %v25591_v60  ;;  %v19884_v2 = vpack.c.bf16 %v25595_v50, %v25594_v61  ;;  %v25597_v63 = vld [vmem:[#allocation11_spill] sm:$0xff]  ;;  %v7658_v9 = vand.u32 4294901760, %v7657_v5  ;;  %v25604_v50 = vld [vmem:[#allocation89_spill] sm:$0xff]  ;;  %13927 = vmatpush1.bf16.msra.mxu1 %v19830_v24 }
 0x30b   : > { %25584 = vst [vmem:[#allocation82_spill] sm:$0xff] %v19865_v45  ;;  %v6976_v14 = vsub.f32 %v19218_v7, %v25596_v43  ;;  %v25598_v17 = vand.u32 4294901760, %v25597_v63  ;;  %v19897_v8 = vpack.c.bf16 %v25600_v19, %v25599_v12  ;;  %v7670_v11 = vand.u32 4294901760, %v7669_v27  ;;  %v25602_v4 = vld [vmem:[#allocation63_spill] sm:$0xff]  ;;  %13929 = vmatprep.subr.bf16.mxu1 %v19853_v37 }
 0x30c   : > { %25589 = vst [vmem:[#allocation85_spill] sm:$0xff] %v19871_v62  ;;  %25593 = vst [vmem:[#allocation86_spill] sm:$0xff] %v19878_v31  ;;  %v25603_v32 = vand.u32 4294901760, %v25602_v4  ;;  %v13816_v25 = vpack.c.bf16 %v6971_v57, %v6959_v29  ;;  %v6965_v61 = vand.u32 4294901760, %v6964_v42  ;;  %v25605_v43 = vand.u32 4294901760, %v25604_v50  ;;  %13811 = vmatpush1.bf16.msra.mxu0 %v19859_v39 }
 0x30d   : > { %v7663_v15 = vsub.f32 %v25597_v63, %v25598_v17  ;;  %25601 = vst [vmem:[#allocation87_spill] sm:$0xff] %v19897_v8  ;;  %v25607_v59 = vand.u32 4294901760, %v25606_v40  ;;  %v25608_v27 = vand.u32 4294901760, %v19264_v13  ;;  %v25609_v12 = vand.u32 4294901760, %v19280_v23  ;;  %13813 = vmatprep.subr.bf16.mxu0 %v19871_v62 }
 0x30e   : > { %v7675_v60 = vsub.f32 %v25602_v4, %v25603_v32  ;;  %v6982_v17 = vsub.f32 %v25604_v50, %v25605_v43  ;;  %v25610_v42 = vand.u32 4294901760, %v19285_v51  ;;  %v25611_v57 = vand.u32 4294901760, %v19290_v38  ;;  %13931 = vmatpush1.bf16.msra.mxu1 %v19865_v45  ;;  %v25626_v45 = vld [vmem:[#allocation18_spill] sm:$0xff] }
 0x30f   : > { %v6994_v3 = vsub.f32 %v25606_v40, %v25607_v59  ;;  %v7681_v5 = vsub.f32 %v19264_v13, %v25608_v27  ;;  %v7693_v19 = vsub.f32 %v19280_v23, %v25609_v12  ;;  %v6977_v43 = vand.u32 4294901760, %v6976_v14  ;;  %13933 = vmatprep.subr.bf16.mxu1 %v19878_v31  ;;  %v25628_v31 = vld [vmem:[#allocation70_spill] sm:$0xff] }
 0x310   : > { %v6988_v29 = vsub.f32 %v19285_v51, %v25610_v42  ;;  %v7000_v32 = vsub.f32 %v19290_v38, %v25611_v57  ;;  %v7664_v59 = vand.u32 4294901760, %v7663_v15  ;;  %v25612_v20 = vand.u32 4294901760, %v19299_v49  ;;  %v25615_v51 = vld [vmem:[#allocation66_spill] sm:$0xff]  ;;  %v25623_v38 = vld [vmem:[#allocation40_spill] sm:$0xff]  ;;  %13815 = vmatpush1.bf16.msra.mxu0 %v19884_v2 }
 0x311   : > { %v25614_v1 = vand.u32 4294901760, %v25613_v53  ;;  %v13936_v23 = vpack.c.bf16 %v7670_v11, %v7658_v9  ;;  %v7676_v42 = vand.u32 4294901760, %v7675_v60  ;;  %v25616_v13 = vand.u32 4294901760, %v25615_v51  ;;  %13817 = vmatprep.subr.bf16.mxu0 %v13816_v25 }
 0x312   : > { %v7687_v27 = vsub.f32 %v19299_v49, %v25612_v20  ;;  %v25617_v24 = vand.u32 4294901760, %v19336_v26  ;;  %v6983_v15 = vand.u32 4294901760, %v6982_v17  ;;  %v6995_v20 = vand.u32 4294901760, %v6994_v3  ;;  %v25621_v17 = vld [vmem:[#allocation39_spill] sm:$0xff]  ;;  %13935 = vmatpush1.bf16.msra.mxu1 %v19897_v8 }
 0x313   : > { %v7699_v12 = vsub.f32 %v25613_v53, %v25614_v1  ;;  %v7006_v57 = vsub.f32 %v25615_v51, %v25616_v13  ;;  %v25618_v49 = vand.u32 4294901760, %v19341_v16  ;;  %v25619_v53 = vld [vmem:[#allocation88_spill] sm:$0xff]  ;;  %v7682_v11 = vand.u32 4294901760, %v7681_v5  ;;  %13937 = vmatprep.subr.bf16.mxu1 %v13936_v23 }
 0x314   : > { %v7018_v14 = vsub.f32 %v19336_v26, %v25617_v24  ;;  %v25620_v37 = vand.u32 4294901760, %v25619_v53  ;;  %v7694_v13 = vand.u32 4294901760, %v7693_v19  ;;  %v6989_v60 = vand.u32 4294901760, %v6988_v29 }
 0x315   : > { %v7705_v1 = vsub.f32 %v19341_v16, %v25618_v49  ;;  %v7001_v51 = vand.u32 4294901760, %v7000_v32  ;;  %v7688_v24 = vand.u32 4294901760, %v7687_v27  ;;  %v7700_v39 = vand.u32 4294901760, %v7699_v12 }
 0x316   : > { %v7717_v9 = vsub.f32 %v25619_v53, %v25620_v37  ;;  %v25622_v3 = vand.u32 4294901760, %v25621_v17  ;;  %v25624_v49 = vand.u32 4294901760, %v25623_v38  ;;  %v13818_v37 = vpack.c.bf16 %v6977_v43, %v6965_v61 }
 0x317   : > { %v7007_v62 = vand.u32 4294901760, %v7006_v57  ;;  %v7019_v5 = vand.u32 4294901760, %v7018_v14  ;;  %v25625_v19 = vand.u32 4294901760, %v19377_v18  ;;  %v13938_v32 = vpack.c.bf16 %v7676_v42, %v7664_v59 }
 0x318   : > { %v7012_v26 = vsub.f32 %v25621_v17, %v25622_v3  ;;  %v7024_v16 = vsub.f32 %v25623_v38, %v25624_v49  ;;  %v7706_v27 = vand.u32 4294901760, %v7705_v1  ;;  %v7718_v12 = vand.u32 4294901760, %v7717_v9 }
 0x319   : > { %v7711_v29 = vsub.f32 %v19377_v18, %v25625_v19  ;;  %v25627_v3 = vand.u32 4294901760, %v25626_v45  ;;  %v13820_v49 = vpack.c.bf16 %v6995_v20, %v6983_v15  ;;  %v13940_v38 = vpack.c.bf16 %v7694_v13, %v7682_v11  ;;  %v25631_v19 = vld [vmem:[#allocation28_spill] sm:$0xff] }
 0x31a   : > { %v25629_v61 = vand.u32 4294901760, %v25628_v31  ;;  %v25630_v57 = vand.u32 4294901760, %v19412_v44  ;;  %v13822_v59 = vpack.c.bf16 %v7001_v51, %v6989_v60  ;;  %v13942_v42 = vpack.c.bf16 %v7700_v39, %v7688_v24  ;;  %6949 = vmatmul.mubr.f32.vlgmr.msra.gmra.mrb[8].mxu0 %v25631_v19  ;;  %7648 = vmatmul.mubr.f32.vlgmr.msra.gmra.mrb[8].mxu1 %v25631_v19 }
 0x31b   : > { %v7723_v17 = vsub.f32 %v25626_v45, %v25627_v3  ;;  %v7013_v1 = vand.u32 4294901760, %v7012_v26  ;;  %v7025_v9 = vand.u32 4294901760, %v7024_v16  ;;  %v13824_v25 = vpack.c.bf16 %v7019_v5, %v7007_v62  ;;  %13819 = vmatpush1.bf16.msra.mxu0 %v13818_v37  ;;  %7119 = vmatprep.mubr.f32.mxu0 %v24295_v52 }
 0x31c   : > { %v7030_v43 = vsub.f32 %v25628_v31, %v25629_v61  ;;  %v7042_v14 = vsub.f32 %v19412_v44, %v25630_v57  ;;  %v7712_v15 = vand.u32 4294901760, %v7711_v29  ;;  %v25632_v20 = vand.u32 4294901760, %v19417_v30  ;;  %13821 = vmatprep.subr.bf16.mxu0 %v13820_v49  ;;  %13939 = vmatpush1.bf16.msra.mxu1 %v13938_v32 }
 0x31d   : > { %v25633_v13 = vand.u32 4294901760, %v19428_v47  ;;  %v13944_v61 = vpack.c.bf16 %v7718_v12, %v7706_v27  ;;  %v7724_v57 = vand.u32 4294901760, %v7723_v17  ;;  %v25634_v51 = vand.u32 4294901760, %v19433_v56  ;;  %7818 = vmatprep.mubr.f32.mxu1 %v24295_v52  ;;  %13941 = vmatprep.subr.bf16.mxu1 %v13940_v38 }
 0x31e   : > { %v7729_v11 = vsub.f32 %v19417_v30, %v25632_v20  ;;  %v25635_v26 = vand.u32 4294901760, %v19441_v6  ;;  %v7031_v23 = vand.u32 4294901760, %v7030_v43  ;;  %v7043_v39 = vand.u32 4294901760, %v7042_v14 }
 0x31f   : > { %v7741_v3 = vsub.f32 %v19428_v47, %v25633_v13  ;;  %v7036_v16 = vsub.f32 %v19433_v56, %v25634_v51  ;;  %v25636_v60 = vand.u32 4294901760, %v19472_v48  ;;  %v25637_v17 = vand.u32 4294901760, %v19477_v21  ;;  %13823 = vmatpush1.bf16.msra.mxu0 %v13822_v59 }
 0x320   : > { %v7048_v62 = vsub.f32 %v19441_v6, %v25635_v26  ;;  %v13826_v5 = vpack.c.bf16 %v7025_v9, %v7013_v1  ;;  %v25638_v29 = vand.u32 4294901760, %v19452_v54  ;;  %v25639_v12 = vand.u32 4294901760, %v19457_v58  ;;  %13825 = vmatprep.subr.bf16.mxu0 %v13824_v25  ;;  %13943 = vmatpush1.bf16.msra.mxu1 %v13942_v42 }
 0x321   : > { %v7054_v24 = vsub.f32 %v19472_v48, %v25636_v60  ;;  %v7066_v37 = vsub.f32 %v19477_v21, %v25637_v17  ;;  %v7730_v43 = vand.u32 4294901760, %v7729_v11  ;;  %v7742_v14 = vand.u32 4294901760, %v7741_v3  ;;  %13945 = vmatprep.subr.bf16.mxu1 %v13944_v61 }
 0x322   : > { %v7735_v27 = vsub.f32 %v19452_v54, %v25638_v29  ;;  %v7747_v49 = vsub.f32 %v19457_v58, %v25639_v12  ;;  %v25640_v20 = vand.u32 4294901760, %v19505_v41  ;;  %v25641_v32 = vand.u32 4294901760, %v19573_v0 }
 0x323   : > { %v7037_v9 = vand.u32 4294901760, %v7036_v16  ;;  %v7049_v51 = vand.u32 4294901760, %v7048_v62  ;;  %v25642_v26 = vand.u32 4294901760, %v19598_v46  ;;  %v25643_v17 = vand.u32 4294901760, %v19603_v28  ;;  %13827 = vmatpush1.bf16.msra.mxu0 %v13826_v5 }
 0x324   : > { %v7753_v13 = vsub.f32 %v19505_v41, %v25640_v20  ;;  %v7765_v1 = vsub.f32 %v19573_v0, %v25641_v32  ;;  %v13946_v11 = vpack.c.bf16 %v7724_v57, %v7712_v15  ;;  %v13828_v3 = vpack.c.bf16 %v7043_v39, %v7031_v23 }
 0x325   : > { %v7060_v60 = vsub.f32 %v19598_v46, %v25642_v26  ;;  %v7072_v38 = vsub.f32 %v19603_v28, %v25643_v17  ;;  %v7055_v29 = vand.u32 4294901760, %v7054_v24  ;;  %v7067_v12 = vand.u32 4294901760, %v7066_v37 }
 0x326   : > { %v7736_v20 = vand.u32 4294901760, %v7735_v27  ;;  %v7748_v19 = vand.u32 4294901760, %v7747_v49  ;;  %v25644_v59 = vand.u32 4294901760, %v19616_v55  ;;  %v25645_v62 = vand.u32 4294901760, %v19621_v22  ;;  %13829 = vmatprep.subr.bf16.mxu0 %v13828_v3  ;;  %13947 = vmatpush1.bf16.msra.mxu1 %v13946_v11 }
 0x327   : > { %v13948_v26 = vpack.c.bf16 %v7742_v14, %v7730_v43  ;;  %v7754_v8 = vand.u32 4294901760, %v7753_v13  ;;  %v7766_v17 = vand.u32 4294901760, %v7765_v1  ;;  %v13830_v25 = vpack.c.bf16 %v7049_v51, %v7037_v9  ;;  %v25648_v14 = vld [vmem:[#allocation90_spill] sm:$0xff]  ;;  %v25655_v9 = vld [vmem:[#allocation92_spill] sm:$0xff] }
 0x328   : > { %v7759_v16 = vsub.f32 %v19616_v55, %v25644_v59  ;;  %v7771_v32 = vsub.f32 %v19621_v22, %v25645_v62  ;;  %v7061_v15 = vand.u32 4294901760, %v7060_v60  ;;  %v7073_v57 = vand.u32 4294901760, %v7072_v38  ;;  %v25656_v60 = vld [vmem:[#allocation39_spill] sm:$0xff]  ;;  %v25657_v38 = vld [vmem:[#allocation40_spill] sm:$0xff]  ;;  %v20051_v59 = vld [vmem:[%s15902_s27 + $0xb8] sm:$0xff] }
 0x329   : > { %v13832_v42 = vpack.c.bf16 %v7067_v12, %v7055_v29  ;;  %v13950_v23 = vpack.c.bf16 %v7748_v19, %v7736_v20  ;;  %13949 = vmatprep.subr.bf16.mxu1 %v13948_v26  ;;  %v13952_v37 = vpack.c.bf16 %v7766_v17, %v7754_v8  ;;  %13831 = vmatpush1.bf16.msra.mxu0 %v13830_v25  ;;  %v20048_v20 = vld [vmem:[%s15902_s27 + $0x1a8] sm:$0xff]  ;;  %v20093_v26 = vld [vmem:[%s15902_s27 + $0x2b8] sm:$0xff] }
 0x32a   : > { %v7760_v39 = vand.u32 4294901760, %v7759_v16  ;;  %v7772_v24 = vand.u32 4294901760, %v7771_v32  ;;  %v13834_v27 = vpack.c.bf16 %v7073_v57, %v7061_v15  ;;  %v13836_v61 = vpack.c.bf16 %v19187_v34, %v25532_v10  ;;  %v25646_v34 = vld [vmem:[#allocation6_spill] sm:$0xff]  ;;  %v25647_v10 = vld [vmem:[#allocation20_spill] sm:$0xff]  ;;  %25659 = vst [vmem:[#allocation95_spill] sm:$0xff] %v20048_v20  ;;  %25660 = vst [vmem:[#allocation61_spill] sm:$0xff] %v20051_v59 }
 0x32b   : > { %13833 = vmatprep.subr.bf16.mxu0 %v13832_v42  ;;  %13951 = vmatpush1.bf16.msra.mxu1 %v13950_v23  ;;  %v13956_v5 = vpack.c.bf16 %v25561_v36, %v19203_v33  ;;  %v13838_v19 = vpack.c.bf16 %v19218_v7, %v25568_v35  ;;  %v13840_v8 = vpack.c.bf16 %v25606_v40, %v25604_v50  ;;  %v25649_v33 = vld [vmem:[#allocation91_spill] sm:$0xff]  ;;  %v25650_v36 = vld [vmem:[#allocation81_spill] sm:$0xff]  ;;  %v25651_v7 = vld [vmem:[#allocation66_spill] sm:$0xff] }
 0x32c   : > { %v13954_v49 = vpack.c.bf16 %v7772_v24, %v7760_v39  ;;  %13953 = vmatprep.subr.bf16.mxu1 %v13952_v37  ;;  %v13958_v43 = vpack.c.bf16 %v25602_v4, %v25597_v63  ;;  %v13960_v13 = vpack.c.bf16 %v25648_v14, %v25647_v10  ;;  %v13842_v1 = vpack.c.bf16 %v25650_v36, %v25649_v33  ;;  %v25652_v40 = vld [vmem:[#allocation33_spill] sm:$0xff]  ;;  %v25654_v4 = vld [vmem:[#allocation96_spill] sm:$0xff]  ;;  %v20059_v16 = vld [vmem:[%s15902_s27 + $0xa0] sm:$0xff] }
 0x32d   : > { %13835 = vmatpush1.bf16.msra.mxu0 %v13834_v27  ;;  %v13844_v35 = vpack.c.bf16 %v25652_v40, %v25651_v7  ;;  %v25653_v63 = vld [vmem:[#allocation73_spill] sm:$0xff]  ;;  %v13964_v51 = vpack.c.bf16 %v25619_v53, %v25655_v9  ;;  %v13846_v11 = vpack.c.bf16 %v25657_v38, %v25656_v60  ;;  %v13848_v3 = vpack.c.bf16 %v19412_v44, %v25628_v31  ;;  %v20045_v53 = vld [vmem:[%s15902_s27 + $0xa8] sm:$0xff]  ;;  %v20111_v57 = vld [vmem:[%s15902_s27 + $0x2a0] sm:$0xff] }
 0x32e   : > { %13837 = vmatprep.subr.bf16.mxu0 %v13836_v61  ;;  %v13962_v50 = vpack.c.bf16 %v25654_v4, %v25653_v63  ;;  %v13966_v29 = vpack.c.bf16 %v25626_v45, %v19377_v18  ;;  %v13968_v12 = vpack.c.bf16 %v19428_v47, %v19417_v30  ;;  %25658 = vst [vmem:[#allocation25_spill] sm:$0xff] %v20045_v53  ;;  %v20056_v31 = vld [vmem:[%s15902_s27 + $0x1b8] sm:$0xff]  ;;  %25662 = vst [vmem:[#allocation16_spill] sm:$0xff] %v20059_v16  ;;  %v20062_v18 = vld [vmem:[%s15902_s27 + $0x1a0] sm:$0xff] }
 0x32f   : > { %13955 = vmatpush1.bf16.msra.mxu1 %v13954_v49  ;;  %v13850_v44 = vpack.c.bf16 %v19441_v6, %v19433_v56  ;;  %25661 = vst [vmem:[#allocation94_spill] sm:$0xff] %v20056_v31  ;;  %25663 = vst [vmem:[#allocation83_spill] sm:$0xff] %v20062_v18  ;;  %v13970_v47 = vpack.c.bf16 %v19457_v58, %v19452_v54  ;;  %v13852_v30 = vpack.c.bf16 %v19477_v21, %v19472_v48  ;;  %v20071_v6 = vld [vmem:[%s15902_s27 + $0xb0] sm:$0xff]  ;;  %v20108_v15 = vld [vmem:[%s15902_s27 + $0x3b8] sm:$0xff] }
 0x330   : > { %13957 = vmatprep.subr.bf16.mxu1 %v13956_v5  ;;  %7121 = vmatmul.mubr.f32.vlgmr.msra.gmra.mrb[8].mxu0 %v25646_v34  ;;  %v13972_v45 = vpack.c.bf16 %v19573_v0, %v19505_v41  ;;  %25664 = vst [vmem:[#allocation93_spill] sm:$0xff] %v20071_v6  ;;  %v20074_v56 = vld [vmem:[%s15902_s27 + $0x1b0] sm:$0xff]  ;;  %v13854_v62 = vpack.c.bf16 %v19603_v28, %v19598_v46  ;;  %v23865_v32 = vand.u32 4294901760, %v20045_v53  ;;  %v23862_v54 = vand.u32 4294901760, %v20048_v20  ;;  %v20087_v46 = vld [vmem:[%s15902_s27 + $0x2a8] sm:$0xff]  ;;  %v20114_v42 = vld [vmem:[%s15902_s27 + $0x3a0] sm:$0xff] }
 0x331   : > { %13839 = vmatpush1.bf16.msra.mxu0 %v13838_v19  ;;  %7231 = vmatprep.mubr.f32.mxu0 %v24295_v52  ;;  %25665 = vst [vmem:[#allocation10_spill] sm:$0xff] %v20074_v56  ;;  %v23860_v21 = vand.u32 4294901760, %v20051_v59  ;;  %v13974_v48 = vpack.c.bf16 %v19621_v22, %v19616_v55  ;;  %v23859_v58 = vand.u32 4294901760, %v20056_v31  ;;  %v23858_v41 = vand.u32 4294901760, %v20059_v16  ;;  %25666 = vst [vmem:[#allocation24_spill] sm:$0xff] %v20087_v46  ;;  %v20090_v28 = vld [vmem:[%s15902_s27 + $0x3a8] sm:$0xff] }
 0x332   : > { %7820 = vmatmul.mubr.f32.vlgmr.msra.gmra.mrb[8].mxu1 %v25646_v34  ;;  %13841 = vmatprep.subr.bf16.mxu0 %v13840_v8  ;;  %v23857_v0 = vand.u32 4294901760, %v20062_v18  ;;  %25667 = vst [vmem:[#allocation74_spill] sm:$0xff] %v20090_v28  ;;  %25668 = vst [vmem:[#allocation60_spill] sm:$0xff] %v20093_v26  ;;  %v20098_v17 = vsub.f32 %v20045_v53, %v23865_v32  ;;  %v20103_v55 = vsub.f32 %v20048_v20, %v23862_v54  ;;  %v20137_v27 = vld [vmem:[%s15902_s27 + $0x2b0] sm:$0xff]  ;;  %v20159_v33 = vld [vmem:[%s15902_s27 + $0x4a8] sm:$0xff] }
 0x333   : > { %13959 = vmatpush1.bf16.msra.mxu1 %v13958_v43  ;;  %7930 = vmatprep.mubr.f32.mxu1 %v24295_v52  ;;  %v23853_v22 = vand.u32 4294901760, %v20071_v6  ;;  %v23852_v25 = vand.u32 4294901760, %v20074_v56  ;;  %25670 = vst [vmem:[#allocation9_spill] sm:$0xff] %v20108_v15  ;;  %25671 = vst [vmem:[#allocation50_spill] sm:$0xff] %v20111_v57  ;;  %v20119_v23 = vsub.f32 %v20051_v59, %v23860_v21  ;;  %v23856_v49 = vand.u32 4294901760, %v20087_v46  ;;  %v20148_v8 = vld [vmem:[%s15902_s27 + $0x3b0] sm:$0xff] }
 0x334   : > { %13961 = vmatprep.subr.bf16.mxu1 %v13960_v13  ;;  %25669 = vst [vmem:[#allocation84_spill] sm:$0xff] %v20098_v17  ;;  %25672 = vst [vmem:[#allocation35_spill] sm:$0xff] %v20114_v42  ;;  %v20124_v39 = vsub.f32 %v20056_v31, %v23859_v58  ;;  %v20129_v24 = vsub.f32 %v20059_v16, %v23858_v41  ;;  %v20134_v37 = vsub.f32 %v20062_v18, %v23857_v0  ;;  %v20162_v36 = vld [vmem:[%s15902_s27 + $0x5a8] sm:$0xff]  ;;  %v20184_v4 = vld [vmem:[%s15902_s27 + $0x5b8] sm:$0xff] }
 0x335   : > { %13843 = vmatpush1.bf16.msra.mxu0 %v13842_v1  ;;  %25675 = vst [vmem:[#allocation46_spill] sm:$0xff] %v20137_v27  ;;  %v20142_v61 = vsub.f32 %v20071_v6, %v23853_v22  ;;  %v23854_v5 = vand.u32 4294901760, %v20090_v28  ;;  %v23851_v19 = vand.u32 4294901760, %v20093_v26  ;;  %25677 = vst [vmem:[#allocation51_spill] sm:$0xff] %v20148_v8  ;;  %v20153_v43 = vsub.f32 %v20074_v56, %v23852_v25  ;;  %v20165_v1 = vld [vmem:[%s15902_s27 + $0x4b8] sm:$0xff]  ;;  %v20190_v9 = vld [vmem:[%s15902_s27 + $0x5a0] sm:$0xff] }
 0x336   : > { %13845 = vmatprep.subr.bf16.mxu0 %v13844_v35  ;;  %25673 = vst [vmem:[#allocation97_spill] sm:$0xff] %v20124_v39  ;;  %25674 = vst [vmem:[#allocation98_spill] sm:$0xff] %v20129_v24  ;;  %v23850_v10 = vand.u32 4294901760, %v20108_v15  ;;  %v23849_v14 = vand.u32 4294901760, %v20111_v57  ;;  %v23847_v13 = vand.u32 4294901760, %v20114_v42  ;;  %v20170_v7 = vsub.f32 %v20087_v46, %v23856_v49  ;;  %v20237_v25 = vld [vmem:[%s15902_s27 + $0x7a8] sm:$0xff] }
 0x337   : > { %13963 = vmatpush1.bf16.msra.mxu1 %v13962_v50  ;;  %25676 = vst [vmem:[#allocation64_spill] sm:$0xff] %v20142_v61  ;;  %25678 = vst [vmem:[#allocation8_spill] sm:$0xff] %v20153_v43  ;;  %v20175_v40 = vsub.f32 %v20090_v28, %v23854_v5  ;;  %v20180_v35 = vsub.f32 %v20093_v26, %v23851_v19  ;;  %v23848_v63 = vand.u32 4294901760, %v20137_v27  ;;  %v20187_v50 = vld [vmem:[%s15902_s27 + $0x4a0] sm:$0xff]  ;;  %v20234_v19 = vld [vmem:[%s15902_s27 + $0x6a8] sm:$0xff]  ;;  %v25740_v20 = vand.u32 4294901760, %v20103_v55 }
 0x338   : > { %13965 = vmatprep.subr.bf16.mxu1 %v13964_v51  ;;  %25679 = vst [vmem:[#allocation67_spill] sm:$0xff] %v20159_v33  ;;  %25680 = vst [vmem:[#allocation69_spill] sm:$0xff] %v20162_v36  ;;  %v25688_v51 = vld [vmem:[#allocation15_spill] sm:$0xff]  ;;  %v20196_v60 = vsub.f32 %v20108_v15, %v23850_v10  ;;  %v20201_v38 = vsub.f32 %v20111_v57, %v23849_v14  ;;  %v23869_v14 = vand.u32 4294901760, %v20187_v50  ;;  %v23872_v10 = vand.u32 4294901760, %v20190_v9  ;;  %v20240_v22 = vld [vmem:[%s15902_s27 + $0x6b8] sm:$0xff] }
 0x339   : > { %13847 = vmatpush1.bf16.msra.mxu0 %v13846_v11  ;;  %25681 = vst [vmem:[#allocation68_spill] sm:$0xff] %v20165_v1  ;;  %25682 = vst [vmem:[#allocation99_spill] sm:$0xff] %v20170_v7  ;;  %v20206_v11 = vsub.f32 %v20114_v42, %v23847_v13  ;;  %v25696_v13 = vld [vmem:[#allocation7_spill] sm:$0xff]  ;;  %v25701_v5 = vld [vmem:[#allocation12_spill] sm:$0xff]  ;;  %v25722_v42 = vand.u32 4294901760, %v20234_v19 }
 0x33a   : > { %13849 = vmatprep.subr.bf16.mxu0 %v13848_v3  ;;  %25683 = vst [vmem:[#allocation100_spill] sm:$0xff] %v20175_v40  ;;  %25684 = vst [vmem:[#allocation101_spill] sm:$0xff] %v20180_v35  ;;  %v23855_v3 = vand.u32 4294901760, %v20148_v8  ;;  %v20261_v58 = vld [vmem:[%s15902_s27 + $0x7b8] sm:$0xff]  ;;  %v20264_v21 = vld [vmem:[%s15902_s27 + $0x6a0] sm:$0xff]  ;;  %v20282_v32 = vsub.f32 %v20190_v9, %v23872_v10 }
 0x33b   : > { %13967 = vmatpush1.bf16.msra.mxu1 %v13966_v29  ;;  %25685 = vst [vmem:[#allocation11_spill] sm:$0xff] %v20184_v4  ;;  %25686 = vst [vmem:[#allocation63_spill] sm:$0xff] %v20187_v50  ;;  %v20210_v29 = vld [vmem:[%s15902_s27 + $0x4b0] sm:$0xff]  ;;  %v25707_v54 = vld [vmem:[#allocation30_spill] sm:$0xff]  ;;  %v20323_v57 = vsub.f32 %v20234_v19, %v25722_v42  ;;  %v25728_v42 = vand.u32 4294901760, %v20261_v58 }
 0x33c   : > { %13969 = vmatprep.subr.bf16.mxu1 %v13968_v12  ;;  %25687 = vst [vmem:[#allocation89_spill] sm:$0xff] %v20190_v9  ;;  %25689 = vst [vmem:[#allocation72_spill] sm:$0xff] %v20196_v60  ;;  %v20215_v12 = vsub.f32 %v20137_v27, %v23848_v63  ;;  %v23868_v63 = vand.u32 4294901760, %v20184_v4  ;;  %v20299_v41 = vld [vmem:[%s15902_s27 + $0x6b0] sm:$0xff]  ;;  %v20337_v15 = vld [vmem:[%s15902_s27 + $0x8b8] sm:$0xff] }
 0x33d   : > { %13851 = vmatpush1.bf16.msra.mxu0 %v13850_v44  ;;  %25690 = vst [vmem:[#allocation88_spill] sm:$0xff] %v20201_v38  ;;  %25691 = vst [vmem:[#allocation18_spill] sm:$0xff] %v20206_v11  ;;  %v23861_v44 = vand.u32 4294901760, %v20159_v33  ;;  %v20302_v9 = vld [vmem:[%s15902_s27 + $0x7b0] sm:$0xff]  ;;  %v1154_v26 = vld [vmem:[%s15902_s27 + $0x9a0] sm:$0x7] }
 0x33e   : > { %13853 = vmatprep.subr.bf16.mxu0 %v13852_v30  ;;  %25692 = vst [vmem:[#allocation70_spill] sm:$0xff] %v20210_v29  ;;  %25693 = vst [vmem:[#allocation20_spill] sm:$0xff] %v20215_v12  ;;  %v23864_v30 = vand.u32 4294901760, %v20165_v1  ;;  %v25727_v56 = vld [vmem:[#allocation52_spill] sm:$0xff]  ;;  %v25745_v53 = vld [vmem:[#allocation29_spill] sm:$0xff]  ;;  %v25746_v59 = vand.u32 4294901760, %v20337_v15 }
 0x33f   : > { %13971 = vmatpush1.bf16.msra.mxu1 %v13970_v47  ;;  %v23863_v47 = vand.u32 4294901760, %v20162_v36  ;;  %25698 = vst [vmem:[#allocation81_spill] sm:$0xff] %v20234_v19  ;;  %25699 = vst [vmem:[#allocation66_spill] sm:$0xff] %v20237_v25  ;;  %v20344_v19 = vsub.f32 %v20261_v58, %v25728_v42  ;;  %v20377_v42 = vsel %vm1170_vm1, %v1154_v26, 0  ;;  %v25735_v16 = vld [vmem:[#allocation32_spill] sm:$0xff] }
 0x340   : > { %13973 = vmatprep.subr.bf16.mxu1 %v13972_v45  ;;  %v20221_v45 = vld [vmem:[%s15902_s27 + $0x5b0] sm:$0xff]  ;;  %25700 = vst [vmem:[#allocation33_spill] sm:$0xff] %v20240_v22  ;;  %v20257_v0 = vsub.f32 %v20165_v1, %v23864_v30  ;;  %25705 = vst [vmem:[#allocation39_spill] sm:$0xff] %v20261_v58  ;;  %v20277_v30 = vsub.f32 %v20187_v50, %v23869_v14  ;;  %v25712_v1 = vld [vmem:[#allocation13_spill] sm:$0xff]  ;;  %v25725_v50 = vand.u32 4294901760, %v20240_v22 }
 0x341   : > { %13855 = vmatpush1.bf16.msra.mxu0 %v13854_v62  ;;  %25694 = vst [vmem:[#allocation90_spill] sm:$0xff] %v20221_v45  ;;  %v25695_v62 = vld [vmem:[#allocation26_spill] sm:$0xff]  ;;  %v20252_v49 = vsub.f32 %v20162_v36, %v23863_v47  ;;  %25706 = vst [vmem:[#allocation40_spill] sm:$0xff] %v20264_v21  ;;  %v20272_v47 = vsub.f32 %v20184_v4, %v23868_v63  ;;  %v25713_v63 = vand.u32 4294901760, %v20210_v29  ;;  %v25717_v27 = vand.u32 4294901760, %v20221_v45  ;;  %v20313_v4 = vld [vmem:[%s15902_s27 + $0x8a8] sm:$0xff] }
 0x342   : > { %13857 = vmatprep.subr.bf16.mxu0 %v25688_v51  ;;  %25704 = vst [vmem:[#allocation92_spill] sm:$0xff] %v20257_v0  ;;  %25709 = vst [vmem:[#allocation26_spill] sm:$0xff] %v20277_v30  ;;  %v1156_v31 = vld [vmem:[%s15902_s27 + $0x9b0] sm:$0x7] }
 0x343   : > { %13975 = vmatpush1.bf16.msra.mxu1 %v13974_v48  ;;  %v20228_v48 = vsub.f32 %v20148_v8, %v23855_v3  ;;  %v20247_v3 = vsub.f32 %v20159_v33, %v23861_v44  ;;  %25703 = vst [vmem:[#allocation96_spill] sm:$0xff] %v20252_v49  ;;  %v1155_v44 = vld [vmem:[%s15902_s27 + $0x9a8] sm:$0x7]  ;;  %25708 = vst [vmem:[#allocation15_spill] sm:$0xff] %v20272_v47  ;;  %v20293_v14 = vsub.f32 %v20210_v29, %v25713_v63  ;;  %v1157_v29 = vld [vmem:[%s15902_s27 + $0x9b8] sm:$0x7] }
 0x344   : > { %13977 = vmatprep.subr.bf16.mxu1 %v25695_v62  ;;  %7234 = vmatmul.mubr.f32.vlgmr.msra.gmra.mrb[8].mxu0 %v25696_v13  ;;  %25710 = vst [vmem:[#allocation12_spill] sm:$0xff] %v20282_v32  ;;  %25714 = vst [vmem:[#allocation13_spill] sm:$0xff] %v20299_v41  ;;  %v25716_v8 = vld [vmem:[#allocation31_spill] sm:$0xff]  ;;  %v20308_v36 = vsub.f32 %v20221_v45, %v25717_v27  ;;  %v20316_v10 = vsel %vm1170_vm1, %v1155_v44, 0  ;;  %v25721_v33 = vld [vmem:[#allocation37_spill] sm:$0xff]  ;;  %v25724_v27 = vand.u32 4294901760, %v20237_v25 }
 0x345   : > { %25697 = vst [vmem:[#allocation91_spill] sm:$0xff] %v20228_v48  ;;  %13859 = vmatpush1.bf16.msra.mxu0 %v25701_v5  ;;  %7324 = vmatprep.mubr.f32.mxu0 %v24295_v52  ;;  %25702 = vst [vmem:[#allocation73_spill] sm:$0xff] %v20247_v3  ;;  %v20333_v63 = vsub.f32 %v20240_v22, %v25725_v50  ;;  %v23895_v50 = vand.u32 4294901760, %v20299_v41  ;;  %v25730_v44 = vld [vmem:[#allocation56_spill] sm:$0xff]  ;;  %v20362_v58 = vsel %vm1170_vm1, %v1157_v29, 0  ;;  %v25734_v29 = vld [vmem:[#allocation62_spill] sm:$0xff] }
 0x346   : > { %7933 = vmatmul.mubr.f32.vlgmr.msra.gmra.mrb[8].mxu1 %v25696_v13  ;;  %13861 = vmatprep.subr.bf16.mxu0 %v25707_v54  ;;  %v20286_v13 = vld [vmem:[%s15902_s27 + $0x7a0] sm:$0xff]  ;;  %25715 = vst [vmem:[#allocation102_spill] sm:$0xff] %v20302_v9  ;;  %25718 = vst [vmem:[#allocation31_spill] sm:$0xff] %v20308_v36  ;;  %v20328_v45 = vsub.f32 %v20237_v25, %v25724_v27  ;;  %v25729_v27 = vand.u32 4294901760, %v20264_v21  ;;  %v25737_v26 = vand.u32 4294901760, %v20316_v10 }
 0x347   : > { %25711 = vst [vmem:[#allocation30_spill] sm:$0xff] %v20286_v13  ;;  %13979 = vmatpush1.bf16.msra.mxu1 %v25712_v1  ;;  %8023 = vmatprep.mubr.f32.mxu1 %v24295_v52  ;;  %25719 = vst [vmem:[#allocation103_spill] sm:$0xff] %v20313_v4  ;;  %v25731_v6 = vand.u32 4294901760, %v20286_v13  ;;  %v20368_v22 = vsub.f32 %v20299_v41, %v23895_v50  ;;  %v25738_v50 = vld [vmem:[#allocation65_spill] sm:$0xff]  ;;  %v20399_v41 = vld [vmem:[%s15902_s27 + $0x8a0] sm:$0xff] }
 0x348   : > { %13981 = vmatprep.subr.bf16.mxu1 %v25716_v8  ;;  %25720 = vst [vmem:[#allocation104_spill] sm:$0xff] %v20316_v10  ;;  %25723 = vst [vmem:[#allocation37_spill] sm:$0xff] %v20323_v57  ;;  %v20349_v25 = vsub.f32 %v20264_v21, %v25729_v27  ;;  %v25732_v27 = vld [vmem:[#allocation17_spill] sm:$0xff]  ;;  %v25733_v21 = vand.u32 4294901760, %v20302_v9  ;;  %v20393_v46 = vsub.f32 %v20316_v10, %v25737_v26  ;;  %v25742_v10 = vand.u32 4294901760, %v20119_v23 }
 0x349   : > { %13863 = vmatpush1.bf16.msra.mxu0 %v25721_v33  ;;  %25726 = vst [vmem:[#allocation105_spill] sm:$0xff] %v20337_v15  ;;  %v20357_v28 = vsub.f32 %v20286_v13, %v25731_v6  ;;  %v25743_v13 = vand.u32 4294901760, %v20124_v39  ;;  %v25750_v39 = vld [vmem:[#allocation54_spill] sm:$0xff] }
 0x34a   : > { %13865 = vmatprep.subr.bf16.mxu0 %v25727_v56  ;;  %v20373_v6 = vsub.f32 %v20302_v9, %v25733_v21  ;;  %v25736_v21 = vand.u32 4294901760, %v20313_v4 }
 0x34b   : > { %13983 = vmatpush1.bf16.msra.mxu1 %v25730_v44  ;;  %v20414_v18 = vpack.c.bf16 %v25743_v13, %v25742_v10  ;;  %v20432_v10 = vld [vmem:[%s15902_s27 + $0x8b0] sm:$0xff]  ;;  %v25766_v13 = vand.u32 4294901760, %v20215_v12 }
 0x34c   : > { %13985 = vmatprep.subr.bf16.mxu1 %v25732_v27  ;;  %v20388_v9 = vsub.f32 %v20313_v4, %v25736_v21  ;;  %v25739_v4 = vand.u32 4294901760, %v20098_v17  ;;  %v20421_v21 = vsub.f32 %v20337_v15, %v25746_v59  ;;  %v25751_v59 = vand.u32 4294901760, %v20142_v61  ;;  %v25769_v61 = vld [vmem:[#allocation71_spill] sm:$0xff] }
 0x34d   : > { %13867 = vmatpush1.bf16.msra.mxu0 %v25734_v29  ;;  %25744 = vst [vmem:[#allocation56_spill] sm:$0xff] %v20414_v18  ;;  %v25752_v17 = vand.u32 4294901760, %v20153_v43  ;;  %v25767_v18 = vand.u32 4294901760, %v20228_v48 }
 0x34e   : > { %13869 = vmatprep.subr.bf16.mxu0 %v25735_v16  ;;  %v20408_v26 = vpack.c.bf16 %v25740_v20, %v25739_v4  ;;  %v25747_v20 = vand.u32 4294901760, %v20129_v24  ;;  %v25748_v4 = vand.u32 4294901760, %v20134_v37  ;;  %v25754_v24 = vld [vmem:[#allocation85_spill] sm:$0xff] }
 0x34f   : > { %13987 = vmatpush1.bf16.msra.mxu1 %v25738_v50  ;;  %v20441_v15 = vpack.c.bf16 %v25752_v17, %v25751_v59  ;;  %v25755_v50 = vld [vmem:[#allocation82_spill] sm:$0xff]  ;;  %v25756_v17 = vand.u32 4294901760, %v20170_v7  ;;  %v25757_v59 = vand.u32 4294901760, %v20175_v40  ;;  %v25763_v7 = vand.u32 4294901760, %v20201_v38 }
 0x350   : > { %25741 = vst [vmem:[#allocation52_spill] sm:$0xff] %v20408_v26  ;;  %13989 = vmatprep.subr.bf16.mxu1 %v25745_v53  ;;  %v20428_v26 = vpack.c.bf16 %v25748_v4, %v25747_v20  ;;  %v20446_v4 = vsel %vm1170_vm1, %v1156_v31, 0  ;;  %v25759_v20 = vand.u32 4294901760, %v20180_v35  ;;  %v25760_v31 = vand.u32 4294901760, %v20196_v60 }
 0x351   : > { %13871 = vmatpush1.bf16.msra.mxu0 %v25750_v39  ;;  %25753 = vst [vmem:[#allocation62_spill] sm:$0xff] %v20441_v15  ;;  %v20457_v15 = vpack.c.bf16 %v25757_v59, %v25756_v17  ;;  %v25764_v40 = vand.u32 4294901760, %v20206_v11  ;;  %v25778_v59 = vld [vmem:[#allocation22_spill] sm:$0xff] }
 0x352   : > { %25749 = vst [vmem:[#allocation17_spill] sm:$0xff] %v20428_v26  ;;  %13873 = vmatprep.subr.bf16.mxu0 %v25754_v24  ;;  %v20463_v43 = vpack.c.bf16 %v25760_v31, %v25759_v20  ;;  %v25762_v26 = vld [vmem:[#allocation86_spill] sm:$0xff]  ;;  %v25771_v31 = vld [vmem:[#allocation87_spill] sm:$0xff] }
 0x353   : > { %13991 = vmatpush1.bf16.msra.mxu1 %v25755_v50  ;;  %25758 = vst [vmem:[#allocation32_spill] sm:$0xff] %v20457_v15  ;;  %v20473_v17 = vpack.c.bf16 %v25764_v40, %v25763_v7  ;;  %v25770_v15 = vand.u32 4294901760, %v20362_v58  ;;  %v25776_v40 = vand.u32 4294901760, %v20272_v47  ;;  %v25779_v20 = vld [vmem:[#allocation27_spill] sm:$0xff] }
 0x354   : > { %25761 = vst [vmem:[#allocation29_spill] sm:$0xff] %v20463_v43  ;;  %13993 = vmatprep.subr.bf16.mxu1 %v25762_v26  ;;  %v20483_v43 = vpack.c.bf16 %v25767_v18, %v25766_v13  ;;  %v25772_v13 = vand.u32 4294901760, %v20247_v3  ;;  %v25781_v3 = vand.u32 4294901760, %v20377_v42 }
 0x355   : > { %25765 = vst [vmem:[#allocation54_spill] sm:$0xff] %v20473_v17  ;;  %13875 = vmatpush1.bf16.msra.mxu0 %v19884_v2  ;;  %v20489_v7 = vsub.f32 %v20362_v58, %v25770_v15  ;;  %v25775_v15 = vand.u32 4294901760, %v20257_v0  ;;  %v25780_v17 = vand.u32 4294901760, %v20399_v41 }
 0x356   : > { %25768 = vst [vmem:[#allocation85_spill] sm:$0xff] %v20483_v43  ;;  %13877 = vmatprep.subr.bf16.mxu0 %v25769_v61  ;;  %v25773_v61 = vand.u32 4294901760, %v20252_v49 }
 0x357   : > { %13995 = vmatpush1.bf16.msra.mxu1 %v25771_v31  ;;  %v20507_v48 = vpack.c.bf16 %v25776_v40, %v25775_v15  ;;  %v20514_v18 = vsub.f32 %v20399_v41, %v25780_v17  ;;  %v25785_v15 = vld [vmem:[#allocation80_spill] sm:$0xff] }
 0x358   : > { %v20501_v43 = vpack.c.bf16 %v25773_v61, %v25772_v13  ;;  %13997 = vmatprep.subr.bf16.mxu1 %v25778_v59  ;;  %7328 = vmatmul.mubr.f32.vlgmr.msra.gmra.mrb[8].mxu0 %v25779_v20  ;;  %v20519_v13 = vsub.f32 %v20377_v42, %v25781_v3  ;;  %v25782_v61 = vand.u32 4294901760, %v20277_v30  ;;  %v25786_v59 = vand.u32 4294901760, %v20432_v10 }
 0x359   : > { %25777 = vst [vmem:[#allocation86_spill] sm:$0xff] %v20507_v48  ;;  %13879 = vmatpush1.bf16.msra.mxu0 %v25785_v15  ;;  %7458 = vmatprep.mubr.f32.mxu0 %v24295_v52  ;;  %v25787_v48 = vand.u32 4294901760, %v20446_v4  ;;  %v25788_v30 = vand.u32 4294901760, %v20293_v14  ;;  %v23935_v15 = vand.u32 4294901760, %v20323_v57 }
 0x35a   : > { %25774 = vst [vmem:[#allocation82_spill] sm:$0xff] %v20501_v43  ;;  %v25783_v43 = vand.u32 4294901760, %v20282_v32  ;;  %v20532_v17 = vsub.f32 %v20432_v10, %v25786_v59  ;;  %v25789_v32 = vand.u32 4294901760, %v20308_v36  ;;  %8027 = vmatmul.mubr.f32.vlgmr.msra.gmra.mrb[8].mxu1 %v25779_v20  ;;  %v25796_v36 = vand.u32 4294901760, %v20333_v63 }
 0x35b   : > { %v20537_v3 = vsub.f32 %v20446_v4, %v25787_v48  ;;  %v25792_v48 = vld [vmem:[#allocation47_spill] sm:$0xff]  ;;  %8157 = vmatprep.mubr.f32.mxu1 %v24295_v52 }
 0x35c   : > { %v20525_v40 = vpack.c.bf16 %v25783_v43, %v25782_v61  ;;  %v20543_v43 = vpack.c.bf16 %v25789_v32, %v25788_v30  ;;  %v25791_v61 = vld [vmem:[#allocation53_spill] sm:$0xff]  ;;  %13999 = vmatpush1.bf16.msra.mxu1 %v25792_v48  ;;  %v25794_v48 = vand.u32 4294901760, %v20328_v45  ;;  %v25797_v32 = vand.u32 4294901760, %v20344_v19 }
 0x35d   : > { %13881 = vmatprep.subr.bf16.mxu0 %v25791_v61  ;;  %v25799_v30 = vld [vmem:[#allocation49_spill] sm:$0xff]  ;;  %v25801_v61 = vand.u32 4294901760, %v20357_v28 }
 0x35e   : > { %25784 = vst [vmem:[#allocation71_spill] sm:$0xff] %v20525_v40  ;;  %25790 = vst [vmem:[#allocation87_spill] sm:$0xff] %v20543_v43  ;;  %v25793_v43 = vld [vmem:[#allocation48_spill] sm:$0xff]  ;;  %v20564_v47 = vpack.c.bf16 %v25794_v48, %v23935_v15  ;;  %v20570_v20 = vpack.c.bf16 %v25797_v32, %v25796_v36  ;;  %13883 = vmatpush1.bf16.msra.mxu0 %v25799_v30  ;;  %v25800_v40 = vand.u32 4294901760, %v20349_v25  ;;  %v25803_v48 = vand.u32 4294901760, %v20368_v22  ;;  %v25806_v36 = vld [vmem:[#allocation55_spill] sm:$0xff] }
 0x35f   : > { %14001 = vmatprep.subr.bf16.mxu1 %v25793_v43  ;;  %v25804_v15 = vand.u32 4294901760, %v20373_v6  ;;  %13885 = vmatprep.subr.bf16.mxu0 %v25806_v36  ;;  %v23936_v30 = vand.u32 4294901760, %v20519_v13  ;;  %v25807_v43 = vld [vmem:[#allocation58_spill] sm:$0xff]  ;;  %v25814_v32 = vld [vmem:[#allocation59_spill] sm:$0xff] }
 0x360   : > { %25795 = vst [vmem:[#allocation22_spill] sm:$0xff] %v20564_v47  ;;  %25798 = vst [vmem:[#allocation80_spill] sm:$0xff] %v20570_v20  ;;  %v20579_v57 = vpack.c.bf16 %v25801_v61, %v25800_v40  ;;  %14003 = vmatpush1.bf16.msra.mxu1 %v25807_v43  ;;  %v25808_v40 = vand.u32 4294901760, %v20388_v9  ;;  %v25809_v61 = vand.u32 4294901760, %v20393_v46  ;;  %v25815_v43 = vand.u32 4294901760, %v20514_v18  ;;  %v25817_v20 = vld [vmem:[#allocation75_spill] sm:$0xff] }
 0x361   : > { %v20585_v47 = vpack.c.bf16 %v25804_v15, %v25803_v48  ;;  %v25811_v15 = vand.u32 4294901760, %v20421_v21  ;;  %v25812_v48 = vand.u32 4294901760, %v20489_v7  ;;  %14005 = vmatprep.subr.bf16.mxu1 %v25814_v32 }
 0x362   : > { %25802 = vst [vmem:[#allocation53_spill] sm:$0xff] %v20579_v57  ;;  %v20597_v57 = vpack.c.bf16 %v25809_v61, %v25808_v40  ;;  %v20610_v59 = vpack.c.bf16 %v23936_v30, %v25815_v43  ;;  %13887 = vmatpush1.bf16.msra.mxu0 %v25817_v20  ;;  %v25819_v40 = vand.u32 4294901760, %v20537_v3  ;;  %v20626_v43 = vpop.f32.mrb[4].mxu1  ;;  %v25827_v30 = vld [vmem:[#allocation78_spill] sm:$0xff] }
 0x363   : > { %25805 = vst [vmem:[#allocation47_spill] sm:$0xff] %v20585_v47  ;;  %v20603_v36 = vpack.c.bf16 %v25812_v48, %v25811_v15  ;;  %v25818_v47 = vand.u32 4294901760, %v20532_v17  ;;  %v25822_v15 = vld [vmem:[#allocation57_spill] sm:$0xff]  ;;  %v20621_v48 = vpop.f32.mrb[4].mxu0  ;;  %v20629_v20 = vpop.f32.mrb[5].mxu1 }
 0x364   : > { %25810 = vst [vmem:[#allocation48_spill] sm:$0xff] %v20597_v57  ;;  %25816 = vst [vmem:[#allocation55_spill] sm:$0xff] %v20610_v59  ;;  %v25821_v57 = vld [vmem:[#allocation21_spill] sm:$0xff]  ;;  %14007 = vmatpush1.bf16.msra.mxu1 %v25822_v15  ;;  %v20623_v32 = vpop.f32.mrb[5].mxu0  ;;  %v25829_v59 = vld [vmem:[#allocation23_spill] sm:$0xff] }
 0x365   : > { %25813 = vst [vmem:[#allocation49_spill] sm:$0xff] %v20603_v36  ;;  %v20617_v61 = vpack.c.bf16 %v25819_v40, %v25818_v47  ;;  %13889 = vmatprep.subr.bf16.mxu0 %v25821_v57  ;;  %25823 = vst [vmem:[#allocation59_spill] sm:$0xff] %v20621_v48  ;;  %v25825_v36 = vld [vmem:[#allocation76_spill] sm:$0xff]  ;;  %v25830_v47 = vld [vmem:[#allocation77_spill] sm:$0xff] }
 0x366   : > { %25824 = vst [vmem:[#allocation75_spill] sm:$0xff] %v20623_v32  ;;  %14009 = vmatprep.subr.bf16.mxu1 %v25825_v36  ;;  %25826 = vst [vmem:[#allocation21_spill] sm:$0xff] %v20626_v43  ;;  %13891 = vmatpush1.bf16.msra.mxu0 %v25827_v30  ;;  %v25831_v40 = vld [vmem:[#allocation79_spill] sm:$0xff]  ;;  %v25832_v57 = vld [vmem:[#allocation42_spill] sm:$0xff] }
 0x367   : > { %25820 = vst [vmem:[#allocation58_spill] sm:$0xff] %v20617_v61  ;;  %25828 = vst [vmem:[#allocation57_spill] sm:$0xff] %v20629_v20  ;;  %13893 = vmatprep.subr.bf16.mxu0 %v25829_v59  ;;  %v25833_v15 = vld [vmem:[#allocation41_spill] sm:$0xff]  ;;  %v25850_v30 = vld [vmem:[#allocation24_spill] sm:$0xff] }
 0x368   : > { %14011 = vmatpush1.bf16.msra.mxu1 %v25830_v47  ;;  %v25852_v36 = vld [vmem:[#allocation74_spill] sm:$0xff] }
 0x369   : > { %14013 = vmatprep.subr.bf16.mxu1 %v25831_v40  ;;  %v25855_v40 = vld [vmem:[#allocation93_spill] sm:$0xff] }
 0x36a   : > { %13895 = vmatpush1.bf16.msra.mxu0 %v25832_v57  ;;  %v25856_v57 = vand.u32 4294901760, %v25855_v40  ;;  %v25875_v40 = vld [vmem:[#allocation69_spill] sm:$0xff] }
 0x36b   : > { %13897 = vmatprep.subr.bf16.mxu0 %v25688_v51  ;;  %v25840_v51 = vld [vmem:[#allocation61_spill] sm:$0xff] }
 0x36c   : > { %14015 = vmatpush1.bf16.msra.mxu1 %v25833_v15  ;;  %v25857_v15 = vld [vmem:[#allocation10_spill] sm:$0xff] }
 0x36d   : > { %14017 = vmatprep.subr.bf16.mxu1 %v25695_v62  ;;  %7460 = vmatmul.mubr.f32.vlgmr.msra.gmra.mrb[8].mxu0 %v25646_v34  ;;  %v25842_v62 = vld [vmem:[#allocation94_spill] sm:$0xff] }
 0x36e   : > { %13899 = vmatpush1.bf16.msra.mxu0 %v25701_v5  ;;  %7550 = vmatprep.mubr.f32.mxu0 %v24295_v52  ;;  %v25834_v5 = vld [vmem:[#allocation65_spill] sm:$0xff] }
 0x36f   : > { %8159 = vmatmul.mubr.f32.vlgmr.msra.gmra.mrb[8].mxu1 %v25646_v34  ;;  %13901 = vmatprep.subr.bf16.mxu0 %v25707_v54  ;;  %v25835_v54 = vld [vmem:[#allocation25_spill] sm:$0xff] }
 0x370   : > { %14019 = vmatpush1.bf16.msra.mxu1 %v25712_v1  ;;  %8249 = vmatprep.mubr.f32.mxu1 %v24295_v52 }
 0x371   : > { %14021 = vmatprep.subr.bf16.mxu1 %v25716_v8  ;;  %v25836_v8 = vand.u32 4294901760, %v25835_v54  ;;  %v25860_v54 = vld [vmem:[#allocation60_spill] sm:$0xff] }
 0x372   : > { %13903 = vmatpush1.bf16.msra.mxu0 %v25721_v33  ;;  %v25837_v33 = vld [vmem:[#allocation95_spill] sm:$0xff] }
 0x373   : > { %13905 = vmatprep.subr.bf16.mxu0 %v25727_v56  ;;  %v25838_v56 = vand.u32 4294901760, %v25837_v33  ;;  %v25862_v33 = vld [vmem:[#allocation9_spill] sm:$0xff] }
 0x374   : > { %14023 = vmatpush1.bf16.msra.mxu1 %v25730_v44  ;;  %v25843_v44 = vand.u32 4294901760, %v25842_v62  ;;  %v25867_v62 = vld [vmem:[#allocation35_spill] sm:$0xff] }
 0x375   : > { %14025 = vmatprep.subr.bf16.mxu1 %v25732_v27  ;;  %v20660_v1 = vpack.c.bf16 %v25838_v56, %v25836_v8  ;;  %v25861_v8 = vand.u32 4294901760, %v25860_v54  ;;  %v25863_v56 = vand.u32 4294901760, %v25862_v33 }
 0x376   : > { %13907 = vmatpush1.bf16.msra.mxu0 %v25734_v29 }
 0x377   : > { %13909 = vmatprep.subr.bf16.mxu0 %v25735_v16  ;;  %25839 = vst [vmem:[#allocation76_spill] sm:$0xff] %v20660_v1  ;;  %v25841_v16 = vand.u32 4294901760, %v25840_v51  ;;  %v20697_v51 = vpack.c.bf16 %v25863_v56, %v25861_v8  ;;  %v25880_v8 = vld [vmem:[#allocation51_spill] sm:$0xff] }
 0x378   : > { %14027 = vmatpush1.bf16.msra.mxu1 %v25834_v5  ;;  %v25881_v33 = vand.u32 4294901760, %v25880_v8 }
 0x379   : > { %14029 = vmatprep.subr.bf16.mxu1 %v25745_v53  ;;  %v20668_v27 = vpack.c.bf16 %v25843_v44, %v25841_v16  ;;  %v25845_v53 = vld [vmem:[#allocation16_spill] sm:$0xff]  ;;  %25864 = vst [vmem:[#allocation42_spill] sm:$0xff] %v20697_v51  ;;  %v25865_v16 = vld [vmem:[#allocation50_spill] sm:$0xff]  ;;  %v25868_v44 = vand.u32 4294901760, %v25867_v62  ;;  %v25885_v62 = vld [vmem:[#allocation11_spill] sm:$0xff] }
 0x37a   : > { %13911 = vmatpush1.bf16.msra.mxu0 %v25750_v39  ;;  %v25846_v39 = vand.u32 4294901760, %v25845_v53 }
 0x37b   : > { %13913 = vmatprep.subr.bf16.mxu0 %v25754_v24  ;;  %25844 = vst [vmem:[#allocation78_spill] sm:$0xff] %v20668_v27  ;;  %v25847_v24 = vld [vmem:[#allocation83_spill] sm:$0xff] }
 0x37c   : > { %14031 = vmatpush1.bf16.msra.mxu1 %v25755_v50  ;;  %v25848_v29 = vand.u32 4294901760, %v25847_v24  ;;  %v25851_v50 = vand.u32 4294901760, %v25850_v30  ;;  %v25872_v30 = vand.u32 4294901760, %v20103_v55 }
 0x37d   : > { %14033 = vmatprep.subr.bf16.mxu1 %v25762_v26  ;;  %v25853_v26 = vand.u32 4294901760, %v25852_v36  ;;  %v25873_v36 = vld [vmem:[#allocation67_spill] sm:$0xff] }
 0x37e   : > { %13915 = vmatpush1.bf16.msra.mxu0 %v19884_v2  ;;  %v20675_v59 = vpack.c.bf16 %v25848_v29, %v25846_v39  ;;  %v25858_v2 = vand.u32 4294901760, %v25857_v15  ;;  %v25870_v39 = vld [vmem:[#allocation84_spill] sm:$0xff] }
 0x37f   : > { %14037 = vmatprep.subr.bf16.mxu0 %v20660_v1  ;;  %v20682_v47 = vpack.c.bf16 %v25853_v26, %v25851_v50  ;;  %v25871_v24 = vand.u32 4294901760, %v25870_v39  ;;  %v8368_v50 = vsub.f32 %v20103_v55, %v25872_v30  ;;  %v25874_v26 = vand.u32 4294901760, %v25873_v36  ;;  %v25888_v30 = vld [vmem:[#allocation63_spill] sm:$0xff]  ;;  %v25925_v1 = vld [vmem:[#allocation104_spill] sm:$0xff] }
 0x380   : > { %25849 = vst [vmem:[#allocation23_spill] sm:$0xff] %v20675_v59  ;;  %14035 = vmatpush1.bf16.msra.mxu1 %v25771_v31  ;;  %v20689_v5 = vpack.c.bf16 %v25858_v2, %v25856_v57  ;;  %v25866_v31 = vand.u32 4294901760, %v25865_v16  ;;  %v25876_v57 = vand.u32 4294901760, %v25875_v40  ;;  %v25878_v2 = vld [vmem:[#allocation46_spill] sm:$0xff]  ;;  %v25883_v16 = vld [vmem:[#allocation68_spill] sm:$0xff]  ;;  %v25889_v36 = vand.u32 4294901760, %v25888_v30 }
 0x381   : > { %25854 = vst [vmem:[#allocation77_spill] sm:$0xff] %v20682_v47  ;;  %7552 = vmatmul.mubr.f32.vlgmr.msra.gmra.mrb[8].mxu0 %v25646_v34  ;;  %14157 = vmatprep.subr.bf16.mxu1 %v20668_v27  ;;  %v8356_v29 = vsub.f32 %v25870_v39, %v25871_v24  ;;  %v25879_v54 = vand.u32 4294901760, %v25878_v2  ;;  %v25893_v2 = vld [vmem:[#allocation70_spill] sm:$0xff]  ;;  %v25901_v30 = vld [vmem:[#allocation81_spill] sm:$0xff] }
 0x382   : > { %25859 = vst [vmem:[#allocation79_spill] sm:$0xff] %v20689_v5  ;;  %14039 = vmatpush1.bf16.msra.mxu0 %v20675_v59  ;;  %v20704_v53 = vpack.c.bf16 %v25868_v44, %v25866_v31  ;;  %8341 = vmatprep.mubr.f32.mxu0 %v24295_v52  ;;  %v20719_v15 = vpack.c.bf16 %v25876_v57, %v25874_v26  ;;  %v25884_v31 = vand.u32 4294901760, %v25883_v16  ;;  %v25886_v44 = vand.u32 4294901760, %v25885_v62  ;;  %v25890_v26 = vld [vmem:[#allocation89_spill] sm:$0xff] }
 0x383   : > { %8251 = vmatmul.mubr.f32.vlgmr.msra.gmra.mrb[8].mxu1 %v25646_v34  ;;  %14041 = vmatprep.subr.bf16.mxu0 %v20682_v47  ;;  %v20726_v56 = vpack.c.bf16 %v25881_v33, %v25879_v54  ;;  %v25891_v40 = vand.u32 4294901760, %v25890_v26  ;;  %v25894_v8 = vand.u32 4294901760, %v25893_v2  ;;  %v25895_v54 = vld [vmem:[#allocation90_spill] sm:$0xff]  ;;  %v25898_v16 = vand.u32 4294901760, %v20119_v23  ;;  %v25899_v62 = vld [vmem:[#allocation97_spill] sm:$0xff] }
 0x384   : > { %25869 = vst [vmem:[#allocation41_spill] sm:$0xff] %v20704_v53  ;;  %25877 = vst [vmem:[#allocation65_spill] sm:$0xff] %v20719_v15  ;;  %14159 = vmatpush1.bf16.msra.mxu1 %v20689_v5  ;;  %v20732_v24 = vpack.c.bf16 %v25886_v44, %v25884_v31  ;;  %9040 = vmatprep.mubr.f32.mxu1 %v24295_v52  ;;  %v25896_v33 = vand.u32 4294901760, %v25895_v54  ;;  %v25900_v44 = vand.u32 4294901760, %v25899_v62  ;;  %v25902_v26 = vand.u32 4294901760, %v25901_v30  ;;  %v25915_v47 = vld [vmem:[#allocation30_spill] sm:$0xff] }
 0x385   : > { %25882 = vst [vmem:[#allocation25_spill] sm:$0xff] %v20726_v56  ;;  %14161 = vmatprep.subr.bf16.mxu1 %v20697_v51  ;;  %v20740_v57 = vpack.c.bf16 %v25891_v40, %v25889_v36  ;;  %v9055_v31 = vsub.f32 %v20119_v23, %v25898_v16  ;;  %v25903_v36 = vld [vmem:[#allocation66_spill] sm:$0xff]  ;;  %v8357_v2 = vand.u32 4294901760, %v8356_v29  ;;  %v8369_v54 = vand.u32 4294901760, %v8368_v50  ;;  %v25908_v16 = vld [vmem:[#allocation33_spill] sm:$0xff]  ;;  %v25910_v51 = vld [vmem:[#allocation39_spill] sm:$0xff] }
 0x386   : > { %25887 = vst [vmem:[#allocation95_spill] sm:$0xff] %v20732_v24  ;;  %v20746_v20 = vpack.c.bf16 %v25896_v33, %v25894_v8  ;;  %v9067_v43 = vsub.f32 %v25899_v62, %v25900_v44  ;;  %14043 = vmatpush1.bf16.msra.mxu0 %v20704_v53  ;;  %v25904_v40 = vand.u32 4294901760, %v25903_v36  ;;  %v25906_v8 = vld [vmem:[#allocation98_spill] sm:$0xff]  ;;  %v25909_v61 = vand.u32 4294901760, %v25908_v16  ;;  %v25913_v53 = vld [vmem:[#allocation40_spill] sm:$0xff]  ;;  %v25918_v29 = vld [vmem:[#allocation13_spill] sm:$0xff] }
 0x387   : > { %25892 = vst [vmem:[#allocation61_spill] sm:$0xff] %v20740_v57  ;;  %v25907_v33 = vand.u32 4294901760, %v25906_v8  ;;  %14045 = vmatprep.subr.bf16.mxu0 %v20719_v15  ;;  %v25911_v44 = vand.u32 4294901760, %v25910_v51  ;;  %v25914_v30 = vand.u32 4294901760, %v25913_v53  ;;  %v25916_v36 = vand.u32 4294901760, %v25915_v47 }
 0x388   : > { %25897 = vst [vmem:[#allocation94_spill] sm:$0xff] %v20746_v20  ;;  %v20759_v32 = vpack.c.bf16 %v25904_v40, %v25902_v26  ;;  %v25919_v50 = vand.u32 4294901760, %v25918_v29  ;;  %v25920_v40 = vld [vmem:[#allocation102_spill] sm:$0xff]  ;;  %v25926_v16 = vand.u32 4294901760, %v25925_v1  ;;  %14163 = vmatpush1.bf16.msra.mxu1 %v20726_v56  ;;  %v25930_v47 = vand.u32 4294901760, %v20362_v58 }
 0x389   : > { %v8362_v48 = vsub.f32 %v25906_v8, %v25907_v33  ;;  %v20769_v5 = vpack.c.bf16 %v25911_v44, %v25909_v61  ;;  %v20775_v26 = vpack.c.bf16 %v25916_v36, %v25914_v30  ;;  %v25921_v59 = vand.u32 4294901760, %v25920_v40  ;;  %v25923_v33 = vld [vmem:[#allocation103_spill] sm:$0xff]  ;;  %v25928_v61 = vld [vmem:[#allocation105_spill] sm:$0xff]  ;;  %14165 = vmatprep.subr.bf16.mxu1 %v20732_v24  ;;  %v25944_v24 = vld [vmem:[#allocation100_spill] sm:$0xff] }
 0x38a   : > { %25905 = vst [vmem:[#allocation16_spill] sm:$0xff] %v20759_v32  ;;  %v25924_v15 = vand.u32 4294901760, %v25923_v33  ;;  %v25929_v51 = vand.u32 4294901760, %v25928_v61  ;;  %v25932_v44 = vand.u32 4294901760, %v20399_v41  ;;  %v25933_v30 = vand.u32 4294901760, %v20377_v42  ;;  %14047 = vmatpush1.bf16.msra.mxu0 %v20740_v57  ;;  %v25951_v57 = vld [vmem:[#allocation91_spill] sm:$0xff] }
 0x38b   : > { %25912 = vst [vmem:[#allocation83_spill] sm:$0xff] %v20769_v5  ;;  %25917 = vst [vmem:[#allocation24_spill] sm:$0xff] %v20775_v26  ;;  %v20781_v27 = vpack.c.bf16 %v25921_v59, %v25919_v50  ;;  %v25934_v36 = vand.u32 4294901760, %v20134_v37  ;;  %v25937_v58 = vand.u32 4294901760, %v20432_v10  ;;  %v25938_v40 = vand.u32 4294901760, %v20446_v4  ;;  %14049 = vmatprep.subr.bf16.mxu0 %v20759_v32 }
 0x38c   : > { %v20787_v34 = vpack.c.bf16 %v25926_v16, %v25924_v15  ;;  %v20794_v53 = vpack.c.bf16 %v25930_v47, %v25929_v51  ;;  %v20800_v59 = vpack.c.bf16 %v25933_v30, %v25932_v44  ;;  %v25935_v15 = vld [vmem:[#allocation64_spill] sm:$0xff]  ;;  %v9056_v41 = vand.u32 4294901760, %v9055_v31  ;;  %v25942_v30 = vld [vmem:[#allocation99_spill] sm:$0xff]  ;;  %14167 = vmatpush1.bf16.msra.mxu1 %v20746_v20 }
 0x38d   : > { %25922 = vst [vmem:[#allocation74_spill] sm:$0xff] %v20781_v27  ;;  %v8374_v1 = vsub.f32 %v20134_v37, %v25934_v36  ;;  %v25936_v29 = vand.u32 4294901760, %v25935_v15  ;;  %v20813_v33 = vpack.c.bf16 %v25938_v40, %v25937_v58  ;;  %v9068_v42 = vand.u32 4294901760, %v9067_v43  ;;  %v25940_v16 = vld [vmem:[#allocation8_spill] sm:$0xff]  ;;  %14169 = vmatprep.subr.bf16.mxu1 %v20769_v5 }
 0x38e   : > { %25927 = vst [vmem:[#allocation93_spill] sm:$0xff] %v20787_v34  ;;  %25931 = vst [vmem:[#allocation10_spill] sm:$0xff] %v20794_v53  ;;  %v25941_v61 = vand.u32 4294901760, %v25940_v16  ;;  %v14056_v47 = vpack.c.bf16 %v8369_v54, %v8357_v2  ;;  %v8363_v44 = vand.u32 4294901760, %v8362_v48  ;;  %v25943_v36 = vand.u32 4294901760, %v25942_v30  ;;  %14051 = vmatpush1.bf16.msra.mxu0 %v20775_v26 }
 0x38f   : > { %v9061_v50 = vsub.f32 %v25935_v15, %v25936_v29  ;;  %25939 = vst [vmem:[#allocation60_spill] sm:$0xff] %v20813_v33  ;;  %v25945_v10 = vand.u32 4294901760, %v25944_v24  ;;  %v25946_v43 = vand.u32 4294901760, %v20180_v35  ;;  %v25947_v58 = vand.u32 4294901760, %v20196_v60  ;;  %14053 = vmatprep.subr.bf16.mxu0 %v20787_v34 }
 0x390   : > { %v9073_v51 = vsub.f32 %v25940_v16, %v25941_v61  ;;  %v8380_v29 = vsub.f32 %v25942_v30, %v25943_v36  ;;  %v25948_v48 = vand.u32 4294901760, %v20201_v38  ;;  %v25949_v54 = vand.u32 4294901760, %v20206_v11  ;;  %14171 = vmatpush1.bf16.msra.mxu1 %v20781_v27  ;;  %v25964_v27 = vld [vmem:[#allocation31_spill] sm:$0xff] }
 0x391   : > { %v8392_v4 = vsub.f32 %v25944_v24, %v25945_v10  ;;  %v9079_v31 = vsub.f32 %v20180_v35, %v25946_v43  ;;  %v9091_v40 = vsub.f32 %v20196_v60, %v25947_v58  ;;  %v8375_v36 = vand.u32 4294901760, %v8374_v1  ;;  %14173 = vmatprep.subr.bf16.mxu1 %v20794_v53  ;;  %v25966_v53 = vld [vmem:[#allocation37_spill] sm:$0xff] }
 0x392   : > { %v8386_v2 = vsub.f32 %v20201_v38, %v25948_v48  ;;  %v8398_v61 = vsub.f32 %v20206_v11, %v25949_v54  ;;  %v9062_v10 = vand.u32 4294901760, %v9061_v50  ;;  %v25950_v32 = vand.u32 4294901760, %v20215_v12  ;;  %v25953_v38 = vld [vmem:[#allocation73_spill] sm:$0xff]  ;;  %v25961_v11 = vld [vmem:[#allocation12_spill] sm:$0xff]  ;;  %14055 = vmatpush1.bf16.msra.mxu0 %v20800_v59 }
 0x393   : > { %v25952_v56 = vand.u32 4294901760, %v25951_v57  ;;  %v14176_v60 = vpack.c.bf16 %v9068_v42, %v9056_v41  ;;  %v9074_v48 = vand.u32 4294901760, %v9073_v51  ;;  %v25954_v35 = vand.u32 4294901760, %v25953_v38  ;;  %14057 = vmatprep.subr.bf16.mxu0 %v14056_v47 }
 0x394   : > { %v9085_v43 = vsub.f32 %v20215_v12, %v25950_v32  ;;  %v25955_v20 = vand.u32 4294901760, %v20252_v49  ;;  %v8381_v50 = vand.u32 4294901760, %v8380_v29  ;;  %v8393_v32 = vand.u32 4294901760, %v8392_v4  ;;  %v25959_v29 = vld [vmem:[#allocation26_spill] sm:$0xff]  ;;  %14175 = vmatpush1.bf16.msra.mxu1 %v20813_v33 }
 0x395   : > { %v9097_v58 = vsub.f32 %v25951_v57, %v25952_v56  ;;  %v8404_v54 = vsub.f32 %v25953_v38, %v25954_v35  ;;  %v25956_v12 = vand.u32 4294901760, %v20257_v0  ;;  %v25957_v57 = vld [vmem:[#allocation15_spill] sm:$0xff]  ;;  %v9080_v42 = vand.u32 4294901760, %v9079_v31  ;;  %14177 = vmatprep.subr.bf16.mxu1 %v14176_v60 }
 0x396   : > { %v8416_v1 = vsub.f32 %v20252_v49, %v25955_v20  ;;  %v25958_v5 = vand.u32 4294901760, %v25957_v57  ;;  %v9092_v35 = vand.u32 4294901760, %v9091_v40  ;;  %v8387_v51 = vand.u32 4294901760, %v8386_v2 }
 0x397   : > { %v9103_v56 = vsub.f32 %v20257_v0, %v25956_v12  ;;  %v8399_v38 = vand.u32 4294901760, %v8398_v61  ;;  %v9086_v20 = vand.u32 4294901760, %v9085_v43  ;;  %v9098_v26 = vand.u32 4294901760, %v9097_v58 }
 0x398   : > { %v9115_v41 = vsub.f32 %v25957_v57, %v25958_v5  ;;  %v25960_v4 = vand.u32 4294901760, %v25959_v29  ;;  %v25962_v12 = vand.u32 4294901760, %v25961_v11  ;;  %v14058_v5 = vpack.c.bf16 %v8375_v36, %v8363_v44 }
 0x399   : > { %v8405_v34 = vand.u32 4294901760, %v8404_v54  ;;  %v8417_v31 = vand.u32 4294901760, %v8416_v1  ;;  %v25963_v40 = vand.u32 4294901760, %v20293_v14  ;;  %v14178_v61 = vpack.c.bf16 %v9074_v48, %v9062_v10 }
 0x39a   : > { %v8410_v49 = vsub.f32 %v25959_v29, %v25960_v4  ;;  %v8422_v0 = vsub.f32 %v25961_v11, %v25962_v12  ;;  %v9104_v43 = vand.u32 4294901760, %v9103_v56  ;;  %v9116_v58 = vand.u32 4294901760, %v9115_v41 }
 0x39b   : > { %v9109_v2 = vsub.f32 %v20293_v14, %v25963_v40  ;;  %v25965_v4 = vand.u32 4294901760, %v25964_v27  ;;  %v14060_v12 = vpack.c.bf16 %v8393_v32, %v8381_v50  ;;  %v14180_v11 = vpack.c.bf16 %v9092_v35, %v9080_v42  ;;  %v25969_v40 = vld [vmem:[#allocation28_spill] sm:$0xff] }
 0x39c   : > { %v25967_v44 = vand.u32 4294901760, %v25966_v53  ;;  %v25968_v54 = vand.u32 4294901760, %v20328_v45  ;;  %v14062_v10 = vpack.c.bf16 %v8399_v38, %v8387_v51  ;;  %v14182_v48 = vpack.c.bf16 %v9098_v26, %v9086_v20  ;;  %8347 = vmatmul.mubr.f32.vlgmr.msra.gmra.mrb[10].mxu0 %v25969_v40  ;;  %9046 = vmatmul.mubr.f32.vlgmr.msra.gmra.mrb[10].mxu1 %v25969_v40 }
 0x39d   : > { %v9121_v29 = vsub.f32 %v25964_v27, %v25965_v4  ;;  %v8411_v56 = vand.u32 4294901760, %v8410_v49  ;;  %v8423_v41 = vand.u32 4294901760, %v8422_v0  ;;  %v14064_v47 = vpack.c.bf16 %v8417_v31, %v8405_v34  ;;  %14059 = vmatpush1.bf16.msra.mxu0 %v14058_v5  ;;  %8517 = vmatprep.mubr.f32.mxu0 %v24295_v52 }
 0x39e   : > { %v8428_v36 = vsub.f32 %v25966_v53, %v25967_v44  ;;  %v8440_v1 = vsub.f32 %v20328_v45, %v25968_v54  ;;  %v9110_v50 = vand.u32 4294901760, %v9109_v2  ;;  %v25970_v32 = vand.u32 4294901760, %v20333_v63  ;;  %14061 = vmatprep.subr.bf16.mxu0 %v14060_v12  ;;  %14179 = vmatpush1.bf16.msra.mxu1 %v14178_v61 }
 0x39f   : > { %v25971_v35 = vand.u32 4294901760, %v20344_v19  ;;  %v14184_v44 = vpack.c.bf16 %v9116_v58, %v9104_v43  ;;  %v9122_v54 = vand.u32 4294901760, %v9121_v29  ;;  %v25972_v38 = vand.u32 4294901760, %v20349_v25  ;;  %9216 = vmatprep.mubr.f32.mxu1 %v24295_v52  ;;  %14181 = vmatprep.subr.bf16.mxu1 %v14180_v11 }
 0x3a0   : > { %v9127_v42 = vsub.f32 %v20333_v63, %v25970_v32  ;;  %v25973_v49 = vand.u32 4294901760, %v20357_v28  ;;  %v8429_v60 = vand.u32 4294901760, %v8428_v36  ;;  %v8441_v26 = vand.u32 4294901760, %v8440_v1 }
 0x3a1   : > { %v9139_v4 = vsub.f32 %v20344_v19, %v25971_v35  ;;  %v8434_v0 = vsub.f32 %v20349_v25, %v25972_v38  ;;  %v25974_v51 = vand.u32 4294901760, %v20388_v9  ;;  %v25975_v29 = vand.u32 4294901760, %v20393_v46  ;;  %14063 = vmatpush1.bf16.msra.mxu0 %v14062_v10 }
 0x3a2   : > { %v8446_v34 = vsub.f32 %v20357_v28, %v25973_v49  ;;  %v14066_v31 = vpack.c.bf16 %v8423_v41, %v8411_v56  ;;  %v25976_v2 = vand.u32 4294901760, %v20368_v22  ;;  %v25977_v58 = vand.u32 4294901760, %v20373_v6  ;;  %14065 = vmatprep.subr.bf16.mxu0 %v14064_v47  ;;  %14183 = vmatpush1.bf16.msra.mxu1 %v14182_v48 }
 0x3a3   : > { %v8452_v20 = vsub.f32 %v20388_v9, %v25974_v51  ;;  %v8464_v5 = vsub.f32 %v20393_v46, %v25975_v29  ;;  %v9128_v36 = vand.u32 4294901760, %v9127_v42  ;;  %v9140_v1 = vand.u32 4294901760, %v9139_v4  ;;  %14185 = vmatprep.subr.bf16.mxu1 %v14184_v44 }
 0x3a4   : > { %v9133_v43 = vsub.f32 %v20368_v22, %v25976_v2  ;;  %v9145_v12 = vsub.f32 %v20373_v6, %v25977_v58  ;;  %v25978_v32 = vand.u32 4294901760, %v20421_v21  ;;  %v25979_v61 = vand.u32 4294901760, %v20489_v7 }
 0x3a5   : > { %v8435_v41 = vand.u32 4294901760, %v8434_v0  ;;  %v8447_v38 = vand.u32 4294901760, %v8446_v34  ;;  %v25980_v49 = vand.u32 4294901760, %v20514_v18  ;;  %v25981_v29 = vand.u32 4294901760, %v20519_v13  ;;  %14067 = vmatpush1.bf16.msra.mxu0 %v14066_v31 }
 0x3a6   : > { %v9151_v35 = vsub.f32 %v20421_v21, %v25978_v32  ;;  %v9163_v56 = vsub.f32 %v20489_v7, %v25979_v61  ;;  %v14186_v42 = vpack.c.bf16 %v9122_v54, %v9110_v50  ;;  %v14068_v4 = vpack.c.bf16 %v8441_v26, %v8429_v60 }
 0x3a7   : > { %v8458_v51 = vsub.f32 %v20514_v18, %v25980_v49  ;;  %v8470_v11 = vsub.f32 %v20519_v13, %v25981_v29  ;;  %v8453_v2 = vand.u32 4294901760, %v8452_v20  ;;  %v8465_v58 = vand.u32 4294901760, %v8464_v5 }
 0x3a8   : > { %v9134_v32 = vand.u32 4294901760, %v9133_v43  ;;  %v9146_v40 = vand.u32 4294901760, %v9145_v12  ;;  %v25982_v10 = vand.u32 4294901760, %v20532_v17  ;;  %v25983_v34 = vand.u32 4294901760, %v20537_v3  ;;  %14069 = vmatprep.subr.bf16.mxu0 %v14068_v4  ;;  %14187 = vmatpush1.bf16.msra.mxu1 %v14186_v42 }
 0x3a9   : > { %v14188_v49 = vpack.c.bf16 %v9140_v1, %v9128_v36  ;;  %v9152_v33 = vand.u32 4294901760, %v9151_v35  ;;  %v9164_v29 = vand.u32 4294901760, %v9163_v56  ;;  %v14070_v47 = vpack.c.bf16 %v8447_v38, %v8435_v41  ;;  %v25986_v1 = vld [vmem:[#allocation72_spill] sm:$0xff] }
 0x3aa   : > { %v9157_v0 = vsub.f32 %v20532_v17, %v25982_v10  ;;  %v9169_v61 = vsub.f32 %v20537_v3, %v25983_v34  ;;  %v8459_v50 = vand.u32 4294901760, %v8458_v51  ;;  %v8471_v54 = vand.u32 4294901760, %v8470_v11  ;;  %v25993_v41 = vld [vmem:[#allocation92_spill] sm:$0xff]  ;;  %v25994_v51 = vld [vmem:[#allocation26_spill] sm:$0xff]  ;;  %v20967_v10 = vld [vmem:[%s15902_s27 + $0xd8] sm:$0xff] }
 0x3ab   : > { %v14072_v48 = vpack.c.bf16 %v8465_v58, %v8453_v2  ;;  %v14190_v60 = vpack.c.bf16 %v9146_v40, %v9134_v32  ;;  %14189 = vmatprep.subr.bf16.mxu1 %v14188_v49  ;;  %v14192_v5 = vpack.c.bf16 %v9164_v29, %v9152_v33  ;;  %14071 = vmatpush1.bf16.msra.mxu0 %v14070_v47  ;;  %v25995_v11 = vld [vmem:[#allocation12_spill] sm:$0xff]  ;;  %v20964_v32 = vld [vmem:[%s15902_s27 + $0x1c8] sm:$0xff]  ;;  %v21009_v49 = vld [vmem:[%s15902_s27 + $0x2d8] sm:$0xff] }
 0x3ac   : > { %v9158_v26 = vand.u32 4294901760, %v9157_v0  ;;  %v9170_v20 = vand.u32 4294901760, %v9169_v61  ;;  %v14074_v43 = vpack.c.bf16 %v8471_v54, %v8459_v50  ;;  %v14076_v44 = vpack.c.bf16 %v20103_v55, %v25870_v39  ;;  %v25984_v55 = vld [vmem:[#allocation6_spill] sm:$0xff]  ;;  %v25985_v39 = vld [vmem:[#allocation101_spill] sm:$0xff]  ;;  %25997 = vst [vmem:[#allocation50_spill] sm:$0xff] %v20964_v32  ;;  %25998 = vst [vmem:[#allocation35_spill] sm:$0xff] %v20967_v10 }
 0x3ad   : > { %14073 = vmatprep.subr.bf16.mxu0 %v14072_v48  ;;  %14191 = vmatpush1.bf16.msra.mxu1 %v14190_v60  ;;  %v14196_v31 = vpack.c.bf16 %v25899_v62, %v20119_v23  ;;  %v14078_v40 = vpack.c.bf16 %v20134_v37, %v25906_v8  ;;  %v14080_v33 = vpack.c.bf16 %v25944_v24, %v25942_v30  ;;  %v25987_v23 = vld [vmem:[#allocation88_spill] sm:$0xff]  ;;  %v25988_v62 = vld [vmem:[#allocation18_spill] sm:$0xff]  ;;  %v25989_v37 = vld [vmem:[#allocation73_spill] sm:$0xff] }
 0x3ae   : > { %v14194_v12 = vpack.c.bf16 %v9170_v20, %v9158_v26  ;;  %14193 = vmatprep.subr.bf16.mxu1 %v14192_v5  ;;  %v14198_v36 = vpack.c.bf16 %v25940_v16, %v25935_v15  ;;  %v14200_v35 = vpack.c.bf16 %v25986_v1, %v25985_v39  ;;  %v14082_v56 = vpack.c.bf16 %v25988_v62, %v25987_v23  ;;  %v25990_v24 = vld [vmem:[#allocation96_spill] sm:$0xff]  ;;  %v25992_v16 = vld [vmem:[#allocation91_spill] sm:$0xff]  ;;  %v20975_v0 = vld [vmem:[%s15902_s27 + $0xc0] sm:$0xff] }
 0x3af   : > { %14075 = vmatpush1.bf16.msra.mxu0 %v14074_v43  ;;  %v14084_v8 = vpack.c.bf16 %v25990_v24, %v25989_v37  ;;  %v25991_v15 = vld [vmem:[#allocation20_spill] sm:$0xff]  ;;  %v14204_v38 = vpack.c.bf16 %v25957_v57, %v25993_v41  ;;  %v14086_v42 = vpack.c.bf16 %v25995_v11, %v25994_v51  ;;  %v14088_v4 = vpack.c.bf16 %v20328_v45, %v25966_v53  ;;  %v20961_v57 = vld [vmem:[%s15902_s27 + $0xc8] sm:$0xff]  ;;  %v20972_v53 = vld [vmem:[%s15902_s27 + $0x1d8] sm:$0xff] }
 0x3b0   : > { %14077 = vmatprep.subr.bf16.mxu0 %v14076_v44  ;;  %v14202_v30 = vpack.c.bf16 %v25992_v16, %v25991_v15  ;;  %v14206_v2 = vpack.c.bf16 %v25964_v27, %v20293_v14  ;;  %v14208_v58 = vpack.c.bf16 %v20344_v19, %v20333_v63  ;;  %25996 = vst [vmem:[#allocation9_spill] sm:$0xff] %v20961_v57  ;;  %25999 = vst [vmem:[#allocation84_spill] sm:$0xff] %v20972_v53  ;;  %v20978_v14 = vld [vmem:[%s15902_s27 + $0x1c0] sm:$0xff]  ;;  %v21024_v50 = vld [vmem:[%s15902_s27 + $0x3d8] sm:$0xff] }
 0x3b1   : > { %14195 = vmatpush1.bf16.msra.mxu1 %v14194_v12  ;;  %v14090_v45 = vpack.c.bf16 %v20357_v28, %v20349_v25  ;;  %26000 = vst [vmem:[#allocation67_spill] sm:$0xff] %v20975_v0  ;;  %26001 = vst [vmem:[#allocation69_spill] sm:$0xff] %v20978_v14  ;;  %v14210_v19 = vpack.c.bf16 %v20373_v6, %v20368_v22  ;;  %v14092_v63 = vpack.c.bf16 %v20393_v46, %v20388_v9  ;;  %v20987_v28 = vld [vmem:[%s15902_s27 + $0xd0] sm:$0xff]  ;;  %v21027_v54 = vld [vmem:[%s15902_s27 + $0x2c0] sm:$0xff] }
 0x3b2   : > { %14197 = vmatprep.subr.bf16.mxu1 %v14196_v31  ;;  %8519 = vmatmul.mubr.f32.vlgmr.msra.gmra.mrb[10].mxu0 %v25984_v55  ;;  %v14212_v27 = vpack.c.bf16 %v20489_v7, %v20421_v21  ;;  %26002 = vst [vmem:[#allocation46_spill] sm:$0xff] %v20987_v28  ;;  %v20990_v25 = vld [vmem:[%s15902_s27 + $0x1d0] sm:$0xff]  ;;  %v14094_v34 = vpack.c.bf16 %v20519_v13, %v20514_v18  ;;  %v24006_v61 = vand.u32 4294901760, %v20961_v57  ;;  %v24003_v22 = vand.u32 4294901760, %v20964_v32  ;;  %v21003_v18 = vld [vmem:[%s15902_s27 + $0x2c8] sm:$0xff]  ;;  %v21030_v48 = vld [vmem:[%s15902_s27 + $0x3c0] sm:$0xff] }
 0x3b3   : > { %14079 = vmatpush1.bf16.msra.mxu0 %v14078_v40  ;;  %8629 = vmatprep.mubr.f32.mxu0 %v24295_v52  ;;  %26003 = vst [vmem:[#allocation51_spill] sm:$0xff] %v20990_v25  ;;  %v24001_v46 = vand.u32 4294901760, %v20967_v10  ;;  %v14214_v9 = vpack.c.bf16 %v20537_v3, %v20532_v17  ;;  %v24000_v6 = vand.u32 4294901760, %v20972_v53  ;;  %v23999_v21 = vand.u32 4294901760, %v20975_v0  ;;  %26004 = vst [vmem:[#allocation68_spill] sm:$0xff] %v21003_v18  ;;  %v21006_v13 = vld [vmem:[%s15902_s27 + $0x3c8] sm:$0xff] }
 0x3b4   : > { %9218 = vmatmul.mubr.f32.vlgmr.msra.gmra.mrb[10].mxu1 %v25984_v55  ;;  %14081 = vmatprep.subr.bf16.mxu0 %v14080_v33  ;;  %v23998_v7 = vand.u32 4294901760, %v20978_v14  ;;  %26005 = vst [vmem:[#allocation11_spill] sm:$0xff] %v21006_v13  ;;  %26006 = vst [vmem:[#allocation63_spill] sm:$0xff] %v21009_v49  ;;  %v21014_v29 = vsub.f32 %v20961_v57, %v24006_v61  ;;  %v21019_v17 = vsub.f32 %v20964_v32, %v24003_v22  ;;  %v21053_v43 = vld [vmem:[%s15902_s27 + $0x2d0] sm:$0xff]  ;;  %v21075_v23 = vld [vmem:[%s15902_s27 + $0x4c8] sm:$0xff] }
 0x3b5   : > { %14199 = vmatpush1.bf16.msra.mxu1 %v14198_v36  ;;  %9328 = vmatprep.mubr.f32.mxu1 %v24295_v52  ;;  %v23994_v3 = vand.u32 4294901760, %v20987_v28  ;;  %v23993_v47 = vand.u32 4294901760, %v20990_v25  ;;  %26008 = vst [vmem:[#allocation70_spill] sm:$0xff] %v21024_v50  ;;  %26009 = vst [vmem:[#allocation90_spill] sm:$0xff] %v21027_v54  ;;  %v21035_v60 = vsub.f32 %v20967_v10, %v24001_v46  ;;  %v23997_v12 = vand.u32 4294901760, %v21003_v18  ;;  %v21064_v33 = vld [vmem:[%s15902_s27 + $0x3d0] sm:$0xff] }
 0x3b6   : > { %14201 = vmatprep.subr.bf16.mxu1 %v14200_v35  ;;  %26007 = vst [vmem:[#allocation89_spill] sm:$0xff] %v21014_v29  ;;  %26010 = vst [vmem:[#allocation97_spill] sm:$0xff] %v21030_v48  ;;  %v21040_v26 = vsub.f32 %v20972_v53, %v24000_v6  ;;  %v21045_v20 = vsub.f32 %v20975_v0, %v23999_v21  ;;  %v21050_v5 = vsub.f32 %v20978_v14, %v23998_v7  ;;  %v21078_v62 = vld [vmem:[%s15902_s27 + $0x5c8] sm:$0xff]  ;;  %v21100_v16 = vld [vmem:[%s15902_s27 + $0x5d8] sm:$0xff] }
 0x3b7   : > { %14083 = vmatpush1.bf16.msra.mxu0 %v14082_v56  ;;  %26013 = vst [vmem:[#allocation98_spill] sm:$0xff] %v21053_v43  ;;  %v21058_v44 = vsub.f32 %v20987_v28, %v23994_v3  ;;  %v23995_v31 = vand.u32 4294901760, %v21006_v13  ;;  %v23992_v40 = vand.u32 4294901760, %v21009_v49  ;;  %26015 = vst [vmem:[#allocation39_spill] sm:$0xff] %v21064_v33  ;;  %v21069_v36 = vsub.f32 %v20990_v25, %v23993_v47  ;;  %v21081_v56 = vld [vmem:[%s15902_s27 + $0x4d8] sm:$0xff]  ;;  %v21106_v41 = vld [vmem:[%s15902_s27 + $0x5c0] sm:$0xff] }
 0x3b8   : > { %14085 = vmatprep.subr.bf16.mxu0 %v14084_v8  ;;  %26011 = vst [vmem:[#allocation81_spill] sm:$0xff] %v21040_v26  ;;  %26012 = vst [vmem:[#allocation66_spill] sm:$0xff] %v21045_v20  ;;  %v23991_v39 = vand.u32 4294901760, %v21024_v50  ;;  %v23990_v1 = vand.u32 4294901760, %v21027_v54  ;;  %v23988_v35 = vand.u32 4294901760, %v21030_v48  ;;  %v21086_v37 = vsub.f32 %v21003_v18, %v23997_v12  ;;  %v21153_v47 = vld [vmem:[%s15902_s27 + $0x7c8] sm:$0xff] }
 0x3b9   : > { %14203 = vmatpush1.bf16.msra.mxu1 %v14202_v30  ;;  %26014 = vst [vmem:[#allocation33_spill] sm:$0xff] %v21058_v44  ;;  %26016 = vst [vmem:[#allocation40_spill] sm:$0xff] %v21069_v36  ;;  %v21091_v24 = vsub.f32 %v21006_v13, %v23995_v31  ;;  %v21096_v8 = vsub.f32 %v21009_v49, %v23992_v40  ;;  %v23989_v15 = vand.u32 4294901760, %v21053_v43  ;;  %v21103_v30 = vld [vmem:[%s15902_s27 + $0x4c0] sm:$0xff]  ;;  %v21150_v40 = vld [vmem:[%s15902_s27 + $0x6c8] sm:$0xff]  ;;  %v26078_v32 = vand.u32 4294901760, %v21019_v17 }
 0x3ba   : > { %14205 = vmatprep.subr.bf16.mxu1 %v14204_v38  ;;  %26017 = vst [vmem:[#allocation30_spill] sm:$0xff] %v21075_v23  ;;  %26018 = vst [vmem:[#allocation13_spill] sm:$0xff] %v21078_v62  ;;  %v26026_v38 = vld [vmem:[#allocation76_spill] sm:$0xff]  ;;  %v21112_v51 = vsub.f32 %v21024_v50, %v23991_v39  ;;  %v21117_v11 = vsub.f32 %v21027_v54, %v23990_v1  ;;  %v24010_v1 = vand.u32 4294901760, %v21103_v30  ;;  %v24013_v39 = vand.u32 4294901760, %v21106_v41  ;;  %v21156_v3 = vld [vmem:[%s15902_s27 + $0x6d8] sm:$0xff] }
 0x3bb   : > { %14087 = vmatpush1.bf16.msra.mxu0 %v14086_v42  ;;  %26019 = vst [vmem:[#allocation102_spill] sm:$0xff] %v21081_v56  ;;  %26020 = vst [vmem:[#allocation103_spill] sm:$0xff] %v21086_v37  ;;  %v21122_v42 = vsub.f32 %v21030_v48, %v23988_v35  ;;  %v26034_v35 = vld [vmem:[#allocation7_spill] sm:$0xff]  ;;  %v21177_v6 = vld [vmem:[%s15902_s27 + $0x7d8] sm:$0xff]  ;;  %v26060_v48 = vand.u32 4294901760, %v21150_v40 }
 0x3bc   : > { %14089 = vmatprep.subr.bf16.mxu0 %v14088_v4  ;;  %26021 = vst [vmem:[#allocation104_spill] sm:$0xff] %v21091_v24  ;;  %26022 = vst [vmem:[#allocation105_spill] sm:$0xff] %v21096_v8  ;;  %v23996_v4 = vand.u32 4294901760, %v21064_v33  ;;  %v26039_v31 = vld [vmem:[#allocation23_spill] sm:$0xff]  ;;  %v21180_v46 = vld [vmem:[%s15902_s27 + $0x6c0] sm:$0xff]  ;;  %v21198_v61 = vsub.f32 %v21106_v41, %v24013_v39 }
 0x3bd   : > { %14207 = vmatpush1.bf16.msra.mxu1 %v14206_v2  ;;  %26023 = vst [vmem:[#allocation64_spill] sm:$0xff] %v21100_v16  ;;  %26024 = vst [vmem:[#allocation8_spill] sm:$0xff] %v21103_v30  ;;  %v21126_v2 = vld [vmem:[%s15902_s27 + $0x4d0] sm:$0xff]  ;;  %v26045_v22 = vld [vmem:[#allocation77_spill] sm:$0xff]  ;;  %v21239_v54 = vsub.f32 %v21150_v40, %v26060_v48  ;;  %v26066_v48 = vand.u32 4294901760, %v21177_v6 }
 0x3be   : > { %14209 = vmatprep.subr.bf16.mxu1 %v14208_v58  ;;  %26025 = vst [vmem:[#allocation99_spill] sm:$0xff] %v21106_v41  ;;  %26027 = vst [vmem:[#allocation100_spill] sm:$0xff] %v21112_v51  ;;  %v21131_v58 = vsub.f32 %v21053_v43, %v23989_v15  ;;  %v24009_v15 = vand.u32 4294901760, %v21100_v16  ;;  %v21215_v21 = vld [vmem:[%s15902_s27 + $0x6d0] sm:$0xff]  ;;  %v21253_v50 = vld [vmem:[%s15902_s27 + $0x8d8] sm:$0xff] }
 0x3bf   : > { %14091 = vmatpush1.bf16.msra.mxu0 %v14090_v45  ;;  %26028 = vst [vmem:[#allocation15_spill] sm:$0xff] %v21117_v11  ;;  %26029 = vst [vmem:[#allocation31_spill] sm:$0xff] %v21122_v42  ;;  %v24002_v45 = vand.u32 4294901760, %v21075_v23  ;;  %v21218_v41 = vld [vmem:[%s15902_s27 + $0x7d0] sm:$0xff]  ;;  %v1158_v49 = vld [vmem:[%s15902_s27 + $0x9c0] sm:$0x7] }
 0x3c0   : > { %14093 = vmatprep.subr.bf16.mxu0 %v14092_v63  ;;  %26030 = vst [vmem:[#allocation37_spill] sm:$0xff] %v21126_v2  ;;  %26031 = vst [vmem:[#allocation101_spill] sm:$0xff] %v21131_v58  ;;  %v24005_v63 = vand.u32 4294901760, %v21081_v56  ;;  %v26065_v25 = vld [vmem:[#allocation65_spill] sm:$0xff]  ;;  %v26073_v0 = vld [vmem:[#allocation16_spill] sm:$0xff]  ;;  %v26084_v10 = vand.u32 4294901760, %v21253_v50 }
 0x3c1   : > { %14211 = vmatpush1.bf16.msra.mxu1 %v14210_v19  ;;  %v24004_v19 = vand.u32 4294901760, %v21078_v62  ;;  %26036 = vst [vmem:[#allocation18_spill] sm:$0xff] %v21150_v40  ;;  %26037 = vst [vmem:[#allocation73_spill] sm:$0xff] %v21153_v47  ;;  %v21260_v40 = vsub.f32 %v21177_v6, %v26066_v48  ;;  %v21293_v48 = vsel %vm1170_vm1, %v1158_v49, 0  ;;  %v1160_v53 = vld [vmem:[%s15902_s27 + $0x9d0] sm:$0x7] }
 0x3c2   : > { %14213 = vmatprep.subr.bf16.mxu1 %v14212_v27  ;;  %v21137_v27 = vld [vmem:[%s15902_s27 + $0x5d0] sm:$0xff]  ;;  %26038 = vst [vmem:[#allocation96_spill] sm:$0xff] %v21156_v3  ;;  %v21173_v7 = vsub.f32 %v21081_v56, %v24005_v63  ;;  %26043 = vst [vmem:[#allocation26_spill] sm:$0xff] %v21177_v6  ;;  %v21193_v63 = vsub.f32 %v21103_v30, %v24010_v1  ;;  %v26050_v56 = vld [vmem:[#allocation79_spill] sm:$0xff]  ;;  %v26063_v30 = vand.u32 4294901760, %v21156_v3 }
 0x3c3   : > { %14095 = vmatpush1.bf16.msra.mxu0 %v14094_v34  ;;  %26032 = vst [vmem:[#allocation72_spill] sm:$0xff] %v21137_v27  ;;  %v26033_v34 = vld [vmem:[#allocation78_spill] sm:$0xff]  ;;  %v21168_v12 = vsub.f32 %v21078_v62, %v24004_v19  ;;  %26044 = vst [vmem:[#allocation12_spill] sm:$0xff] %v21180_v46  ;;  %v21188_v19 = vsub.f32 %v21100_v16, %v24009_v15  ;;  %v26051_v15 = vand.u32 4294901760, %v21126_v2  ;;  %v26055_v43 = vand.u32 4294901760, %v21137_v27  ;;  %v21229_v16 = vld [vmem:[%s15902_s27 + $0x8c8] sm:$0xff] }
 0x3c4   : > { %14097 = vmatprep.subr.bf16.mxu0 %v26026_v38  ;;  %26042 = vst [vmem:[#allocation92_spill] sm:$0xff] %v21173_v7  ;;  %26047 = vst [vmem:[#allocation78_spill] sm:$0xff] %v21193_v63  ;;  %v26083_v57 = vld [vmem:[#allocation83_spill] sm:$0xff] }
 0x3c5   : > { %14215 = vmatpush1.bf16.msra.mxu1 %v14214_v9  ;;  %v21144_v9 = vsub.f32 %v21064_v33, %v23996_v4  ;;  %v21163_v4 = vsub.f32 %v21075_v23, %v24002_v45  ;;  %26041 = vst [vmem:[#allocation91_spill] sm:$0xff] %v21168_v12  ;;  %v1159_v45 = vld [vmem:[%s15902_s27 + $0x9c8] sm:$0x7]  ;;  %26046 = vst [vmem:[#allocation76_spill] sm:$0xff] %v21188_v19  ;;  %v21209_v1 = vsub.f32 %v21126_v2, %v26051_v15  ;;  %v26054_v33 = vld [vmem:[#allocation42_spill] sm:$0xff] }
 0x3c6   : > { %14217 = vmatprep.subr.bf16.mxu1 %v26033_v34  ;;  %8632 = vmatmul.mubr.f32.vlgmr.msra.gmra.mrb[10].mxu0 %v26034_v35  ;;  %26048 = vst [vmem:[#allocation23_spill] sm:$0xff] %v21198_v61  ;;  %26052 = vst [vmem:[#allocation79_spill] sm:$0xff] %v21215_v21  ;;  %v21224_v62 = vsub.f32 %v21137_v27, %v26055_v43  ;;  %v21232_v39 = vsel %vm1170_vm1, %v1159_v45, 0  ;;  %v1161_v2 = vld [vmem:[%s15902_s27 + $0x9d8] sm:$0x7]  ;;  %v26062_v43 = vand.u32 4294901760, %v21153_v47 }
 0x3c7   : > { %26035 = vst [vmem:[#allocation88_spill] sm:$0xff] %v21144_v9  ;;  %14099 = vmatpush1.bf16.msra.mxu0 %v26039_v31  ;;  %8722 = vmatprep.mubr.f32.mxu0 %v24295_v52  ;;  %26040 = vst [vmem:[#allocation20_spill] sm:$0xff] %v21163_v4  ;;  %v26059_v23 = vld [vmem:[#allocation41_spill] sm:$0xff]  ;;  %v21249_v15 = vsub.f32 %v21156_v3, %v26063_v30  ;;  %v24036_v30 = vand.u32 4294901760, %v21215_v21  ;;  %v21278_v6 = vsel %vm1170_vm1, %v1161_v2, 0  ;;  %v26075_v49 = vand.u32 4294901760, %v21232_v39 }
 0x3c8   : > { %9331 = vmatmul.mubr.f32.vlgmr.msra.gmra.mrb[10].mxu1 %v26034_v35  ;;  %14101 = vmatprep.subr.bf16.mxu0 %v26045_v22  ;;  %v21202_v35 = vld [vmem:[%s15902_s27 + $0x7c0] sm:$0xff]  ;;  %26053 = vst [vmem:[#allocation106_spill] sm:$0xff] %v21218_v41  ;;  %26056 = vst [vmem:[#allocation42_spill] sm:$0xff] %v21224_v62  ;;  %v21244_v27 = vsub.f32 %v21153_v47, %v26062_v43  ;;  %v26067_v43 = vand.u32 4294901760, %v21180_v46  ;;  %v26068_v45 = vld [vmem:[#allocation25_spill] sm:$0xff] }
 0x3c9   : > { %26049 = vst [vmem:[#allocation77_spill] sm:$0xff] %v21202_v35  ;;  %14219 = vmatpush1.bf16.msra.mxu1 %v26050_v56  ;;  %9421 = vmatprep.mubr.f32.mxu1 %v24295_v52  ;;  %26057 = vst [vmem:[#allocation107_spill] sm:$0xff] %v21229_v16  ;;  %v26069_v28 = vand.u32 4294901760, %v21202_v35  ;;  %v21284_v3 = vsub.f32 %v21215_v21, %v24036_v30  ;;  %v26072_v2 = vld [vmem:[#allocation61_spill] sm:$0xff]  ;;  %v21309_v18 = vsub.f32 %v21232_v39, %v26075_v49  ;;  %v26076_v30 = vld [vmem:[#allocation94_spill] sm:$0xff] }
 0x3ca   : > { %14221 = vmatprep.subr.bf16.mxu1 %v26054_v33  ;;  %26058 = vst [vmem:[#allocation108_spill] sm:$0xff] %v21232_v39  ;;  %26061 = vst [vmem:[#allocation41_spill] sm:$0xff] %v21239_v54  ;;  %v21265_v47 = vsub.f32 %v21180_v46, %v26067_v43  ;;  %v26070_v43 = vld [vmem:[#allocation95_spill] sm:$0xff]  ;;  %v26071_v46 = vand.u32 4294901760, %v21218_v41  ;;  %v21315_v21 = vld [vmem:[%s15902_s27 + $0x8c0] sm:$0xff]  ;;  %v26080_v39 = vand.u32 4294901760, %v21035_v60 }
 0x3cb   : > { %14103 = vmatpush1.bf16.msra.mxu0 %v26059_v23  ;;  %26064 = vst [vmem:[#allocation109_spill] sm:$0xff] %v21253_v50  ;;  %v21273_v13 = vsub.f32 %v21202_v35, %v26069_v28  ;;  %v26081_v35 = vand.u32 4294901760, %v21040_v26  ;;  %v26088_v26 = vld [vmem:[#allocation24_spill] sm:$0xff] }
 0x3cc   : > { %14105 = vmatprep.subr.bf16.mxu0 %v26065_v25  ;;  %v21289_v28 = vsub.f32 %v21218_v41, %v26071_v46  ;;  %v26074_v46 = vand.u32 4294901760, %v21229_v16 }
 0x3cd   : > { %14223 = vmatpush1.bf16.msra.mxu1 %v26068_v45  ;;  %v21330_v14 = vpack.c.bf16 %v26081_v35, %v26080_v39  ;;  %v21348_v39 = vld [vmem:[%s15902_s27 + $0x8d0] sm:$0xff]  ;;  %v26104_v35 = vand.u32 4294901760, %v21131_v58 }
 0x3ce   : > { %14225 = vmatprep.subr.bf16.mxu1 %v26070_v43  ;;  %v21304_v41 = vsub.f32 %v21229_v16, %v26074_v46  ;;  %v26077_v16 = vand.u32 4294901760, %v21014_v29  ;;  %v21337_v46 = vsub.f32 %v21253_v50, %v26084_v10  ;;  %v26089_v10 = vand.u32 4294901760, %v21058_v44  ;;  %v26107_v44 = vld [vmem:[#allocation52_spill] sm:$0xff] }
 0x3cf   : > { %14107 = vmatpush1.bf16.msra.mxu0 %v26072_v2  ;;  %26082 = vst [vmem:[#allocation25_spill] sm:$0xff] %v21330_v14  ;;  %v26090_v29 = vand.u32 4294901760, %v21069_v36  ;;  %v26105_v14 = vand.u32 4294901760, %v21144_v9 }
 0x3d0   : > { %14109 = vmatprep.subr.bf16.mxu0 %v26073_v0  ;;  %v21324_v49 = vpack.c.bf16 %v26078_v32, %v26077_v16  ;;  %v26085_v32 = vand.u32 4294901760, %v21045_v20  ;;  %v26086_v16 = vand.u32 4294901760, %v21050_v5  ;;  %v26092_v20 = vld [vmem:[#allocation93_spill] sm:$0xff] }
 0x3d1   : > { %14227 = vmatpush1.bf16.msra.mxu1 %v26076_v30  ;;  %v21357_v50 = vpack.c.bf16 %v26090_v29, %v26089_v10  ;;  %v26093_v30 = vld [vmem:[#allocation74_spill] sm:$0xff]  ;;  %v26094_v29 = vand.u32 4294901760, %v21086_v37  ;;  %v26095_v10 = vand.u32 4294901760, %v21091_v24  ;;  %v26101_v37 = vand.u32 4294901760, %v21117_v11 }
 0x3d2   : > { %26079 = vst [vmem:[#allocation65_spill] sm:$0xff] %v21324_v49  ;;  %14229 = vmatprep.subr.bf16.mxu1 %v26083_v57  ;;  %v21344_v49 = vpack.c.bf16 %v26086_v16, %v26085_v32  ;;  %v21362_v16 = vsel %vm1170_vm1, %v1160_v53, 0  ;;  %v26097_v32 = vand.u32 4294901760, %v21096_v8  ;;  %v26098_v53 = vand.u32 4294901760, %v21112_v51 }
 0x3d3   : > { %14111 = vmatpush1.bf16.msra.mxu0 %v26088_v26  ;;  %26091 = vst [vmem:[#allocation61_spill] sm:$0xff] %v21357_v50  ;;  %v21373_v50 = vpack.c.bf16 %v26095_v10, %v26094_v29  ;;  %v26102_v24 = vand.u32 4294901760, %v21122_v42  ;;  %v26116_v10 = vld [vmem:[#allocation56_spill] sm:$0xff] }
 0x3d4   : > { %26087 = vst [vmem:[#allocation95_spill] sm:$0xff] %v21344_v49  ;;  %14113 = vmatprep.subr.bf16.mxu0 %v26092_v20  ;;  %v21379_v36 = vpack.c.bf16 %v26098_v53, %v26097_v32  ;;  %v26100_v49 = vld [vmem:[#allocation10_spill] sm:$0xff]  ;;  %v26109_v53 = vld [vmem:[#allocation60_spill] sm:$0xff]  ;;  %v26117_v32 = vld [vmem:[#allocation27_spill] sm:$0xff] }
 0x3d5   : > { %14231 = vmatpush1.bf16.msra.mxu1 %v26093_v30  ;;  %26096 = vst [vmem:[#allocation16_spill] sm:$0xff] %v21373_v50  ;;  %v21389_v29 = vpack.c.bf16 %v26102_v24, %v26101_v37  ;;  %v26108_v50 = vand.u32 4294901760, %v21278_v6  ;;  %v26114_v24 = vand.u32 4294901760, %v21188_v19 }
 0x3d6   : > { %26099 = vst [vmem:[#allocation83_spill] sm:$0xff] %v21379_v36  ;;  %14233 = vmatprep.subr.bf16.mxu1 %v26100_v49  ;;  %v21399_v36 = vpack.c.bf16 %v26105_v14, %v26104_v35  ;;  %v26110_v35 = vand.u32 4294901760, %v21163_v4  ;;  %v26119_v4 = vand.u32 4294901760, %v21293_v48 }
 0x3d7   : > { %26103 = vst [vmem:[#allocation24_spill] sm:$0xff] %v21389_v29  ;;  %14115 = vmatpush1.bf16.msra.mxu0 %v20800_v59  ;;  %v21405_v37 = vsub.f32 %v21278_v6, %v26108_v50  ;;  %v26113_v50 = vand.u32 4294901760, %v21173_v7  ;;  %v26118_v29 = vand.u32 4294901760, %v21315_v21 }
 0x3d8   : > { %26106 = vst [vmem:[#allocation93_spill] sm:$0xff] %v21399_v36  ;;  %14117 = vmatprep.subr.bf16.mxu0 %v26107_v44  ;;  %v26111_v44 = vand.u32 4294901760, %v21168_v12 }
 0x3d9   : > { %14235 = vmatpush1.bf16.msra.mxu1 %v26109_v53  ;;  %v21423_v9 = vpack.c.bf16 %v26114_v24, %v26113_v50  ;;  %v21430_v14 = vsub.f32 %v21315_v21, %v26118_v29  ;;  %v26123_v50 = vld [vmem:[#allocation17_spill] sm:$0xff] }
 0x3da   : > { %v21417_v36 = vpack.c.bf16 %v26111_v44, %v26110_v35  ;;  %14237 = vmatprep.subr.bf16.mxu1 %v26116_v10  ;;  %8726 = vmatmul.mubr.f32.vlgmr.msra.gmra.mrb[10].mxu0 %v26117_v32  ;;  %v21435_v35 = vsub.f32 %v21293_v48, %v26119_v4  ;;  %v26120_v44 = vand.u32 4294901760, %v21193_v63  ;;  %v26124_v10 = vand.u32 4294901760, %v21348_v39 }
 0x3db   : > { %26115 = vst [vmem:[#allocation10_spill] sm:$0xff] %v21423_v9  ;;  %14119 = vmatpush1.bf16.msra.mxu0 %v26123_v50  ;;  %8856 = vmatprep.mubr.f32.mxu0 %v24295_v52  ;;  %v26125_v9 = vand.u32 4294901760, %v21362_v16  ;;  %v26126_v63 = vand.u32 4294901760, %v21209_v1  ;;  %v24076_v50 = vand.u32 4294901760, %v21239_v54 }
 0x3dc   : > { %26112 = vst [vmem:[#allocation74_spill] sm:$0xff] %v21417_v36  ;;  %v26121_v36 = vand.u32 4294901760, %v21198_v61  ;;  %v21448_v29 = vsub.f32 %v21348_v39, %v26124_v10  ;;  %v26127_v61 = vand.u32 4294901760, %v21224_v62  ;;  %9425 = vmatmul.mubr.f32.vlgmr.msra.gmra.mrb[10].mxu1 %v26117_v32  ;;  %v26134_v62 = vand.u32 4294901760, %v21249_v15 }
 0x3dd   : > { %v21453_v4 = vsub.f32 %v21362_v16, %v26125_v9  ;;  %v26130_v9 = vld [vmem:[#allocation62_spill] sm:$0xff]  ;;  %9555 = vmatprep.mubr.f32.mxu1 %v24295_v52 }
 0x3de   : > { %v21441_v24 = vpack.c.bf16 %v26121_v36, %v26120_v44  ;;  %v21459_v36 = vpack.c.bf16 %v26127_v61, %v26126_v63  ;;  %v26129_v44 = vld [vmem:[#allocation32_spill] sm:$0xff]  ;;  %14239 = vmatpush1.bf16.msra.mxu1 %v26130_v9  ;;  %v26132_v9 = vand.u32 4294901760, %v21244_v27  ;;  %v26135_v61 = vand.u32 4294901760, %v21260_v40  ;;  %v26137_v63 = vld [vmem:[#allocation54_spill] sm:$0xff] }
 0x3df   : > { %14121 = vmatprep.subr.bf16.mxu0 %v26129_v44  ;;  %v26139_v44 = vand.u32 4294901760, %v21273_v13 }
 0x3e0   : > { %26122 = vst [vmem:[#allocation52_spill] sm:$0xff] %v21441_v24  ;;  %26128 = vst [vmem:[#allocation60_spill] sm:$0xff] %v21459_v36  ;;  %v26131_v36 = vld [vmem:[#allocation29_spill] sm:$0xff]  ;;  %v21480_v19 = vpack.c.bf16 %v26132_v9, %v24076_v50  ;;  %v21486_v32 = vpack.c.bf16 %v26135_v61, %v26134_v62  ;;  %14123 = vmatpush1.bf16.msra.mxu0 %v26137_v63  ;;  %v26138_v24 = vand.u32 4294901760, %v21265_v47  ;;  %v26141_v9 = vand.u32 4294901760, %v21284_v3  ;;  %v26144_v62 = vld [vmem:[#allocation82_spill] sm:$0xff] }
 0x3e1   : > { %14241 = vmatprep.subr.bf16.mxu1 %v26131_v36  ;;  %v26142_v50 = vand.u32 4294901760, %v21289_v28  ;;  %14125 = vmatprep.subr.bf16.mxu0 %v26144_v62  ;;  %v24077_v63 = vand.u32 4294901760, %v21435_v35  ;;  %v26145_v36 = vld [vmem:[#allocation85_spill] sm:$0xff]  ;;  %v26152_v61 = vld [vmem:[#allocation86_spill] sm:$0xff] }
 0x3e2   : > { %26133 = vst [vmem:[#allocation56_spill] sm:$0xff] %v21480_v19  ;;  %26136 = vst [vmem:[#allocation17_spill] sm:$0xff] %v21486_v32  ;;  %v21495_v54 = vpack.c.bf16 %v26139_v44, %v26138_v24  ;;  %14243 = vmatpush1.bf16.msra.mxu1 %v26145_v36  ;;  %v26146_v24 = vand.u32 4294901760, %v21304_v41  ;;  %v26147_v44 = vand.u32 4294901760, %v21309_v18  ;;  %v26153_v36 = vand.u32 4294901760, %v21430_v14  ;;  %v26155_v32 = vld [vmem:[#allocation71_spill] sm:$0xff] }
 0x3e3   : > { %v21501_v19 = vpack.c.bf16 %v26142_v50, %v26141_v9  ;;  %v26149_v50 = vand.u32 4294901760, %v21337_v46  ;;  %v26150_v9 = vand.u32 4294901760, %v21405_v37  ;;  %14245 = vmatprep.subr.bf16.mxu1 %v26152_v61 }
 0x3e4   : > { %26140 = vst [vmem:[#allocation32_spill] sm:$0xff] %v21495_v54  ;;  %v21513_v54 = vpack.c.bf16 %v26147_v44, %v26146_v24  ;;  %v21526_v10 = vpack.c.bf16 %v24077_v63, %v26153_v36  ;;  %14127 = vmatpush1.bf16.msra.mxu0 %v26155_v32  ;;  %v26157_v24 = vand.u32 4294901760, %v21453_v4  ;;  %v21542_v36 = vpop.f32.mrb[6].mxu1  ;;  %v26165_v63 = vld [vmem:[#allocation53_spill] sm:$0xff] }
 0x3e5   : > { %26143 = vst [vmem:[#allocation62_spill] sm:$0xff] %v21501_v19  ;;  %v21519_v62 = vpack.c.bf16 %v26150_v9, %v26149_v50  ;;  %v26156_v19 = vand.u32 4294901760, %v21448_v29  ;;  %v26160_v50 = vld [vmem:[#allocation87_spill] sm:$0xff]  ;;  %v21537_v9 = vpop.f32.mrb[6].mxu0  ;;  %v21545_v32 = vpop.f32.mrb[7].mxu1 }
 0x3e6   : > { %26148 = vst [vmem:[#allocation29_spill] sm:$0xff] %v21513_v54  ;;  %26154 = vst [vmem:[#allocation82_spill] sm:$0xff] %v21526_v10  ;;  %v26159_v54 = vld [vmem:[#allocation22_spill] sm:$0xff]  ;;  %14247 = vmatpush1.bf16.msra.mxu1 %v26160_v50  ;;  %v21539_v61 = vpop.f32.mrb[7].mxu0  ;;  %v26167_v10 = vld [vmem:[#allocation48_spill] sm:$0xff] }
 0x3e7   : > { %26151 = vst [vmem:[#allocation54_spill] sm:$0xff] %v21519_v62  ;;  %v21533_v44 = vpack.c.bf16 %v26157_v24, %v26156_v19  ;;  %14129 = vmatprep.subr.bf16.mxu0 %v26159_v54  ;;  %26161 = vst [vmem:[#allocation86_spill] sm:$0xff] %v21537_v9  ;;  %v26163_v62 = vld [vmem:[#allocation80_spill] sm:$0xff]  ;;  %v26168_v19 = vld [vmem:[#allocation47_spill] sm:$0xff] }
 0x3e8   : > { %26162 = vst [vmem:[#allocation71_spill] sm:$0xff] %v21539_v61  ;;  %14249 = vmatprep.subr.bf16.mxu1 %v26163_v62  ;;  %26164 = vst [vmem:[#allocation22_spill] sm:$0xff] %v21542_v36  ;;  %14131 = vmatpush1.bf16.msra.mxu0 %v26165_v63  ;;  %v26169_v24 = vld [vmem:[#allocation49_spill] sm:$0xff]  ;;  %v26170_v54 = vld [vmem:[#allocation55_spill] sm:$0xff] }
 0x3e9   : > { %26158 = vst [vmem:[#allocation85_spill] sm:$0xff] %v21533_v44  ;;  %26166 = vst [vmem:[#allocation87_spill] sm:$0xff] %v21545_v32  ;;  %14133 = vmatprep.subr.bf16.mxu0 %v26167_v10  ;;  %v26171_v50 = vld [vmem:[#allocation58_spill] sm:$0xff]  ;;  %v26188_v63 = vld [vmem:[#allocation68_spill] sm:$0xff] }
 0x3ea   : > { %14251 = vmatpush1.bf16.msra.mxu1 %v26168_v19  ;;  %v26190_v62 = vld [vmem:[#allocation11_spill] sm:$0xff] }
 0x3eb   : > { %14253 = vmatprep.subr.bf16.mxu1 %v26169_v24  ;;  %v26193_v24 = vld [vmem:[#allocation46_spill] sm:$0xff] }
 0x3ec   : > { %14135 = vmatpush1.bf16.msra.mxu0 %v26170_v54  ;;  %v26194_v54 = vand.u32 4294901760, %v26193_v24  ;;  %v26213_v24 = vld [vmem:[#allocation13_spill] sm:$0xff] }
 0x3ed   : > { %14137 = vmatprep.subr.bf16.mxu0 %v26026_v38  ;;  %v26178_v38 = vld [vmem:[#allocation35_spill] sm:$0xff] }
 0x3ee   : > { %14255 = vmatpush1.bf16.msra.mxu1 %v26171_v50  ;;  %v26195_v50 = vld [vmem:[#allocation51_spill] sm:$0xff] }
 0x3ef   : > { %14257 = vmatprep.subr.bf16.mxu1 %v26033_v34  ;;  %8858 = vmatmul.mubr.f32.vlgmr.msra.gmra.mrb[10].mxu0 %v25984_v55  ;;  %v26180_v34 = vld [vmem:[#allocation84_spill] sm:$0xff] }
 0x3f0   : > { %14139 = vmatpush1.bf16.msra.mxu0 %v26039_v31  ;;  %8948 = vmatprep.mubr.f32.mxu0 %v24295_v52  ;;  %v26172_v31 = vld [vmem:[#allocation94_spill] sm:$0xff] }
 0x3f1   : > { %9557 = vmatmul.mubr.f32.vlgmr.msra.gmra.mrb[10].mxu1 %v25984_v55  ;;  %14141 = vmatprep.subr.bf16.mxu0 %v26045_v22  ;;  %v26173_v22 = vld [vmem:[#allocation9_spill] sm:$0xff] }
 0x3f2   : > { %14259 = vmatpush1.bf16.msra.mxu1 %v26050_v56  ;;  %9647 = vmatprep.mubr.f32.mxu1 %v24295_v52 }
 0x3f3   : > { %14261 = vmatprep.subr.bf16.mxu1 %v26054_v33  ;;  %v26174_v33 = vand.u32 4294901760, %v26173_v22  ;;  %v26198_v22 = vld [vmem:[#allocation63_spill] sm:$0xff] }
 0x3f4   : > { %14143 = vmatpush1.bf16.msra.mxu0 %v26059_v23  ;;  %v26175_v23 = vld [vmem:[#allocation50_spill] sm:$0xff] }
 0x3f5   : > { %14145 = vmatprep.subr.bf16.mxu0 %v26065_v25  ;;  %v26176_v25 = vand.u32 4294901760, %v26175_v23  ;;  %v26200_v23 = vld [vmem:[#allocation70_spill] sm:$0xff] }
 0x3f6   : > { %14263 = vmatpush1.bf16.msra.mxu1 %v26068_v45  ;;  %v26181_v45 = vand.u32 4294901760, %v26180_v34  ;;  %v26205_v34 = vld [vmem:[#allocation97_spill] sm:$0xff] }
 0x3f7   : > { %14265 = vmatprep.subr.bf16.mxu1 %v26070_v43  ;;  %v21576_v56 = vpack.c.bf16 %v26176_v25, %v26174_v33  ;;  %v26199_v33 = vand.u32 4294901760, %v26198_v22  ;;  %v26201_v25 = vand.u32 4294901760, %v26200_v23 }
 0x3f8   : > { %14147 = vmatpush1.bf16.msra.mxu0 %v26072_v2 }
 0x3f9   : > { %14149 = vmatprep.subr.bf16.mxu0 %v26073_v0  ;;  %26177 = vst [vmem:[#allocation80_spill] sm:$0xff] %v21576_v56  ;;  %v26179_v0 = vand.u32 4294901760, %v26178_v38  ;;  %v21613_v38 = vpack.c.bf16 %v26201_v25, %v26199_v33  ;;  %v26218_v33 = vld [vmem:[#allocation39_spill] sm:$0xff] }
 0x3fa   : > { %14267 = vmatpush1.bf16.msra.mxu1 %v26172_v31  ;;  %v26219_v23 = vand.u32 4294901760, %v26218_v33 }
 0x3fb   : > { %14269 = vmatprep.subr.bf16.mxu1 %v26083_v57  ;;  %v21584_v43 = vpack.c.bf16 %v26181_v45, %v26179_v0  ;;  %v26183_v57 = vld [vmem:[#allocation67_spill] sm:$0xff]  ;;  %26202 = vst [vmem:[#allocation55_spill] sm:$0xff] %v21613_v38  ;;  %v26203_v0 = vld [vmem:[#allocation90_spill] sm:$0xff]  ;;  %v26206_v45 = vand.u32 4294901760, %v26205_v34  ;;  %v26223_v34 = vld [vmem:[#allocation64_spill] sm:$0xff] }
 0x3fc   : > { %14151 = vmatpush1.bf16.msra.mxu0 %v26088_v26  ;;  %v26184_v26 = vand.u32 4294901760, %v26183_v57 }
 0x3fd   : > { %14153 = vmatprep.subr.bf16.mxu0 %v26092_v20  ;;  %26182 = vst [vmem:[#allocation53_spill] sm:$0xff] %v21584_v43  ;;  %v26185_v20 = vld [vmem:[#allocation69_spill] sm:$0xff] }
 0x3fe   : > { %14271 = vmatpush1.bf16.msra.mxu1 %v26093_v30  ;;  %v26186_v2 = vand.u32 4294901760, %v26185_v20  ;;  %v26189_v30 = vand.u32 4294901760, %v26188_v63  ;;  %v26210_v63 = vand.u32 4294901760, %v21019_v17 }
 0x3ff   : > { %14273 = vmatprep.subr.bf16.mxu1 %v26100_v49  ;;  %v26191_v49 = vand.u32 4294901760, %v26190_v62  ;;  %v26211_v62 = vld [vmem:[#allocation30_spill] sm:$0xff] }
 0x400   : > { %14155 = vmatpush1.bf16.msra.mxu0 %v20800_v59  ;;  %v21591_v10 = vpack.c.bf16 %v26186_v2, %v26184_v26  ;;  %v26196_v59 = vand.u32 4294901760, %v26195_v50  ;;  %v26208_v26 = vld [vmem:[#allocation89_spill] sm:$0xff] }
 0x401   : > { %14277 = vmatprep.subr.bf16.mxu0 %v21576_v56  ;;  %v21598_v19 = vpack.c.bf16 %v26191_v49, %v26189_v30  ;;  %v26209_v20 = vand.u32 4294901760, %v26208_v26  ;;  %v9766_v30 = vsub.f32 %v21019_v17, %v26210_v63  ;;  %v26212_v49 = vand.u32 4294901760, %v26211_v62  ;;  %v26226_v63 = vld [vmem:[#allocation8_spill] sm:$0xff] }
 0x402   : > { %26187 = vst [vmem:[#allocation48_spill] sm:$0xff] %v21591_v10  ;;  %14275 = vmatpush1.bf16.msra.mxu1 %v26109_v53  ;;  %v21605_v31 = vpack.c.bf16 %v26196_v59, %v26194_v54  ;;  %v26204_v53 = vand.u32 4294901760, %v26203_v0  ;;  %v26214_v54 = vand.u32 4294901760, %v26213_v24  ;;  %v26216_v59 = vld [vmem:[#allocation98_spill] sm:$0xff]  ;;  %v26227_v62 = vand.u32 4294901760, %v26226_v63  ;;  %v26263_v56 = vld [vmem:[#allocation108_spill] sm:$0xff] }
 0x403   : > { %26192 = vst [vmem:[#allocation47_spill] sm:$0xff] %v21598_v19  ;;  %8950 = vmatmul.mubr.f32.vlgmr.msra.gmra.mrb[10].mxu0 %v25984_v55  ;;  %14397 = vmatprep.subr.bf16.mxu1 %v21584_v43  ;;  %v9754_v2 = vsub.f32 %v26208_v26, %v26209_v20  ;;  %v26217_v22 = vand.u32 4294901760, %v26216_v59  ;;  %v26221_v0 = vld [vmem:[#allocation102_spill] sm:$0xff]  ;;  %v26231_v59 = vld [vmem:[#allocation37_spill] sm:$0xff] }
 0x404   : > { %26197 = vst [vmem:[#allocation49_spill] sm:$0xff] %v21605_v31  ;;  %14279 = vmatpush1.bf16.msra.mxu0 %v21591_v10  ;;  %v21620_v57 = vpack.c.bf16 %v26206_v45, %v26204_v53  ;;  %9739 = vmatprep.mubr.f32.mxu0 %v24295_v52  ;;  %v21635_v50 = vpack.c.bf16 %v26214_v54, %v26212_v49  ;;  %v26222_v53 = vand.u32 4294901760, %v26221_v0  ;;  %v26224_v45 = vand.u32 4294901760, %v26223_v34  ;;  %v26228_v49 = vld [vmem:[#allocation99_spill] sm:$0xff]  ;;  %v26237_v34 = vld [vmem:[#allocation81_spill] sm:$0xff]  ;;  %v26239_v63 = vld [vmem:[#allocation18_spill] sm:$0xff] }
 0x405   : > { %9649 = vmatmul.mubr.f32.vlgmr.msra.gmra.mrb[10].mxu1 %v25984_v55  ;;  %14281 = vmatprep.subr.bf16.mxu0 %v21598_v19  ;;  %v21642_v25 = vpack.c.bf16 %v26219_v23, %v26217_v22  ;;  %v26229_v24 = vand.u32 4294901760, %v26228_v49  ;;  %v26232_v33 = vand.u32 4294901760, %v26231_v59  ;;  %v26233_v22 = vld [vmem:[#allocation72_spill] sm:$0xff]  ;;  %v26236_v0 = vand.u32 4294901760, %v21035_v60  ;;  %v26253_v19 = vld [vmem:[#allocation77_spill] sm:$0xff] }
 0x406   : > { %26207 = vst [vmem:[#allocation58_spill] sm:$0xff] %v21620_v57  ;;  %26215 = vst [vmem:[#allocation94_spill] sm:$0xff] %v21635_v50  ;;  %14399 = vmatpush1.bf16.msra.mxu1 %v21605_v31  ;;  %v21648_v20 = vpack.c.bf16 %v26224_v45, %v26222_v53  ;;  %10438 = vmatprep.mubr.f32.mxu1 %v24295_v52  ;;  %v26234_v23 = vand.u32 4294901760, %v26233_v22  ;;  %v26238_v45 = vand.u32 4294901760, %v26237_v34  ;;  %v26240_v49 = vand.u32 4294901760, %v26239_v63 }
 0x407   : > { %26220 = vst [vmem:[#allocation9_spill] sm:$0xff] %v21642_v25  ;;  %14401 = vmatprep.subr.bf16.mxu1 %v21613_v38  ;;  %v21656_v54 = vpack.c.bf16 %v26229_v24, %v26227_v62  ;;  %v10453_v53 = vsub.f32 %v21035_v60, %v26236_v0  ;;  %v26241_v62 = vld [vmem:[#allocation73_spill] sm:$0xff]  ;;  %v9755_v59 = vand.u32 4294901760, %v9754_v2  ;;  %v9767_v22 = vand.u32 4294901760, %v9766_v30  ;;  %v26246_v0 = vld [vmem:[#allocation96_spill] sm:$0xff]  ;;  %v26248_v38 = vld [vmem:[#allocation26_spill] sm:$0xff] }
 0x408   : > { %26225 = vst [vmem:[#allocation50_spill] sm:$0xff] %v21648_v20  ;;  %v21662_v32 = vpack.c.bf16 %v26234_v23, %v26232_v33  ;;  %v10465_v36 = vsub.f32 %v26237_v34, %v26238_v45  ;;  %14283 = vmatpush1.bf16.msra.mxu0 %v21620_v57  ;;  %v26242_v24 = vand.u32 4294901760, %v26241_v62  ;;  %v26244_v33 = vld [vmem:[#allocation66_spill] sm:$0xff]  ;;  %v26247_v44 = vand.u32 4294901760, %v26246_v0  ;;  %v26251_v57 = vld [vmem:[#allocation12_spill] sm:$0xff]  ;;  %v26256_v2 = vld [vmem:[#allocation79_spill] sm:$0xff] }
 0x409   : > { %26230 = vst [vmem:[#allocation35_spill] sm:$0xff] %v21656_v54  ;;  %v26245_v23 = vand.u32 4294901760, %v26244_v33  ;;  %14285 = vmatprep.subr.bf16.mxu0 %v21635_v50  ;;  %v26249_v45 = vand.u32 4294901760, %v26248_v38  ;;  %v26252_v63 = vand.u32 4294901760, %v26251_v57  ;;  %v26254_v62 = vand.u32 4294901760, %v26253_v19 }
 0x40a   : > { %26235 = vst [vmem:[#allocation84_spill] sm:$0xff] %v21662_v32  ;;  %v21675_v61 = vpack.c.bf16 %v26242_v24, %v26240_v49  ;;  %v26257_v30 = vand.u32 4294901760, %v26256_v2  ;;  %v26258_v24 = vld [vmem:[#allocation106_spill] sm:$0xff]  ;;  %v26264_v0 = vand.u32 4294901760, %v26263_v56  ;;  %14403 = vmatpush1.bf16.msra.mxu1 %v21642_v25  ;;  %v26268_v19 = vand.u32 4294901760, %v21278_v6 }
 0x40b   : > { %v9760_v9 = vsub.f32 %v26244_v33, %v26245_v23  ;;  %v21685_v31 = vpack.c.bf16 %v26249_v45, %v26247_v44  ;;  %v21691_v49 = vpack.c.bf16 %v26254_v62, %v26252_v63  ;;  %v26259_v10 = vand.u32 4294901760, %v26258_v24  ;;  %v26261_v23 = vld [vmem:[#allocation107_spill] sm:$0xff]  ;;  %v26266_v44 = vld [vmem:[#allocation109_spill] sm:$0xff]  ;;  %14405 = vmatprep.subr.bf16.mxu1 %v21648_v20  ;;  %v26282_v20 = vld [vmem:[#allocation104_spill] sm:$0xff] }
 0x40c   : > { %26243 = vst [vmem:[#allocation67_spill] sm:$0xff] %v21675_v61  ;;  %v26262_v50 = vand.u32 4294901760, %v26261_v23  ;;  %v26267_v38 = vand.u32 4294901760, %v26266_v44  ;;  %v26270_v45 = vand.u32 4294901760, %v21315_v21  ;;  %v26271_v63 = vand.u32 4294901760, %v21293_v48  ;;  %14287 = vmatpush1.bf16.msra.mxu0 %v21656_v54  ;;  %v26289_v54 = vld [vmem:[#allocation88_spill] sm:$0xff] }
 0x40d   : > { %26250 = vst [vmem:[#allocation69_spill] sm:$0xff] %v21685_v31  ;;  %26255 = vst [vmem:[#allocation68_spill] sm:$0xff] %v21691_v49  ;;  %v21697_v43 = vpack.c.bf16 %v26259_v10, %v26257_v30  ;;  %v26272_v62 = vand.u32 4294901760, %v21050_v5  ;;  %v26275_v6 = vand.u32 4294901760, %v21348_v39  ;;  %v26276_v24 = vand.u32 4294901760, %v21362_v16  ;;  %14289 = vmatprep.subr.bf16.mxu0 %v21675_v61 }
 0x40e   : > { %v21703_v55 = vpack.c.bf16 %v26264_v0, %v26262_v50  ;;  %v21710_v57 = vpack.c.bf16 %v26268_v19, %v26267_v38  ;;  %v21716_v10 = vpack.c.bf16 %v26271_v63, %v26270_v45  ;;  %v26273_v50 = vld [vmem:[#allocation33_spill] sm:$0xff]  ;;  %v10454_v21 = vand.u32 4294901760, %v10453_v53  ;;  %v26278_v0 = vld [vmem:[#allocation40_spill] sm:$0xff]  ;;  %v26280_v63 = vld [vmem:[#allocation103_spill] sm:$0xff]  ;;  %14407 = vmatpush1.bf16.msra.mxu1 %v21662_v32 }
 0x40f   : > { %26260 = vst [vmem:[#allocation11_spill] sm:$0xff] %v21697_v43  ;;  %v9772_v56 = vsub.f32 %v21050_v5, %v26272_v62  ;;  %v26274_v2 = vand.u32 4294901760, %v26273_v50  ;;  %v21729_v23 = vpack.c.bf16 %v26276_v24, %v26275_v6  ;;  %v10466_v48 = vand.u32 4294901760, %v10465_v36  ;;  %14409 = vmatprep.subr.bf16.mxu1 %v21685_v31 }
 0x410   : > { %26265 = vst [vmem:[#allocation46_spill] sm:$0xff] %v21703_v55  ;;  %26269 = vst [vmem:[#allocation51_spill] sm:$0xff] %v21710_v57  ;;  %v26279_v44 = vand.u32 4294901760, %v26278_v0  ;;  %v14296_v19 = vpack.c.bf16 %v9767_v22, %v9755_v59  ;;  %v9761_v45 = vand.u32 4294901760, %v9760_v9  ;;  %v26281_v62 = vand.u32 4294901760, %v26280_v63  ;;  %14291 = vmatpush1.bf16.msra.mxu0 %v21691_v49 }
 0x411   : > { %v10459_v30 = vsub.f32 %v26273_v50, %v26274_v2  ;;  %26277 = vst [vmem:[#allocation63_spill] sm:$0xff] %v21729_v23  ;;  %v26283_v39 = vand.u32 4294901760, %v26282_v20  ;;  %v26284_v36 = vand.u32 4294901760, %v21096_v8  ;;  %v26285_v6 = vand.u32 4294901760, %v21112_v51  ;;  %14293 = vmatprep.subr.bf16.mxu0 %v21703_v55 }
 0x412   : > { %v10471_v38 = vsub.f32 %v26278_v0, %v26279_v44  ;;  %v9778_v2 = vsub.f32 %v26280_v63, %v26281_v62  ;;  %v26286_v9 = vand.u32 4294901760, %v21117_v11  ;;  %v26287_v22 = vand.u32 4294901760, %v21122_v42  ;;  %14411 = vmatpush1.bf16.msra.mxu1 %v21697_v43  ;;  %v26302_v43 = vld [vmem:[#allocation42_spill] sm:$0xff] }
 0x413   : > { %v9790_v16 = vsub.f32 %v26282_v20, %v26283_v39  ;;  %v10477_v53 = vsub.f32 %v21096_v8, %v26284_v36  ;;  %v10489_v24 = vsub.f32 %v21112_v51, %v26285_v6  ;;  %v9773_v62 = vand.u32 4294901760, %v9772_v56  ;;  %14413 = vmatprep.subr.bf16.mxu1 %v21710_v57  ;;  %v26304_v57 = vld [vmem:[#allocation41_spill] sm:$0xff] }
 0x414   : > { %v9784_v59 = vsub.f32 %v21117_v11, %v26286_v9  ;;  %v9796_v44 = vsub.f32 %v21122_v42, %v26287_v22  ;;  %v10460_v39 = vand.u32 4294901760, %v10459_v30  ;;  %v26288_v61 = vand.u32 4294901760, %v21131_v58  ;;  %v26291_v11 = vld [vmem:[#allocation20_spill] sm:$0xff]  ;;  %v26299_v42 = vld [vmem:[#allocation23_spill] sm:$0xff]  ;;  %14295 = vmatpush1.bf16.msra.mxu0 %v21716_v10 }
 0x415   : > { %v26290_v25 = vand.u32 4294901760, %v26289_v54  ;;  %v14416_v51 = vpack.c.bf16 %v10466_v48, %v10454_v21  ;;  %v10472_v9 = vand.u32 4294901760, %v10471_v38  ;;  %v26292_v8 = vand.u32 4294901760, %v26291_v11  ;;  %14297 = vmatprep.subr.bf16.mxu0 %v14296_v19 }
 0x416   : > { %v10483_v36 = vsub.f32 %v21131_v58, %v26288_v61  ;;  %v26293_v32 = vand.u32 4294901760, %v21168_v12  ;;  %v9779_v30 = vand.u32 4294901760, %v9778_v2  ;;  %v9791_v61 = vand.u32 4294901760, %v9790_v16  ;;  %v26297_v2 = vld [vmem:[#allocation78_spill] sm:$0xff]  ;;  %14415 = vmatpush1.bf16.msra.mxu1 %v21729_v23 }
 0x417   : > { %v10495_v6 = vsub.f32 %v26289_v54, %v26290_v25  ;;  %v9802_v22 = vsub.f32 %v26291_v11, %v26292_v8  ;;  %v26294_v58 = vand.u32 4294901760, %v21173_v7  ;;  %v26295_v54 = vld [vmem:[#allocation76_spill] sm:$0xff]  ;;  %v10478_v48 = vand.u32 4294901760, %v10477_v53  ;;  %14417 = vmatprep.subr.bf16.mxu1 %v14416_v51 }
 0x418   : > { %v9814_v56 = vsub.f32 %v21168_v12, %v26293_v32  ;;  %v26296_v31 = vand.u32 4294901760, %v26295_v54  ;;  %v10490_v8 = vand.u32 4294901760, %v10489_v24  ;;  %v9785_v38 = vand.u32 4294901760, %v9784_v59 }
 0x419   : > { %v10501_v25 = vsub.f32 %v21173_v7, %v26294_v58  ;;  %v9797_v11 = vand.u32 4294901760, %v9796_v44  ;;  %v10484_v32 = vand.u32 4294901760, %v10483_v36  ;;  %v10496_v49 = vand.u32 4294901760, %v10495_v6 }
 0x41a   : > { %v10513_v21 = vsub.f32 %v26295_v54, %v26296_v31  ;;  %v26298_v16 = vand.u32 4294901760, %v26297_v2  ;;  %v26300_v58 = vand.u32 4294901760, %v26299_v42  ;;  %v14298_v31 = vpack.c.bf16 %v9773_v62, %v9761_v45 }
 0x41b   : > { %v9803_v55 = vand.u32 4294901760, %v9802_v22  ;;  %v9815_v53 = vand.u32 4294901760, %v9814_v56  ;;  %v26301_v24 = vand.u32 4294901760, %v21209_v1  ;;  %v14418_v44 = vpack.c.bf16 %v10472_v9, %v10460_v39 }
 0x41c   : > { %v9808_v12 = vsub.f32 %v26297_v2, %v26298_v16  ;;  %v9820_v7 = vsub.f32 %v26299_v42, %v26300_v58  ;;  %v10502_v36 = vand.u32 4294901760, %v10501_v25  ;;  %v10514_v6 = vand.u32 4294901760, %v10513_v21 }
 0x41d   : > { %v10507_v59 = vsub.f32 %v21209_v1, %v26301_v24  ;;  %v26303_v16 = vand.u32 4294901760, %v26302_v43  ;;  %v14300_v58 = vpack.c.bf16 %v9791_v61, %v9779_v30  ;;  %v14420_v42 = vpack.c.bf16 %v10490_v8, %v10478_v48  ;;  %v26307_v24 = vld [vmem:[#allocation28_spill] sm:$0xff] }
 0x41e   : > { %v26305_v45 = vand.u32 4294901760, %v26304_v57  ;;  %v26306_v22 = vand.u32 4294901760, %v21244_v27  ;;  %v14302_v39 = vpack.c.bf16 %v9797_v11, %v9785_v38  ;;  %v14422_v9 = vpack.c.bf16 %v10496_v49, %v10484_v32  ;;  %9745 = vmatmul.mubr.f32.vlgmr.msra.gmra.mrb[12].mxu0 %v26307_v24  ;;  %10444 = vmatmul.mubr.f32.vlgmr.msra.gmra.mrb[12].mxu1 %v26307_v24 }
 0x41f   : > { %v10519_v2 = vsub.f32 %v26302_v43, %v26303_v16  ;;  %v9809_v25 = vand.u32 4294901760, %v9808_v12  ;;  %v9821_v21 = vand.u32 4294901760, %v9820_v7  ;;  %v14304_v19 = vpack.c.bf16 %v9815_v53, %v9803_v55  ;;  %14299 = vmatpush1.bf16.msra.mxu0 %v14298_v31  ;;  %9915 = vmatprep.mubr.f32.mxu0 %v24295_v52 }
 0x420   : > { %v9826_v62 = vsub.f32 %v26304_v57, %v26305_v45  ;;  %v9838_v56 = vsub.f32 %v21244_v27, %v26306_v22  ;;  %v10508_v30 = vand.u32 4294901760, %v10507_v59  ;;  %v26308_v61 = vand.u32 4294901760, %v21249_v15  ;;  %14301 = vmatprep.subr.bf16.mxu0 %v14300_v58  ;;  %14419 = vmatpush1.bf16.msra.mxu1 %v14418_v44 }
 0x421   : > { %v26309_v8 = vand.u32 4294901760, %v21260_v40  ;;  %v14424_v45 = vpack.c.bf16 %v10514_v6, %v10502_v36  ;;  %v10520_v22 = vand.u32 4294901760, %v10519_v2  ;;  %v26310_v11 = vand.u32 4294901760, %v21265_v47  ;;  %10614 = vmatprep.mubr.f32.mxu1 %v24295_v52  ;;  %14421 = vmatprep.subr.bf16.mxu1 %v14420_v42 }
 0x422   : > { %v10525_v48 = vsub.f32 %v21249_v15, %v26308_v61  ;;  %v26311_v12 = vand.u32 4294901760, %v21273_v13  ;;  %v9827_v51 = vand.u32 4294901760, %v9826_v62  ;;  %v9839_v49 = vand.u32 4294901760, %v9838_v56 }
 0x423   : > { %v10537_v16 = vsub.f32 %v21260_v40, %v26309_v8  ;;  %v9832_v7 = vsub.f32 %v21265_v47, %v26310_v11  ;;  %v26312_v38 = vand.u32 4294901760, %v21304_v41  ;;  %v26313_v2 = vand.u32 4294901760, %v21309_v18  ;;  %14303 = vmatpush1.bf16.msra.mxu0 %v14302_v39 }
 0x424   : > { %v9844_v55 = vsub.f32 %v21273_v13, %v26311_v12  ;;  %v14306_v53 = vpack.c.bf16 %v9821_v21, %v9809_v25  ;;  %v26314_v59 = vand.u32 4294901760, %v21284_v3  ;;  %v26315_v6 = vand.u32 4294901760, %v21289_v28  ;;  %14305 = vmatprep.subr.bf16.mxu0 %v14304_v19  ;;  %14423 = vmatpush1.bf16.msra.mxu1 %v14422_v9 }
 0x425   : > { %v9850_v32 = vsub.f32 %v21304_v41, %v26312_v38  ;;  %v9862_v31 = vsub.f32 %v21309_v18, %v26313_v2  ;;  %v10526_v62 = vand.u32 4294901760, %v10525_v48  ;;  %v10538_v56 = vand.u32 4294901760, %v10537_v16  ;;  %14425 = vmatprep.subr.bf16.mxu1 %v14424_v45 }
 0x426   : > { %v10531_v36 = vsub.f32 %v21284_v3, %v26314_v59  ;;  %v10543_v58 = vsub.f32 %v21289_v28, %v26315_v6  ;;  %v26316_v61 = vand.u32 4294901760, %v21337_v46  ;;  %v26317_v44 = vand.u32 4294901760, %v21405_v37 }
 0x427   : > { %v9833_v21 = vand.u32 4294901760, %v9832_v7  ;;  %v9845_v11 = vand.u32 4294901760, %v9844_v55  ;;  %v26318_v12 = vand.u32 4294901760, %v21430_v14  ;;  %v26319_v2 = vand.u32 4294901760, %v21435_v35  ;;  %14307 = vmatpush1.bf16.msra.mxu0 %v14306_v53 }
 0x428   : > { %v10549_v8 = vsub.f32 %v21337_v46, %v26316_v61  ;;  %v10561_v25 = vsub.f32 %v21405_v37, %v26317_v44  ;;  %v14426_v48 = vpack.c.bf16 %v10520_v22, %v10508_v30  ;;  %v14308_v16 = vpack.c.bf16 %v9839_v49, %v9827_v51 }
 0x429   : > { %v9856_v38 = vsub.f32 %v21430_v14, %v26318_v12  ;;  %v9868_v42 = vsub.f32 %v21435_v35, %v26319_v2  ;;  %v9851_v59 = vand.u32 4294901760, %v9850_v32  ;;  %v9863_v6 = vand.u32 4294901760, %v9862_v31 }
 0x42a   : > { %v10532_v61 = vand.u32 4294901760, %v10531_v36  ;;  %v10544_v24 = vand.u32 4294901760, %v10543_v58  ;;  %v26320_v39 = vand.u32 4294901760, %v21448_v29  ;;  %v26321_v55 = vand.u32 4294901760, %v21453_v4  ;;  %14309 = vmatprep.subr.bf16.mxu0 %v14308_v16  ;;  %14427 = vmatpush1.bf16.msra.mxu1 %v14426_v48 }
 0x42b   : > { %v14428_v12 = vpack.c.bf16 %v10538_v56, %v10526_v62  ;;  %v10550_v23 = vand.u32 4294901760, %v10549_v8  ;;  %v10562_v2 = vand.u32 4294901760, %v10561_v25  ;;  %v14310_v19 = vpack.c.bf16 %v9845_v11, %v9833_v21  ;;  %v26324_v56 = vld [vmem:[#allocation100_spill] sm:$0xff] }
 0x42c   : > { %v10555_v7 = vsub.f32 %v21448_v29, %v26320_v39  ;;  %v10567_v44 = vsub.f32 %v21453_v4, %v26321_v55  ;;  %v9857_v30 = vand.u32 4294901760, %v9856_v38  ;;  %v9869_v22 = vand.u32 4294901760, %v9868_v42  ;;  %v26331_v21 = vld [vmem:[#allocation92_spill] sm:$0xff]  ;;  %v26332_v38 = vld [vmem:[#allocation78_spill] sm:$0xff]  ;;  %v26333_v42 = vld [vmem:[#allocation23_spill] sm:$0xff] }
 0x42d   : > { %v14312_v9 = vpack.c.bf16 %v9863_v6, %v9851_v59  ;;  %v14430_v51 = vpack.c.bf16 %v10544_v24, %v10532_v61  ;;  %14429 = vmatprep.subr.bf16.mxu1 %v14428_v12  ;;  %v14432_v31 = vpack.c.bf16 %v10562_v2, %v10550_v23  ;;  %14311 = vmatpush1.bf16.msra.mxu0 %v14310_v19  ;;  %v21880_v61 = vld [vmem:[%s15902_s27 + $0x1e8] sm:$0xff]  ;;  %v21883_v39 = vld [vmem:[%s15902_s27 + $0xf8] sm:$0xff] }
 0x42e   : > { %v10556_v49 = vand.u32 4294901760, %v10555_v7  ;;  %v10568_v32 = vand.u32 4294901760, %v10567_v44  ;;  %v14314_v36 = vpack.c.bf16 %v9869_v22, %v9857_v30  ;;  %v14316_v45 = vpack.c.bf16 %v21019_v17, %v26208_v26  ;;  %v26322_v17 = vld [vmem:[#allocation6_spill] sm:$0xff]  ;;  %v26323_v26 = vld [vmem:[#allocation105_spill] sm:$0xff]  ;;  %26335 = vst [vmem:[#allocation90_spill] sm:$0xff] %v21880_v61  ;;  %26336 = vst [vmem:[#allocation97_spill] sm:$0xff] %v21883_v39 }
 0x42f   : > { %14313 = vmatprep.subr.bf16.mxu0 %v14312_v9  ;;  %14431 = vmatpush1.bf16.msra.mxu1 %v14430_v51  ;;  %v14436_v53 = vpack.c.bf16 %v26237_v34, %v21035_v60  ;;  %v14318_v24 = vpack.c.bf16 %v21050_v5, %v26244_v33  ;;  %v14320_v23 = vpack.c.bf16 %v26282_v20, %v26280_v63  ;;  %v26325_v60 = vld [vmem:[#allocation15_spill] sm:$0xff]  ;;  %v26327_v5 = vld [vmem:[#allocation20_spill] sm:$0xff]  ;;  %v21891_v7 = vld [vmem:[%s15902_s27 + $0xe0] sm:$0xff] }
 0x430   : > { %v14434_v58 = vpack.c.bf16 %v10568_v32, %v10556_v49  ;;  %14433 = vmatprep.subr.bf16.mxu1 %v14432_v31  ;;  %v14438_v62 = vpack.c.bf16 %v26278_v0, %v26273_v50  ;;  %v14440_v8 = vpack.c.bf16 %v26324_v56, %v26323_v26  ;;  %v26326_v34 = vld [vmem:[#allocation31_spill] sm:$0xff]  ;;  %v26329_v50 = vld [vmem:[#allocation101_spill] sm:$0xff]  ;;  %v26330_v0 = vld [vmem:[#allocation88_spill] sm:$0xff]  ;;  %v14444_v11 = vpack.c.bf16 %v26295_v54, %v26331_v21 }
 0x431   : > { %14315 = vmatpush1.bf16.msra.mxu0 %v14314_v36  ;;  %v14322_v25 = vpack.c.bf16 %v26326_v34, %v26325_v60  ;;  %v26328_v20 = vld [vmem:[#allocation91_spill] sm:$0xff]  ;;  %v14442_v63 = vpack.c.bf16 %v26330_v0, %v26329_v50  ;;  %v14326_v48 = vpack.c.bf16 %v26333_v42, %v26332_v38  ;;  %v14328_v16 = vpack.c.bf16 %v21244_v27, %v26304_v57  ;;  %v21888_v57 = vld [vmem:[%s15902_s27 + $0x1f8] sm:$0xff]  ;;  %v21943_v22 = vld [vmem:[%s15902_s27 + $0x2e0] sm:$0xff] }
 0x432   : > { %14317 = vmatprep.subr.bf16.mxu0 %v14316_v45  ;;  %v14324_v33 = vpack.c.bf16 %v26328_v20, %v26327_v5  ;;  %v14446_v59 = vpack.c.bf16 %v26302_v43, %v21209_v1  ;;  %v14448_v6 = vpack.c.bf16 %v21260_v40, %v21249_v15  ;;  %v21877_v54 = vld [vmem:[%s15902_s27 + $0xe8] sm:$0xff]  ;;  %v14330_v27 = vpack.c.bf16 %v21273_v13, %v21265_v47  ;;  %v21894_v1 = vld [vmem:[%s15902_s27 + $0x1e0] sm:$0xff]  ;;  %v21903_v13 = vld [vmem:[%s15902_s27 + $0xf0] sm:$0xff] }
 0x433   : > { %14435 = vmatpush1.bf16.msra.mxu1 %v14434_v58  ;;  %26334 = vst [vmem:[#allocation70_spill] sm:$0xff] %v21877_v54  ;;  %26337 = vst [vmem:[#allocation89_spill] sm:$0xff] %v21888_v57  ;;  %v14450_v40 = vpack.c.bf16 %v21289_v28, %v21284_v3  ;;  %v14332_v15 = vpack.c.bf16 %v21309_v18, %v21304_v41  ;;  %v14452_v43 = vpack.c.bf16 %v21405_v37, %v21337_v46  ;;  %v21906_v47 = vld [vmem:[%s15902_s27 + $0x1f0] sm:$0xff]  ;;  %v21925_v12 = vld [vmem:[%s15902_s27 + $0x2f8] sm:$0xff] }
 0x434   : > { %14437 = vmatprep.subr.bf16.mxu1 %v14436_v53  ;;  %9917 = vmatmul.mubr.f32.vlgmr.msra.gmra.mrb[12].mxu0 %v26322_v17  ;;  %26338 = vst [vmem:[#allocation30_spill] sm:$0xff] %v21891_v7  ;;  %26339 = vst [vmem:[#allocation13_spill] sm:$0xff] %v21894_v1  ;;  %v14334_v55 = vpack.c.bf16 %v21435_v35, %v21430_v14  ;;  %v24147_v44 = vand.u32 4294901760, %v21877_v54  ;;  %v24144_v3 = vand.u32 4294901760, %v21880_v61  ;;  %v24142_v18 = vand.u32 4294901760, %v21883_v39  ;;  %v21919_v14 = vld [vmem:[%s15902_s27 + $0x2e8] sm:$0xff] }
 0x435   : > { %14319 = vmatpush1.bf16.msra.mxu0 %v14318_v24  ;;  %10027 = vmatprep.mubr.f32.mxu0 %v24295_v52  ;;  %26340 = vst [vmem:[#allocation98_spill] sm:$0xff] %v21903_v13  ;;  %26341 = vst [vmem:[#allocation39_spill] sm:$0xff] %v21906_v47  ;;  %v14454_v41 = vpack.c.bf16 %v21453_v4, %v21448_v29  ;;  %v24141_v28 = vand.u32 4294901760, %v21888_v57  ;;  %v24140_v46 = vand.u32 4294901760, %v21891_v7  ;;  %v24139_v37 = vand.u32 4294901760, %v21894_v1  ;;  %v21922_v35 = vld [vmem:[%s15902_s27 + $0x3e8] sm:$0xff] }
 0x436   : > { %10616 = vmatmul.mubr.f32.vlgmr.msra.gmra.mrb[12].mxu1 %v26322_v17  ;;  %14321 = vmatprep.subr.bf16.mxu0 %v14320_v23  ;;  %26342 = vst [vmem:[#allocation102_spill] sm:$0xff] %v21919_v14  ;;  %26343 = vst [vmem:[#allocation64_spill] sm:$0xff] %v21922_v35  ;;  %v21930_v2 = vsub.f32 %v21877_v54, %v24147_v44  ;;  %v21935_v29 = vsub.f32 %v21880_v61, %v24144_v3  ;;  %v24135_v4 = vand.u32 4294901760, %v21903_v13  ;;  %v21940_v30 = vld [vmem:[%s15902_s27 + $0x3f8] sm:$0xff]  ;;  %v21946_v9 = vld [vmem:[%s15902_s27 + $0x3e0] sm:$0xff] }
 0x437   : > { %14439 = vmatpush1.bf16.msra.mxu1 %v14438_v62  ;;  %10726 = vmatprep.mubr.f32.mxu1 %v24295_v52  ;;  %26344 = vst [vmem:[#allocation8_spill] sm:$0xff] %v21925_v12  ;;  %v24134_v19 = vand.u32 4294901760, %v21906_v47  ;;  %26346 = vst [vmem:[#allocation37_spill] sm:$0xff] %v21940_v30  ;;  %v21951_v51 = vsub.f32 %v21883_v39, %v24142_v18  ;;  %v21956_v49 = vsub.f32 %v21888_v57, %v24141_v28  ;;  %v21969_v36 = vld [vmem:[%s15902_s27 + $0x2f0] sm:$0xff]  ;;  %v21991_v60 = vld [vmem:[%s15902_s27 + $0x4e8] sm:$0xff] }
 0x438   : > { %14441 = vmatprep.subr.bf16.mxu1 %v14440_v8  ;;  %26345 = vst [vmem:[#allocation99_spill] sm:$0xff] %v21930_v2  ;;  %26347 = vst [vmem:[#allocation72_spill] sm:$0xff] %v21943_v22  ;;  %v21961_v32 = vsub.f32 %v21891_v7, %v24140_v46  ;;  %v21966_v31 = vsub.f32 %v21894_v1, %v24139_v37  ;;  %v21974_v45 = vsub.f32 %v21903_v13, %v24135_v4  ;;  %v21980_v23 = vld [vmem:[%s15902_s27 + $0x3f0] sm:$0xff]  ;;  %v21994_v34 = vld [vmem:[%s15902_s27 + $0x5e8] sm:$0xff] }
 0x439   : > { %14323 = vmatpush1.bf16.msra.mxu0 %v14322_v25  ;;  %26348 = vst [vmem:[#allocation81_spill] sm:$0xff] %v21946_v9  ;;  %26349 = vst [vmem:[#allocation18_spill] sm:$0xff] %v21956_v49  ;;  %v24138_v58 = vand.u32 4294901760, %v21919_v14  ;;  %v24136_v53 = vand.u32 4294901760, %v21922_v35  ;;  %v24133_v24 = vand.u32 4294901760, %v21925_v12  ;;  %v21985_v62 = vsub.f32 %v21906_v47, %v24134_v19  ;;  %v21997_v25 = vld [vmem:[%s15902_s27 + $0x4f8] sm:$0xff] }
 0x43a   : > { %14325 = vmatprep.subr.bf16.mxu0 %v14324_v33  ;;  %26350 = vst [vmem:[#allocation73_spill] sm:$0xff] %v21961_v32  ;;  %26351 = vst [vmem:[#allocation66_spill] sm:$0xff] %v21969_v36  ;;  %v24132_v26 = vand.u32 4294901760, %v21940_v30  ;;  %v24131_v56 = vand.u32 4294901760, %v21943_v22  ;;  %v24129_v8 = vand.u32 4294901760, %v21946_v9  ;;  %v24130_v50 = vand.u32 4294901760, %v21969_v36 }
 0x43b   : > { %14443 = vmatpush1.bf16.msra.mxu1 %v14442_v63  ;;  %26352 = vst [vmem:[#allocation96_spill] sm:$0xff] %v21974_v45  ;;  %26353 = vst [vmem:[#allocation26_spill] sm:$0xff] %v21980_v23  ;;  %v22002_v5 = vsub.f32 %v21919_v14, %v24138_v58  ;;  %v22007_v20 = vsub.f32 %v21922_v35, %v24136_v53  ;;  %v22012_v33 = vsub.f32 %v21925_v12, %v24133_v24  ;;  %v22016_v0 = vld [vmem:[%s15902_s27 + $0x5f8] sm:$0xff]  ;;  %v22019_v63 = vld [vmem:[%s15902_s27 + $0x4e0] sm:$0xff] }
 0x43c   : > { %14445 = vmatprep.subr.bf16.mxu1 %v14444_v11  ;;  %26354 = vst [vmem:[#allocation12_spill] sm:$0xff] %v21985_v62  ;;  %26355 = vst [vmem:[#allocation77_spill] sm:$0xff] %v21991_v60  ;;  %v22022_v21 = vld [vmem:[%s15902_s27 + $0x5e0] sm:$0xff]  ;;  %v26364_v11 = vld [vmem:[#allocation80_spill] sm:$0xff]  ;;  %v22028_v38 = vsub.f32 %v21940_v30, %v24132_v26  ;;  %v22033_v42 = vsub.f32 %v21943_v22, %v24131_v56  ;;  %v24151_v56 = vand.u32 4294901760, %v22019_v63  ;;  %v26416_v61 = vand.u32 4294901760, %v21935_v29 }
 0x43d   : > { %14327 = vmatpush1.bf16.msra.mxu0 %v14326_v48  ;;  %26356 = vst [vmem:[#allocation79_spill] sm:$0xff] %v21994_v34  ;;  %26357 = vst [vmem:[#allocation106_spill] sm:$0xff] %v21997_v25  ;;  %v22038_v48 = vsub.f32 %v21946_v9, %v24129_v8  ;;  %v26372_v8 = vld [vmem:[#allocation7_spill] sm:$0xff]  ;;  %v24154_v26 = vand.u32 4294901760, %v22022_v21  ;;  %v22072_v4 = vld [vmem:[%s15902_s27 + $0x6f8] sm:$0xff] }
 0x43e   : > { %14329 = vmatprep.subr.bf16.mxu0 %v14328_v16  ;;  %26358 = vst [vmem:[#allocation107_spill] sm:$0xff] %v22002_v5  ;;  %26359 = vst [vmem:[#allocation108_spill] sm:$0xff] %v22007_v20  ;;  %v24137_v16 = vand.u32 4294901760, %v21980_v23  ;;  %v22066_v24 = vld [vmem:[%s15902_s27 + $0x6e8] sm:$0xff]  ;;  %v26377_v53 = vld [vmem:[#allocation48_spill] sm:$0xff] }
 0x43f   : > { %14447 = vmatpush1.bf16.msra.mxu1 %v14446_v59  ;;  %26360 = vst [vmem:[#allocation109_spill] sm:$0xff] %v22012_v33  ;;  %26361 = vst [vmem:[#allocation33_spill] sm:$0xff] %v22016_v0  ;;  %v22042_v59 = vld [vmem:[%s15902_s27 + $0x4f0] sm:$0xff]  ;;  %v22069_v19 = vld [vmem:[%s15902_s27 + $0x7e8] sm:$0xff]  ;;  %v22114_v44 = vsub.f32 %v22022_v21, %v24154_v26  ;;  %v26398_v9 = vand.u32 4294901760, %v22066_v24 }
 0x440   : > { %14449 = vmatprep.subr.bf16.mxu1 %v14448_v6  ;;  %26362 = vst [vmem:[#allocation40_spill] sm:$0xff] %v22019_v63  ;;  %26363 = vst [vmem:[#allocation103_spill] sm:$0xff] %v22022_v21  ;;  %v22047_v6 = vsub.f32 %v21969_v36, %v24130_v50  ;;  %v24150_v50 = vand.u32 4294901760, %v22016_v0  ;;  %v22093_v28 = vld [vmem:[%s15902_s27 + $0x7f8] sm:$0xff]  ;;  %v22096_v18 = vld [vmem:[%s15902_s27 + $0x6e0] sm:$0xff] }
 0x441   : > { %14331 = vmatpush1.bf16.msra.mxu0 %v14330_v27  ;;  %26365 = vst [vmem:[#allocation104_spill] sm:$0xff] %v22028_v38  ;;  %26366 = vst [vmem:[#allocation76_spill] sm:$0xff] %v22033_v42  ;;  %v24143_v27 = vand.u32 4294901760, %v21991_v60  ;;  %v26383_v3 = vld [vmem:[#allocation47_spill] sm:$0xff]  ;;  %v22131_v46 = vld [vmem:[%s15902_s27 + $0x6f0] sm:$0xff]  ;;  %v22155_v22 = vsub.f32 %v22066_v24, %v26398_v9  ;;  %v26404_v9 = vand.u32 4294901760, %v22093_v28 }
 0x442   : > { %14333 = vmatprep.subr.bf16.mxu0 %v14332_v15  ;;  %26367 = vst [vmem:[#allocation42_spill] sm:$0xff] %v22038_v48  ;;  %26368 = vst [vmem:[#allocation41_spill] sm:$0xff] %v22042_v59  ;;  %v24146_v15 = vand.u32 4294901760, %v21997_v25  ;;  %v22134_v21 = vld [vmem:[%s15902_s27 + $0x7f0] sm:$0xff]  ;;  %v22169_v30 = vld [vmem:[%s15902_s27 + $0x8f8] sm:$0xff] }
 0x443   : > { %14451 = vmatpush1.bf16.msra.mxu1 %v14450_v40  ;;  %26369 = vst [vmem:[#allocation105_spill] sm:$0xff] %v22047_v6  ;;  %v24145_v40 = vand.u32 4294901760, %v21994_v34  ;;  %26374 = vst [vmem:[#allocation31_spill] sm:$0xff] %v22066_v24  ;;  %v1162_v12 = vld [vmem:[%s15902_s27 + $0x9e0] sm:$0x7]  ;;  %v22176_v24 = vsub.f32 %v22093_v28, %v26404_v9  ;;  %v26411_v7 = vld [vmem:[#allocation67_spill] sm:$0xff] }
 0x444   : > { %14453 = vmatprep.subr.bf16.mxu1 %v14452_v43  ;;  %v22053_v43 = vld [vmem:[%s15902_s27 + $0x5f0] sm:$0xff]  ;;  %26375 = vst [vmem:[#allocation20_spill] sm:$0xff] %v22069_v19  ;;  %26376 = vst [vmem:[#allocation91_spill] sm:$0xff] %v22072_v4  ;;  %v22089_v37 = vsub.f32 %v21997_v25, %v24146_v15  ;;  %v22109_v15 = vsub.f32 %v22019_v63, %v24151_v56  ;;  %v26388_v25 = vld [vmem:[#allocation49_spill] sm:$0xff]  ;;  %v26401_v63 = vand.u32 4294901760, %v22072_v4  ;;  %v22209_v9 = vsel %vm1170_vm1, %v1162_v12, 0 }
 0x445   : > { %14335 = vmatpush1.bf16.msra.mxu0 %v14334_v55  ;;  %26370 = vst [vmem:[#allocation100_spill] sm:$0xff] %v22053_v43  ;;  %v26371_v55 = vld [vmem:[#allocation53_spill] sm:$0xff]  ;;  %v22084_v58 = vsub.f32 %v21994_v34, %v24145_v40  ;;  %26381 = vst [vmem:[#allocation78_spill] sm:$0xff] %v22093_v28  ;;  %v22104_v40 = vsub.f32 %v22016_v0, %v24150_v50  ;;  %v26389_v50 = vand.u32 4294901760, %v22042_v59  ;;  %v26393_v36 = vand.u32 4294901760, %v22053_v43  ;;  %v22145_v0 = vld [vmem:[%s15902_s27 + $0x8e8] sm:$0xff] }
 0x446   : > { %14337 = vmatprep.subr.bf16.mxu0 %v26364_v11  ;;  %26380 = vst [vmem:[#allocation92_spill] sm:$0xff] %v22089_v37  ;;  %26382 = vst [vmem:[#allocation23_spill] sm:$0xff] %v22096_v18  ;;  %v26403_v47 = vld [vmem:[#allocation94_spill] sm:$0xff]  ;;  %v1164_v57 = vld [vmem:[%s15902_s27 + $0x9f0] sm:$0x7]  ;;  %v26422_v39 = vand.u32 4294901760, %v22169_v30 }
 0x447   : > { %14455 = vmatpush1.bf16.msra.mxu1 %v14454_v41  ;;  %v22060_v41 = vsub.f32 %v21980_v23, %v24137_v16  ;;  %v22079_v16 = vsub.f32 %v21991_v60, %v24143_v27  ;;  %26379 = vst [vmem:[#allocation88_spill] sm:$0xff] %v22084_v58  ;;  %v1163_v27 = vld [vmem:[%s15902_s27 + $0x9e8] sm:$0x7]  ;;  %26384 = vst [vmem:[#allocation80_spill] sm:$0xff] %v22104_v40  ;;  %v22125_v56 = vsub.f32 %v22042_v59, %v26389_v50  ;;  %v1165_v59 = vld [vmem:[%s15902_s27 + $0x9f8] sm:$0x7] }
 0x448   : > { %14457 = vmatprep.subr.bf16.mxu1 %v26371_v55  ;;  %10030 = vmatmul.mubr.f32.vlgmr.msra.gmra.mrb[12].mxu0 %v26372_v8  ;;  %26385 = vst [vmem:[#allocation53_spill] sm:$0xff] %v22109_v15  ;;  %26386 = vst [vmem:[#allocation48_spill] sm:$0xff] %v22114_v44  ;;  %v26392_v23 = vld [vmem:[#allocation55_spill] sm:$0xff]  ;;  %v22140_v34 = vsub.f32 %v22053_v43, %v26393_v36  ;;  %v22148_v26 = vsel %vm1170_vm1, %v1163_v27, 0  ;;  %v26397_v60 = vld [vmem:[#allocation58_spill] sm:$0xff]  ;;  %v26400_v36 = vand.u32 4294901760, %v22069_v19 }
 0x449   : > { %26373 = vst [vmem:[#allocation15_spill] sm:$0xff] %v22060_v41  ;;  %14339 = vmatpush1.bf16.msra.mxu0 %v26377_v53  ;;  %10120 = vmatprep.mubr.f32.mxu0 %v24295_v52  ;;  %26378 = vst [vmem:[#allocation101_spill] sm:$0xff] %v22079_v16  ;;  %v22165_v50 = vsub.f32 %v22072_v4, %v26401_v63  ;;  %v24177_v63 = vand.u32 4294901760, %v22131_v46  ;;  %v26406_v27 = vld [vmem:[#allocation9_spill] sm:$0xff]  ;;  %v22194_v28 = vsel %vm1170_vm1, %v1165_v59, 0  ;;  %v26410_v59 = vld [vmem:[#allocation35_spill] sm:$0xff] }
 0x44a   : > { %10729 = vmatmul.mubr.f32.vlgmr.msra.gmra.mrb[12].mxu1 %v26372_v8  ;;  %14341 = vmatprep.subr.bf16.mxu0 %v26383_v3  ;;  %v22118_v8 = vld [vmem:[%s15902_s27 + $0x7e0] sm:$0xff]  ;;  %26390 = vst [vmem:[#allocation49_spill] sm:$0xff] %v22131_v46  ;;  %26391 = vst [vmem:[#allocation110_spill] sm:$0xff] %v22134_v21  ;;  %v22160_v43 = vsub.f32 %v22069_v19, %v26400_v36  ;;  %v26405_v36 = vand.u32 4294901760, %v22096_v18  ;;  %v26413_v12 = vand.u32 4294901760, %v22148_v26  ;;  %v26421_v54 = vld [vmem:[#allocation69_spill] sm:$0xff] }
 0x44b   : > { %26387 = vst [vmem:[#allocation47_spill] sm:$0xff] %v22118_v8  ;;  %14459 = vmatpush1.bf16.msra.mxu1 %v26388_v25  ;;  %10819 = vmatprep.mubr.f32.mxu1 %v24295_v52  ;;  %26394 = vst [vmem:[#allocation55_spill] sm:$0xff] %v22140_v34  ;;  %v26407_v13 = vand.u32 4294901760, %v22118_v8  ;;  %v22200_v4 = vsub.f32 %v22131_v46, %v24177_v63  ;;  %v26414_v63 = vld [vmem:[#allocation84_spill] sm:$0xff]  ;;  %v22231_v46 = vld [vmem:[%s15902_s27 + $0x8e0] sm:$0xff] }
 0x44c   : > { %14461 = vmatprep.subr.bf16.mxu1 %v26392_v23  ;;  %26395 = vst [vmem:[#allocation111_spill] sm:$0xff] %v22145_v0  ;;  %26396 = vst [vmem:[#allocation112_spill] sm:$0xff] %v22148_v26  ;;  %v22181_v19 = vsub.f32 %v22096_v18, %v26405_v36  ;;  %v26408_v36 = vld [vmem:[#allocation50_spill] sm:$0xff]  ;;  %v26409_v18 = vand.u32 4294901760, %v22134_v21  ;;  %v22225_v14 = vsub.f32 %v22148_v26, %v26413_v12  ;;  %v26418_v26 = vand.u32 4294901760, %v21951_v51 }
 0x44d   : > { %14343 = vmatpush1.bf16.msra.mxu0 %v26397_v60  ;;  %26399 = vst [vmem:[#allocation58_spill] sm:$0xff] %v22155_v22  ;;  %26402 = vst [vmem:[#allocation113_spill] sm:$0xff] %v22169_v30  ;;  %v22189_v35 = vsub.f32 %v22118_v8, %v26407_v13  ;;  %v26419_v8 = vand.u32 4294901760, %v21956_v49  ;;  %v26426_v49 = vld [vmem:[#allocation68_spill] sm:$0xff] }
 0x44e   : > { %14345 = vmatprep.subr.bf16.mxu0 %v26403_v47  ;;  %v22205_v13 = vsub.f32 %v22134_v21, %v26409_v18  ;;  %v26412_v18 = vand.u32 4294901760, %v22145_v0 }
 0x44f   : > { %14463 = vmatpush1.bf16.msra.mxu1 %v26406_v27  ;;  %v22246_v1 = vpack.c.bf16 %v26419_v8, %v26418_v26  ;;  %v22264_v26 = vld [vmem:[%s15902_s27 + $0x8f0] sm:$0xff]  ;;  %v26442_v8 = vand.u32 4294901760, %v22047_v6 }
 0x450   : > { %14465 = vmatprep.subr.bf16.mxu1 %v26408_v36  ;;  %v22220_v21 = vsub.f32 %v22145_v0, %v26412_v18  ;;  %v26415_v0 = vand.u32 4294901760, %v21930_v2  ;;  %v22253_v18 = vsub.f32 %v22169_v30, %v26422_v39  ;;  %v26427_v39 = vand.u32 4294901760, %v21974_v45  ;;  %v26445_v45 = vld [vmem:[#allocation65_spill] sm:$0xff] }
 0x451   : > { %14347 = vmatpush1.bf16.msra.mxu0 %v26410_v59  ;;  %26420 = vst [vmem:[#allocation9_spill] sm:$0xff] %v22246_v1  ;;  %v26428_v2 = vand.u32 4294901760, %v21985_v62  ;;  %v26443_v1 = vand.u32 4294901760, %v22060_v41 }
 0x452   : > { %14349 = vmatprep.subr.bf16.mxu0 %v26411_v7  ;;  %v22240_v12 = vpack.c.bf16 %v26416_v61, %v26415_v0  ;;  %v26423_v61 = vand.u32 4294901760, %v21961_v32  ;;  %v26424_v0 = vand.u32 4294901760, %v21966_v31  ;;  %v26430_v32 = vld [vmem:[#allocation46_spill] sm:$0xff] }
 0x453   : > { %14467 = vmatpush1.bf16.msra.mxu1 %v26414_v63  ;;  %v22273_v30 = vpack.c.bf16 %v26428_v2, %v26427_v39  ;;  %v26431_v63 = vld [vmem:[#allocation11_spill] sm:$0xff]  ;;  %v26432_v2 = vand.u32 4294901760, %v22002_v5  ;;  %v26433_v39 = vand.u32 4294901760, %v22007_v20  ;;  %v26439_v5 = vand.u32 4294901760, %v22033_v42 }
 0x454   : > { %26417 = vst [vmem:[#allocation94_spill] sm:$0xff] %v22240_v12  ;;  %14469 = vmatprep.subr.bf16.mxu1 %v26421_v54  ;;  %v22260_v12 = vpack.c.bf16 %v26424_v0, %v26423_v61  ;;  %v22278_v0 = vsel %vm1170_vm1, %v1164_v57, 0  ;;  %v26435_v61 = vand.u32 4294901760, %v22012_v33  ;;  %v26436_v57 = vand.u32 4294901760, %v22028_v38 }
 0x455   : > { %14351 = vmatpush1.bf16.msra.mxu0 %v26426_v49  ;;  %26429 = vst [vmem:[#allocation35_spill] sm:$0xff] %v22273_v30  ;;  %v22289_v30 = vpack.c.bf16 %v26433_v39, %v26432_v2  ;;  %v26440_v20 = vand.u32 4294901760, %v22038_v48  ;;  %v26454_v39 = vld [vmem:[#allocation25_spill] sm:$0xff] }
 0x456   : > { %26425 = vst [vmem:[#allocation50_spill] sm:$0xff] %v22260_v12  ;;  %14353 = vmatprep.subr.bf16.mxu0 %v26430_v32  ;;  %v22295_v62 = vpack.c.bf16 %v26436_v57, %v26435_v61  ;;  %v26438_v12 = vld [vmem:[#allocation51_spill] sm:$0xff] }
 0x457   : > { %14471 = vmatpush1.bf16.msra.mxu1 %v26431_v63  ;;  %26434 = vst [vmem:[#allocation67_spill] sm:$0xff] %v22289_v30  ;;  %v22305_v2 = vpack.c.bf16 %v26440_v20, %v26439_v5  ;;  %v26446_v30 = vand.u32 4294901760, %v22194_v28  ;;  %v26447_v57 = vld [vmem:[#allocation63_spill] sm:$0xff]  ;;  %v26452_v20 = vand.u32 4294901760, %v22104_v40 }
 0x458   : > { %26437 = vst [vmem:[#allocation69_spill] sm:$0xff] %v22295_v62  ;;  %14473 = vmatprep.subr.bf16.mxu1 %v26438_v12  ;;  %v22315_v62 = vpack.c.bf16 %v26443_v1, %v26442_v8  ;;  %v26448_v8 = vand.u32 4294901760, %v22079_v16  ;;  %v26455_v61 = vld [vmem:[#allocation27_spill] sm:$0xff]  ;;  %v26457_v16 = vand.u32 4294901760, %v22209_v9 }
 0x459   : > { %26441 = vst [vmem:[#allocation68_spill] sm:$0xff] %v22305_v2  ;;  %14355 = vmatpush1.bf16.msra.mxu0 %v21716_v10  ;;  %v22321_v5 = vsub.f32 %v22194_v28, %v26446_v30  ;;  %v26451_v30 = vand.u32 4294901760, %v22089_v37  ;;  %v26456_v2 = vand.u32 4294901760, %v22231_v46 }
 0x45a   : > { %26444 = vst [vmem:[#allocation46_spill] sm:$0xff] %v22315_v62  ;;  %14357 = vmatprep.subr.bf16.mxu0 %v26445_v45  ;;  %v26449_v45 = vand.u32 4294901760, %v22084_v58 }
 0x45b   : > { %14475 = vmatpush1.bf16.msra.mxu1 %v26447_v57  ;;  %v22339_v41 = vpack.c.bf16 %v26452_v20, %v26451_v30  ;;  %v22346_v1 = vsub.f32 %v22231_v46, %v26456_v2  ;;  %v26461_v30 = vld [vmem:[#allocation95_spill] sm:$0xff] }
 0x45c   : > { %v22333_v62 = vpack.c.bf16 %v26449_v45, %v26448_v8  ;;  %14477 = vmatprep.subr.bf16.mxu1 %v26454_v39  ;;  %10124 = vmatmul.mubr.f32.vlgmr.msra.gmra.mrb[12].mxu0 %v26455_v61  ;;  %v22351_v8 = vsub.f32 %v22209_v9, %v26457_v16  ;;  %v26458_v45 = vand.u32 4294901760, %v22109_v15  ;;  %v26462_v39 = vand.u32 4294901760, %v22264_v26 }
 0x45d   : > { %26453 = vst [vmem:[#allocation51_spill] sm:$0xff] %v22339_v41  ;;  %14359 = vmatpush1.bf16.msra.mxu0 %v26461_v30  ;;  %10254 = vmatprep.mubr.f32.mxu0 %v24295_v52  ;;  %v26463_v41 = vand.u32 4294901760, %v22278_v0  ;;  %v26464_v15 = vand.u32 4294901760, %v22125_v56  ;;  %v24217_v30 = vand.u32 4294901760, %v22155_v22 }
 0x45e   : > { %26450 = vst [vmem:[#allocation11_spill] sm:$0xff] %v22333_v62  ;;  %v26459_v62 = vand.u32 4294901760, %v22114_v44  ;;  %v22364_v2 = vsub.f32 %v22264_v26, %v26462_v39  ;;  %v26465_v44 = vand.u32 4294901760, %v22140_v34  ;;  %10823 = vmatmul.mubr.f32.vlgmr.msra.gmra.mrb[12].mxu1 %v26455_v61  ;;  %v26472_v34 = vand.u32 4294901760, %v22165_v50 }
 0x45f   : > { %v22369_v16 = vsub.f32 %v22278_v0, %v26463_v41  ;;  %v26468_v41 = vld [vmem:[#allocation61_spill] sm:$0xff]  ;;  %10953 = vmatprep.mubr.f32.mxu1 %v24295_v52 }
 0x460   : > { %v22357_v20 = vpack.c.bf16 %v26459_v62, %v26458_v45  ;;  %v22375_v62 = vpack.c.bf16 %v26465_v44, %v26464_v15  ;;  %v26467_v45 = vld [vmem:[#allocation16_spill] sm:$0xff]  ;;  %14479 = vmatpush1.bf16.msra.mxu1 %v26468_v41  ;;  %v26470_v41 = vand.u32 4294901760, %v22160_v43  ;;  %v26473_v44 = vand.u32 4294901760, %v22176_v24 }
 0x461   : > { %14361 = vmatprep.subr.bf16.mxu0 %v26467_v45  ;;  %v26475_v15 = vld [vmem:[#allocation24_spill] sm:$0xff]  ;;  %v26477_v45 = vand.u32 4294901760, %v22189_v35 }
 0x462   : > { %26460 = vst [vmem:[#allocation65_spill] sm:$0xff] %v22357_v20  ;;  %26466 = vst [vmem:[#allocation63_spill] sm:$0xff] %v22375_v62  ;;  %v26469_v62 = vld [vmem:[#allocation83_spill] sm:$0xff]  ;;  %v22396_v40 = vpack.c.bf16 %v26470_v41, %v24217_v30  ;;  %v22402_v61 = vpack.c.bf16 %v26473_v44, %v26472_v34  ;;  %14363 = vmatpush1.bf16.msra.mxu0 %v26475_v15  ;;  %v26476_v20 = vand.u32 4294901760, %v22181_v19  ;;  %v26479_v41 = vand.u32 4294901760, %v22200_v4  ;;  %v26482_v34 = vld [vmem:[#allocation74_spill] sm:$0xff] }
 0x463   : > { %14481 = vmatprep.subr.bf16.mxu1 %v26469_v62  ;;  %v26480_v30 = vand.u32 4294901760, %v22205_v13  ;;  %14365 = vmatprep.subr.bf16.mxu0 %v26482_v34  ;;  %v24218_v15 = vand.u32 4294901760, %v22351_v8  ;;  %v26483_v62 = vld [vmem:[#allocation93_spill] sm:$0xff]  ;;  %v26490_v44 = vld [vmem:[#allocation10_spill] sm:$0xff] }
 0x464   : > { %26471 = vst [vmem:[#allocation25_spill] sm:$0xff] %v22396_v40  ;;  %26474 = vst [vmem:[#allocation95_spill] sm:$0xff] %v22402_v61  ;;  %v22411_v22 = vpack.c.bf16 %v26477_v45, %v26476_v20  ;;  %14483 = vmatpush1.bf16.msra.mxu1 %v26483_v62  ;;  %v26484_v20 = vand.u32 4294901760, %v22220_v21  ;;  %v26485_v45 = vand.u32 4294901760, %v22225_v14  ;;  %v26491_v62 = vand.u32 4294901760, %v22346_v1  ;;  %v26493_v61 = vld [vmem:[#allocation52_spill] sm:$0xff] }
 0x465   : > { %v22417_v40 = vpack.c.bf16 %v26480_v30, %v26479_v41  ;;  %v26487_v30 = vand.u32 4294901760, %v22253_v18  ;;  %v26488_v41 = vand.u32 4294901760, %v22321_v5  ;;  %14485 = vmatprep.subr.bf16.mxu1 %v26490_v44 }
 0x466   : > { %26478 = vst [vmem:[#allocation16_spill] sm:$0xff] %v22411_v22  ;;  %v22429_v22 = vpack.c.bf16 %v26485_v45, %v26484_v20  ;;  %v22442_v39 = vpack.c.bf16 %v24218_v15, %v26491_v62  ;;  %14367 = vmatpush1.bf16.msra.mxu0 %v26493_v61  ;;  %v26495_v20 = vand.u32 4294901760, %v22369_v16  ;;  %v22458_v62 = vpop.f32.mrb[8].mxu1  ;;  %v26503_v15 = vld [vmem:[#allocation32_spill] sm:$0xff] }
 0x467   : > { %26481 = vst [vmem:[#allocation61_spill] sm:$0xff] %v22417_v40  ;;  %v22435_v34 = vpack.c.bf16 %v26488_v41, %v26487_v30  ;;  %v26494_v40 = vand.u32 4294901760, %v22364_v2  ;;  %v26498_v30 = vld [vmem:[#allocation60_spill] sm:$0xff]  ;;  %v22453_v41 = vpop.f32.mrb[8].mxu0  ;;  %v22461_v61 = vpop.f32.mrb[9].mxu1 }
 0x468   : > { %26486 = vst [vmem:[#allocation83_spill] sm:$0xff] %v22429_v22  ;;  %26492 = vst [vmem:[#allocation74_spill] sm:$0xff] %v22442_v39  ;;  %v26497_v22 = vld [vmem:[#allocation56_spill] sm:$0xff]  ;;  %14487 = vmatpush1.bf16.msra.mxu1 %v26498_v30  ;;  %v22455_v44 = vpop.f32.mrb[9].mxu0  ;;  %v26505_v39 = vld [vmem:[#allocation29_spill] sm:$0xff] }
 0x469   : > { %26489 = vst [vmem:[#allocation24_spill] sm:$0xff] %v22435_v34  ;;  %v22449_v45 = vpack.c.bf16 %v26495_v20, %v26494_v40  ;;  %14369 = vmatprep.subr.bf16.mxu0 %v26497_v22  ;;  %26499 = vst [vmem:[#allocation10_spill] sm:$0xff] %v22453_v41  ;;  %v26501_v34 = vld [vmem:[#allocation17_spill] sm:$0xff]  ;;  %v26506_v40 = vld [vmem:[#allocation62_spill] sm:$0xff] }
 0x46a   : > { %26500 = vst [vmem:[#allocation52_spill] sm:$0xff] %v22455_v44  ;;  %14489 = vmatprep.subr.bf16.mxu1 %v26501_v34  ;;  %26502 = vst [vmem:[#allocation56_spill] sm:$0xff] %v22458_v62  ;;  %14371 = vmatpush1.bf16.msra.mxu0 %v26503_v15  ;;  %v26507_v20 = vld [vmem:[#allocation54_spill] sm:$0xff]  ;;  %v26509_v30 = vld [vmem:[#allocation85_spill] sm:$0xff] }
 0x46b   : > { %26496 = vst [vmem:[#allocation93_spill] sm:$0xff] %v22449_v45  ;;  %26504 = vst [vmem:[#allocation60_spill] sm:$0xff] %v22461_v61  ;;  %14373 = vmatprep.subr.bf16.mxu0 %v26505_v39  ;;  %v26508_v22 = vld [vmem:[#allocation82_spill] sm:$0xff]  ;;  %v26528_v34 = vld [vmem:[#allocation64_spill] sm:$0xff] }
 0x46c   : > { %14491 = vmatpush1.bf16.msra.mxu1 %v26506_v40  ;;  %v26526_v15 = vld [vmem:[#allocation102_spill] sm:$0xff] }
 0x46d   : > { %14493 = vmatprep.subr.bf16.mxu1 %v26507_v20  ;;  %v26531_v20 = vld [vmem:[#allocation98_spill] sm:$0xff] }
 0x46e   : > { %14375 = vmatpush1.bf16.msra.mxu0 %v26508_v22  ;;  %v26532_v22 = vand.u32 4294901760, %v26531_v20  ;;  %v26551_v20 = vld [vmem:[#allocation79_spill] sm:$0xff] }
 0x46f   : > { %14377 = vmatprep.subr.bf16.mxu0 %v26364_v11  ;;  %v26516_v11 = vld [vmem:[#allocation97_spill] sm:$0xff] }
 0x470   : > { %14495 = vmatpush1.bf16.msra.mxu1 %v26509_v30  ;;  %v26533_v30 = vld [vmem:[#allocation39_spill] sm:$0xff] }
 0x471   : > { %14497 = vmatprep.subr.bf16.mxu1 %v26371_v55  ;;  %10256 = vmatmul.mubr.f32.vlgmr.msra.gmra.mrb[12].mxu0 %v26322_v17  ;;  %v26518_v55 = vld [vmem:[#allocation89_spill] sm:$0xff] }
 0x472   : > { %14379 = vmatpush1.bf16.msra.mxu0 %v26377_v53  ;;  %10346 = vmatprep.mubr.f32.mxu0 %v24295_v52  ;;  %v26510_v53 = vld [vmem:[#allocation84_spill] sm:$0xff] }
 0x473   : > { %10955 = vmatmul.mubr.f32.vlgmr.msra.gmra.mrb[12].mxu1 %v26322_v17  ;;  %14381 = vmatprep.subr.bf16.mxu0 %v26383_v3  ;;  %v26511_v3 = vld [vmem:[#allocation70_spill] sm:$0xff] }
 0x474   : > { %14499 = vmatpush1.bf16.msra.mxu1 %v26388_v25  ;;  %11045 = vmatprep.mubr.f32.mxu1 %v24295_v52 }
 0x475   : > { %14501 = vmatprep.subr.bf16.mxu1 %v26392_v23  ;;  %v26512_v23 = vand.u32 4294901760, %v26511_v3  ;;  %v26536_v3 = vld [vmem:[#allocation8_spill] sm:$0xff] }
 0x476   : > { %14383 = vmatpush1.bf16.msra.mxu0 %v26397_v60  ;;  %v26513_v60 = vld [vmem:[#allocation90_spill] sm:$0xff] }
 0x477   : > { %14385 = vmatprep.subr.bf16.mxu0 %v26403_v47  ;;  %v26514_v47 = vand.u32 4294901760, %v26513_v60  ;;  %v26538_v60 = vld [vmem:[#allocation37_spill] sm:$0xff] }
 0x478   : > { %14503 = vmatpush1.bf16.msra.mxu1 %v26406_v27  ;;  %v26519_v27 = vand.u32 4294901760, %v26518_v55  ;;  %v26543_v55 = vld [vmem:[#allocation81_spill] sm:$0xff] }
 0x479   : > { %14505 = vmatprep.subr.bf16.mxu1 %v26408_v36  ;;  %v22492_v25 = vpack.c.bf16 %v26514_v47, %v26512_v23  ;;  %v26537_v23 = vand.u32 4294901760, %v26536_v3  ;;  %v26539_v47 = vand.u32 4294901760, %v26538_v60 }
 0x47a   : > { %14387 = vmatpush1.bf16.msra.mxu0 %v26410_v59 }
 0x47b   : > { %14389 = vmatprep.subr.bf16.mxu0 %v26411_v7  ;;  %26515 = vst [vmem:[#allocation17_spill] sm:$0xff] %v22492_v25  ;;  %v26517_v7 = vand.u32 4294901760, %v26516_v11  ;;  %v22529_v11 = vpack.c.bf16 %v26539_v47, %v26537_v23  ;;  %v26556_v23 = vld [vmem:[#allocation26_spill] sm:$0xff] }
 0x47c   : > { %14507 = vmatpush1.bf16.msra.mxu1 %v26510_v53  ;;  %v26557_v60 = vand.u32 4294901760, %v26556_v23 }
 0x47d   : > { %14509 = vmatprep.subr.bf16.mxu1 %v26421_v54  ;;  %v22500_v36 = vpack.c.bf16 %v26519_v27, %v26517_v7  ;;  %v26521_v54 = vld [vmem:[#allocation30_spill] sm:$0xff]  ;;  %26540 = vst [vmem:[#allocation82_spill] sm:$0xff] %v22529_v11  ;;  %v26541_v7 = vld [vmem:[#allocation72_spill] sm:$0xff]  ;;  %v26544_v27 = vand.u32 4294901760, %v26543_v55  ;;  %v26561_v55 = vld [vmem:[#allocation33_spill] sm:$0xff] }
 0x47e   : > { %14391 = vmatpush1.bf16.msra.mxu0 %v26426_v49  ;;  %v26522_v49 = vand.u32 4294901760, %v26521_v54 }
 0x47f   : > { %14393 = vmatprep.subr.bf16.mxu0 %v26430_v32  ;;  %26520 = vst [vmem:[#allocation32_spill] sm:$0xff] %v22500_v36  ;;  %v26523_v32 = vld [vmem:[#allocation13_spill] sm:$0xff] }
 0x480   : > { %14511 = vmatpush1.bf16.msra.mxu1 %v26431_v63  ;;  %v26524_v59 = vand.u32 4294901760, %v26523_v32  ;;  %v26527_v63 = vand.u32 4294901760, %v26526_v15  ;;  %v26548_v15 = vand.u32 4294901760, %v21935_v29 }
 0x481   : > { %14513 = vmatprep.subr.bf16.mxu1 %v26438_v12  ;;  %v26529_v12 = vand.u32 4294901760, %v26528_v34  ;;  %v26549_v34 = vld [vmem:[#allocation77_spill] sm:$0xff] }
 0x482   : > { %14395 = vmatpush1.bf16.msra.mxu0 %v21716_v10  ;;  %v22507_v39 = vpack.c.bf16 %v26524_v59, %v26522_v49  ;;  %v26534_v10 = vand.u32 4294901760, %v26533_v30  ;;  %v26546_v49 = vld [vmem:[#allocation99_spill] sm:$0xff] }
 0x483   : > { %14517 = vmatprep.subr.bf16.mxu0 %v22492_v25  ;;  %v22514_v40 = vpack.c.bf16 %v26529_v12, %v26527_v63  ;;  %v26547_v32 = vand.u32 4294901760, %v26546_v49  ;;  %v11164_v63 = vsub.f32 %v21935_v29, %v26548_v15  ;;  %v26550_v12 = vand.u32 4294901760, %v26549_v34  ;;  %v26564_v15 = vld [vmem:[#allocation40_spill] sm:$0xff] }
 0x484   : > { %26525 = vst [vmem:[#allocation29_spill] sm:$0xff] %v22507_v39  ;;  %14515 = vmatpush1.bf16.msra.mxu1 %v26447_v57  ;;  %v22521_v53 = vpack.c.bf16 %v26534_v10, %v26532_v22  ;;  %v26542_v57 = vand.u32 4294901760, %v26541_v7  ;;  %v26552_v22 = vand.u32 4294901760, %v26551_v20  ;;  %v26554_v10 = vld [vmem:[#allocation66_spill] sm:$0xff]  ;;  %v26565_v34 = vand.u32 4294901760, %v26564_v15  ;;  %v26577_v15 = vld [vmem:[#allocation31_spill] sm:$0xff] }
 0x485   : > { %26530 = vst [vmem:[#allocation62_spill] sm:$0xff] %v22514_v40  ;;  %10348 = vmatmul.mubr.f32.vlgmr.msra.gmra.mrb[12].mxu0 %v26322_v17  ;;  %14637 = vmatprep.subr.bf16.mxu1 %v22500_v36  ;;  %v11152_v59 = vsub.f32 %v26546_v49, %v26547_v32  ;;  %v26555_v3 = vand.u32 4294901760, %v26554_v10  ;;  %v26559_v7 = vld [vmem:[#allocation106_spill] sm:$0xff]  ;;  %v26569_v10 = vld [vmem:[#allocation41_spill] sm:$0xff]  ;;  %v26601_v25 = vld [vmem:[#allocation112_spill] sm:$0xff] }
 0x486   : > { %26535 = vst [vmem:[#allocation54_spill] sm:$0xff] %v22521_v53  ;;  %14519 = vmatpush1.bf16.msra.mxu0 %v22507_v39  ;;  %v22536_v54 = vpack.c.bf16 %v26544_v27, %v26542_v57  ;;  %11137 = vmatprep.mubr.f32.mxu0 %v24295_v52  ;;  %v22551_v30 = vpack.c.bf16 %v26552_v22, %v26550_v12  ;;  %v26560_v57 = vand.u32 4294901760, %v26559_v7  ;;  %v26562_v27 = vand.u32 4294901760, %v26561_v55  ;;  %v26566_v12 = vld [vmem:[#allocation103_spill] sm:$0xff]  ;;  %v26575_v55 = vld [vmem:[#allocation18_spill] sm:$0xff] }
 0x487   : > { %11047 = vmatmul.mubr.f32.vlgmr.msra.gmra.mrb[12].mxu1 %v26322_v17  ;;  %14521 = vmatprep.subr.bf16.mxu0 %v22514_v40  ;;  %v22558_v47 = vpack.c.bf16 %v26557_v60, %v26555_v3  ;;  %v26567_v20 = vand.u32 4294901760, %v26566_v12  ;;  %v26570_v23 = vand.u32 4294901760, %v26569_v10  ;;  %v26571_v3 = vld [vmem:[#allocation100_spill] sm:$0xff]  ;;  %v26574_v7 = vand.u32 4294901760, %v21951_v51  ;;  %v26591_v40 = vld [vmem:[#allocation47_spill] sm:$0xff] }
 0x488   : > { %26545 = vst [vmem:[#allocation85_spill] sm:$0xff] %v22536_v54  ;;  %26553 = vst [vmem:[#allocation84_spill] sm:$0xff] %v22551_v30  ;;  %14639 = vmatpush1.bf16.msra.mxu1 %v22521_v53  ;;  %v22564_v32 = vpack.c.bf16 %v26562_v27, %v26560_v57  ;;  %11836 = vmatprep.mubr.f32.mxu1 %v24295_v52  ;;  %v26572_v60 = vand.u32 4294901760, %v26571_v3  ;;  %v26576_v27 = vand.u32 4294901760, %v26575_v55  ;;  %v26578_v12 = vand.u32 4294901760, %v26577_v15 }
 0x489   : > { %26558 = vst [vmem:[#allocation70_spill] sm:$0xff] %v22558_v47  ;;  %14641 = vmatprep.subr.bf16.mxu1 %v22529_v11  ;;  %v22572_v22 = vpack.c.bf16 %v26567_v20, %v26565_v34  ;;  %v11851_v57 = vsub.f32 %v21951_v51, %v26574_v7  ;;  %v26579_v34 = vld [vmem:[#allocation20_spill] sm:$0xff]  ;;  %v11153_v10 = vand.u32 4294901760, %v11152_v59  ;;  %v11165_v3 = vand.u32 4294901760, %v11164_v63  ;;  %v26584_v7 = vld [vmem:[#allocation91_spill] sm:$0xff]  ;;  %v26586_v11 = vld [vmem:[#allocation78_spill] sm:$0xff] }
 0x48a   : > { %26563 = vst [vmem:[#allocation90_spill] sm:$0xff] %v22564_v32  ;;  %v22578_v61 = vpack.c.bf16 %v26572_v60, %v26570_v23  ;;  %v11863_v62 = vsub.f32 %v26575_v55, %v26576_v27  ;;  %14523 = vmatpush1.bf16.msra.mxu0 %v22536_v54  ;;  %v26580_v20 = vand.u32 4294901760, %v26579_v34  ;;  %v26582_v23 = vld [vmem:[#allocation73_spill] sm:$0xff]  ;;  %v26585_v45 = vand.u32 4294901760, %v26584_v7  ;;  %v26589_v54 = vld [vmem:[#allocation23_spill] sm:$0xff] }
 0x48b   : > { %26568 = vst [vmem:[#allocation97_spill] sm:$0xff] %v22572_v22  ;;  %v26583_v60 = vand.u32 4294901760, %v26582_v23  ;;  %14525 = vmatprep.subr.bf16.mxu0 %v22551_v30  ;;  %v26587_v27 = vand.u32 4294901760, %v26586_v11  ;;  %v26590_v15 = vand.u32 4294901760, %v26589_v54  ;;  %v26592_v34 = vand.u32 4294901760, %v26591_v40  ;;  %v26594_v59 = vld [vmem:[#allocation49_spill] sm:$0xff] }
 0x48c   : > { %26573 = vst [vmem:[#allocation89_spill] sm:$0xff] %v22578_v61  ;;  %v22591_v44 = vpack.c.bf16 %v26580_v20, %v26578_v12  ;;  %v26595_v63 = vand.u32 4294901760, %v26594_v59  ;;  %v26596_v20 = vld [vmem:[#allocation110_spill] sm:$0xff]  ;;  %v26602_v7 = vand.u32 4294901760, %v26601_v25  ;;  %14643 = vmatpush1.bf16.msra.mxu1 %v22558_v47  ;;  %v26606_v40 = vand.u32 4294901760, %v22194_v28 }
 0x48d   : > { %v11158_v41 = vsub.f32 %v26582_v23, %v26583_v60  ;;  %v22601_v53 = vpack.c.bf16 %v26587_v27, %v26585_v45  ;;  %v22607_v12 = vpack.c.bf16 %v26592_v34, %v26590_v15  ;;  %v26597_v39 = vand.u32 4294901760, %v26596_v20  ;;  %v26599_v60 = vld [vmem:[#allocation111_spill] sm:$0xff]  ;;  %v26604_v45 = vld [vmem:[#allocation113_spill] sm:$0xff]  ;;  %14645 = vmatprep.subr.bf16.mxu1 %v22564_v32  ;;  %v26620_v32 = vld [vmem:[#allocation108_spill] sm:$0xff] }
 0x48e   : > { %26581 = vst [vmem:[#allocation30_spill] sm:$0xff] %v22591_v44  ;;  %v26600_v30 = vand.u32 4294901760, %v26599_v60  ;;  %v26605_v11 = vand.u32 4294901760, %v26604_v45  ;;  %v26608_v27 = vand.u32 4294901760, %v22231_v46  ;;  %v26609_v15 = vand.u32 4294901760, %v22209_v9  ;;  %14527 = vmatpush1.bf16.msra.mxu0 %v22572_v22  ;;  %v26627_v22 = vld [vmem:[#allocation15_spill] sm:$0xff] }
 0x48f   : > { %26588 = vst [vmem:[#allocation13_spill] sm:$0xff] %v22601_v53  ;;  %26593 = vst [vmem:[#allocation102_spill] sm:$0xff] %v22607_v12  ;;  %v22613_v36 = vpack.c.bf16 %v26597_v39, %v26595_v63  ;;  %v26610_v34 = vand.u32 4294901760, %v21966_v31  ;;  %v26613_v28 = vand.u32 4294901760, %v22264_v26  ;;  %v26614_v20 = vand.u32 4294901760, %v22278_v0  ;;  %14529 = vmatprep.subr.bf16.mxu0 %v22591_v44 }
 0x490   : > { %v22619_v17 = vpack.c.bf16 %v26602_v7, %v26600_v30  ;;  %v22626_v54 = vpack.c.bf16 %v26606_v40, %v26605_v11  ;;  %v22632_v39 = vpack.c.bf16 %v26609_v15, %v26608_v27  ;;  %v26611_v30 = vld [vmem:[#allocation96_spill] sm:$0xff]  ;;  %v11852_v46 = vand.u32 4294901760, %v11851_v57  ;;  %v26618_v15 = vld [vmem:[#allocation107_spill] sm:$0xff]  ;;  %14647 = vmatpush1.bf16.msra.mxu1 %v22578_v61 }
 0x491   : > { %26598 = vst [vmem:[#allocation64_spill] sm:$0xff] %v22613_v36  ;;  %v11170_v25 = vsub.f32 %v21966_v31, %v26610_v34  ;;  %v26612_v59 = vand.u32 4294901760, %v26611_v30  ;;  %v22645_v60 = vpack.c.bf16 %v26614_v20, %v26613_v28  ;;  %v11864_v9 = vand.u32 4294901760, %v11863_v62  ;;  %v26616_v7 = vld [vmem:[#allocation12_spill] sm:$0xff]  ;;  %14649 = vmatprep.subr.bf16.mxu1 %v22601_v53 }
 0x492   : > { %26603 = vst [vmem:[#allocation98_spill] sm:$0xff] %v22619_v17  ;;  %26607 = vst [vmem:[#allocation39_spill] sm:$0xff] %v22626_v54  ;;  %v26617_v45 = vand.u32 4294901760, %v26616_v7  ;;  %v14536_v40 = vpack.c.bf16 %v11165_v3, %v11153_v10  ;;  %v11159_v27 = vand.u32 4294901760, %v11158_v41  ;;  %v26619_v34 = vand.u32 4294901760, %v26618_v15  ;;  %14531 = vmatpush1.bf16.msra.mxu0 %v22607_v12 }
 0x493   : > { %v11857_v63 = vsub.f32 %v26611_v30, %v26612_v59  ;;  %26615 = vst [vmem:[#allocation8_spill] sm:$0xff] %v22645_v60  ;;  %v26621_v26 = vand.u32 4294901760, %v26620_v32  ;;  %v26622_v62 = vand.u32 4294901760, %v22012_v33  ;;  %v26623_v28 = vand.u32 4294901760, %v22028_v38  ;;  %14533 = vmatprep.subr.bf16.mxu0 %v22619_v17 }
 0x494   : > { %v11869_v11 = vsub.f32 %v26616_v7, %v26617_v45  ;;  %v11176_v59 = vsub.f32 %v26618_v15, %v26619_v34  ;;  %v26624_v41 = vand.u32 4294901760, %v22033_v42  ;;  %v26625_v3 = vand.u32 4294901760, %v22038_v48  ;;  %14651 = vmatpush1.bf16.msra.mxu1 %v22613_v36  ;;  %v26640_v36 = vld [vmem:[#allocation55_spill] sm:$0xff] }
 0x495   : > { %v11188_v0 = vsub.f32 %v26620_v32, %v26621_v26  ;;  %v11875_v57 = vsub.f32 %v22012_v33, %v26622_v62  ;;  %v11887_v20 = vsub.f32 %v22028_v38, %v26623_v28  ;;  %v11171_v34 = vand.u32 4294901760, %v11170_v25  ;;  %14653 = vmatprep.subr.bf16.mxu1 %v22626_v54  ;;  %v26642_v54 = vld [vmem:[#allocation58_spill] sm:$0xff] }
 0x496   : > { %v11182_v10 = vsub.f32 %v22033_v42, %v26624_v41  ;;  %v11194_v45 = vsub.f32 %v22038_v48, %v26625_v3  ;;  %v11858_v26 = vand.u32 4294901760, %v11857_v63  ;;  %v26626_v44 = vand.u32 4294901760, %v22047_v6  ;;  %v26629_v42 = vld [vmem:[#allocation101_spill] sm:$0xff]  ;;  %v26637_v48 = vld [vmem:[#allocation48_spill] sm:$0xff]  ;;  %14535 = vmatpush1.bf16.msra.mxu0 %v22632_v39 }
 0x497   : > { %v26628_v47 = vand.u32 4294901760, %v26627_v22  ;;  %v14656_v38 = vpack.c.bf16 %v11864_v9, %v11852_v46  ;;  %v11870_v41 = vand.u32 4294901760, %v11869_v11  ;;  %v26630_v33 = vand.u32 4294901760, %v26629_v42  ;;  %14537 = vmatprep.subr.bf16.mxu0 %v14536_v40 }
 0x498   : > { %v11881_v62 = vsub.f32 %v22047_v6, %v26626_v44  ;;  %v26631_v61 = vand.u32 4294901760, %v22084_v58  ;;  %v11177_v63 = vand.u32 4294901760, %v11176_v59  ;;  %v11189_v44 = vand.u32 4294901760, %v11188_v0  ;;  %v26635_v59 = vld [vmem:[#allocation53_spill] sm:$0xff]  ;;  %14655 = vmatpush1.bf16.msra.mxu1 %v22645_v60 }
 0x499   : > { %v11893_v28 = vsub.f32 %v26627_v22, %v26628_v47  ;;  %v11200_v3 = vsub.f32 %v26629_v42, %v26630_v33  ;;  %v26632_v6 = vand.u32 4294901760, %v22089_v37  ;;  %v26633_v22 = vld [vmem:[#allocation80_spill] sm:$0xff]  ;;  %v11876_v9 = vand.u32 4294901760, %v11875_v57  ;;  %14657 = vmatprep.subr.bf16.mxu1 %v14656_v38 }
 0x49a   : > { %v11212_v25 = vsub.f32 %v22084_v58, %v26631_v61  ;;  %v26634_v53 = vand.u32 4294901760, %v26633_v22  ;;  %v11888_v33 = vand.u32 4294901760, %v11887_v20  ;;  %v11183_v11 = vand.u32 4294901760, %v11182_v10 }
 0x49b   : > { %v11899_v47 = vsub.f32 %v22089_v37, %v26632_v6  ;;  %v11195_v42 = vand.u32 4294901760, %v11194_v45  ;;  %v11882_v61 = vand.u32 4294901760, %v11881_v62  ;;  %v11894_v12 = vand.u32 4294901760, %v11893_v28 }
 0x49c   : > { %v11911_v46 = vsub.f32 %v26633_v22, %v26634_v53  ;;  %v26636_v0 = vand.u32 4294901760, %v26635_v59  ;;  %v26638_v6 = vand.u32 4294901760, %v26637_v48  ;;  %v14538_v53 = vpack.c.bf16 %v11171_v34, %v11159_v27 }
 0x49d   : > { %v11201_v17 = vand.u32 4294901760, %v11200_v3  ;;  %v11213_v57 = vand.u32 4294901760, %v11212_v25  ;;  %v26639_v20 = vand.u32 4294901760, %v22125_v56  ;;  %v14658_v45 = vpack.c.bf16 %v11870_v41, %v11858_v26 }
 0x49e   : > { %v11206_v58 = vsub.f32 %v26635_v59, %v26636_v0  ;;  %v11218_v37 = vsub.f32 %v26637_v48, %v26638_v6  ;;  %v11900_v62 = vand.u32 4294901760, %v11899_v47  ;;  %v11912_v28 = vand.u32 4294901760, %v11911_v46 }
 0x49f   : > { %v11905_v10 = vsub.f32 %v22125_v56, %v26639_v20  ;;  %v26641_v0 = vand.u32 4294901760, %v26640_v36  ;;  %v14540_v6 = vpack.c.bf16 %v11189_v44, %v11177_v63  ;;  %v14660_v48 = vpack.c.bf16 %v11888_v33, %v11876_v9  ;;  %v26645_v20 = vld [vmem:[#allocation28_spill] sm:$0xff] }
 0x4a0   : > { %v26643_v27 = vand.u32 4294901760, %v26642_v54  ;;  %v26644_v3 = vand.u32 4294901760, %v22160_v43  ;;  %v14542_v26 = vpack.c.bf16 %v11195_v42, %v11183_v11  ;;  %v14662_v41 = vpack.c.bf16 %v11894_v12, %v11882_v61  ;;  %11143 = vmatmul.mubr.f32.vlgmr.msra.gmra.mrb[14].mxu0 %v26645_v20  ;;  %11842 = vmatmul.mubr.f32.vlgmr.msra.gmra.mrb[14].mxu1 %v26645_v20 }
 0x4a1   : > { %v11917_v59 = vsub.f32 %v26640_v36, %v26641_v0  ;;  %v11207_v47 = vand.u32 4294901760, %v11206_v58  ;;  %v11219_v46 = vand.u32 4294901760, %v11218_v37  ;;  %v14544_v40 = vpack.c.bf16 %v11213_v57, %v11201_v17  ;;  %14539 = vmatpush1.bf16.msra.mxu0 %v14538_v53  ;;  %11313 = vmatprep.mubr.f32.mxu0 %v24295_v52 }
 0x4a2   : > { %v11224_v34 = vsub.f32 %v26642_v54, %v26643_v27  ;;  %v11236_v25 = vsub.f32 %v22160_v43, %v26644_v3  ;;  %v11906_v63 = vand.u32 4294901760, %v11905_v10  ;;  %v26646_v44 = vand.u32 4294901760, %v22165_v50  ;;  %14541 = vmatprep.subr.bf16.mxu0 %v14540_v6  ;;  %14659 = vmatpush1.bf16.msra.mxu1 %v14658_v45 }
 0x4a3   : > { %v26647_v33 = vand.u32 4294901760, %v22176_v24  ;;  %v14664_v27 = vpack.c.bf16 %v11912_v28, %v11900_v62  ;;  %v11918_v3 = vand.u32 4294901760, %v11917_v59  ;;  %v26648_v42 = vand.u32 4294901760, %v22181_v19  ;;  %12012 = vmatprep.mubr.f32.mxu1 %v24295_v52  ;;  %14661 = vmatprep.subr.bf16.mxu1 %v14660_v48 }
 0x4a4   : > { %v11923_v9 = vsub.f32 %v22165_v50, %v26646_v44  ;;  %v26649_v58 = vand.u32 4294901760, %v22189_v35  ;;  %v11225_v38 = vand.u32 4294901760, %v11224_v34  ;;  %v11237_v12 = vand.u32 4294901760, %v11236_v25 }
 0x4a5   : > { %v11935_v0 = vsub.f32 %v22176_v24, %v26647_v33  ;;  %v11230_v37 = vsub.f32 %v22181_v19, %v26648_v42  ;;  %v26650_v11 = vand.u32 4294901760, %v22220_v21  ;;  %v26651_v59 = vand.u32 4294901760, %v22225_v14  ;;  %14543 = vmatpush1.bf16.msra.mxu0 %v14542_v26 }
 0x4a6   : > { %v11242_v17 = vsub.f32 %v22189_v35, %v26649_v58  ;;  %v14546_v57 = vpack.c.bf16 %v11219_v46, %v11207_v47  ;;  %v26652_v10 = vand.u32 4294901760, %v22200_v4  ;;  %v26653_v28 = vand.u32 4294901760, %v22205_v13  ;;  %14545 = vmatprep.subr.bf16.mxu0 %v14544_v40  ;;  %14663 = vmatpush1.bf16.msra.mxu1 %v14662_v41 }
 0x4a7   : > { %v11248_v61 = vsub.f32 %v22220_v21, %v26650_v11  ;;  %v11260_v53 = vsub.f32 %v22225_v14, %v26651_v59  ;;  %v11924_v34 = vand.u32 4294901760, %v11923_v9  ;;  %v11936_v25 = vand.u32 4294901760, %v11935_v0  ;;  %14665 = vmatprep.subr.bf16.mxu1 %v14664_v27 }
 0x4a8   : > { %v11929_v62 = vsub.f32 %v22200_v4, %v26652_v10  ;;  %v11941_v6 = vsub.f32 %v22205_v13, %v26653_v28  ;;  %v26654_v20 = vand.u32 4294901760, %v22253_v18  ;;  %v26655_v45 = vand.u32 4294901760, %v22321_v5 }
 0x4a9   : > { %v11231_v46 = vand.u32 4294901760, %v11230_v37  ;;  %v11243_v33 = vand.u32 4294901760, %v11242_v17  ;;  %v26656_v42 = vand.u32 4294901760, %v22346_v1  ;;  %v26657_v11 = vand.u32 4294901760, %v22351_v8  ;;  %14547 = vmatpush1.bf16.msra.mxu0 %v14546_v57 }
 0x4aa   : > { %v11947_v44 = vsub.f32 %v22253_v18, %v26654_v20  ;;  %v11959_v47 = vsub.f32 %v22321_v5, %v26655_v45  ;;  %v14666_v9 = vpack.c.bf16 %v11918_v3, %v11906_v63  ;;  %v14548_v0 = vpack.c.bf16 %v11237_v12, %v11225_v38 }
 0x4ab   : > { %v11254_v58 = vsub.f32 %v22346_v1, %v26656_v42  ;;  %v11266_v48 = vsub.f32 %v22351_v8, %v26657_v11  ;;  %v11249_v59 = vand.u32 4294901760, %v11248_v61  ;;  %v11261_v10 = vand.u32 4294901760, %v11260_v53 }
 0x4ac   : > { %v11930_v28 = vand.u32 4294901760, %v11929_v62  ;;  %v11942_v20 = vand.u32 4294901760, %v11941_v6  ;;  %v26658_v26 = vand.u32 4294901760, %v22364_v2  ;;  %v26659_v17 = vand.u32 4294901760, %v22369_v16  ;;  %14549 = vmatprep.subr.bf16.mxu0 %v14548_v0  ;;  %14667 = vmatpush1.bf16.msra.mxu1 %v14666_v9  ;;  %v26671_v9 = vld [vmem:[#allocation48_spill] sm:$0xff] }
 0x4ad   : > { %v14668_v42 = vpack.c.bf16 %v11936_v25, %v11924_v34  ;;  %v11948_v60 = vand.u32 4294901760, %v11947_v44  ;;  %v11960_v11 = vand.u32 4294901760, %v11959_v47  ;;  %v14550_v40 = vpack.c.bf16 %v11243_v33, %v11231_v46  ;;  %v26662_v44 = vld [vmem:[#allocation104_spill] sm:$0xff] }
 0x4ae   : > { %v11953_v37 = vsub.f32 %v22364_v2, %v26658_v26  ;;  %v11965_v45 = vsub.f32 %v22369_v16, %v26659_v17  ;;  %v11255_v63 = vand.u32 4294901760, %v11254_v58  ;;  %v11267_v3 = vand.u32 4294901760, %v11266_v48  ;;  %v26669_v33 = vld [vmem:[#allocation92_spill] sm:$0xff]  ;;  %v26670_v48 = vld [vmem:[#allocation53_spill] sm:$0xff]  ;;  %v26688_v17 = vld [vmem:[#allocation98_spill] sm:$0xff] }
 0x4af   : > { %v14552_v41 = vpack.c.bf16 %v11261_v10, %v11249_v59  ;;  %v14670_v38 = vpack.c.bf16 %v11942_v20, %v11930_v28  ;;  %14669 = vmatprep.subr.bf16.mxu1 %v14668_v42  ;;  %v14672_v53 = vpack.c.bf16 %v11960_v11, %v11948_v60  ;;  %14551 = vmatpush1.bf16.msra.mxu0 %v14550_v40  ;;  %v26686_v26 = vld [vmem:[#allocation13_spill] sm:$0xff]  ;;  %v26690_v42 = vld [vmem:[#allocation39_spill] sm:$0xff]  ;;  %v26691_v11 = vld [vmem:[#allocation94_spill] sm:$0xff] }
 0x4b0   : > { %v11954_v12 = vand.u32 4294901760, %v11953_v37  ;;  %v11966_v61 = vand.u32 4294901760, %v11965_v45  ;;  %v14554_v62 = vpack.c.bf16 %v11267_v3, %v11255_v63  ;;  %v14556_v27 = vpack.c.bf16 %v21935_v29, %v26546_v49  ;;  %v26660_v29 = vld [vmem:[#allocation6_spill] sm:$0xff]  ;;  %v26661_v49 = vld [vmem:[#allocation109_spill] sm:$0xff]  ;;  %v26689_v45 = vld [vmem:[#allocation64_spill] sm:$0xff] }
 0x4b1   : > { %14553 = vmatprep.subr.bf16.mxu0 %v14552_v41  ;;  %14671 = vmatpush1.bf16.msra.mxu1 %v14670_v38  ;;  %v14676_v57 = vpack.c.bf16 %v26575_v55, %v21951_v51  ;;  %v14558_v34 = vpack.c.bf16 %v21966_v31, %v26582_v23  ;;  %v14560_v60 = vpack.c.bf16 %v26620_v32, %v26618_v15  ;;  %v26663_v51 = vld [vmem:[#allocation76_spill] sm:$0xff]  ;;  %v26664_v55 = vld [vmem:[#allocation42_spill] sm:$0xff]  ;;  %v26665_v31 = vld [vmem:[#allocation101_spill] sm:$0xff] }
 0x4b2   : > { %v14674_v6 = vpack.c.bf16 %v11966_v61, %v11954_v12  ;;  %14673 = vmatprep.subr.bf16.mxu1 %v14672_v53  ;;  %v14678_v25 = vpack.c.bf16 %v26616_v7, %v26611_v30  ;;  %v14680_v47 = vpack.c.bf16 %v26662_v44, %v26661_v49  ;;  %v14562_v46 = vpack.c.bf16 %v26664_v55, %v26663_v51  ;;  %v26666_v32 = vld [vmem:[#allocation88_spill] sm:$0xff]  ;;  %v26667_v30 = vld [vmem:[#allocation105_spill] sm:$0xff]  ;;  %v26668_v7 = vld [vmem:[#allocation15_spill] sm:$0xff] }
 0x4b3   : > { %14555 = vmatpush1.bf16.msra.mxu0 %v14554_v62  ;;  %v14564_v23 = vpack.c.bf16 %v26666_v32, %v26665_v31  ;;  %v14682_v15 = vpack.c.bf16 %v26668_v7, %v26667_v30  ;;  %v14684_v58 = vpack.c.bf16 %v26633_v22, %v26669_v33  ;;  %v14566_v0 = vpack.c.bf16 %v26671_v9, %v26670_v48  ;;  %v26687_v37 = vld [vmem:[#allocation102_spill] sm:$0xff]  ;;  %v26692_v40 = vld [vmem:[#allocation8_spill] sm:$0xff]  ;;  %v26693_v63 = vld [vmem:[#allocation9_spill] sm:$0xff] }
 0x4b4   : > { %14557 = vmatprep.subr.bf16.mxu0 %v14556_v27  ;;  %v14568_v59 = vpack.c.bf16 %v22160_v43, %v26642_v54  ;;  %v14686_v10 = vpack.c.bf16 %v26640_v36, %v22125_v56  ;;  %v14688_v28 = vpack.c.bf16 %v22176_v24, %v22165_v50  ;;  %v14570_v22 = vpack.c.bf16 %v22189_v35, %v22181_v19  ;;  %v26673_v19 = vld [vmem:[#allocation32_spill] sm:$0xff]  ;;  %v26676_v50 = vld [vmem:[#allocation62_spill] sm:$0xff]  ;;  %v26685_v54 = vld [vmem:[#allocation89_spill] sm:$0xff] }
 0x4b5   : > { %14675 = vmatpush1.bf16.msra.mxu1 %v14674_v6  ;;  %v14572_v20 = vpack.c.bf16 %v22225_v14, %v22220_v21  ;;  %v14690_v43 = vpack.c.bf16 %v22205_v13, %v22200_v4  ;;  %v14692_v56 = vpack.c.bf16 %v22321_v5, %v22253_v18  ;;  %v14574_v24 = vpack.c.bf16 %v22351_v8, %v22346_v1  ;;  %v26672_v14 = vld [vmem:[#allocation17_spill] sm:$0xff]  ;;  %v26674_v4 = vld [vmem:[#allocation7_spill] sm:$0xff]  ;;  %v26677_v13 = vld [vmem:[#allocation54_spill] sm:$0xff] }
 0x4b6   : > { %14677 = vmatprep.subr.bf16.mxu1 %v14676_v57  ;;  %11315 = vmatmul.mubr.f32.vlgmr.msra.gmra.mrb[14].mxu0 %v26660_v29  ;;  %v14694_v35 = vpack.c.bf16 %v22369_v16, %v22364_v2  ;;  %v26675_v21 = vld [vmem:[#allocation29_spill] sm:$0xff]  ;;  %v26678_v18 = vld [vmem:[#allocation82_spill] sm:$0xff]  ;;  %v26680_v1 = vld [vmem:[#allocation84_spill] sm:$0xff] }
 0x4b7   : > { %14559 = vmatpush1.bf16.msra.mxu0 %v14558_v34  ;;  %11425 = vmatprep.mubr.f32.mxu0 %v24295_v52  ;;  %v26679_v5 = vld [vmem:[#allocation85_spill] sm:$0xff]  ;;  %v26681_v8 = vld [vmem:[#allocation70_spill] sm:$0xff]  ;;  %v26694_v3 = vld [vmem:[#allocation27_spill] sm:$0xff] }
 0x4b8   : > { %12014 = vmatmul.mubr.f32.vlgmr.msra.gmra.mrb[14].mxu1 %v26660_v29  ;;  %14561 = vmatprep.subr.bf16.mxu0 %v14560_v60  ;;  %v26682_v2 = vld [vmem:[#allocation90_spill] sm:$0xff]  ;;  %v26683_v16 = vld [vmem:[#allocation97_spill] sm:$0xff]  ;;  %v26696_v38 = vld [vmem:[#allocation67_spill] sm:$0xff] }
 0x4b9   : > { %14679 = vmatpush1.bf16.msra.mxu1 %v14678_v25  ;;  %12124 = vmatprep.mubr.f32.mxu1 %v24295_v52  ;;  %v26684_v36 = vld [vmem:[#allocation30_spill] sm:$0xff]  ;;  %v26697_v12 = vld [vmem:[#allocation35_spill] sm:$0xff]  ;;  %v26698_v61 = vld [vmem:[#allocation69_spill] sm:$0xff] }
 0x4ba   : > { %14681 = vmatprep.subr.bf16.mxu1 %v14680_v47  ;;  %v26695_v41 = vld [vmem:[#allocation50_spill] sm:$0xff]  ;;  %v26699_v53 = vld [vmem:[#allocation68_spill] sm:$0xff]  ;;  %v26700_v62 = vld [vmem:[#allocation11_spill] sm:$0xff] }
 0x4bb   : > { %14563 = vmatpush1.bf16.msra.mxu0 %v14562_v46  ;;  %v26701_v27 = vld [vmem:[#allocation46_spill] sm:$0xff]  ;;  %v26702_v6 = vld [vmem:[#allocation51_spill] sm:$0xff]  ;;  %v26703_v57 = vld [vmem:[#allocation65_spill] sm:$0xff] }
 0x4bc   : > { %14565 = vmatprep.subr.bf16.mxu0 %v14564_v23  ;;  %v26704_v34 = vld [vmem:[#allocation25_spill] sm:$0xff]  ;;  %v26705_v60 = vld [vmem:[#allocation63_spill] sm:$0xff]  ;;  %v26707_v51 = vld [vmem:[#allocation16_spill] sm:$0xff] }
 0x4bd   : > { %14683 = vmatpush1.bf16.msra.mxu1 %v14682_v15  ;;  %v26706_v44 = vld [vmem:[#allocation95_spill] sm:$0xff]  ;;  %v26709_v31 = vld [vmem:[#allocation61_spill] sm:$0xff]  ;;  %v26710_v32 = vld [vmem:[#allocation24_spill] sm:$0xff] }
 0x4be   : > { %14685 = vmatprep.subr.bf16.mxu1 %v14684_v58  ;;  %v26708_v46 = vld [vmem:[#allocation83_spill] sm:$0xff]  ;;  %v26711_v23 = vld [vmem:[#allocation74_spill] sm:$0xff]  ;;  %v26712_v30 = vld [vmem:[#allocation93_spill] sm:$0xff] }
 0x4bf   : > { %14567 = vmatpush1.bf16.msra.mxu0 %v14566_v0  ;;  %v26714_v0 = vld [vmem:[#allocation36_spill] sm:$0xff] (!%p12827_p3) }
 0x4c0   : > { %14569 = vmatprep.subr.bf16.mxu0 %v14568_v59  ;;  %12456 = vst [vmem:[%s22903_s15 + $0x8] sm:$0x3f] (!%p12827_p3), %v26714_v0  ;;  %v26715_v59 = vld [vmem:[#allocation38_spill] sm:$0xff] (!%p12827_p3) }
 0x4c1   : > { %14687 = vmatpush1.bf16.msra.mxu1 %v14686_v10  ;;  %12457 = vst [vmem:[%s22903_s15 + $0x10] sm:$0x3f] (!%p12827_p3), %v26715_v59  ;;  %v26716_v10 = vld [vmem:[#allocation19_spill] sm:$0xff] (!%p12827_p3) }
 0x4c2   : > { %14689 = vmatprep.subr.bf16.mxu1 %v14688_v28  ;;  %12458 = vst [vmem:[%s22903_s15 + $0x18] sm:$0x3f] (!%p12827_p3), %v26716_v10  ;;  %v26717_v28 = vld [vmem:[#allocation44_spill] sm:$0xff] (!%p12827_p3) }
 0x4c3   : > { %14571 = vmatpush1.bf16.msra.mxu0 %v14570_v22  ;;  %12459 = vst [vmem:[%s22903_s15 + $0x20] sm:$0x3f] (!%p12827_p3), %v26717_v28  ;;  %v26718_v22 = vld [vmem:[#allocation43_spill] sm:$0xff] (!%p12827_p3) }
 0x4c4   : > { %14573 = vmatprep.subr.bf16.mxu0 %v14572_v20  ;;  %12460 = vst [vmem:[%s22903_s15 + $0x28] sm:$0x3f] (!%p12827_p3), %v26718_v22  ;;  %v26719_v20 = vld [vmem:[#allocation14_spill] sm:$0xff] (!%p12827_p3) }
 0x4c5   : > { %14691 = vmatpush1.bf16.msra.mxu1 %v14690_v43  ;;  %12461 = vst [vmem:[%s22903_s15 + $0x30] sm:$0x3f] (!%p12827_p3), %v26719_v20  ;;  %v26720_v43 = vld [vmem:[#allocation45_spill] sm:$0xff] (!%p12827_p3) }
 0x4c6   : > { %14693 = vmatprep.subr.bf16.mxu1 %v14692_v56  ;;  %12462 = vst [vmem:[%s22903_s15 + $0x38] sm:$0x3f] (!%p12827_p3), %v26720_v43  ;;  %v26721_v56 = vld [vmem:[#allocation59_spill] sm:$0xff] (!%p12827_p3) }
 0x4c7   : > { %14575 = vmatpush1.bf16.msra.mxu0 %v14574_v24  ;;  %12463 = vst [vmem:[%s22903_s15 + $0x40] sm:$0x3f] (!%p12827_p3), %v26721_v56  ;;  %v26722_v24 = vld [vmem:[#allocation75_spill] sm:$0xff] (!%p12827_p3) }
 0x4c8   : > { %14577 = vmatprep.subr.bf16.mxu0 %v26672_v14  ;;  %12464 = vst [vmem:[%s22903_s15 + $0x48] sm:$0x3f] (!%p12827_p3), %v26722_v24 }
 0x4c9   : > { %14695 = vmatpush1.bf16.msra.mxu1 %v14694_v35  ;;  %v26723_v35 = vld [vmem:[#allocation21_spill] sm:$0xff] (!%p12827_p3) }
 0x4ca   : > { %14697 = vmatprep.subr.bf16.mxu1 %v26673_v19  ;;  %11428 = vmatmul.mubr.f32.vlgmr.msra.gmra.mrb[14].mxu0 %v26674_v4  ;;  %12465 = vst [vmem:[%s22903_s15 + $0x50] sm:$0x3f] (!%p12827_p3), %v26723_v35 }
 0x4cb   : > { %14579 = vmatpush1.bf16.msra.mxu0 %v26675_v21  ;;  %11518 = vmatprep.mubr.f32.mxu0 %v24295_v52 }
 0x4cc   : > { %12127 = vmatmul.mubr.f32.vlgmr.msra.gmra.mrb[14].mxu1 %v26674_v4  ;;  %14581 = vmatprep.subr.bf16.mxu0 %v26676_v50  ;;  %v26726_v4 = vld [vmem:[#allocation71_spill] sm:$0xff] (!%p12827_p3) }
 0x4cd   : > { %14699 = vmatpush1.bf16.msra.mxu1 %v26677_v13  ;;  %12217 = vmatprep.mubr.f32.mxu1 %v24295_v52  ;;  %12468 = vst [vmem:[%s22903_s15 + $0x68] sm:$0x3f] (!%p12827_p3), %v26726_v4 }
 0x4ce   : > { %14701 = vmatprep.subr.bf16.mxu1 %v26678_v18 }
 0x4cf   : > { %14583 = vmatpush1.bf16.msra.mxu0 %v26679_v5 }
 0x4d0   : > { %14585 = vmatprep.subr.bf16.mxu0 %v26680_v1 }
 0x4d1   : > { %14703 = vmatpush1.bf16.msra.mxu1 %v26681_v8 }
 0x4d2   : > { %14705 = vmatprep.subr.bf16.mxu1 %v26682_v2 }
 0x4d3   : > { %14587 = vmatpush1.bf16.msra.mxu0 %v26683_v16 }
 0x4d4   : > { %14589 = vmatprep.subr.bf16.mxu0 %v26684_v36 }
 0x4d5   : > { %14707 = vmatpush1.bf16.msra.mxu1 %v26685_v54 }
 0x4d6   : > { %14709 = vmatprep.subr.bf16.mxu1 %v26686_v26  ;;  %v22845_v25 = vpop.f32.mrb[10].mxu0 }
 0x4d7   : > { %14591 = vmatpush1.bf16.msra.mxu0 %v26687_v37  ;;  %v22847_v49 = vpop.f32.mrb[11].mxu0  ;;  %12475 = vst [vmem:[%s22903_s15 + $0xa0] sm:$0x3f] (!%p12827_p3), %v22845_v25 }
 0x4d8   : > { %14593 = vmatprep.subr.bf16.mxu0 %v26688_v17  ;;  %v22850_v47 = vpop.f32.mrb[10].mxu1  ;;  %12476 = vst [vmem:[%s22903_s15 + $0xa8] sm:$0x3f] (!%p12827_p3), %v22847_v49 }
 0x4d9   : > { %14711 = vmatpush1.bf16.msra.mxu1 %v26689_v45  ;;  %v22853_v55 = vpop.f32.mrb[11].mxu1  ;;  %12477 = vst [vmem:[%s22903_s15 + $0xb0] sm:$0x3f] (!%p12827_p3), %v22850_v47 }
 0x4da   : > { %14713 = vmatprep.subr.bf16.mxu1 %v26690_v42  ;;  %12478 = vst [vmem:[%s22903_s15 + $0xb8] sm:$0x3f] (!%p12827_p3), %v22853_v55 }
 0x4db   : > { %14595 = vmatpush1.bf16.msra.mxu0 %v22632_v39 }
 0x4dc   : > { %14597 = vmatprep.subr.bf16.mxu0 %v26691_v11 }
 0x4dd   : > { %14715 = vmatpush1.bf16.msra.mxu1 %v26692_v40 }
 0x4de   : > { %14717 = vmatprep.subr.bf16.mxu1 %v26693_v63  ;;  %11522 = vmatmul.mubr.f32.vlgmr.msra.gmra.mrb[14].mxu0 %v26694_v3 }
 0x4df   : > { %14599 = vmatpush1.bf16.msra.mxu0 %v26695_v41  ;;  %11652 = vmatprep.mubr.f32.mxu0 %v24295_v52 }
 0x4e0   : > { %12221 = vmatmul.mubr.f32.vlgmr.msra.gmra.mrb[14].mxu1 %v26694_v3  ;;  %14601 = vmatprep.subr.bf16.mxu0 %v26696_v38 }
 0x4e1   : > { %14719 = vmatpush1.bf16.msra.mxu1 %v26697_v12  ;;  %12351 = vmatprep.mubr.f32.mxu1 %v24295_v52 }
 0x4e2   : > { %14721 = vmatprep.subr.bf16.mxu1 %v26698_v61 }
 0x4e3   : > { %14603 = vmatpush1.bf16.msra.mxu0 %v26699_v53 }
 0x4e4   : > { %14605 = vmatprep.subr.bf16.mxu0 %v26700_v62 }
 0x4e5   : > { %14723 = vmatpush1.bf16.msra.mxu1 %v26701_v27 }
 0x4e6   : > { %14725 = vmatprep.subr.bf16.mxu1 %v26702_v6 }
 0x4e7   : > { %14607 = vmatpush1.bf16.msra.mxu0 %v26703_v57 }
 0x4e8   : > { %14609 = vmatprep.subr.bf16.mxu0 %v26704_v34 }
 0x4e9   : > { %14727 = vmatpush1.bf16.msra.mxu1 %v26705_v60 }
 0x4ea   : > { %14729 = vmatprep.subr.bf16.mxu1 %v26706_v44 }
 0x4eb   : > { %14611 = vmatpush1.bf16.msra.mxu0 %v26707_v51 }
 0x4ec   : > { %14613 = vmatprep.subr.bf16.mxu0 %v26708_v46 }
 0x4ed   : > { %14731 = vmatpush1.bf16.msra.mxu1 %v26709_v31 }
 0x4ee   : > { %14733 = vmatprep.subr.bf16.mxu1 %v26710_v32 }
 0x4ef   : > { %14615 = vmatpush1.bf16.msra.mxu0 %v26711_v23 }
 0x4f0   : > { %14617 = vmatprep.subr.bf16.mxu0 %v26672_v14  ;;  %v26724_v14 = vld [vmem:[#allocation57_spill] sm:$0xff] (!%p12827_p3) }
 0x4f1   : > { %14735 = vmatpush1.bf16.msra.mxu1 %v26712_v30  ;;  %12466 = vst [vmem:[%s22903_s15 + $0x58] sm:$0x3f] (!%p12827_p3), %v26724_v14 }
 0x4f2   : > { %14737 = vmatprep.subr.bf16.mxu1 %v26673_v19  ;;  %11654 = vmatmul.mubr.f32.vlgmr.msra.gmra.mrb[14].mxu0 %v26660_v29  ;;  %v26725_v19 = vld [vmem:[#allocation86_spill] sm:$0xff] (!%p12827_p3) }
 0x4f3   : > { %14619 = vmatpush1.bf16.msra.mxu0 %v26675_v21  ;;  %11744 = vmatprep.mubr.f32.mxu0 %v24295_v52  ;;  %12467 = vst [vmem:[%s22903_s15 + $0x60] sm:$0x3f] (!%p12827_p3), %v26725_v19  ;;  %v26727_v21 = vld [vmem:[#allocation22_spill] sm:$0xff] (!%p12827_p3) }
 0x4f4   : > { %12353 = vmatmul.mubr.f32.vlgmr.msra.gmra.mrb[14].mxu1 %v26660_v29  ;;  %14621 = vmatprep.subr.bf16.mxu0 %v26676_v50  ;;  %12469 = vst [vmem:[%s22903_s15 + $0x70] sm:$0x3f] (!%p12827_p3), %v26727_v21  ;;  %v26728_v50 = vld [vmem:[#allocation87_spill] sm:$0xff] (!%p12827_p3) }
 0x4f5   : > { %14739 = vmatpush1.bf16.msra.mxu1 %v26677_v13  ;;  %12443 = vmatprep.mubr.f32.mxu1 %v24295_v52  ;;  %12470 = vst [vmem:[%s22903_s15 + $0x78] sm:$0x3f] (!%p12827_p3), %v26728_v50  ;;  %v26729_v13 = vld [vmem:[#allocation10_spill] sm:$0xff] (!%p12827_p3) }
 0x4f6   : > { %14741 = vmatprep.subr.bf16.mxu1 %v26678_v18  ;;  %12471 = vst [vmem:[%s22903_s15 + $0x80] sm:$0x3f] (!%p12827_p3), %v26729_v13  ;;  %v26730_v18 = vld [vmem:[#allocation52_spill] sm:$0xff] (!%p12827_p3) }
 0x4f7   : > { %14623 = vmatpush1.bf16.msra.mxu0 %v26679_v5  ;;  %12472 = vst [vmem:[%s22903_s15 + $0x88] sm:$0x3f] (!%p12827_p3), %v26730_v18  ;;  %v26731_v5 = vld [vmem:[#allocation56_spill] sm:$0xff] (!%p12827_p3) }
 0x4f8   : > { %14625 = vmatprep.subr.bf16.mxu0 %v26680_v1  ;;  %12473 = vst [vmem:[%s22903_s15 + $0x90] sm:$0x3f] (!%p12827_p3), %v26731_v5  ;;  %v26732_v1 = vld [vmem:[#allocation60_spill] sm:$0xff] (!%p12827_p3) }
 0x4f9   : > { %14743 = vmatpush1.bf16.msra.mxu1 %v26681_v8  ;;  %12474 = vst [vmem:[%s22903_s15 + $0x98] sm:$0x3f] (!%p12827_p3), %v26732_v1 }
 0x4fa   : > { %14745 = vmatprep.subr.bf16.mxu1 %v26682_v2 }
 0x4fb   : > { %14627 = vmatpush1.bf16.msra.mxu0 %v26683_v16 }
 0x4fc   : > { %14629 = vmatprep.subr.bf16.mxu0 %v26684_v36 }
 0x4fd   : > { %14747 = vmatpush1.bf16.msra.mxu1 %v26685_v54 }
 0x4fe   : > { %14749 = vmatprep.subr.bf16.mxu1 %v26686_v26 }
 0x4ff   : > { %14631 = vmatpush1.bf16.msra.mxu0 %v26687_v37 }
 0x500   : > { %14633 = vmatprep.subr.bf16.mxu0 %v26688_v17 }
 0x501   : > { %14751 = vmatpush1.bf16.msra.mxu1 %v26689_v45 }
 0x502   : > { %14753 = vmatprep.subr.bf16.mxu1 %v26690_v42 }
 0x503   : > { %14635 = vmatpush1.bf16.msra.mxu0 %v22632_v39 }
 0x505   : > { %14755 = vmatpush1.bf16.msra.mxu1 %v26692_v40 }
 0x506   : > { %11746 = vmatmul.mubr.f32.vlgmr.msra.gmra.mrb[14].mxu0 %v26660_v29 }
 0x508   : > { %12445 = vmatmul.mubr.f32.vlgmr.msra.gmra.mrb[14].mxu1 %v26660_v29  ;;  %v26713_v29 = vld [vmem:[#allocation34_spill] sm:$0xff] (!%p12827_p3) }
 0x509   : > { %12455 = vst [vmem:[%s22903_s15] sm:$0x3f] (!%p12827_p3), %v26713_v29 }
 0x558   : > { %v22886_v52 = vpop.f32.mrb[12].mxu0 }
 0x559   : > { %v22888_v7 = vpop.f32.mrb[13].mxu0  ;;  %12479 = vst [vmem:[%s22903_s15 + $0xc0] sm:$0x3f] (!%p12827_p3), %v22886_v52 }
 0x55a   : > { %v22890_v15 = vpop.f32.mrb[12].mxu1  ;;  %12480 = vst [vmem:[%s22903_s15 + $0xc8] sm:$0x3f] (!%p12827_p3), %v22888_v7 }
 0x55b   : > { %v22892_v33 = vpop.f32.mrb[13].mxu1  ;;  %12481 = vst [vmem:[%s22903_s15 + $0xd0] sm:$0x3f] (!%p12827_p3), %v22890_v15 }
 0x55c   : > { %12482 = vst [vmem:[%s22903_s15 + $0xd8] sm:$0x3f] (!%p12827_p3), %v22892_v33 }
 0x5d6   : > { %12454 = sbr.rel (%p12827_p3) target bundleno = 1502 (0x5de), region = 59 }
 0x5d9   : > { %v22894_v58 = vpop.f32.mrb[14].mxu0 }
 0x5da   : > { %v22896_v48 = vpop.f32.mrb[15].mxu0  ;;  %12483 = vst [vmem:[%s22903_s15 + $0xe0] sm:$0x3f] (!%p12827_p3), %v22894_v58 }
 0x5db   : > { %v22898_v9 = vpop.f32.mrb[14].mxu1  ;;  %12484 = vst [vmem:[%s22903_s15 + $0xe8] sm:$0x3f] (!%p12827_p3), %v22896_v48 }
 0x5dc   : > { %v22900_v39 = vpop.f32.mrb[15].mxu1  ;;  %12485 = vst [vmem:[%s22903_s15 + $0xf0] sm:$0x3f] (!%p12827_p3), %v22898_v9 }
 0x5dd   : > { %12486 = vst [vmem:[%s22903_s15 + $0xf8] sm:$0x3f] %v22900_v39 }
 0x5de PF: > { %p12828_p4 = scmp.le.s32.totalorder %s15103_s17, 0 }
 0x5df   : > { %v12491_v8 = vld [vmem:[%s22903_s15] sm:$0x3f] (!%p12828_p4)  ;;  %v12492_v2 = vld [vmem:[%s22903_s15 + $0x8] sm:$0x3f] (!%p12828_p4)  ;;  %v12493_v16 = vld [vmem:[%s22903_s15 + $0x10] sm:$0x3f] (!%p12828_p4) }
 0x5e0   : > { %12490 = sbr.rel (%p12828_p4) target bundleno = 1530 (0x5fa), region = 63  ;;  %v26733_v36 = vld [vmem:[#allocation34_spill] sm:$0xff] (!%p12828_p4)  ;;  %v26734_v26 = vld [vmem:[#allocation36_spill] sm:$0xff] (!%p12828_p4)  ;;  %v12494_v42 = vld [vmem:[%s22903_s15 + $0x18] sm:$0x3f] (!%p12828_p4) }
 0x5e1   : > { %v12523_v54 = vmax.f32 (!%p12828_p4), %v12491_v8, %v26733_v36  ;;  %v12524_v37 = vmax.f32 (!%p12828_p4), %v12492_v2, %v26734_v26  ;;  %v26735_v17 = vld [vmem:[#allocation38_spill] sm:$0xff] (!%p12828_p4)  ;;  %v12496_v40 = vld [vmem:[%s22903_s15 + $0x28] sm:$0x3f] (!%p12828_p4)  ;;  %v26737_v41 = vld [vmem:[#allocation44_spill] sm:$0xff] (!%p12828_p4) }
 0x5e2   : > { %v12525_v45 = vmax.f32 (!%p12828_p4), %v12493_v16, %v26735_v17  ;;  %v12495_v11 = vld [vmem:[%s22903_s15 + $0x20] sm:$0x3f] (!%p12828_p4)  ;;  %v26736_v63 = vld [vmem:[#allocation19_spill] sm:$0xff] (!%p12828_p4)  ;;  %v12497_v53 = vld [vmem:[%s22903_s15 + $0x30] sm:$0x3f] (!%p12828_p4) }
 0x5e3   : > { %v12526_v3 = vmax.f32 (!%p12828_p4), %v12494_v42, %v26736_v63  ;;  %v12527_v38 = vmax.f32 (!%p12828_p4), %v12495_v11, %v26737_v41  ;;  %v26738_v12 = vld [vmem:[#allocation43_spill] sm:$0xff] (!%p12828_p4)  ;;  %v12498_v62 = vld [vmem:[%s22903_s15 + $0x38] sm:$0x3f] (!%p12828_p4)  ;;  %v12499_v27 = vld [vmem:[%s22903_s15 + $0x40] sm:$0x3f] (!%p12828_p4)  ;;  %12555 = vst [vmem:[%s22903_s15] sm:$0x3f] (!%p12828_p4), %v12523_v54 }
 0x5e4   : > { %v12528_v61 = vmax.f32 (!%p12828_p4), %v12496_v40, %v26738_v12  ;;  %12556 = vst [vmem:[%s22903_s15 + $0x8] sm:$0x3f] (!%p12828_p4), %v12524_v37  ;;  %12557 = vst [vmem:[%s22903_s15 + $0x10] sm:$0x3f] (!%p12828_p4), %v12525_v45  ;;  %v26739_v6 = vld [vmem:[#allocation14_spill] sm:$0xff] (!%p12828_p4)  ;;  %v26740_v34 = vld [vmem:[#allocation45_spill] sm:$0xff] (!%p12828_p4) }
 0x5e5   : > { %v12529_v57 = vmax.f32 (!%p12828_p4), %v12497_v53, %v26739_v6  ;;  %v12530_v60 = vmax.f32 (!%p12828_p4), %v12498_v62, %v26740_v34  ;;  %v26741_v44 = vld [vmem:[#allocation59_spill] sm:$0xff] (!%p12828_p4)  ;;  %v12501_v31 = vld [vmem:[%s22903_s15 + $0x50] sm:$0x3f] (!%p12828_p4)  ;;  %v12502_v32 = vld [vmem:[%s22903_s15 + $0x58] sm:$0x3f] (!%p12828_p4) }
 0x5e6   : > { %v12531_v51 = vmax.f32 (!%p12828_p4), %v12499_v27, %v26741_v44  ;;  %v12500_v46 = vld [vmem:[%s22903_s15 + $0x48] sm:$0x3f] (!%p12828_p4)  ;;  %12558 = vst [vmem:[%s22903_s15 + $0x18] sm:$0x3f] (!%p12828_p4), %v12526_v3  ;;  %12559 = vst [vmem:[%s22903_s15 + $0x20] sm:$0x3f] (!%p12828_p4), %v12527_v38 }
 0x5e7   : > { %12560 = vst [vmem:[%s22903_s15 + $0x28] sm:$0x3f] %v12528_v61  ;;  %v26742_v23 = vld [vmem:[#allocation75_spill] sm:$0xff]  ;;  %v26743_v29 = vld [vmem:[#allocation21_spill] sm:$0xff]  ;;  %v12503_v28 = vld [vmem:[%s22903_s15 + $0x60] sm:$0x3f] }
 0x5e8   : > { %v12532_v30 = vmax.f32 %v12500_v46, %v26742_v23  ;;  %v12533_v0 = vmax.f32 %v12501_v31, %v26743_v29  ;;  %v26744_v59 = vld [vmem:[#allocation57_spill] sm:$0xff]  ;;  %v12504_v22 = vld [vmem:[%s22903_s15 + $0x68] sm:$0x3f]  ;;  %v12505_v20 = vld [vmem:[%s22903_s15 + $0x70] sm:$0x3f] }
 0x5e9   : > { %v12534_v10 = vmax.f32 %v12502_v32, %v26744_v59  ;;  %12561 = vst [vmem:[%s22903_s15 + $0x30] sm:$0x3f] %v12529_v57  ;;  %12562 = vst [vmem:[%s22903_s15 + $0x38] sm:$0x3f] %v12530_v60  ;;  %v26745_v43 = vld [vmem:[#allocation86_spill] sm:$0xff]  ;;  %v26746_v24 = vld [vmem:[#allocation71_spill] sm:$0xff] }
 0x5ea   : > { %12563 = vst [vmem:[%s22903_s15 + $0x40] sm:$0x3f] %v12531_v51  ;;  %v12535_v56 = vmax.f32 %v12503_v28, %v26745_v43  ;;  %v12536_v35 = vmax.f32 %v12504_v22, %v26746_v24  ;;  %v26747_v14 = vld [vmem:[#allocation22_spill] sm:$0xff]  ;;  %v12506_v4 = vld [vmem:[%s22903_s15 + $0x78] sm:$0x3f]  ;;  %v26748_v13 = vld [vmem:[#allocation87_spill] sm:$0xff] }
 0x5eb   : > { %v12537_v19 = vmax.f32 %v12505_v20, %v26747_v14  ;;  %v12507_v21 = vld [vmem:[%s22903_s15 + $0x80] sm:$0x3f]  ;;  %v12508_v50 = vld [vmem:[%s22903_s15 + $0x88] sm:$0x3f]  ;;  %12564 = vst [vmem:[%s22903_s15 + $0x48] sm:$0x3f] %v12532_v30  ;;  %v12538_v18 = vmax.f32 %v12506_v4, %v26748_v13 }
 0x5ec   : > { %12565 = vst [vmem:[%s22903_s15 + $0x50] sm:$0x3f] %v12533_v0  ;;  %12566 = vst [vmem:[%s22903_s15 + $0x58] sm:$0x3f] %v12534_v10  ;;  %v26749_v5 = vld [vmem:[#allocation10_spill] sm:$0xff]  ;;  %v26750_v8 = vld [vmem:[#allocation52_spill] sm:$0xff] }
 0x5ed   : > { %v12539_v1 = vmax.f32 %v12507_v21, %v26749_v5  ;;  %v12540_v2 = vmax.f32 %v12508_v50, %v26750_v8  ;;  %v12509_v16 = vld [vmem:[%s22903_s15 + $0x90] sm:$0x3f]  ;;  %v12510_v36 = vld [vmem:[%s22903_s15 + $0x98] sm:$0x3f]  ;;  %v12511_v54 = vld [vmem:[%s22903_s15 + $0xa0] sm:$0x3f] }
 0x5ee   : > { %12567 = vst [vmem:[%s22903_s15 + $0x60] sm:$0x3f] %v12535_v56  ;;  %12568 = vst [vmem:[%s22903_s15 + $0x68] sm:$0x3f] %v12536_v35  ;;  %v26751_v26 = vld [vmem:[#allocation56_spill] sm:$0xff]  ;;  %v12543_v42 = vmax.f32 %v12511_v54, %v22845_v25 }
 0x5ef   : > { %12569 = vst [vmem:[%s22903_s15 + $0x70] sm:$0x3f] %v12537_v19  ;;  %v12541_v37 = vmax.f32 %v12509_v16, %v26751_v26  ;;  %v26752_v17 = vld [vmem:[#allocation60_spill] sm:$0xff]  ;;  %v12512_v11 = vld [vmem:[%s22903_s15 + $0xa8] sm:$0x3f] }
 0x5f0   : > { %v12542_v45 = vmax.f32 %v12510_v36, %v26752_v17  ;;  %v12513_v40 = vld [vmem:[%s22903_s15 + $0xb0] sm:$0x3f]  ;;  %v12514_v63 = vld [vmem:[%s22903_s15 + $0xb8] sm:$0x3f]  ;;  %12570 = vst [vmem:[%s22903_s15 + $0x78] sm:$0x3f] %v12538_v18  ;;  %v12544_v3 = vmax.f32 %v12512_v11, %v22847_v49 }
 0x5f1   : > { %12571 = vst [vmem:[%s22903_s15 + $0x80] sm:$0x3f] %v12539_v1  ;;  %12572 = vst [vmem:[%s22903_s15 + $0x88] sm:$0x3f] %v12540_v2  ;;  %v12545_v41 = vmax.f32 %v12513_v40, %v22850_v47  ;;  %v12546_v38 = vmax.f32 %v12514_v63, %v22853_v55  ;;  %v12515_v12 = vld [vmem:[%s22903_s15 + $0xc0] sm:$0x3f] }
 0x5f2   : > { %v12516_v25 = vld [vmem:[%s22903_s15 + $0xc8] sm:$0x3f]  ;;  %v12517_v61 = vld [vmem:[%s22903_s15 + $0xd0] sm:$0x3f]  ;;  %12573 = vst [vmem:[%s22903_s15 + $0x90] sm:$0x3f] %v12541_v37  ;;  %v12547_v53 = vmax.f32 %v12515_v12, %v22886_v52 }
 0x5f3   : > { %12574 = vst [vmem:[%s22903_s15 + $0x98] sm:$0x3f] %v12542_v45  ;;  %12575 = vst [vmem:[%s22903_s15 + $0xa0] sm:$0x3f] %v12543_v42  ;;  %v12548_v49 = vmax.f32 %v12516_v25, %v22888_v7  ;;  %v12549_v47 = vmax.f32 %v12517_v61, %v22890_v15  ;;  %v12518_v62 = vld [vmem:[%s22903_s15 + $0xd8] sm:$0x3f] }
 0x5f4   : > { %v12519_v55 = vld [vmem:[%s22903_s15 + $0xe0] sm:$0x3f]  ;;  %v12520_v27 = vld [vmem:[%s22903_s15 + $0xe8] sm:$0x3f]  ;;  %12576 = vst [vmem:[%s22903_s15 + $0xa8] sm:$0x3f] %v12544_v3  ;;  %v12550_v6 = vmax.f32 %v12518_v62, %v22892_v33 }
 0x5f5   : > { %12577 = vst [vmem:[%s22903_s15 + $0xb0] sm:$0x3f] %v12545_v41  ;;  %12578 = vst [vmem:[%s22903_s15 + $0xb8] sm:$0x3f] %v12546_v38  ;;  %v12551_v52 = vmax.f32 %v12519_v55, %v22894_v58  ;;  %v12552_v57 = vmax.f32 %v12520_v27, %v22896_v48  ;;  %v12521_v7 = vld [vmem:[%s22903_s15 + $0xf0] sm:$0x3f] }
 0x5f6   : > { %v12522_v34 = vld [vmem:[%s22903_s15 + $0xf8] sm:$0x3f]  ;;  %12579 = vst [vmem:[%s22903_s15 + $0xc0] sm:$0x3f] %v12547_v53  ;;  %12580 = vst [vmem:[%s22903_s15 + $0xc8] sm:$0x3f] %v12548_v49  ;;  %v12553_v15 = vmax.f32 %v12521_v7, %v22898_v9 }
 0x5f7   : > { %12581 = vst [vmem:[%s22903_s15 + $0xd0] sm:$0x3f] %v12549_v47  ;;  %v12554_v60 = vmax.f32 %v12522_v34, %v22900_v39  ;;  %12582 = vst [vmem:[%s22903_s15 + $0xd8] sm:$0x3f] %v12550_v6 }
 0x5f8   : > { %12583 = vst [vmem:[%s22903_s15 + $0xe0] sm:$0x3f] %v12551_v52  ;;  %12584 = vst [vmem:[%s22903_s15 + $0xe8] sm:$0x3f] %v12552_v57 }
 0x5f9   : > { %12585 = vst [vmem:[%s22903_s15 + $0xf0] sm:$0x3f] %v12553_v15  ;;  %12586 = vst [vmem:[%s22903_s15 + $0xf8] sm:$0x3f] %v12554_v60 }
 0x5fa PF: > { %p12829_p5 = scmp.ne.s32.totalorder %s15103_s17, 3 }
 0x5fb   : > { %v12623_v33 = vld [vmem:[%s23233_s2] sm:$0x3f] (!%p12829_p5)  ;;  %v15122_v58 = vmov (!%p12829_p5), 0   ;;  %v12597_v31 = vld [vmem:[%s22903_s15 + $0x30] sm:$0x3f] (!%p12829_p5) }
 0x5fc   : > { %12590 = sbr.rel (%p12829_p5) target bundleno = 1688 (0x698), region = 67  ;;  %15008 = vset.pattern.permute.xlu0 (!%p12829_p5), %v15122_v58  ;;  %v12598_v32 = vld [vmem:[%s22903_s15 + $0x38] sm:$0x3f] (!%p12829_p5)  ;;  %v12599_v23 = vld [vmem:[%s22903_s15 + $0x40] sm:$0x3f] (!%p12829_p5) }
 0x5fd   : > { %12626 = vperm.xlu0 (!%p12829_p5), %15008, %v12623_v33   ;;  %v12591_v48 = vld [vmem:[%s22903_s15] sm:$0x3f] (!%p12829_p5)  ;;  %v12600_v30 = vld [vmem:[%s22903_s15 + $0x48] sm:$0x3f] (!%p12829_p5)  ;;  %v12601_v29 = vld [vmem:[%s22903_s15 + $0x50] sm:$0x3f] (!%p12829_p5) }
 0x5fe   : > { %v12592_v9 = vld [vmem:[%s22903_s15 + $0x8] sm:$0x3f] (!%p12829_p5)  ;;  %v12593_v39 = vld [vmem:[%s22903_s15 + $0x10] sm:$0x3f] (!%p12829_p5)  ;;  %v12602_v0 = vld [vmem:[%s22903_s15 + $0x58] sm:$0x3f] (!%p12829_p5) }
 0x5ff   : > { %v12603_v59 = vld [vmem:[%s22903_s15 + $0x60] sm:$0x3f] (!%p12829_p5)  ;;  %v12604_v10 = vld [vmem:[%s22903_s15 + $0x68] sm:$0x3f] (!%p12829_p5)  ;;  %v12605_v22 = vld [vmem:[%s22903_s15 + $0x70] sm:$0x3f] (!%p12829_p5) }
 0x600   : > { %v12594_v44 = vld [vmem:[%s22903_s15 + $0x18] sm:$0x3f] (!%p12829_p5)  ;;  %v12595_v51 = vld [vmem:[%s22903_s15 + $0x20] sm:$0x3f] (!%p12829_p5)  ;;  %v12608_v56 = vld [vmem:[%s22903_s15 + $0x88] sm:$0x3f] (!%p12829_p5) }
 0x601   : > { %v12596_v46 = vld [vmem:[%s22903_s15 + $0x28] sm:$0x3f] (!%p12829_p5)  ;;  %v12606_v20 = vld [vmem:[%s22903_s15 + $0x78] sm:$0x3f] (!%p12829_p5)  ;;  %v12607_v43 = vld [vmem:[%s22903_s15 + $0x80] sm:$0x3f] (!%p12829_p5) }
 0x602   : > { %v12609_v24 = vld [vmem:[%s22903_s15 + $0x90] sm:$0x3f] (!%p12829_p5)  ;;  %v12610_v35 = vld [vmem:[%s22903_s15 + $0x98] sm:$0x3f] (!%p12829_p5)  ;;  %v12611_v50 = vld [vmem:[%s22903_s15 + $0xa0] sm:$0x3f] (!%p12829_p5) }
 0x603   : > { %v12612_v13 = vld [vmem:[%s22903_s15 + $0xa8] sm:$0x3f]  ;;  %v12613_v18 = vld [vmem:[%s22903_s15 + $0xb0] sm:$0x3f]  ;;  %v12614_v16 = vld [vmem:[%s22903_s15 + $0xb8] sm:$0x3f] }
 0x604   : > { %v12615_v36 = vld [vmem:[%s22903_s15 + $0xc0] sm:$0x3f]  ;;  %v12616_v54 = vld [vmem:[%s22903_s15 + $0xc8] sm:$0x3f]  ;;  %v12617_v42 = vld [vmem:[%s22903_s15 + $0xd0] sm:$0x3f] }
 0x605   : > { %v12618_v11 = vld [vmem:[%s22903_s15 + $0xd8] sm:$0x3f]  ;;  %v12619_v40 = vld [vmem:[%s22903_s15 + $0xe0] sm:$0x3f]  ;;  %v12620_v12 = vld [vmem:[%s22903_s15 + $0xe8] sm:$0x3f] }
 0x606   : > { %v12621_v25 = vld [vmem:[%s22903_s15 + $0xf0] sm:$0x3f]  ;;  %v12622_v61 = vld [vmem:[%s22903_s15 + $0xf8] sm:$0x3f] }
 0x67c   : > { %v12627_v28 = vpop.permute.xlu0 %12626 }
 0x67d   : > { %v12629_v14 = vadd.f32 %v12627_v28, %v12591_v48  ;;  %v12630_v19 = vadd.f32 %v12627_v28, %v12592_v9  ;;  %v12631_v4 = vadd.f32 %v12627_v28, %v12593_v39  ;;  %v12632_v21 = vadd.f32 %v12627_v28, %v12594_v44 }
 0x67e   : > { %v12633_v5 = vadd.f32 %v12627_v28, %v12595_v51  ;;  %v12634_v1 = vadd.f32 %v12627_v28, %v12596_v46  ;;  %v12635_v8 = vadd.f32 %v12627_v28, %v12597_v31  ;;  %v12636_v2 = vadd.f32 %v12627_v28, %v12598_v32 }
 0x67f   : > { %v12637_v26 = vadd.f32 %v12627_v28, %v12599_v23  ;;  %v12638_v37 = vadd.f32 %v12627_v28, %v12600_v30  ;;  %v12639_v17 = vadd.f32 %v12627_v28, %v12601_v29  ;;  %v12640_v45 = vadd.f32 %v12627_v28, %v12602_v0 }
 0x680   : > { %v12641_v63 = vadd.f32 %v12627_v28, %v12603_v59  ;;  %v12642_v3 = vadd.f32 %v12627_v28, %v12604_v10  ;;  %v12643_v41 = vadd.f32 %v12627_v28, %v12605_v22  ;;  %v12644_v38 = vadd.f32 %v12627_v28, %v12606_v20 }
 0x681   : > { %v12645_v53 = vadd.f32 %v12627_v28, %v12607_v43  ;;  %v12646_v49 = vadd.f32 %v12627_v28, %v12608_v56  ;;  %v12647_v47 = vadd.f32 %v12627_v28, %v12609_v24  ;;  %v12648_v62 = vadd.f32 %v12627_v28, %v12610_v35 }
 0x682   : > { %v23103_v55 = vadd.f32 %v12627_v28, %v12611_v50  ;;  %v23105_v27 = vadd.f32 %v12627_v28, %v12612_v13  ;;  %v23107_v6 = vadd.f32 %v12627_v28, %v12613_v18  ;;  %v23109_v52 = vadd.f32 %v12627_v28, %v12614_v16 }
 0x683   : > { %v23111_v57 = vadd.f32 %v12627_v28, %v12615_v36  ;;  %v23113_v7 = vadd.f32 %v12627_v28, %v12616_v54  ;;  %v23115_v34 = vadd.f32 %v12627_v28, %v12617_v42  ;;  %v23117_v15 = vadd.f32 %v12627_v28, %v12618_v11 }
 0x684   : > { %v23119_v60 = vadd.f32 %v12627_v28, %v12619_v40  ;;  %v23121_v33 = vadd.f32 %v12627_v28, %v12620_v12  ;;  %v23123_v58 = vadd.f32 %v12627_v28, %v12621_v25  ;;  %v23125_v48 = vadd.f32 %v12627_v28, %v12622_v61 }
 0x685   : > { %v12661_v9 = vmax.f32 %v12629_v14, 0.0  ;;  %v12662_v39 = vmax.f32 %v12630_v19, 0.0  ;;  %v12663_v44 = vmax.f32 %v12631_v4, 0.0  ;;  %v12664_v51 = vmax.f32 %v12632_v21, 0.0 }
 0x686   : > { %v12665_v46 = vmax.f32 %v12633_v5, 0.0  ;;  %v12666_v31 = vmax.f32 %v12634_v1, 0.0  ;;  %v12667_v32 = vmax.f32 %v12635_v8, 0.0  ;;  %v12668_v23 = vmax.f32 %v12636_v2, 0.0 }
 0x687   : > { %v12669_v30 = vmax.f32 %v12637_v26, 0.0  ;;  %v12670_v29 = vmax.f32 %v12638_v37, 0.0  ;;  %v12671_v0 = vmax.f32 %v12639_v17, 0.0  ;;  %v12672_v59 = vmax.f32 %v12640_v45, 0.0  ;;  %12693 = vst [vmem:[%s22903_s15] sm:$0x3f] %v12661_v9 }
 0x688   : > { %12694 = vst [vmem:[%s22903_s15 + $0x8] sm:$0x3f] %v12662_v39  ;;  %12695 = vst [vmem:[%s22903_s15 + $0x10] sm:$0x3f] %v12663_v44  ;;  %v12673_v10 = vmax.f32 %v12641_v63, 0.0  ;;  %v12674_v28 = vmax.f32 %v12642_v3, 0.0 }
 0x689   : > { %12696 = vst [vmem:[%s22903_s15 + $0x18] sm:$0x3f] %v12664_v51  ;;  %v12675_v22 = vmax.f32 %v12643_v41, 0.0  ;;  %v12676_v20 = vmax.f32 %v12644_v38, 0.0  ;;  %12697 = vst [vmem:[%s22903_s15 + $0x20] sm:$0x3f] %v12665_v46 }
 0x68a   : > { %12698 = vst [vmem:[%s22903_s15 + $0x28] sm:$0x3f] %v12666_v31  ;;  %12699 = vst [vmem:[%s22903_s15 + $0x30] sm:$0x3f] %v12667_v32  ;;  %v12677_v43 = vmax.f32 %v12645_v53, 0.0  ;;  %v12678_v56 = vmax.f32 %v12646_v49, 0.0 }
 0x68b   : > { %12700 = vst [vmem:[%s22903_s15 + $0x38] sm:$0x3f] %v12668_v23  ;;  %v12679_v24 = vmax.f32 %v12647_v47, 0.0  ;;  %v12680_v35 = vmax.f32 %v12648_v62, 0.0  ;;  %12701 = vst [vmem:[%s22903_s15 + $0x40] sm:$0x3f] %v12669_v30 }
 0x68c   : > { %12702 = vst [vmem:[%s22903_s15 + $0x48] sm:$0x3f] %v12670_v29  ;;  %12703 = vst [vmem:[%s22903_s15 + $0x50] sm:$0x3f] %v12671_v0  ;;  %v12681_v14 = vmax.f32 %v23103_v55, 0.0  ;;  %v12682_v19 = vmax.f32 %v23105_v27, 0.0 }
 0x68d   : > { %12704 = vst [vmem:[%s22903_s15 + $0x58] sm:$0x3f] %v12672_v59  ;;  %v12683_v4 = vmax.f32 %v23107_v6, 0.0  ;;  %v12684_v21 = vmax.f32 %v23109_v52, 0.0  ;;  %12705 = vst [vmem:[%s22903_s15 + $0x60] sm:$0x3f] %v12673_v10 }
 0x68e   : > { %12706 = vst [vmem:[%s22903_s15 + $0x68] sm:$0x3f] %v12674_v28  ;;  %12707 = vst [vmem:[%s22903_s15 + $0x70] sm:$0x3f] %v12675_v22  ;;  %v12685_v50 = vmax.f32 %v23111_v57, 0.0  ;;  %v12686_v13 = vmax.f32 %v23113_v7, 0.0 }
 0x68f   : > { %12708 = vst [vmem:[%s22903_s15 + $0x78] sm:$0x3f] %v12676_v20  ;;  %v12687_v18 = vmax.f32 %v23115_v34, 0.0  ;;  %v12688_v5 = vmax.f32 %v23117_v15, 0.0  ;;  %12709 = vst [vmem:[%s22903_s15 + $0x80] sm:$0x3f] %v12677_v43 }
 0x690   : > { %12710 = vst [vmem:[%s22903_s15 + $0x88] sm:$0x3f] %v12678_v56  ;;  %12711 = vst [vmem:[%s22903_s15 + $0x90] sm:$0x3f] %v12679_v24  ;;  %v12689_v1 = vmax.f32 %v23119_v60, 0.0  ;;  %v12690_v8 = vmax.f32 %v23121_v33, 0.0 }
 0x691   : > { %12712 = vst [vmem:[%s22903_s15 + $0x98] sm:$0x3f] %v12680_v35  ;;  %v12691_v2 = vmax.f32 %v23123_v58, 0.0  ;;  %v12692_v16 = vmax.f32 %v23125_v48, 0.0  ;;  %12713 = vst [vmem:[%s22903_s15 + $0xa0] sm:$0x3f] %v12681_v14 }
 0x692   : > { %12714 = vst [vmem:[%s22903_s15 + $0xa8] sm:$0x3f] %v12682_v19  ;;  %12715 = vst [vmem:[%s22903_s15 + $0xb0] sm:$0x3f] %v12683_v4 }
 0x693   : > { %12716 = vst [vmem:[%s22903_s15 + $0xb8] sm:$0x3f] %v12684_v21  ;;  %12717 = vst [vmem:[%s22903_s15 + $0xc0] sm:$0x3f] %v12685_v50 }
 0x694   : > { %12718 = vst [vmem:[%s22903_s15 + $0xc8] sm:$0x3f] %v12686_v13  ;;  %12719 = vst [vmem:[%s22903_s15 + $0xd0] sm:$0x3f] %v12687_v18 }
 0x695   : > { %12720 = vst [vmem:[%s22903_s15 + $0xd8] sm:$0x3f] %v12688_v5  ;;  %12721 = vst [vmem:[%s22903_s15 + $0xe0] sm:$0x3f] %v12689_v1 }
 0x696   : > { %12722 = vst [vmem:[%s22903_s15 + $0xe8] sm:$0x3f] %v12690_v8  ;;  %12723 = vst [vmem:[%s22903_s15 + $0xf0] sm:$0x3f] %v12691_v2 }
 0x697   : > { %12724 = vst [vmem:[%s22903_s15 + $0xf8] sm:$0x3f] %v12692_v16 }
 0x698 PF: > { %s12835_s17 = sshll.u32 %s15107_s18, 12  ;;  %s12740_s10 = sshll.u32 %s22903_s15, 4  ;;  %s12741_s10 = int_to_ptr.vmem [resolvable:$true] %s12740_s10 }
 0x699   : > { %s23175_s5 = scalar_lea.hbm %s23234_s3, %s12835_s17  ;;  %s12726_s11 = scalar_lea.sflag [#allocation4], %s840_s9 }
 0x69a   : > { %s15009_s22 = scalar_lea.vmem %s12741_s10, 4096  ;;  %s15123_s23 = smov [#allocation3]  }
 0x69b   : > { %p15010_p6 = scmp.ne.s32.totalorder %s12741_s10, %s15009_s22  ;;  %s15013_s27 = sshll.u32 %s15123_s23, 4  ;;  %s15014_s27 = int_to_ptr.vmem [resolvable:$false] %s15013_s27 }
 0x69c   : > { %s15015_s4 = scalar_lea.vmem %s15014_s27, 8192  ;;  %p15016_p10 = scmp.lt.s32.totalorder %s12741_s10, %s15014_s27 }
 0x69d   : > { %p15011_p8 = pnand %p15010_p6, %p15216_p7  ;;  %p15017_p11 = scmp.lt.s32.totalorder %s15015_s4, %s15009_s22 }
 0x69f   : > { %p15012_p9 = pneg %p15011_p8  ;;  %p15018_p13 = por %p15017_p11, %p15016_p10 }
 0x6a1   : > { %p15019_p0 = pnand %p15018_p13, %p15012_p9 }
 0x6a3   : > { %15022 = shalt.err (!%p15019_p0)
}
 0x6a4   : > { %s15023_s18 = scalar_lea.hbm %s23175_s5, 4096  ;;  %s15027_s29 = scalar_lea.hbm %s23234_s3, 24576 }
 0x6a5   : > { %p15024_p1 = scmp.ne.s32.totalorder %s23175_s5, %s15023_s18  ;;  %p15028_p4 = scmp.lt.u32.totalorder %s23175_s5, %s23234_s3 }
 0x6a6   : > { %p15029_p5 = scmp.lt.u32.totalorder %s15027_s29, %s15023_s18  ;;  %p15031_p8 = scmp.lt.u32.totalorder %s15023_s18, %s23175_s5 }
 0x6a7   : > { %p15025_p2 = pnand %p15024_p1, %p15216_p7 }
 0x6a8   : > { %p15030_p6 = por %p15029_p5, %p15028_p4 }
 0x6a9   : > { %p15026_p3 = pneg %p15025_p2 }
 0x6aa   : > { %p15032_p9 = por %p15031_p8, %p15030_p6 }
 0x6ac   : > { %p15033_p10 = pnand %p15032_p9, %p15026_p3 }
 0x6ae   : > { %15036 = shalt.err (!%p15033_p10)
}
 0x6af   : > { %14919 = dma.vmem_to_hbm [thread:$0]  (%p15216_p7), %s12741_s10, 4096, %s23175_s5, %s12726_s11  }
 0x6b0 PF: > { %p14925_p11 = scmp.ge.s32.totalorder %s15119_s21, 2  ;;  %s12752_s28 = sand.u32 1, %s15083_s12  }
 0x6b1   : > { %s12753_s22 = scalar_lea.sflag [#allocation4], %s12752_s28 }
 0x6b2   : > { %p14922_p13 = pnand %p14925_p11, %p15224_p12 }
 0x6b4   : > { %15078 = dma.done.wait (!%p14922_p13), %s12753_s22, 4096  }
 0x6b5   : > { %15080 = vsyncadd (!%p14922_p13), %s12753_s22, 4294963200  ;;  %s16_s21 = sadd.s32 1, %s15119_s21   ;;  %s26753_s12 = smov %s15087_s13 }
 0x6b6   : > { %p13_p0 = scmp.ge.s32.totalorder %s16_s21, 26   ;;  %s26754_s13 = smov %s15091_s14 }
 0x6b7   : > { %s26755_s14 = smov %s15229_s7  ;;  %s26756_s15 = smov %s15099_s16 }
 0x6b8   : > { %s26757_s16 = smov %s15232_s8  ;;  %s26758_s17 = smov %s15111_s19 }
 0x6b9   : > { %s26759_s18 = smov %s15115_s20  ;;  %s26760_s19 = smov %s26763_s24 }
 0x6ba   : > { %s26761_s20 = smov %s26767_s25  ;;  %15 = sbr.rel (!%p13_p0) target bundleno = 6 (0x6), region = 107 }
 0x6c1   :  { %12758 = vsyncpa [#allocation4], 1 }
 0x6c2   :  { %12760 = vsyncpa [#allocation4 + $0x1], 1 }

</bundles_post_ra>
